<compile_context>
chip_gen: v7x
topology: tpu7x:2x2x1
jax: 0.10.0
libtpu: 0.0.40
codegen_flags: <defaults>
</compile_context>

<pallas_src>
import functools

import jax
import jax.numpy as jnp
from jax.experimental import pallas as pl
from jax.experimental.pallas import tpu as pltpu


_VMEM_LIMIT = 32 * 1024 * 1024  # safe on v5e / v6e (128 MiB) and v7x (64 MiB)


def _round_up(x, m):
    return ((x + m - 1) // m) * m


# ----------------------------- Pallas kernels ------------------------------
def _conv1_kernel(x_ref, w_ref, b_ref, o_ref, *, width):
    """2x2 stride-1 conv on a flat (rows, C_in) raster of line-width `width`.

    x_ref: (block_rows, 64) bf16   w_ref: (4, 64, 32) bf16   b_ref: (1, 32) f32
    Output row r corresponds to raster position r; only positions with
    h < width-1 and w < width-1 are valid (others are garbage, never read).
    """
    rows = x_ref.shape[0]
    m = rows - (width + 1)                       # max shift = 1*width + 1
    offs = (0, 1, width, width + 1)              # (p, q) in row-major order
    acc = None
    for idx, off in enumerate(offs):
        part = jnp.dot(x_ref[off:off + m, :], w_ref[idx],
                       preferred_element_type=jnp.float32)
        acc = part if acc is None else acc + part
    acc = jnp.maximum(acc + b_ref[...], 0.0)
    o_ref[0:m, :] = acc.astype(o_ref.dtype)


def _conv23_kernel(z_ref, w2_ref, b2_ref, w3_ref, b3_ref, o_ref, *, width):
    """Fused conv2' (2x2 s1, C_in=128) + conv3 (3x3 s1) on a width-`width` raster.

    z_ref: (block_rows, 128) bf16
    w2_ref: (4, 128, 64) bf16,  w3_ref: (9, 64, 64) bf16, biases (1, 64) f32.
    """
    rows = z_ref.shape[0]
    # ---- conv2' ----
    m1 = rows - (width + 1)
    offs2 = (0, 1, width, width + 1)
    acc2 = None
    for idx, off in enumerate(offs2):
        part = jnp.dot(z_ref[off:off + m1, :], w2_ref[idx],
                       preferred_element_type=jnp.float32)
        acc2 = part if acc2 is None else acc2 + part
    y2 = jnp.maximum(acc2 + b2_ref[...], 0.0).astype(jnp.bfloat16)  # stays in VMEM
    # ---- conv3 ----
    m2 = rows - (3 * width + 3)                  # reads up to off 2*width+2 into y2
    offs3 = tuple(i * width + j for i in range(3) for j in range(3))
    acc3 = None
    for idx, off in enumerate(offs3):
        part = jnp.dot(y2[off:off + m2, :], w3_ref[idx],
                       preferred_element_type=jnp.float32)
        acc3 = part if acc3 is None else acc3 + part
    acc3 = jnp.maximum(acc3 + b3_ref[...], 0.0)
    o_ref[0:m2, :] = acc3.astype(o_ref.dtype)


def _mlp_head_kernel(x_ref, w1_ref, b1_ref, w2_ref, b2_ref, o_ref):
    """Fused: relu(x @ W1 + b1) @ W2 + b2 (actor & critic concatenated in W2)."""
    h = jnp.dot(x_ref[...], w1_ref[...], preferred_element_type=jnp.float32)
    h = jnp.maximum(h + b1_ref[...], 0.0).astype(jnp.bfloat16)
    o_ref[...] = (
        jnp.dot(h, w2_ref[...], preferred_element_type=jnp.float32) + b2_ref[...]
    )


# ------------------------------ kernel wrappers -----------------------------
def _conv_call(kernel, x_flat, weights, batch, rows_per_sample, width, c_out,
               max_bt):
    """Shared pallas_call plumbing for the raster conv kernels."""
    rows = x_flat.shape[0]
    bt = batch if batch <= max_bt else max_bt       # max_bt is a multiple of 8
    block_rows = bt * rows_per_sample               # sample-aligned blocks
    grid = (pl.cdiv(batch, bt),)

    in_specs = [pl.BlockSpec((block_rows, x_flat.shape[1]), lambda i: (i, 0))]
    args = [x_flat]
    for w in weights:
        if w.ndim == 3:
            in_specs.append(pl.BlockSpec(w.shape, lambda i: (0, 0, 0)))
        else:
            in_specs.append(pl.BlockSpec(w.shape, lambda i: (0, 0)))
        args.append(w)

    return pl.pallas_call(
        functools.partial(kernel, width=width),
        out_shape=jax.ShapeDtypeStruct((rows, c_out), jnp.bfloat16),
        grid=grid,
        in_specs=in_specs,
        out_specs=pl.BlockSpec((block_rows, c_out), lambda i: (i, 0)),
        compiler_params=pltpu.CompilerParams(
            dimension_semantics=("parallel",),
            vmem_limit_bytes=_VMEM_LIMIT,
        ),
    )(*args)


def conv1_pallas(x_flat, w1, b1, batch):
    # x_flat: (B*441, 64) bf16 -> (B*441, 32) bf16 raster (width 21, valid 20x20)
    return _conv_call(_conv1_kernel, x_flat, (w1, b1), batch,
                      rows_per_sample=21 * 21, width=21, c_out=32, max_bt=16)


def conv23_pallas(z_flat, w2, b2, w3, b3, batch):
    # z_flat: (B*100, 128) bf16 -> (B*100, 64) bf16 raster (width 10, valid 7x7)
    return _conv_call(_conv23_kernel, z_flat, (w2, b2, w3, b3), batch,
                      rows_per_sample=10 * 10, width=10, c_out=64, max_bt=32)


def mlp_head_pallas(x, w1, b1, w2, b2, *, tm_cap=512):
    """out = relu(x @ w1 + b1) @ w2 + b2 in one kernel.  x:(M,3200) bf16."""
    M, K = x.shape
    H = w1.shape[1]
    N = w2.shape[1]
    tm = tm_cap if M >= tm_cap else M
    grid = (pl.cdiv(M, tm),)
    return pl.pallas_call(
        _mlp_head_kernel,
        out_shape=jax.ShapeDtypeStruct((M, N), jnp.float32),
        grid=grid,
        in_specs=[
            pl.BlockSpec((tm, K), lambda i: (i, 0)),
            pl.BlockSpec((K, H), lambda i: (0, 0)),   # 3200x512 weight resident
            pl.BlockSpec((1, H), lambda i: (0, 0)),
            pl.BlockSpec((H, N), lambda i: (0, 0)),   # fused actor+critic weight
            pl.BlockSpec((1, N), lambda i: (0, 0)),
        ],
        out_specs=pl.BlockSpec((tm, N), lambda i: (i, 0)),
        compiler_params=pltpu.CompilerParams(
            dimension_semantics=("parallel",),
            vmem_limit_bytes=_VMEM_LIMIT,
        ),
    )(x, w1, b1, w2, b2)


# ------------------------------ parameters ---------------------------------
def _orthogonal(key, shape, scale):
    return jax.nn.initializers.orthogonal(scale=scale)(key, shape, jnp.float32)


def init_agent_params(key, num_actions):
    """Parameters in PyTorch layout (used by the reference)."""
    ks = jax.random.split(key, 6)
    s2 = float(jnp.sqrt(2.0))
    p = {}
    p["conv1_w"] = _orthogonal(ks[0], (32, 4 * 8 * 8), s2).reshape(32, 4, 8, 8)
    p["conv1_b"] = jnp.zeros((32,), jnp.float32)
    p["conv2_w"] = _orthogonal(ks[1], (64, 32 * 4 * 4), s2).reshape(64, 32, 4, 4)
    p["conv2_b"] = jnp.zeros((64,), jnp.float32)
    p["conv3_w"] = _orthogonal(ks[2], (64, 64 * 3 * 3), s2).reshape(64, 64, 3, 3)
    p["conv3_b"] = jnp.zeros((64,), jnp.float32)
    p["fc_w"] = _orthogonal(ks[3], (512, 64 * 7 * 7), s2)          # (out, in)
    p["fc_b"] = jnp.zeros((512,), jnp.float32)
    p["actor_w"] = _orthogonal(ks[4], (num_actions, 512), 0.01)    # (out, in)
    p["actor_b"] = jnp.zeros((num_actions,), jnp.float32)
    p["critic_w"] = _orthogonal(ks[5], (1, 512), 1.0)              # (out, in)
    p["critic_b"] = jnp.zeros((1,), jnp.float32)
    return p


def prepare_params(p):
    """One-time conversion to the kernel-ready layout (bf16, s2d / raster order)."""
    prep = {}
    # conv1: 8x8 s4 -> after s2d(4) of the input it is 2x2 s1 with C_in=64.
    # s2d input channel order is (c, u, v); 1/255 is folded into the weight.
    w1 = (p["conv1_w"] / 255.0).reshape(32, 4, 2, 4, 2, 4)      # (o, c, p, u, q, v)
    w1 = w1.transpose(2, 4, 1, 3, 5, 0).reshape(4, 64, 32)      # (pq, cuv, o)
    prep["c1_w"] = w1.astype(jnp.bfloat16)
    prep["c1_b"] = p["conv1_b"].reshape(1, 32).astype(jnp.float32)

    # conv2: 4x4 s2 -> after s2d(2) of conv1's output it is 2x2 s1 with C_in=128.
    # s2d channel order is (u, v, c1).
    w2 = p["conv2_w"].reshape(64, 32, 2, 2, 2, 2)               # (o, c, p, u, q, v)
    w2 = w2.transpose(2, 4, 3, 5, 1, 0).reshape(4, 128, 64)     # (pq, uvc, o)
    prep["c2_w"] = w2.astype(jnp.bfloat16)
    prep["c2_b"] = p["conv2_b"].reshape(1, 64).astype(jnp.float32)

    # conv3: 3x3 s1, kernel-position major, channels innermost.
    w3 = p["conv3_w"].transpose(2, 3, 1, 0).reshape(9, 64, 64)  # (ij, c, o)
    prep["c3_w"] = w3.astype(jnp.bfloat16)
    prep["c3_b"] = p["conv3_b"].reshape(1, 64).astype(jnp.float32)

    # FC: PyTorch flatten order is (C, H, W); ours is (H, W, C).  Pad K 3136 -> 3200
    # (zero rows) so row loads in the head kernel are lane-dense.
    fc = p["fc_w"].reshape(512, 64, 7, 7).transpose(0, 2, 3, 1).reshape(512, 3136)
    fc = jnp.pad(fc.T, ((0, 64), (0, 0)))                        # (3200, 512)
    prep["fc_w"] = fc.astype(jnp.bfloat16)
    prep["fc_b"] = p["fc_b"].reshape(1, 512).astype(jnp.float32)

    # Fused actor+critic head: (512, A+1) padded to lane-dense (512, 128).
    A = p["actor_w"].shape[0]
    head_w = jnp.concatenate([p["actor_w"].T, p["critic_w"].T], axis=1)  # (512, A+1)
    head_b = jnp.concatenate([p["actor_b"], p["critic_b"]])              # (A+1,)
    Np = _round_up(A + 1, 128)
    prep["head_w"] = jnp.pad(head_w, ((0, 0), (0, Np - (A + 1)))).astype(jnp.bfloat16)
    prep["head_b"] = jnp.pad(head_b, (0, Np - (A + 1))).reshape(1, Np).astype(jnp.float32)
    return prep


# ------------------------------- forward -----------------------------------
def agent_forward(prep, x, *, num_actions):
    """x: (B, 4, 84, 84) NCHW, values in [0, 255]. Returns (logits, value)."""
    B = x.shape[0]

    # Space-to-depth by 4 (folds the NCHW->NHWC transpose + bf16 cast): one XLA pass.
    z = x.astype(jnp.bfloat16).reshape(B, 4, 21, 4, 21, 4)       # (b, c, h', u, w', v)
    z = z.transpose(0, 2, 4, 1, 3, 5).reshape(B * 21 * 21, 64)   # channel = (c, u, v)

    # conv1 (2x2 s1, C_in=64) on the flat width-21 raster.
    y1 = conv1_pallas(z, prep["c1_w"], prep["c1_b"], B)          # (B*441, 32)

    # Crop valid 20x20 + space-to-depth by 2: one small XLA pass.
    y1 = y1.reshape(B, 21, 21, 32)[:, :20, :20, :]
    y1 = y1.reshape(B, 10, 2, 10, 2, 32).transpose(0, 1, 3, 2, 4, 5)
    z2 = y1.reshape(B * 100, 128)                                # channel = (u, v, c1)

    # Fused conv2 (2x2 s1, C_in=128) + conv3 (3x3 s1) on the flat width-10 raster.
    y3 = conv23_pallas(z2, prep["c2_w"], prep["c2_b"],
                       prep["c3_w"], prep["c3_b"], B)            # (B*100, 64)

    # Crop valid 7x7, flatten (H, W, C), pad K to 3200: one tiny XLA pass.
    h = y3.reshape(B, 10, 10, 64)[:, :7, :7, :].reshape(B, 3136)
    h = jnp.pad(h, ((0, 0), (0, 64)))                            # (B, 3200) bf16

    # Fused FC(3200->512)+ReLU and actor/critic heads.
    out = mlp_head_pallas(h, prep["fc_w"], prep["fc_b"],
                          prep["head_w"], prep["head_b"])        # (B, 128) f32
    logits = out[:, :num_actions]
    value = out[:, num_actions:num_actions + 1]
    return logits, value


# --------------------------- pure-JAX reference -----------------------------
def _conv_ref(h, w, b, s):
    y = jax.lax.conv_general_dilated(
        h, w, window_strides=(s, s), padding="VALID",
        dimension_numbers=("NCHW", "OIHW", "NCHW"),
        precision=jax.lax.Precision.HIGHEST)
    return jax.nn.relu(y + b[None, :, None, None])


def agent_forward_ref(params, x):
    h = x.astype(jnp.float32) / 255.0
    h = _conv_ref(h, params["conv1_w"], params["conv1_b"], 4)
    h = _conv_ref(h, params["conv2_w"], params["conv2_b"], 2)
    h = _conv_ref(h, params["conv3_w"], params["conv3_b"], 1)
    B = h.shape[0]
    h = h.reshape(B, 64 * 7 * 7)
    hp = jax.lax.Precision.HIGHEST
    h = jax.nn.relu(jnp.dot(h, params["fc_w"].T, precision=hp) + params["fc_b"])
    logits = jnp.dot(h, params["actor_w"].T, precision=hp) + params["actor_b"]
    value = jnp.dot(h, params["critic_w"].T, precision=hp) + params["critic_b"]
    return logits, value


# TODO(synk): Categorical sampling / log_prob / entropy (get_action_and_value)
# are not part of Agent.forward and are not implemented here.

if __name__ == "__main__":
    num_actions = 6
    key = jax.random.PRNGKey(0)
    pkey, xkey = jax.random.split(key)
    params = init_agent_params(pkey, num_actions)
    prep = prepare_params(params)           # one-time weight prep (hoisted)

    # Small batch; spatial must be 84x84 (the Linear(64*7*7) fixes it).
    x = jax.random.randint(xkey, (2, 4, 84, 84), 0, 256).astype(jnp.float32)

    fwd = jax.jit(functools.partial(agent_forward, num_actions=num_actions))
    logits, value = fwd(prep, x)
    jax.block_until_ready((logits, value))

    ref_logits, ref_value = agent_forward_ref(params, x)
    assert logits.shape == (2, num_actions) and value.shape == (2, 1)
    # bf16 MXU inputs (f32 accumulate) -> slightly looser tolerance than pure f32.
    assert jnp.allclose(logits, ref_logits, atol=5e-2, rtol=5e-2)
    assert jnp.allclose(value, ref_value, atol=5e-2, rtol=5e-2)

    print("KERNEL_OK")
</pallas_src>

<mosaic_0001>
module attributes {stable_mosaic.version = 11 : i64} {
  func.func @_conv1_kernel(%arg0: i32, %arg1: memref<882x64xbf16, #tpu.memory_space<vmem>>, %arg2: memref<4x64x32xbf16, #tpu.memory_space<vmem>>, %arg3: memref<1x32xf32, #tpu.memory_space<vmem>>, %arg4: memref<882x32xbf16, #tpu.memory_space<vmem>>) attributes {dimension_semantics = [#tpu.dimension_semantics<parallel>], iteration_bounds = array<i64: 1>, scalar_prefetch = 0 : i64, scratch_operands = 0 : i64, tpu.core_type = #tpu.core_type<tc>, window_params = [{transform_indices = @transform_0, window_bounds = array<i64: 882, 64>}, {pipeline_mode = #tpu.pipeline_mode<synchronous>, transform_indices = @transform_1, window_bounds = array<i64: 4, 64, 32>}, {pipeline_mode = #tpu.pipeline_mode<synchronous>, transform_indices = @transform_2, window_bounds = array<i64: 1, 32>}, {transform_indices = @transform_3, window_bounds = array<i64: 882, 32>}]} {
    %c0 = arith.constant 0 : index
    %c0_0 = arith.constant 0 : index
    %0 = vector.load %arg1[%c0, %c0_0] : memref<882x64xbf16, #tpu.memory_space<vmem>>, vector<860x64xbf16>
    %c0_1 = arith.constant 0 : index
    %c0_2 = arith.constant 0 : index
    %c0_3 = arith.constant 0 : index
    %1 = vector.load %arg2[%c0_1, %c0_2, %c0_3] : memref<4x64x32xbf16, #tpu.memory_space<vmem>>, vector<1x64x32xbf16>
    %2 = vector.shape_cast %1 : vector<1x64x32xbf16> to vector<64x32xbf16>
    %cst = arith.constant dense<0.000000e+00> : vector<860x32xf32>
    %3 = tpu.matmul %0, %2, %cst {dimension_numbers = #tpu.dot_dimension_numbers<[1], [0], [0], [1], [0, 0, 1, 1], [], []>} : vector<860x64xbf16>, vector<64x32xbf16>, vector<860x32xf32> -> vector<860x32xf32>
    %c1 = arith.constant 1 : index
    %c0_4 = arith.constant 0 : index
    %4 = vector.load %arg1[%c1, %c0_4] : memref<882x64xbf16, #tpu.memory_space<vmem>>, vector<860x64xbf16>
    %c1_5 = arith.constant 1 : index
    %c0_6 = arith.constant 0 : index
    %c0_7 = arith.constant 0 : index
    %5 = vector.load %arg2[%c1_5, %c0_6, %c0_7] : memref<4x64x32xbf16, #tpu.memory_space<vmem>>, vector<1x64x32xbf16>
    %6 = vector.shape_cast %5 : vector<1x64x32xbf16> to vector<64x32xbf16>
    %cst_8 = arith.constant dense<0.000000e+00> : vector<860x32xf32>
    %7 = tpu.matmul %4, %6, %cst_8 {dimension_numbers = #tpu.dot_dimension_numbers<[1], [0], [0], [1], [0, 0, 1, 1], [], []>} : vector<860x64xbf16>, vector<64x32xbf16>, vector<860x32xf32> -> vector<860x32xf32>
    %8 = arith.addf %3, %7 : vector<860x32xf32>
    %c21 = arith.constant 21 : index
    %c0_9 = arith.constant 0 : index
    %9 = vector.load %arg1[%c21, %c0_9] : memref<882x64xbf16, #tpu.memory_space<vmem>>, vector<860x64xbf16>
    %c2 = arith.constant 2 : index
    %c0_10 = arith.constant 0 : index
    %c0_11 = arith.constant 0 : index
    %10 = vector.load %arg2[%c2, %c0_10, %c0_11] : memref<4x64x32xbf16, #tpu.memory_space<vmem>>, vector<1x64x32xbf16>
    %11 = vector.shape_cast %10 : vector<1x64x32xbf16> to vector<64x32xbf16>
    %cst_12 = arith.constant dense<0.000000e+00> : vector<860x32xf32>
    %12 = tpu.matmul %9, %11, %cst_12 {dimension_numbers = #tpu.dot_dimension_numbers<[1], [0], [0], [1], [0, 0, 1, 1], [], []>} : vector<860x64xbf16>, vector<64x32xbf16>, vector<860x32xf32> -> vector<860x32xf32>
    %13 = arith.addf %8, %12 : vector<860x32xf32>
    %c22 = arith.constant 22 : index
    %c0_13 = arith.constant 0 : index
    %14 = vector.load %arg1[%c22, %c0_13] : memref<882x64xbf16, #tpu.memory_space<vmem>>, vector<860x64xbf16>
    %c3 = arith.constant 3 : index
    %c0_14 = arith.constant 0 : index
    %c0_15 = arith.constant 0 : index
    %15 = vector.load %arg2[%c3, %c0_14, %c0_15] : memref<4x64x32xbf16, #tpu.memory_space<vmem>>, vector<1x64x32xbf16>
    %16 = vector.shape_cast %15 : vector<1x64x32xbf16> to vector<64x32xbf16>
    %cst_16 = arith.constant dense<0.000000e+00> : vector<860x32xf32>
    %17 = tpu.matmul %14, %16, %cst_16 {dimension_numbers = #tpu.dot_dimension_numbers<[1], [0], [0], [1], [0, 0, 1, 1], [], []>} : vector<860x64xbf16>, vector<64x32xbf16>, vector<860x32xf32> -> vector<860x32xf32>
    %18 = arith.addf %13, %17 : vector<860x32xf32>
    %c0_17 = arith.constant 0 : index
    %c0_18 = arith.constant 0 : index
    %19 = vector.load %arg3[%c0_17, %c0_18] : memref<1x32xf32, #tpu.memory_space<vmem>>, vector<1x32xf32>
    %20 = vector.broadcast %19 : vector<1x32xf32> to vector<860x32xf32>
    %21 = arith.addf %18, %20 : vector<860x32xf32>
    %cst_19 = arith.constant 0.000000e+00 : f32
    %22 = vector.broadcast %cst_19 : f32 to vector<860x32xf32>
    %23 = arith.maximumf %21, %22 : vector<860x32xf32>
    %24 = arith.truncf %23 : vector<860x32xf32> to vector<860x32xbf16>
    %c0_20 = arith.constant 0 : index
    %c0_21 = arith.constant 0 : index
    %25 = vector.load %arg4[%c0_20, %c0_21] : memref<882x32xbf16, #tpu.memory_space<vmem>>, vector<860x32xbf16>
    tpu.vector_store %arg4[%c0_20, %c0_21], %24 {strides = array<i32>} : memref<882x32xbf16, #tpu.memory_space<vmem>>, vector<860x32xbf16>,
    return
  }
  func.func @transform_0(%arg0: i32) -> (i32, i32) {
    %c0_i32 = arith.constant 0 : i32
    %c0_i32_0 = arith.constant 0 : i32
    return %arg0, %c0_i32 : i32, i32
  }
  func.func @transform_1(%arg0: i32) -> (i32, i32, i32) {
    %c0_i32 = arith.constant 0 : i32
    %c0_i32_0 = arith.constant 0 : i32
    %c0_i32_1 = arith.constant 0 : i32
    %c0_i32_2 = arith.constant 0 : i32
    return %c0_i32, %c0_i32_0, %c0_i32_1 : i32, i32, i32
  }
  func.func @transform_2(%arg0: i32) -> (i32, i32) {
    %c0_i32 = arith.constant 0 : i32
    %c0_i32_0 = arith.constant 0 : i32
    %c0_i32_1 = arith.constant 0 : i32
    return %c0_i32, %c0_i32_0 : i32, i32
  }
  func.func @transform_3(%arg0: i32) -> (i32, i32) {
    %c0_i32 = arith.constant 0 : i32
    %c0_i32_0 = arith.constant 0 : i32
    return %arg0, %c0_i32 : i32, i32
  }
}

module attributes {stable_mosaic.version = 11 : i64} {
  func.func @_conv23_kernel(%arg0: i32, %arg1: memref<200x128xbf16, #tpu.memory_space<vmem>>, %arg2: memref<4x128x64xbf16, #tpu.memory_space<vmem>>, %arg3: memref<1x64xf32, #tpu.memory_space<vmem>>, %arg4: memref<9x64x64xbf16, #tpu.memory_space<vmem>>, %arg5: memref<1x64xf32, #tpu.memory_space<vmem>>, %arg6: memref<200x64xbf16, #tpu.memory_space<vmem>>) attributes {dimension_semantics = [#tpu.dimension_semantics<parallel>], iteration_bounds = array<i64: 1>, scalar_prefetch = 0 : i64, scratch_operands = 0 : i64, tpu.core_type = #tpu.core_type<tc>, window_params = [{transform_indices = @transform_0, window_bounds = array<i64: 200, 128>}, {pipeline_mode = #tpu.pipeline_mode<synchronous>, transform_indices = @transform_1, window_bounds = array<i64: 4, 128, 64>}, {pipeline_mode = #tpu.pipeline_mode<synchronous>, transform_indices = @transform_2, window_bounds = array<i64: 1, 64>}, {pipeline_mode = #tpu.pipeline_mode<synchronous>, transform_indices = @transform_3, window_bounds = array<i64: 9, 64, 64>}, {pipeline_mode = #tpu.pipeline_mode<synchronous>, transform_indices = @transform_4, window_bounds = array<i64: 1, 64>}, {transform_indices = @transform_5, window_bounds = array<i64: 200, 64>}]} {
    %c0 = arith.constant 0 : index
    %c0_0 = arith.constant 0 : index
    %0 = vector.load %arg1[%c0, %c0_0] : memref<200x128xbf16, #tpu.memory_space<vmem>>, vector<189x128xbf16>
    %c0_1 = arith.constant 0 : index
    %c0_2 = arith.constant 0 : index
    %c0_3 = arith.constant 0 : index
    %1 = vector.load %arg2[%c0_1, %c0_2, %c0_3] : memref<4x128x64xbf16, #tpu.memory_space<vmem>>, vector<1x128x64xbf16>
    %2 = vector.shape_cast %1 : vector<1x128x64xbf16> to vector<128x64xbf16>
    %cst = arith.constant dense<0.000000e+00> : vector<189x64xf32>
    %3 = tpu.matmul %0, %2, %cst {dimension_numbers = #tpu.dot_dimension_numbers<[1], [0], [0], [1], [0, 0, 1, 1], [], []>} : vector<189x128xbf16>, vector<128x64xbf16>, vector<189x64xf32> -> vector<189x64xf32>
    %c1 = arith.constant 1 : index
    %c0_4 = arith.constant 0 : index
    %4 = vector.load %arg1[%c1, %c0_4] : memref<200x128xbf16, #tpu.memory_space<vmem>>, vector<189x128xbf16>
    %c1_5 = arith.constant 1 : index
    %c0_6 = arith.constant 0 : index
    %c0_7 = arith.constant 0 : index
    %5 = vector.load %arg2[%c1_5, %c0_6, %c0_7] : memref<4x128x64xbf16, #tpu.memory_space<vmem>>, vector<1x128x64xbf16>
    %6 = vector.shape_cast %5 : vector<1x128x64xbf16> to vector<128x64xbf16>
    %cst_8 = arith.constant dense<0.000000e+00> : vector<189x64xf32>
    %7 = tpu.matmul %4, %6, %cst_8 {dimension_numbers = #tpu.dot_dimension_numbers<[1], [0], [0], [1], [0, 0, 1, 1], [], []>} : vector<189x128xbf16>, vector<128x64xbf16>, vector<189x64xf32> -> vector<189x64xf32>
    %8 = arith.addf %3, %7 : vector<189x64xf32>
    %c10 = arith.constant 10 : index
    %c0_9 = arith.constant 0 : index
    %9 = vector.load %arg1[%c10, %c0_9] : memref<200x128xbf16, #tpu.memory_space<vmem>>, vector<189x128xbf16>
    %c2 = arith.constant 2 : index
    %c0_10 = arith.constant 0 : index
    %c0_11 = arith.constant 0 : index
    %10 = vector.load %arg2[%c2, %c0_10, %c0_11] : memref<4x128x64xbf16, #tpu.memory_space<vmem>>, vector<1x128x64xbf16>
    %11 = vector.shape_cast %10 : vector<1x128x64xbf16> to vector<128x64xbf16>
    %cst_12 = arith.constant dense<0.000000e+00> : vector<189x64xf32>
    %12 = tpu.matmul %9, %11, %cst_12 {dimension_numbers = #tpu.dot_dimension_numbers<[1], [0], [0], [1], [0, 0, 1, 1], [], []>} : vector<189x128xbf16>, vector<128x64xbf16>, vector<189x64xf32> -> vector<189x64xf32>
    %13 = arith.addf %8, %12 : vector<189x64xf32>
    %c11 = arith.constant 11 : index
    %c0_13 = arith.constant 0 : index
    %14 = vector.load %arg1[%c11, %c0_13] : memref<200x128xbf16, #tpu.memory_space<vmem>>, vector<189x128xbf16>
    %c3 = arith.constant 3 : index
    %c0_14 = arith.constant 0 : index
    %c0_15 = arith.constant 0 : index
    %15 = vector.load %arg2[%c3, %c0_14, %c0_15] : memref<4x128x64xbf16, #tpu.memory_space<vmem>>, vector<1x128x64xbf16>
    %16 = vector.shape_cast %15 : vector<1x128x64xbf16> to vector<128x64xbf16>
    %cst_16 = arith.constant dense<0.000000e+00> : vector<189x64xf32>
    %17 = tpu.matmul %14, %16, %cst_16 {dimension_numbers = #tpu.dot_dimension_numbers<[1], [0], [0], [1], [0, 0, 1, 1], [], []>} : vector<189x128xbf16>, vector<128x64xbf16>, vector<189x64xf32> -> vector<189x64xf32>
    %18 = arith.addf %13, %17 : vector<189x64xf32>
    %c0_17 = arith.constant 0 : index
    %c0_18 = arith.constant 0 : index
    %19 = vector.load %arg3[%c0_17, %c0_18] : memref<1x64xf32, #tpu.memory_space<vmem>>, vector<1x64xf32>
    %20 = vector.broadcast %19 : vector<1x64xf32> to vector<189x64xf32>
    %21 = arith.addf %18, %20 : vector<189x64xf32>
    %cst_19 = arith.constant 0.000000e+00 : f32
    %22 = vector.broadcast %cst_19 : f32 to vector<189x64xf32>
    %23 = arith.maximumf %21, %22 : vector<189x64xf32>
    %24 = arith.truncf %23 : vector<189x64xf32> to vector<189x64xbf16>
    %25 = vector.extract_strided_slice %24 {offsets = [0, 0], sizes = [167, 64], strides = [1, 1]} : vector<189x64xbf16> to vector<167x64xbf16>
    %c0_20 = arith.constant 0 : index
    %c0_21 = arith.constant 0 : index
    %c0_22 = arith.constant 0 : index
    %26 = vector.load %arg4[%c0_20, %c0_21, %c0_22] : memref<9x64x64xbf16, #tpu.memory_space<vmem>>, vector<1x64x64xbf16>
    %27 = vector.shape_cast %26 : vector<1x64x64xbf16> to vector<64x64xbf16>
    %cst_23 = arith.constant dense<0.000000e+00> : vector<167x64xf32>
    %28 = tpu.matmul %25, %27, %cst_23 {dimension_numbers = #tpu.dot_dimension_numbers<[1], [0], [0], [1], [0, 0, 1, 1], [], []>} : vector<167x64xbf16>, vector<64x64xbf16>, vector<167x64xf32> -> vector<167x64xf32>
    %29 = vector.extract_strided_slice %24 {offsets = [1, 0], sizes = [167, 64], strides = [1, 1]} : vector<189x64xbf16> to vector<167x64xbf16>
    %c1_24 = arith.constant 1 : index
    %c0_25 = arith.constant 0 : index
    %c0_26 = arith.constant 0 : index
    %30 = vector.load %arg4[%c1_24, %c0_25, %c0_26] : memref<9x64x64xbf16, #tpu.memory_space<vmem>>, vector<1x64x64xbf16>
    %31 = vector.shape_cast %30 : vector<1x64x64xbf16> to vector<64x64xbf16>
    %cst_27 = arith.constant dense<0.000000e+00> : vector<167x64xf32>
    %32 = tpu.matmul %29, %31, %cst_27 {dimension_numbers = #tpu.dot_dimension_numbers<[1], [0], [0], [1], [0, 0, 1, 1], [], []>} : vector<167x64xbf16>, vector<64x64xbf16>, vector<167x64xf32> -> vector<167x64xf32>
    %33 = arith.addf %28, %32 : vector<167x64xf32>
    %34 = vector.extract_strided_slice %24 {offsets = [2, 0], sizes = [167, 64], strides = [1, 1]} : vector<189x64xbf16> to vector<167x64xbf16>
    %c2_28 = arith.constant 2 : index
    %c0_29 = arith.constant 0 : index
    %c0_30 = arith.constant 0 : index
    %35 = vector.load %arg4[%c2_28, %c0_29, %c0_30] : memref<9x64x64xbf16, #tpu.memory_space<vmem>>, vector<1x64x64xbf16>
    %36 = vector.shape_cast %35 : vector<1x64x64xbf16> to vector<64x64xbf16>
    %cst_31 = arith.constant dense<0.000000e+00> : vector<167x64xf32>
    %37 = tpu.matmul %34, %36, %cst_31 {dimension_numbers = #tpu.dot_dimension_numbers<[1], [0], [0], [1], [0, 0, 1, 1], [], []>} : vector<167x64xbf16>, vector<64x64xbf16>, vector<167x64xf32> -> vector<167x64xf32>
    %38 = arith.addf %33, %37 : vector<167x64xf32>
    %39 = vector.extract_strided_slice %24 {offsets = [10, 0], sizes = [167, 64], strides = [1, 1]} : vector<189x64xbf16> to vector<167x64xbf16>
    %c3_32 = arith.constant 3 : index
    %c0_33 = arith.constant 0 : index
    %c0_34 = arith.constant 0 : index
    %40 = vector.load %arg4[%c3_32, %c0_33, %c0_34] : memref<9x64x64xbf16, #tpu.memory_space<vmem>>, vector<1x64x64xbf16>
    %41 = vector.shape_cast %40 : vector<1x64x64xbf16> to vector<64x64xbf16>
    %cst_35 = arith.constant dense<0.000000e+00> : vector<167x64xf32>
    %42 = tpu.matmul %39, %41, %cst_35 {dimension_numbers = #tpu.dot_dimension_numbers<[1], [0], [0], [1], [0, 0, 1, 1], [], []>} : vector<167x64xbf16>, vector<64x64xbf16>, vector<167x64xf32> -> vector<167x64xf32>
    %43 = arith.addf %38, %42 : vector<167x64xf32>
    %44 = vector.extract_strided_slice %24 {offsets = [11, 0], sizes = [167, 64], strides = [1, 1]} : vector<189x64xbf16> to vector<167x64xbf16>
    %c4 = arith.constant 4 : index
    %c0_36 = arith.constant 0 : index
    %c0_37 = arith.constant 0 : index
    %45 = vector.load %arg4[%c4, %c0_36, %c0_37] : memref<9x64x64xbf16, #tpu.memory_space<vmem>>, vector<1x64x64xbf16>
    %46 = vector.shape_cast %45 : vector<1x64x64xbf16> to vector<64x64xbf16>
    %cst_38 = arith.constant dense<0.000000e+00> : vector<167x64xf32>
    %47 = tpu.matmul %44, %46, %cst_38 {dimension_numbers = #tpu.dot_dimension_numbers<[1], [0], [0], [1], [0, 0, 1, 1], [], []>} : vector<167x64xbf16>, vector<64x64xbf16>, vector<167x64xf32> -> vector<167x64xf32>
    %48 = arith.addf %43, %47 : vector<167x64xf32>
    %49 = vector.extract_strided_slice %24 {offsets = [12, 0], sizes = [167, 64], strides = [1, 1]} : vector<189x64xbf16> to vector<167x64xbf16>
    %c5 = arith.constant 5 : index
    %c0_39 = arith.constant 0 : index
    %c0_40 = arith.constant 0 : index
    %50 = vector.load %arg4[%c5, %c0_39, %c0_40] : memref<9x64x64xbf16, #tpu.memory_space<vmem>>, vector<1x64x64xbf16>
    %51 = vector.shape_cast %50 : vector<1x64x64xbf16> to vector<64x64xbf16>
    %cst_41 = arith.constant dense<0.000000e+00> : vector<167x64xf32>
    %52 = tpu.matmul %49, %51, %cst_41 {dimension_numbers = #tpu.dot_dimension_numbers<[1], [0], [0], [1], [0, 0, 1, 1], [], []>} : vector<167x64xbf16>, vector<64x64xbf16>, vector<167x64xf32> -> vector<167x64xf32>
    %53 = arith.addf %48, %52 : vector<167x64xf32>
    %54 = vector.extract_strided_slice %24 {offsets = [20, 0], sizes = [167, 64], strides = [1, 1]} : vector<189x64xbf16> to vector<167x64xbf16>
    %c6 = arith.constant 6 : index
    %c0_42 = arith.constant 0 : index
    %c0_43 = arith.constant 0 : index
    %55 = vector.load %arg4[%c6, %c0_42, %c0_43] : memref<9x64x64xbf16, #tpu.memory_space<vmem>>, vector<1x64x64xbf16>
    %56 = vector.shape_cast %55 : vector<1x64x64xbf16> to vector<64x64xbf16>
    %cst_44 = arith.constant dense<0.000000e+00> : vector<167x64xf32>
    %57 = tpu.matmul %54, %56, %cst_44 {dimension_numbers = #tpu.dot_dimension_numbers<[1], [0], [0], [1], [0, 0, 1, 1], [], []>} : vector<167x64xbf16>, vector<64x64xbf16>, vector<167x64xf32> -> vector<167x64xf32>
    %58 = arith.addf %53, %57 : vector<167x64xf32>
    %59 = vector.extract_strided_slice %24 {offsets = [21, 0], sizes = [167, 64], strides = [1, 1]} : vector<189x64xbf16> to vector<167x64xbf16>
    %c7 = arith.constant 7 : index
    %c0_45 = arith.constant 0 : index
    %c0_46 = arith.constant 0 : index
    %60 = vector.load %arg4[%c7, %c0_45, %c0_46] : memref<9x64x64xbf16, #tpu.memory_space<vmem>>, vector<1x64x64xbf16>
    %61 = vector.shape_cast %60 : vector<1x64x64xbf16> to vector<64x64xbf16>
    %cst_47 = arith.constant dense<0.000000e+00> : vector<167x64xf32>
    %62 = tpu.matmul %59, %61, %cst_47 {dimension_numbers = #tpu.dot_dimension_numbers<[1], [0], [0], [1], [0, 0, 1, 1], [], []>} : vector<167x64xbf16>, vector<64x64xbf16>, vector<167x64xf32> -> vector<167x64xf32>
    %63 = arith.addf %58, %62 : vector<167x64xf32>
    %64 = vector.extract_strided_slice %24 {offsets = [22, 0], sizes = [167, 64], strides = [1, 1]} : vector<189x64xbf16> to vector<167x64xbf16>
    %c8 = arith.constant 8 : index
    %c0_48 = arith.constant 0 : index
    %c0_49 = arith.constant 0 : index
    %65 = vector.load %arg4[%c8, %c0_48, %c0_49] : memref<9x64x64xbf16, #tpu.memory_space<vmem>>, vector<1x64x64xbf16>
    %66 = vector.shape_cast %65 : vector<1x64x64xbf16> to vector<64x64xbf16>
    %cst_50 = arith.constant dense<0.000000e+00> : vector<167x64xf32>
    %67 = tpu.matmul %64, %66, %cst_50 {dimension_numbers = #tpu.dot_dimension_numbers<[1], [0], [0], [1], [0, 0, 1, 1], [], []>} : vector<167x64xbf16>, vector<64x64xbf16>, vector<167x64xf32> -> vector<167x64xf32>
    %68 = arith.addf %63, %67 : vector<167x64xf32>
    %c0_51 = arith.constant 0 : index
    %c0_52 = arith.constant 0 : index
    %69 = vector.load %arg5[%c0_51, %c0_52] : memref<1x64xf32, #tpu.memory_space<vmem>>, vector<1x64xf32>
    %70 = vector.broadcast %69 : vector<1x64xf32> to vector<167x64xf32>
    %71 = arith.addf %68, %70 : vector<167x64xf32>
    %cst_53 = arith.constant 0.000000e+00 : f32
    %72 = vector.broadcast %cst_53 : f32 to vector<167x64xf32>
    %73 = arith.maximumf %71, %72 : vector<167x64xf32>
    %74 = arith.truncf %73 : vector<167x64xf32> to vector<167x64xbf16>
    %c0_54 = arith.constant 0 : index
    %c0_55 = arith.constant 0 : index
    %75 = vector.load %arg6[%c0_54, %c0_55] : memref<200x64xbf16, #tpu.memory_space<vmem>>, vector<167x64xbf16>
    tpu.vector_store %arg6[%c0_54, %c0_55], %74 {strides = array<i32>} : memref<200x64xbf16, #tpu.memory_space<vmem>>, vector<167x64xbf16>,
    return
  }
  func.func @transform_0(%arg0: i32) -> (i32, i32) {
    %c0_i32 = arith.constant 0 : i32
    %c0_i32_0 = arith.constant 0 : i32
    return %arg0, %c0_i32 : i32, i32
  }
  func.func @transform_1(%arg0: i32) -> (i32, i32, i32) {
    %c0_i32 = arith.constant 0 : i32
    %c0_i32_0 = arith.constant 0 : i32
    %c0_i32_1 = arith.constant 0 : i32
    %c0_i32_2 = arith.constant 0 : i32
    return %c0_i32, %c0_i32_0, %c0_i32_1 : i32, i32, i32
  }
  func.func @transform_2(%arg0: i32) -> (i32, i32) {
    %c0_i32 = arith.constant 0 : i32
    %c0_i32_0 = arith.constant 0 : i32
    %c0_i32_1 = arith.constant 0 : i32
    return %c0_i32, %c0_i32_0 : i32, i32
  }
  func.func @transform_3(%arg0: i32) -> (i32, i32, i32) {
    %c0_i32 = arith.constant 0 : i32
    %c0_i32_0 = arith.constant 0 : i32
    %c0_i32_1 = arith.constant 0 : i32
    %c0_i32_2 = arith.constant 0 : i32
    return %c0_i32, %c0_i32_0, %c0_i32_1 : i32, i32, i32
  }
  func.func @transform_4(%arg0: i32) -> (i32, i32) {
    %c0_i32 = arith.constant 0 : i32
    %c0_i32_0 = arith.constant 0 : i32
    %c0_i32_1 = arith.constant 0 : i32
    return %c0_i32, %c0_i32_0 : i32, i32
  }
  func.func @transform_5(%arg0: i32) -> (i32, i32) {
    %c0_i32 = arith.constant 0 : i32
    %c0_i32_0 = arith.constant 0 : i32
    return %arg0, %c0_i32 : i32, i32
  }
}

module attributes {stable_mosaic.version = 11 : i64} {
  func.func @_mlp_head_kernel(%arg0: i32, %arg1: memref<2x3200xbf16, #tpu.memory_space<vmem>>, %arg2: memref<3200x512xbf16, #tpu.memory_space<vmem>>, %arg3: memref<1x512xf32, #tpu.memory_space<vmem>>, %arg4: memref<512x128xbf16, #tpu.memory_space<vmem>>, %arg5: memref<1x128xf32, #tpu.memory_space<vmem>>, %arg6: memref<2x128xf32, #tpu.memory_space<vmem>>) attributes {dimension_semantics = [#tpu.dimension_semantics<parallel>], iteration_bounds = array<i64: 1>, scalar_prefetch = 0 : i64, scratch_operands = 0 : i64, tpu.core_type = #tpu.core_type<tc>, window_params = [{transform_indices = @transform_0, window_bounds = array<i64: 2, 3200>}, {pipeline_mode = #tpu.pipeline_mode<synchronous>, transform_indices = @transform_1, window_bounds = array<i64: 3200, 512>}, {pipeline_mode = #tpu.pipeline_mode<synchronous>, transform_indices = @transform_2, window_bounds = array<i64: 1, 512>}, {pipeline_mode = #tpu.pipeline_mode<synchronous>, transform_indices = @transform_3, window_bounds = array<i64: 512, 128>}, {pipeline_mode = #tpu.pipeline_mode<synchronous>, transform_indices = @transform_4, window_bounds = array<i64: 1, 128>}, {transform_indices = @transform_5, window_bounds = array<i64: 2, 128>}]} {
    %c0 = arith.constant 0 : index
    %c0_0 = arith.constant 0 : index
    %0 = vector.load %arg1[%c0, %c0_0] : memref<2x3200xbf16, #tpu.memory_space<vmem>>, vector<2x3200xbf16>
    %c0_1 = arith.constant 0 : index
    %c0_2 = arith.constant 0 : index
    %1 = vector.load %arg2[%c0_1, %c0_2] : memref<3200x512xbf16, #tpu.memory_space<vmem>>, vector<3200x512xbf16>
    %cst = arith.constant dense<0.000000e+00> : vector<2x512xf32>
    %2 = tpu.matmul %0, %1, %cst {dimension_numbers = #tpu.dot_dimension_numbers<[1], [0], [0], [1], [0, 0, 1, 1], [], []>} : vector<2x3200xbf16>, vector<3200x512xbf16>, vector<2x512xf32> -> vector<2x512xf32>
    %c0_3 = arith.constant 0 : index
    %c0_4 = arith.constant 0 : index
    %3 = vector.load %arg3[%c0_3, %c0_4] : memref<1x512xf32, #tpu.memory_space<vmem>>, vector<1x512xf32>
    %4 = vector.broadcast %3 : vector<1x512xf32> to vector<2x512xf32>
    %5 = arith.addf %2, %4 : vector<2x512xf32>
    %cst_5 = arith.constant 0.000000e+00 : f32
    %6 = vector.broadcast %cst_5 : f32 to vector<2x512xf32>
    %7 = arith.maximumf %5, %6 : vector<2x512xf32>
    %8 = arith.truncf %7 : vector<2x512xf32> to vector<2x512xbf16>
    %c0_6 = arith.constant 0 : index
    %c0_7 = arith.constant 0 : index
    %9 = vector.load %arg4[%c0_6, %c0_7] : memref<512x128xbf16, #tpu.memory_space<vmem>>, vector<512x128xbf16>
    %cst_8 = arith.constant dense<0.000000e+00> : vector<2x128xf32>
    %10 = tpu.matmul %8, %9, %cst_8 {dimension_numbers = #tpu.dot_dimension_numbers<[1], [0], [0], [1], [0, 0, 1, 1], [], []>} : vector<2x512xbf16>, vector<512x128xbf16>, vector<2x128xf32> -> vector<2x128xf32>
    %c0_9 = arith.constant 0 : index
    %c0_10 = arith.constant 0 : index
    %11 = vector.load %arg5[%c0_9, %c0_10] : memref<1x128xf32, #tpu.memory_space<vmem>>, vector<1x128xf32>
    %12 = vector.broadcast %11 : vector<1x128xf32> to vector<2x128xf32>
    %13 = arith.addf %10, %12 : vector<2x128xf32>
    %c0_11 = arith.constant 0 : index
    %c0_12 = arith.constant 0 : index
    %14 = vector.load %arg6[%c0_11, %c0_12] : memref<2x128xf32, #tpu.memory_space<vmem>>, vector<2x128xf32>
    tpu.vector_store %arg6[%c0_11, %c0_12], %13 {strides = array<i32>} : memref<2x128xf32, #tpu.memory_space<vmem>>, vector<2x128xf32>,
    return
  }
  func.func @transform_0(%arg0: i32) -> (i32, i32) {
    %c0_i32 = arith.constant 0 : i32
    %c0_i32_0 = arith.constant 0 : i32
    return %arg0, %c0_i32 : i32, i32
  }
  func.func @transform_1(%arg0: i32) -> (i32, i32) {
    %c0_i32 = arith.constant 0 : i32
    %c0_i32_0 = arith.constant 0 : i32
    %c0_i32_1 = arith.constant 0 : i32
    return %c0_i32, %c0_i32_0 : i32, i32
  }
  func.func @transform_2(%arg0: i32) -> (i32, i32) {
    %c0_i32 = arith.constant 0 : i32
    %c0_i32_0 = arith.constant 0 : i32
    %c0_i32_1 = arith.constant 0 : i32
    return %c0_i32, %c0_i32_0 : i32, i32
  }
  func.func @transform_3(%arg0: i32) -> (i32, i32) {
    %c0_i32 = arith.constant 0 : i32
    %c0_i32_0 = arith.constant 0 : i32
    %c0_i32_1 = arith.constant 0 : i32
    return %c0_i32, %c0_i32_0 : i32, i32
  }
  func.func @transform_4(%arg0: i32) -> (i32, i32) {
    %c0_i32 = arith.constant 0 : i32
    %c0_i32_0 = arith.constant 0 : i32
    %c0_i32_1 = arith.constant 0 : i32
    return %c0_i32, %c0_i32_0 : i32, i32
  }
  func.func @transform_5(%arg0: i32) -> (i32, i32) {
    %c0_i32 = arith.constant 0 : i32
    %c0_i32_0 = arith.constant 0 : i32
    return %arg0, %c0_i32 : i32, i32
  }
}

</mosaic_0001>

<bundles_post_ra>
// kernel: agent_forward.3
= control target key start
LH: loop header
LB: loop body
LE: loop exit
PB: predicated region body
PF: predicated region fallthrough
CT: control target
= control target key end

     0   :  { %vm411_vm0 = vsmask.f32 7424  ;;  %vm2487_vm1 = vsmask.f32 5376  ;;  %vm867_vm2 = vcmask 523264   ;;  %vm3750_vm3 = vcmask 1044480   ;;  %s8928_s1 = inlined_call_operand.vmem [shape: bf16[4,64,32], index: 1, kind: input, shape index: {}]   ;;  %s8929_s0 = inlined_call_operand.vmem [shape: bf16[882,64], index: 0, kind: input, shape index: {}]   ;;  %s8930_s2 = inlined_call_operand.vmem [shape: f32[1,32], index: 2, kind: input, shape index: {}]   ;;  %s8931_s3 = inlined_call_operand.vmem [shape: bf16[882,32], index: 3, kind: output, shape index: {}]  }
   0x1   :  { %v6992_v0 = vld [vmem:[%s8928_s1 + $0x20] sm:$0xff]   ;;  %v6994_v2 = vld [vmem:[%s8928_s1 + $0x28] sm:$0xff]   ;;  %v6996_v4 = vld [vmem:[%s8928_s1 + $0x30] sm:$0xff]   ;;  %vm5274_vm4 = vcmask 257024   ;;  %vm5382_vm5 = vcmask 254976  }
   0x2   :  { %v6993_v1 = vld [vmem:[%s8928_s1 + $0x40] sm:$0xff]   ;;  %6204 = vmatprep.subr.bf16.mxu1 %v6992_v0  ;;  %v6995_v3 = vld [vmem:[%s8928_s1 + $0x48] sm:$0xff]   ;;  %v6997_v5 = vld [vmem:[%s8928_s1 + $0x50] sm:$0xff]  }
   0x3   :  { %6436 = vmatprep.subr.bf16.mxu0 %v6993_v1  ;;  %6205 = vmatpush3.bf16.msra.mxu1 %v6992_v0  ;;  %v6998_v6 = vld [vmem:[%s8928_s1 + $0x38] sm:$0xff]   ;;  %v7000_v8 = vld [vmem:[%s8929_s0] sm:$0xff]   ;;  %v7001_v9 = vld [vmem:[%s8929_s0 + $0x8] sm:$0xff]  }
   0x4   :  { %6437 = vmatpush3.bf16.msra.mxu0 %v6993_v1  ;;  %6206 = vmatprep.subr.bf16.mxu1 %v6994_v2  ;;  %v6999_v7 = vld [vmem:[%s8928_s1 + $0x58] sm:$0xff]   ;;  %v2096_v10 = vld [vmem:[%s8929_s0 + $0x8] sm:$0xc]  ;;  %v2097_v11 = vld [vmem:[%s8929_s0 + $0xc] sm:$0xf]  ;;  %v413_v12 = vshrl.u32 %v7000_v8, 16 }
   0x5   :  { %6438 = vmatprep.subr.bf16.mxu0 %v6995_v3  ;;  %v415_v13 = vshll.u32 %v7000_v8, 16  ;;  %v420_v14 = vshll.u32 %v7001_v9, 16  ;;  %v424_v15 = vshrl.u32 %v7001_v9, 16  ;;  %v5575_v16 = vcombine.low %v2096_v10, %v2097_v11  ;;  %v7003_v17 = vld [vmem:[%s8929_s0 + $0x10] sm:$0xff]   ;;  %v7005_v21 = vld [vmem:[%s8928_s1] sm:$0xff]   ;;  %v7006_v29 = vld [vmem:[%s8929_s0 + $0x18] sm:$0xff]  }
   0x6   :  { %v7004_v20 = vld [vmem:[%s8929_s0 + $0x10] sm:$0xff]   ;;  %v2497_v24 = vshrl.u32 %v7003_v17, 16  ;;  %v2500_v25 = vshll.u32 %v7003_v17, 16  ;;  %v2506_v36 = vshrl.u32 %v7006_v29, 16  ;;  %v2509_v37 = vshll.u32 %v7006_v29, 16  ;;  %v7007_v38 = vld [vmem:[%s8928_s1 + $0x60] sm:$0xff]  }
   0x7   :  { %6207 = vmatpush3.bf16.msra.mxu1 %v6994_v2  ;;  %v417_v18 = vrot.slane %v415_v13, 1  ;;  %v422_v19 = vrot.slane %v420_v14, 1  ;;  %v2489_v22 = vshrl.u32 %v5575_v16, 16  ;;  %v2492_v23 = vshll.u32 %v5575_v16, 16  ;;  %v7008_v41 = vld [vmem:[%s8929_s0 + $0x18] sm:$0xff]   ;;  %v7009_v49 = vld [vmem:[%s8929_s0 + $0x20] sm:$0xff]  }
   0x8   :  { %6439 = vmatpush3.bf16.msra.mxu0 %v6995_v3  ;;  %6208 = vmatprep.subr.bf16.mxu1 %v6996_v4  ;;  %v428_v28 = vshll.u32 %v7004_v20, 16  ;;  %v2499_v32 = vrot.slane %v2497_v24, 2  ;;  %v2502_v33 = vrot.slane %v2500_v25, 3  ;;  %v432_v42 = vshrl.u32 %v7004_v20, 16  ;;  %v7010_v51 = vld [vmem:[%s8929_s0 + $0x20] sm:$0xff]   ;;  %v7011_v56 = vld [vmem:[%s8929_s0 + $0x28] sm:$0xff]  }
   0x9   :  { %6440 = vmatprep.subr.bf16.mxu0 %v6997_v5  ;;  %v418_v26 = vor.u32 %v417_v18, %v413_v12  ;;  %v426_v27 = vor.u32 %v424_v15, %v422_v19  ;;  %v2491_v30 = vrot.slane %v2489_v22, 2  ;;  %v2494_v31 = vrot.slane %v2492_v23, 3  ;;  %v7012_v59 = vld [vmem:[%s8929_s0 + $0x28] sm:$0xff]   ;;  %v7013_v61 = vld [vmem:[%s8929_s0 + $0x30] sm:$0xff]   ;;  %v7016_v22 = vld [vmem:[%s8929_s0 + $0x38] sm:$0xff]  }
   0xa   :  { %v430_v35 = vrot.slane %v428_v28, 1  ;;  %v2503_v40 = vor.u32 %v2502_v33, %v2499_v32  ;;  %v2508_v44 = vrot.slane %v2506_v36, 2  ;;  %v2511_v45 = vrot.slane %v2509_v37, 3  ;;  %v7014_v9 = vld [vmem:[%s8929_s0 + $0x30] sm:$0xff]   ;;  %v7017_v24 = vld [vmem:[%s8929_s0 + $0x40] sm:$0xff]  }
   0xb   :  { %6209 = vmatpush3.bf16.msra.mxu1 %v6996_v4  ;;  %v423_v34 = vsel %vm411_vm0, %v418_v26, %v422_v19  ;;  %v2495_v39 = vor.u32 %v2494_v31, %v2491_v30  ;;  %v436_v48 = vshll.u32 %v7008_v41, 16  ;;  %v440_v52 = vshrl.u32 %v7008_v41, 16  ;;  %v7015_v19 = vld [vmem:[%s8929_s0 + $0x38] sm:$0xff]   ;;  %v7018_v29 = vld [vmem:[%s8929_s0 + $0x40] sm:$0xff]  }
   0xc   :  { %6441 = vmatpush3.bf16.msra.mxu0 %v6997_v5  ;;  %6210 = vmatprep.subr.bf16.mxu1 %v6998_v6  ;;  %v431_v43 = vsel %vm411_vm0, %v426_v27, %v430_v35  ;;  %v434_v47 = vor.u32 %v432_v42, %v430_v35  ;;  %v2512_v50 = vor.u32 %v2511_v45, %v2508_v44  ;;  %v2515_v54 = vshrl.u32 %v7009_v49, 16 }
   0xd   :  { %6442 = vmatprep.subr.bf16.mxu0 %v6999_v7  ;;  %6212 = vmatprep.mubr.msk.bf16.mxu1 %vm867_vm2, %v423_v34  ;;  %v2504_v46 = vsel %vm2487_vm1, %v2495_v39, %v2503_v40  ;;  %v438_v53 = vrot.slane %v436_v48, 1  ;;  %v2518_v55 = vshll.u32 %v7009_v49, 16  ;;  %v444_v58 = vshll.u32 %v7010_v51, 16  ;;  %v7019_v34 = vld [vmem:[%s8929_s0 + $0x48] sm:$0xff]  }
   0xe   :  { %6444 = vmatprep.mubr.msk.bf16.mxu0 %vm867_vm2, %v2504_v46  ;;  %v2513_v57 = vsel %vm2487_vm1, %v2503_v40, %v2512_v50  ;;  %v448_v60 = vshrl.u32 %v7010_v51, 16  ;;  %v2517_v63 = vrot.slane %v2515_v54, 2  ;;  %v2524_v3 = vshrl.u32 %v7011_v56, 16  ;;  %v7020_v39 = vld [vmem:[%s8929_s0 + $0x48] sm:$0xff]  }
   0xf   :  { %6211 = vmatpush3.bf16.msra.mxu1 %v6998_v6  ;;  %v439_v62 = vsel %vm411_vm0, %v434_v47, %v438_v53  ;;  %v2520_v0 = vrot.slane %v2518_v55, 3  ;;  %v442_v1 = vor.u32 %v440_v52, %v438_v53  ;;  %v446_v2 = vrot.slane %v444_v58, 1 }
  0x10   :  { %6443 = vmatpush3.bf16.msra.mxu0 %v6999_v7  ;;  %6320 = vmatprep.subr.bf16.mxu1 %v7005_v21  ;;  %v2527_v4 = vshll.u32 %v7011_v56, 16  ;;  %v452_v5 = vshll.u32 %v7012_v59, 16  ;;  %v2533_v7 = vshrl.u32 %v7013_v61, 16  ;;  %v2536_v8 = vshll.u32 %v7013_v61, 16  ;;  %v7021_v56 = vld [vmem:[%s8929_s0 + $0x50] sm:$0xff]  }
  0x11   :  { %6552 = vmatprep.subr.bf16.mxu0 %v7007_v38  ;;  %v2521_v6 = vor.u32 %v2520_v0, %v2517_v63  ;;  %v456_v10 = vshrl.u32 %v7012_v59, 16  ;;  %v447_v11 = vsel %vm411_vm0, %v442_v1, %v446_v2  ;;  %v2526_v12 = vrot.slane %v2524_v3, 2 }
  0x12   :  { %6213 = vmatmul.mubr.msk.bf16.vlgmr.msra.gmra.mrb[0].mxu1 %vm867_vm2, %v431_v43  ;;  %v2529_v13 = vrot.slane %v2527_v4, 3  ;;  %v450_v14 = vor.u32 %v448_v60, %v446_v2  ;;  %v454_v16 = vrot.slane %v452_v5, 1  ;;  %v2535_v17 = vrot.slane %v2533_v7, 2  ;;  %v7024_v5 = vld [vmem:[%s8929_s0 + $0x58] sm:$0xff]  }
  0x13   :  { %6321 = vmatpush3.bf16.msra.mxu1 %v7005_v21  ;;  %6445 = vmatmul.mubr.msk.bf16.vlgmr.msra.gmra.mrb[0].mxu0 %vm867_vm2, %v2513_v57  ;;  %v2522_v15 = vsel %vm2487_vm1, %v2512_v50, %v2521_v6  ;;  %v2538_v18 = vrot.slane %v2536_v8, 3  ;;  %v460_v21 = vshll.u32 %v7014_v9, 16  ;;  %v464_v23 = vshrl.u32 %v7014_v9, 16  ;;  %v7022_v57 = vld [vmem:[%s8929_s0 + $0x50] sm:$0xff]  }
  0x14   :  { %6553 = vmatpush3.bf16.msra.mxu0 %v7007_v38  ;;  %6216 = vmatprep.mubr.msk.bf16.mxu1 %vm867_vm2, %v439_v62  ;;  %v2530_v20 = vor.u32 %v2529_v13, %v2526_v12  ;;  %v455_v25 = vsel %vm411_vm0, %v450_v14, %v454_v16  ;;  %v458_v27 = vor.u32 %v456_v10, %v454_v16  ;;  %v2542_v28 = vshrl.u32 %v7015_v19, 16  ;;  %v7023_v62 = vld [vmem:[%s8929_s0 + $0x58] sm:$0xff]  }
  0x15   :  { %6448 = vmatprep.mubr.msk.bf16.mxu0 %vm867_vm2, %v2522_v15  ;;  %v2539_v26 = vor.u32 %v2538_v18, %v2535_v17  ;;  %v462_v31 = vrot.slane %v460_v21, 1  ;;  %v2545_v32 = vshll.u32 %v7015_v19, 16  ;;  %v468_v33 = vshll.u32 %v7016_v22, 16  ;;  %v7026_v17 = vld [vmem:[%s8929_s0 + $0x60] sm:$0xff]  }
  0x16   :  { %v2531_v30 = vsel %vm2487_vm1, %v2521_v6, %v2530_v20  ;;  %v2544_v36 = vrot.slane %v2542_v28, 2  ;;  %v2551_v37 = vshrl.u32 %v7017_v24, 16  ;;  %v2554_v38 = vshll.u32 %v7017_v24, 16  ;;  %v7025_v6 = vld [vmem:[%s8929_s0 + $0x60] sm:$0xff]   ;;  %v7029_v28 = vld [vmem:[%s8929_s0 + $0x70] sm:$0xff]  }
  0x17   :  { %v2540_v35 = vsel %vm2487_vm1, %v2530_v20, %v2539_v26  ;;  %v463_v40 = vsel %vm411_vm0, %v458_v27, %v462_v31  ;;  %v2547_v41 = vrot.slane %v2545_v32, 3  ;;  %v466_v42 = vor.u32 %v464_v23, %v462_v31 }
  0x18   :  { %v470_v43 = vrot.slane %v468_v33, 1  ;;  %v2553_v44 = vrot.slane %v2551_v37, 2  ;;  %v2556_v45 = vrot.slane %v2554_v38, 3  ;;  %v472_v46 = vshrl.u32 %v7016_v22, 16  ;;  %v7027_v22 = vld [vmem:[%s8929_s0 + $0x68] sm:$0xff]  }
  0x19   :  { %v476_v47 = vshll.u32 %v7018_v29, 16  ;;  %v2548_v48 = vor.u32 %v2547_v41, %v2544_v36  ;;  %v2560_v50 = vshrl.u32 %v7019_v34, 16  ;;  %v2563_v51 = vshll.u32 %v7019_v34, 16  ;;  %v7028_v33 = vld [vmem:[%s8929_s0 + $0x68] sm:$0xff]  }
  0x1a   :  { %6217 = vmatmul.mubr.msk.bf16.gmra.mrb[4].mxu1 %vm867_vm2, %v447_v11  ;;  %v471_v49 = vsel %vm411_vm0, %v466_v42, %v470_v43  ;;  %v2557_v52 = vor.u32 %v2556_v45, %v2553_v44  ;;  %v474_v53 = vor.u32 %v472_v46, %v470_v43  ;;  %v480_v55 = vshrl.u32 %v7018_v29, 16  ;;  %v7032_v46 = vld [vmem:[%s8928_s1 + $0x8] sm:$0xff]  }
  0x1b   :  { %6220 = vmatprep.mubr.msk.bf16.mxu1 %vm867_vm2, %v455_v25  ;;  %6449 = vmatmul.mubr.msk.bf16.gmra.mrb[4].mxu0 %vm867_vm2, %v2531_v30  ;;  %v478_v54 = vrot.slane %v476_v47, 1  ;;  %v2549_v58 = vsel %vm2487_vm1, %v2539_v26, %v2548_v48  ;;  %v2562_v59 = vrot.slane %v2560_v50, 2  ;;  %v2565_v60 = vrot.slane %v2563_v51, 3  ;;  %v7031_v50 = vld [vmem:[%s8929_s0 + $0x78] sm:$0xff]  }
  0x1c   :  { %6452 = vmatprep.mubr.msk.bf16.mxu0 %vm867_vm2, %v2540_v35  ;;  %v484_v61 = vshll.u32 %v7020_v39, 16  ;;  %v2558_v63 = vsel %vm2487_vm1, %v2548_v48, %v2557_v52  ;;  %v2569_v1 = vshrl.u32 %v7021_v56, 16  ;;  %v2572_v4 = vshll.u32 %v7021_v56, 16  ;;  %6322 = vmatprep.subr.bf16.mxu1 %v7032_v46  ;;  %v7033_v56 = vld [vmem:[%s8928_s1 + $0x68] sm:$0xff]  }
  0x1d   :  { %v482_v0 = vor.u32 %v480_v55, %v478_v54  ;;  %v2566_v2 = vor.u32 %v2565_v60, %v2562_v59  ;;  %v488_v8 = vshrl.u32 %v7020_v39, 16  ;;  %v492_v9 = vshll.u32 %v7022_v57, 16  ;;  %6323 = vmatpush3.bf16.msra.mxu1 %v7032_v46  ;;  %6554 = vmatprep.subr.bf16.mxu0 %v7033_v56 }
  0x1e   :  { %v486_v3 = vrot.slane %v484_v61, 1  ;;  %v2571_v7 = vrot.slane %v2569_v1, 2  ;;  %v2578_v10 = vshrl.u32 %v7023_v62, 16  ;;  %v479_v11 = vsel %vm411_vm0, %v474_v53, %v478_v54  ;;  %v7034_v61 = vld [vmem:[%s8929_s0 + $0x78] sm:$0xff]   ;;  %6555 = vmatpush3.bf16.msra.mxu0 %v7033_v56 }
  0x1f   :  { %v2574_v12 = vrot.slane %v2572_v4, 3  ;;  %v2581_v13 = vshll.u32 %v7023_v62, 16  ;;  %v494_v15 = vrot.slane %v492_v9, 1  ;;  %v496_v16 = vshrl.u32 %v7022_v57, 16 }
  0x20   :  { %v487_v14 = vsel %vm411_vm0, %v482_v0, %v486_v3  ;;  %v500_v19 = vshll.u32 %v7024_v5, 16  ;;  %v2587_v20 = vshrl.u32 %v7025_v6, 16  ;;  %v2590_v21 = vshll.u32 %v7025_v6, 16 }
  0x21   :  { %v2575_v18 = vor.u32 %v2574_v12, %v2571_v7  ;;  %v2567_v23 = vsel %vm2487_vm1, %v2557_v52, %v2566_v2  ;;  %v490_v24 = vor.u32 %v488_v8, %v486_v3  ;;  %v2580_v25 = vrot.slane %v2578_v10, 2  ;;  %v7036_v10 = vld [vmem:[%s8929_s0 + $0x80] sm:$0xff]  }
  0x22   :  { %6221 = vmatmul.mubr.msk.bf16.gmra.mrb[8].mxu1 %vm867_vm2, %v463_v40  ;;  %v2583_v26 = vrot.slane %v2581_v13, 3  ;;  %v498_v27 = vor.u32 %v496_v16, %v494_v15  ;;  %v502_v30 = vrot.slane %v500_v19, 1  ;;  %v2589_v31 = vrot.slane %v2587_v20, 2 }
  0x23   :  { %6224 = vmatprep.mubr.msk.bf16.mxu1 %vm867_vm2, %v471_v49  ;;  %6453 = vmatmul.mubr.msk.bf16.gmra.mrb[8].mxu0 %vm867_vm2, %v2549_v58  ;;  %v2576_v29 = vsel %vm2487_vm1, %v2566_v2, %v2575_v18  ;;  %v2592_v32 = vrot.slane %v2590_v21, 3  ;;  %v508_v34 = vshll.u32 %v7026_v17, 16  ;;  %v2596_v35 = vshrl.u32 %v7027_v22, 16  ;;  %v7030_v49 = vld [vmem:[%s8929_s0 + $0x70] sm:$0xff]  }
  0x24   :  { %6456 = vmatprep.mubr.msk.bf16.mxu0 %vm867_vm2, %v2558_v63  ;;  %v504_v36 = vshrl.u32 %v7024_v5, 16  ;;  %v2599_v37 = vshll.u32 %v7027_v22, 16  ;;  %v512_v38 = vshrl.u32 %v7026_v17, 16  ;;  %v495_v39 = vsel %vm411_vm0, %v490_v24, %v494_v15  ;;  %v7035_v63 = vld [vmem:[%s8929_s0 + $0x80] sm:$0xff]   ;;  %v7037_v15 = vld [vmem:[%s8929_s0 + $0x88] sm:$0xff]  }
  0x25   :  { %v2584_v40 = vor.u32 %v2583_v26, %v2580_v25  ;;  %v2605_v41 = vshrl.u32 %v7029_v28, 16  ;;  %v2608_v42 = vshll.u32 %v7029_v28, 16  ;;  %v503_v43 = vsel %vm411_vm0, %v498_v27, %v502_v30 }
  0x26   :  { %v2593_v44 = vor.u32 %v2592_v32, %v2589_v31  ;;  %v516_v45 = vshll.u32 %v7028_v33, 16  ;;  %v510_v47 = vrot.slane %v508_v34, 1  ;;  %v2598_v48 = vrot.slane %v2596_v35, 2 }
  0x27   :  { %v506_v51 = vor.u32 %v504_v36, %v502_v30  ;;  %v2601_v52 = vrot.slane %v2599_v37, 3  ;;  %v2607_v53 = vrot.slane %v2605_v41, 2  ;;  %v2585_v54 = vsel %vm2487_vm1, %v2575_v18, %v2584_v40  ;;  %v7038_v18 = vld [vmem:[%s8929_s0 + $0x88] sm:$0xff]   ;;  %v7040_v37 = vld [vmem:[%s8929_s0 + $0x90] sm:$0xff]  }
  0x28   :  { %v2610_v55 = vrot.slane %v2608_v42, 3  ;;  %v2594_v57 = vsel %vm2487_vm1, %v2584_v40, %v2593_v44  ;;  %v514_v58 = vor.u32 %v512_v38, %v510_v47  ;;  %v518_v59 = vrot.slane %v516_v45, 1  ;;  %v7041_v38 = vld [vmem:[%s8929_s0 + $0x98] sm:$0xff]  }
  0x29   :  { %v520_v60 = vshrl.u32 %v7028_v33, 16  ;;  %v524_v62 = vshll.u32 %v7030_v49, 16  ;;  %v511_v0 = vsel %vm411_vm0, %v506_v51, %v510_v47  ;;  %v2614_v1 = vshrl.u32 %v7031_v50, 16 }
  0x2a   :  { %6225 = vmatmul.mubr.msk.bf16.gmra.mrb[12].mxu1 %vm867_vm2, %v479_v11  ;;  %v2617_v2 = vshll.u32 %v7031_v50, 16  ;;  %v2602_v3 = vor.u32 %v2601_v52, %v2598_v48  ;;  %v2611_v4 = vor.u32 %v2610_v55, %v2607_v53  ;;  %v528_v5 = vshrl.u32 %v7030_v49, 16  ;;  %v7043_v49 = vld [vmem:[%s8929_s0 + $0xa0] sm:$0xff]  }
  0x2b   :  { %6228 = vmatprep.mubr.msk.bf16.mxu1 %vm867_vm2, %v487_v14  ;;  %6457 = vmatmul.mubr.msk.bf16.gmra.mrb[12].mxu0 %vm867_vm2, %v2567_v23  ;;  %v532_v6 = vshll.u32 %v7034_v61, 16  ;;  %v519_v7 = vsel %vm411_vm0, %v514_v58, %v518_v59  ;;  %v2623_v8 = vshrl.u32 %v7035_v63, 16  ;;  %v2626_v9 = vshll.u32 %v7035_v63, 16  ;;  %v7039_v23 = vld [vmem:[%s8929_s0 + $0x90] sm:$0xff]  }
  0x2c   :  { %6460 = vmatprep.mubr.msk.bf16.mxu0 %vm867_vm2, %v2576_v29  ;;  %v522_v11 = vor.u32 %v520_v60, %v518_v59  ;;  %v526_v12 = vrot.slane %v524_v62, 1  ;;  %v2616_v13 = vrot.slane %v2614_v1, 2  ;;  %v2619_v14 = vrot.slane %v2617_v2, 3 }
  0x2d   :  { %v2603_v16 = vsel %vm2487_vm1, %v2593_v44, %v2602_v3  ;;  %v2612_v17 = vsel %vm2487_vm1, %v2602_v3, %v2611_v4  ;;  %v534_v20 = vrot.slane %v532_v6, 1  ;;  %v2625_v21 = vrot.slane %v2623_v8, 2  ;;  %v7042_v44 = vld [vmem:[%s8929_s0 + $0x98] sm:$0xff]   ;;  %v7045_v3 = vld [vmem:[%s8929_s0 + $0xa8] sm:$0xff]  }
  0x2e   :  { %v530_v19 = vor.u32 %v528_v5, %v526_v12  ;;  %v2628_v22 = vrot.slane %v2626_v9, 3  ;;  %v540_v24 = vshll.u32 %v7036_v10, 16  ;;  %v527_v25 = vsel %vm411_vm0, %v522_v11, %v526_v12  ;;  %v7046_v6 = vld [vmem:[%s8929_s0 + $0xa8] sm:$0xff]  }
  0x2f   :  { %v2620_v26 = vor.u32 %v2619_v14, %v2616_v13  ;;  %v2632_v27 = vshrl.u32 %v7037_v15, 16  ;;  %v536_v28 = vshrl.u32 %v7034_v61, 16  ;;  %v2635_v29 = vshll.u32 %v7037_v15, 16 }
  0x30   :  { %v544_v30 = vshrl.u32 %v7036_v10, 16  ;;  %v548_v31 = vshll.u32 %v7038_v18, 16  ;;  %v535_v32 = vsel %vm411_vm0, %v530_v19, %v534_v20  ;;  %v2629_v33 = vor.u32 %v2628_v22, %v2625_v21 }
  0x31   :  { %v2641_v34 = vshrl.u32 %v7039_v23, 16  ;;  %v2644_v35 = vshll.u32 %v7039_v23, 16  ;;  %v542_v36 = vrot.slane %v540_v24, 1  ;;  %v2621_v40 = vsel %vm2487_vm1, %v2611_v4, %v2620_v26 }
  0x32   :  { %6229 = vmatmul.mubr.msk.bf16.gmra.mrb[16].mxu1 %vm867_vm2, %v495_v39  ;;  %v2634_v39 = vrot.slane %v2632_v27, 2  ;;  %v538_v41 = vor.u32 %v536_v28, %v534_v20  ;;  %v2637_v42 = vrot.slane %v2635_v29, 3  ;;  %v2630_v45 = vsel %vm2487_vm1, %v2620_v26, %v2629_v33  ;;  %v7048_v28 = vld [vmem:[%s8929_s0 + $0xb0] sm:$0xff]   ;;  %v7049_v29 = vld [vmem:[%s8929_s0 + $0xb8] sm:$0xff]  }
  0x33   :  { %6232 = vmatprep.mubr.msk.bf16.mxu1 %vm867_vm2, %v503_v43  ;;  %6461 = vmatmul.mubr.msk.bf16.gmra.mrb[16].mxu0 %vm867_vm2, %v2585_v54  ;;  %v546_v43 = vor.u32 %v544_v30, %v542_v36  ;;  %v550_v46 = vrot.slane %v548_v31, 1  ;;  %v2643_v47 = vrot.slane %v2641_v34, 2  ;;  %v2646_v48 = vrot.slane %v2644_v35, 3  ;;  %v7050_v34 = vld [vmem:[%s8929_s0 + $0xb8] sm:$0xff]  }
  0x34   :  { %6464 = vmatprep.mubr.msk.bf16.mxu0 %vm867_vm2, %v2594_v57  ;;  %v556_v50 = vshll.u32 %v7040_v37, 16  ;;  %v2650_v51 = vshrl.u32 %v7041_v38, 16  ;;  %v552_v52 = vshrl.u32 %v7038_v18, 16  ;;  %v2653_v53 = vshll.u32 %v7041_v38, 16 }
  0x35   :  { %v543_v54 = vsel %vm411_vm0, %v538_v41, %v542_v36  ;;  %v2638_v55 = vor.u32 %v2637_v42, %v2634_v39  ;;  %v560_v56 = vshrl.u32 %v7040_v37, 16  ;;  %v564_v57 = vshll.u32 %v7042_v44, 16  ;;  %v7051_v37 = vld [vmem:[%s8929_s0 + $0xc0] sm:$0xff]  }
  0x36   :  { %v551_v58 = vsel %vm411_vm0, %v546_v43, %v550_v46  ;;  %v2647_v59 = vor.u32 %v2646_v48, %v2643_v47  ;;  %v2659_v60 = vshrl.u32 %v7043_v49, 16  ;;  %v2662_v61 = vshll.u32 %v7043_v49, 16 }
  0x37   :  { %v558_v62 = vrot.slane %v556_v50, 1  ;;  %v2652_v63 = vrot.slane %v2650_v51, 2  ;;  %v554_v1 = vor.u32 %v552_v52, %v550_v46  ;;  %v2655_v2 = vrot.slane %v2653_v53, 3  ;;  %v7052_v50 = vld [vmem:[%s8929_s0 + $0xc0] sm:$0xff]   ;;  %v7053_v51 = vld [vmem:[%s8929_s0 + $0xc8] sm:$0xff]  }
  0x38   :  { %v2639_v4 = vsel %vm2487_vm1, %v2629_v33, %v2638_v55  ;;  %v2648_v8 = vsel %vm2487_vm1, %v2638_v55, %v2647_v59  ;;  %v566_v9 = vrot.slane %v564_v57, 1  ;;  %v2661_v10 = vrot.slane %v2659_v60, 2  ;;  %v7055_v55 = vld [vmem:[%s8929_s0 + $0xd0] sm:$0xff]  }
  0x39   :  { %v562_v5 = vor.u32 %v560_v56, %v558_v62  ;;  %v2664_v11 = vrot.slane %v2662_v61, 3  ;;  %v559_v13 = vsel %vm411_vm0, %v554_v1, %v558_v62  ;;  %v2656_v14 = vor.u32 %v2655_v2, %v2652_v63  ;;  %v7062_v60 = vld [vmem:[%s8928_s1 + $0x10] sm:$0xff]  }
  0x3a   :  { %6233 = vmatmul.mubr.msk.bf16.gmra.mrb[20].mxu1 %vm867_vm2, %v511_v0  ;;  %v7044_v0 = vld [vmem:[%s8929_s0 + $0xa0] sm:$0xff]   ;;  %v568_v15 = vshrl.u32 %v7042_v44, 16  ;;  %v580_v19 = vshll.u32 %v7046_v6, 16  ;;  %v584_v38 = vshrl.u32 %v7046_v6, 16  ;;  %v2686_v41 = vshrl.u32 %v7049_v29, 16  ;;  %v7063_v61 = vld [vmem:[%s8928_s1 + $0x70] sm:$0xff]   ;;  %6324 = vmatprep.subr.bf16.mxu1 %v7062_v60 }
  0x3b   :  { %6236 = vmatprep.mubr.msk.bf16.mxu1 %vm867_vm2, %v519_v7  ;;  %6465 = vmatmul.mubr.msk.bf16.gmra.mrb[20].mxu0 %vm867_vm2, %v2603_v16  ;;  %v7047_v7 = vld [vmem:[%s8929_s0 + $0xb0] sm:$0xff]   ;;  %v572_v12 = vshll.u32 %v7044_v0, 16  ;;  %v2668_v16 = vshrl.u32 %v7045_v3, 16  ;;  %v576_v18 = vshrl.u32 %v7044_v0, 16  ;;  %v567_v21 = vsel %vm411_vm0, %v562_v5, %v566_v9 }
  0x3c   :  { %6468 = vmatprep.mubr.msk.bf16.mxu0 %vm867_vm2, %v2612_v17  ;;  %v2671_v17 = vshll.u32 %v7045_v3, 16  ;;  %v2677_v20 = vshrl.u32 %v7047_v7, 16  ;;  %v2665_v22 = vor.u32 %v2664_v11, %v2661_v10  ;;  %v2680_v23 = vshll.u32 %v7047_v7, 16  ;;  %6556 = vmatprep.subr.bf16.mxu0 %v7063_v61 }
  0x3d   :  { %v574_v24 = vrot.slane %v572_v12, 1  ;;  %v570_v26 = vor.u32 %v568_v15, %v566_v9  ;;  %v2670_v27 = vrot.slane %v2668_v16, 2  ;;  %v2689_v44 = vshll.u32 %v7049_v29, 16  ;;  %6325 = vmatpush3.bf16.msra.mxu1 %v7062_v60  ;;  %6557 = vmatpush3.bf16.msra.mxu0 %v7063_v61  ;;  %v7056_v15 = vld [vmem:[%s8929_s0 + $0xd0] sm:$0xff]  }
  0x3e   :  { %v2673_v30 = vrot.slane %v2671_v17, 3  ;;  %v2679_v33 = vrot.slane %v2677_v20, 2  ;;  %v2666_v35 = vsel %vm2487_vm1, %v2656_v14, %v2665_v22  ;;  %v2682_v36 = vrot.slane %v2680_v23, 3  ;;  %v7057_v20 = vld [vmem:[%s8929_s0 + $0xd8] sm:$0xff]  }
  0x3f   :  { %v578_v31 = vor.u32 %v576_v18, %v574_v24  ;;  %v575_v39 = vsel %vm411_vm0, %v570_v26, %v574_v24  ;;  %v592_v47 = vshrl.u32 %v7048_v28, 16  ;;  %v2695_v48 = vshrl.u32 %v7051_v37, 16  ;;  %v7058_v26 = vld [vmem:[%s8929_s0 + $0xd8] sm:$0xff]  }
  0x40   :  { %v2674_v42 = vor.u32 %v2673_v30, %v2670_v27  ;;  %v2683_v46 = vor.u32 %v2682_v36, %v2679_v33  ;;  %v2698_v49 = vshll.u32 %v7051_v37, 16  ;;  %v2688_v53 = vrot.slane %v2686_v41, 2  ;;  %v7059_v27 = vld [vmem:[%s8929_s0 + $0xe0] sm:$0xff]  }
  0x41   :  { %v2697_v0 = vrot.slane %v2695_v48, 2  ;;  %v600_v2 = vshrl.u32 %v7050_v34, 16  ;;  %v604_v3 = vshll.u32 %v7052_v50, 16  ;;  %v2707_v5 = vshll.u32 %v7053_v51, 16  ;;  %v7065_v48 = vld [vmem:[%s8929_s0 + $0xf0] sm:$0xff]  }
  0x42   :  { %6237 = vmatmul.mubr.msk.bf16.gmra.mrb[24].mxu1 %vm867_vm2, %v527_v25  ;;  %v2657_v25 = vsel %vm2487_vm1, %v2647_v59, %v2656_v14  ;;  %v2675_v56 = vsel %vm2487_vm1, %v2665_v22, %v2674_v42  ;;  %v2684_v62 = vsel %vm2487_vm1, %v2674_v42, %v2683_v46  ;;  %v2700_v1 = vrot.slane %v2698_v49, 3 }
  0x43   :  { %6240 = vmatprep.mubr.msk.bf16.mxu1 %vm867_vm2, %v535_v32  ;;  %6469 = vmatmul.mubr.msk.bf16.gmra.mrb[24].mxu0 %vm867_vm2, %v2621_v40  ;;  %v582_v32 = vrot.slane %v580_v19, 1  ;;  %v588_v40 = vshll.u32 %v7048_v28, 16  ;;  %v608_v6 = vshrl.u32 %v7052_v50, 16  ;;  %v2713_v10 = vshrl.u32 %v7055_v55, 16 }
  0x44   :  { %6472 = vmatprep.mubr.msk.bf16.mxu0 %vm867_vm2, %v2630_v45  ;;  %v596_v45 = vshll.u32 %v7050_v34, 16  ;;  %v2716_v11 = vshll.u32 %v7055_v55, 16  ;;  %v606_v14 = vrot.slane %v604_v3, 1  ;;  %v2709_v18 = vrot.slane %v2707_v5, 3 }
  0x45   :  { %v583_v43 = vsel %vm411_vm0, %v578_v31, %v582_v32  ;;  %v590_v52 = vrot.slane %v588_v40, 1  ;;  %v586_v57 = vor.u32 %v584_v38, %v582_v32  ;;  %v2715_v23 = vrot.slane %v2713_v10, 2  ;;  %v7060_v40 = vld [vmem:[%s8929_s0 + $0xe0] sm:$0xff]  }
  0x46   :  { %v598_v59 = vrot.slane %v596_v45, 1  ;;  %v610_v22 = vor.u32 %v608_v6, %v606_v14  ;;  %v2718_v24 = vrot.slane %v2716_v11, 3  ;;  %v620_v30 = vshll.u32 %v7056_v15, 16  ;;  %v7067_v6 = vld [vmem:[%s8929_s0 + $0xf8] sm:$0xff]  }
  0x47   :  { %v594_v63 = vor.u32 %v592_v47, %v590_v52  ;;  %v2722_v31 = vshrl.u32 %v7057_v20, 16  ;;  %v624_v36 = vshrl.u32 %v7056_v15, 16  ;;  %v628_v37 = vshll.u32 %v7058_v26, 16  ;;  %v7068_v11 = vld [vmem:[%s8929_s0 + $0xf8] sm:$0xff]   ;;  %v7069_v15 = vld [vmem:[%s8929_s0 + $0x100] sm:$0xff]  }
  0x48   :  { %v602_v16 = vor.u32 %v600_v2, %v598_v59  ;;  %v2719_v34 = vor.u32 %v2718_v24, %v2715_v23  ;;  %v2731_v38 = vshrl.u32 %v7059_v27, 16  ;;  %v622_v42 = vrot.slane %v620_v30, 1  ;;  %v7066_v2 = vld [vmem:[%s8929_s0 + $0xf0] sm:$0xff]   ;;  %v7071_v30 = vld [vmem:[%s8929_s0 + $0x108] sm:$0xff]  }
  0x49   :  { %v599_v12 = vsel %vm411_vm0, %v594_v63, %v598_v59  ;;  %v630_v50 = vrot.slane %v628_v37, 1  ;;  %v632_v59 = vshrl.u32 %v7058_v26, 16  ;;  %v2749_v60 = vshrl.u32 %v7065_v48, 16 }
  0x4a   :  { %6241 = vmatmul.mubr.msk.bf16.gmra.mrb[28].mxu1 %vm867_vm2, %v543_v54  ;;  %v7483_v54 = vld [vmem:[%s8929_s0 + $0xc8] sm:$0xff]   ;;  %v607_v29 = vsel %vm411_vm0, %v602_v16, %v606_v14  ;;  %v626_v49 = vor.u32 %v624_v36, %v622_v42  ;;  %v2752_v61 = vshll.u32 %v7065_v48, 16  ;;  %v652_v16 = vshll.u32 %v7066_v2, 16 }
  0x4b   :  { %6244 = vmatprep.mubr.msk.bf16.mxu1 %vm867_vm2, %v551_v58  ;;  %6473 = vmatmul.mubr.msk.bf16.gmra.mrb[28].mxu0 %vm867_vm2, %v2639_v4  ;;  %v2691_v58 = vrot.slane %v2689_v44, 3  ;;  %v2704_v4 = vshrl.u32 %v7053_v51, 16  ;;  %v612_v7 = vshll.u32 %v7483_v54, 16  ;;  %v616_v28 = vshrl.u32 %v7483_v54, 16  ;;  %v7061_v44 = vld [vmem:[%s8929_s0 + $0xe8] sm:$0xff]  }
  0x4c   :  { %6476 = vmatprep.mubr.msk.bf16.mxu0 %vm867_vm2, %v2648_v8  ;;  %v591_v8 = vsel %vm411_vm0, %v586_v57, %v590_v52  ;;  %v2733_v51 = vrot.slane %v2731_v38, 2  ;;  %v636_v54 = vshll.u32 %v7060_v40, 16  ;;  %v2743_v57 = vshll.u32 %v7061_v44, 16 }
  0x4d   :  { %v2692_v9 = vor.u32 %v2691_v58, %v2688_v53  ;;  %v2706_v17 = vrot.slane %v2704_v4, 2  ;;  %v614_v19 = vrot.slane %v612_v7, 1  ;;  %v7064_v53 = vld [vmem:[%s8929_s0 + $0xe8] sm:$0xff]   ;;  %v2754_v10 = vrot.slane %v2752_v61, 3 }
  0x4e   :  { %v638_v3 = vrot.slane %v636_v54, 1  ;;  %v2745_v5 = vrot.slane %v2743_v57, 3  ;;  %v660_v23 = vshll.u32 %v7068_v11, 16  ;;  %v2767_v26 = vshrl.u32 %v7069_v15, 16 }
  0x4f   :  { %v2710_v32 = vor.u32 %v2709_v18, %v2706_v17  ;;  %v615_v33 = vsel %vm411_vm0, %v610_v22, %v614_v19  ;;  %v618_v41 = vor.u32 %v616_v28, %v614_v19  ;;  %v648_v18 = vshrl.u32 %v7064_v53, 16  ;;  %v7070_v28 = vld [vmem:[%s8929_s0 + $0x100] sm:$0xff]  }
  0x50   :  { %v2758_v19 = vshrl.u32 %v7067_v6, 16  ;;  %v2761_v22 = vshll.u32 %v7067_v6, 16  ;;  %v662_v37 = vrot.slane %v660_v23, 1  ;;  %v664_v38 = vshrl.u32 %v7068_v11, 16 }
  0x51   :  { %v623_v55 = vsel %vm411_vm0, %v618_v41, %v622_v42  ;;  %v668_v42 = vshll.u32 %v7070_v28, 16 }
  0x52   :  { %6245 = vmatmul.mubr.msk.bf16.gmra.mrb[32].mxu1 %vm867_vm2, %v559_v13  ;;  %v2701_v13 = vor.u32 %v2700_v1, %v2697_v0  ;;  %v640_v0 = vshrl.u32 %v7060_v40, 16  ;;  %v644_v1 = vshll.u32 %v7064_v53, 16  ;;  %v2763_v36 = vrot.slane %v2761_v22, 3 }
  0x53   :  { %6248 = vmatprep.mubr.msk.bf16.mxu1 %vm867_vm2, %v567_v21  ;;  %6477 = vmatmul.mubr.msk.bf16.gmra.mrb[32].mxu0 %vm867_vm2, %v2657_v25  ;;  %v2693_v21 = vsel %vm2487_vm1, %v2683_v46, %v2692_v9  ;;  %v2720_v46 = vsel %vm2487_vm1, %v2710_v32, %v2719_v34  ;;  %v2769_v40 = vrot.slane %v2767_v26, 2  ;;  %v670_v53 = vrot.slane %v668_v42, 1  ;;  %v7626_v26 = vld [vmem:[%s8929_s0 + $0x130] sm:$0xff]  }
  0x54   :  { %6480 = vmatprep.mubr.msk.bf16.mxu0 %vm867_vm2, %v2666_v35  ;;  %v2702_v25 = vsel %vm2487_vm1, %v2692_v9, %v2701_v13  ;;  %v2725_v35 = vshll.u32 %v7057_v20, 16  ;;  %v2711_v45 = vsel %vm2487_vm1, %v2701_v13, %v2710_v32  ;;  %v2751_v9 = vrot.slane %v2749_v60, 2 }
  0x55   :  { %v642_v13 = vor.u32 %v640_v0, %v638_v3  ;;  %v646_v14 = vrot.slane %v644_v1, 1  ;;  %v7092_v1 = vld [vmem:[%s8928_s1 + $0x18] sm:$0xff]  }
  0x56   :  { %v2727_v47 = vrot.slane %v2725_v35, 3  ;;  %6326 = vmatprep.subr.bf16.mxu1 %v7092_v1 }
  0x57   :  { %v647_v24 = vsel %vm411_vm0, %v642_v13, %v646_v14  ;;  %v650_v32 = vor.u32 %v648_v18, %v646_v14  ;;  %6327 = vmatpush3.bf16.msra.mxu1 %v7092_v1  ;;  %v7612_v18 = vld [vmem:[%s8929_s0 + $0x120] sm:$0xff]  }
  0x58   :  { %v704_v42 = vshrl.u32 %v7612_v18, 16 }
  0x5a   :  { %6249 = vmatmul.mubr.msk.bf16.gmra.mrb[36].mxu1 %vm867_vm2, %v575_v39  ;;  %v2734_v39 = vshll.u32 %v7059_v27, 16  ;;  %v2770_v27 = vshll.u32 %v7069_v15, 16 }
  0x5b   :  { %6252 = vmatprep.mubr.msk.bf16.mxu1 %vm867_vm2, %v583_v43  ;;  %6481 = vmatmul.mubr.msk.bf16.gmra.mrb[36].mxu0 %vm867_vm2, %v2675_v56  ;;  %v2724_v43 = vrot.slane %v2722_v31, 2  ;;  %v2740_v56 = vshrl.u32 %v7061_v44, 16  ;;  %v2776_v44 = vshrl.u32 %v7071_v30, 16 }
  0x5c   :  { %6484 = vmatprep.mubr.msk.bf16.mxu0 %vm867_vm2, %v2684_v62  ;;  %v2736_v52 = vrot.slane %v2734_v39, 3  ;;  %v631_v62 = vsel %vm411_vm0, %v626_v49, %v630_v50  ;;  %v2772_v41 = vrot.slane %v2770_v27, 3 }
  0x5d   :  { %v2728_v58 = vor.u32 %v2727_v47, %v2724_v43  ;;  %v2742_v4 = vrot.slane %v2740_v56, 2  ;;  %v7072_v43 = vld [vmem:[%s8929_s0 + $0x108] sm:$0xff]   ;;  %v2778_v56 = vrot.slane %v2776_v44, 2 }
  0x5e   :  { %v2737_v63 = vor.u32 %v2736_v52, %v2733_v51  ;;  %v2773_v52 = vor.u32 %v2772_v41, %v2769_v40  ;;  %v676_v54 = vshll.u32 %v7072_v43, 16 }
  0x5f   :  { %v2729_v7 = vsel %vm2487_vm1, %v2719_v34, %v2728_v58  ;;  %v2746_v17 = vor.u32 %v2745_v5, %v2742_v4  ;;  %v7073_v34 = vld [vmem:[%s8929_s0 + $0x110] sm:$0xff]   ;;  %v680_v5 = vshrl.u32 %v7072_v43, 16 }
  0x60   :  { %v2788_v47 = vshll.u32 %v7073_v34, 16  ;;  %v678_v4 = vrot.slane %v676_v54, 1 }
  0x61   :  { %v2747_v31 = vsel %vm2487_vm1, %v2737_v63, %v2746_v17 }
  0x62   :  { %6253 = vmatmul.mubr.msk.bf16.gmra.mrb[40].mxu1 %vm867_vm2, %v591_v8  ;;  %v634_v8 = vor.u32 %v632_v59, %v630_v50  ;;  %v672_v50 = vshrl.u32 %v7070_v28, 16  ;;  %v7075_v59 = vld [vmem:[%s8929_s0 + $0x118] sm:$0xff]   ;;  %v2790_v61 = vrot.slane %v2788_v47, 3  ;;  %v7648_v47 = vld [vmem:[%s8929_s0 + $0x130] sm:$0xff]  }
  0x63   :  { %6256 = vmatprep.mubr.msk.bf16.mxu1 %vm867_vm2, %v599_v12  ;;  %6485 = vmatmul.mubr.msk.bf16.gmra.mrb[40].mxu0 %vm867_vm2, %v2693_v21  ;;  %v2738_v12 = vsel %vm2487_vm1, %v2728_v58, %v2737_v63  ;;  %v2755_v21 = vor.u32 %v2754_v10, %v2751_v9  ;;  %v7074_v58 = vld [vmem:[%s8929_s0 + $0x110] sm:$0xff]   ;;  %v7077_v63 = vld [vmem:[%s8929_s0 + $0x120] sm:$0xff]   ;;  %v2794_v11 = vshrl.u32 %v7075_v59, 16  ;;  %v2797_v13 = vshll.u32 %v7075_v59, 16 }
  0x64   :  { %6488 = vmatprep.mubr.msk.bf16.mxu0 %vm867_vm2, %v2702_v25  ;;  %v639_v20 = vsel %vm411_vm0, %v634_v8, %v638_v3  ;;  %v656_v25 = vshrl.u32 %v7066_v2, 16  ;;  %v674_v3 = vor.u32 %v672_v50, %v670_v53  ;;  %v7093_v8 = vld [vmem:[%s8928_s1 + $0x78] sm:$0xff]   ;;  %v2803_v15 = vshrl.u32 %v7077_v63, 16 }
  0x65   :  { %v2756_v35 = vsel %vm2487_vm1, %v2746_v17, %v2755_v21  ;;  %6558 = vmatprep.subr.bf16.mxu0 %v7093_v8  ;;  %v720_v1 = vshrl.u32 %v7648_v47, 16 }
  0x66   :  { %v679_v17 = vsel %vm411_vm0, %v674_v3, %v678_v4  ;;  %6559 = vmatpush3.bf16.msra.mxu0 %v7093_v8 }
  0x6a   :  { %6257 = vmatmul.mubr.msk.bf16.gmra.mrb[44].mxu1 %vm867_vm2, %v607_v29  ;;  %v654_v29 = vrot.slane %v652_v16, 1  ;;  %v2806_v16 = vshll.u32 %v7077_v63, 16 }
  0x6b   :  { %6260 = vmatprep.mubr.msk.bf16.mxu1 %vm867_vm2, %v615_v33  ;;  %6489 = vmatmul.mubr.msk.bf16.gmra.mrb[44].mxu0 %vm867_vm2, %v2711_v45  ;;  %v2760_v33 = vrot.slane %v2758_v19, 2  ;;  %v2779_v45 = vshll.u32 %v7071_v30, 16  ;;  %v682_v19 = vor.u32 %v680_v5, %v678_v4 }
  0x6c   :  { %6492 = vmatprep.mubr.msk.bf16.mxu0 %vm867_vm2, %v2720_v46  ;;  %v658_v39 = vor.u32 %v656_v25, %v654_v29  ;;  %v2785_v46 = vshrl.u32 %v7073_v34, 16  ;;  %v655_v48 = vsel %vm411_vm0, %v650_v32, %v654_v29  ;;  %v2799_v25 = vrot.slane %v2797_v13, 3 }
  0x6d   :  { %v2764_v49 = vor.u32 %v2763_v36, %v2760_v33  ;;  %v2781_v57 = vrot.slane %v2779_v45, 3  ;;  %v2805_v29 = vrot.slane %v2803_v15, 2  ;;  %v2808_v30 = vrot.slane %v2806_v16, 3  ;;  %v7702_v15 = vld [vmem:[%s8929_s0 + $0x150] sm:$0xff]  }
  0x6e   :  { %v663_v51 = vsel %vm411_vm0, %v658_v39, %v662_v37  ;;  %v2787_v60 = vrot.slane %v2785_v46, 2  ;;  %v700_v33 = vshll.u32 %v7612_v18, 16  ;;  %v2824_v39 = vshll.u32 %v7626_v26, 16 }
  0x6f   :  { %v2765_v0 = vsel %vm2487_vm1, %v2755_v21, %v2764_v49  ;;  %v2774_v2 = vsel %vm2487_vm1, %v2764_v49, %v2773_v52  ;;  %v2782_v9 = vor.u32 %v2781_v57, %v2778_v56  ;;  %v7618_v21 = vld [vmem:[%s8929_s0 + $0x128] sm:$0xff]   ;;  %v2809_v41 = vor.u32 %v2808_v30, %v2805_v29  ;;  %v7666_v57 = vld [vmem:[%s8929_s0 + $0x140] sm:$0xff]  }
  0x70   :  { %v2791_v10 = vor.u32 %v2790_v61, %v2787_v60  ;;  %v2812_v34 = vshrl.u32 %v7618_v21, 16  ;;  %v702_v45 = vrot.slane %v700_v33, 1  ;;  %v716_v60 = vshll.u32 %v7648_v47, 16 }
  0x71   :  { %v2783_v22 = vsel %vm2487_vm1, %v2773_v52, %v2782_v9  ;;  %v2826_v52 = vrot.slane %v2824_v39, 3  ;;  %v2839_v4 = vshrl.u32 %v7666_v57, 16  ;;  %v2842_v5 = vshll.u32 %v7666_v57, 16 }
  0x72   :  { %6261 = vmatmul.mubr.msk.bf16.gmra.mrb[48].mxu1 %vm867_vm2, %v623_v55  ;;  %v666_v55 = vor.u32 %v664_v38, %v662_v37  ;;  %v2792_v23 = vsel %vm2487_vm1, %v2782_v9, %v2791_v10  ;;  %v2821_v38 = vshrl.u32 %v7626_v26, 16  ;;  %v2814_v46 = vrot.slane %v2812_v34, 2  ;;  %v7689_v9 = vld [vmem:[%s8929_s0 + $0x148] sm:$0xff]  }
  0x73   :  { %6264 = vmatprep.mubr.msk.bf16.mxu1 %vm867_vm2, %v631_v62  ;;  %6493 = vmatmul.mubr.msk.bf16.gmra.mrb[48].mxu0 %vm867_vm2, %v2729_v7  ;;  %v7076_v62 = vld [vmem:[%s8929_s0 + $0x118] sm:$0xff]   ;;  %v684_v7 = vshll.u32 %v7074_v58, 16  ;;  %v2857_v30 = vshrl.u32 %v7702_v15, 16 }
  0x74   :  { %6496 = vmatprep.mubr.msk.bf16.mxu0 %vm867_vm2, %v2738_v12  ;;  %v671_v6 = vsel %vm411_vm0, %v666_v55, %v670_v53  ;;  %v688_v12 = vshrl.u32 %v7074_v58, 16  ;;  %v692_v14 = vshll.u32 %v7076_v62, 16  ;;  %v696_v32 = vshrl.u32 %v7076_v62, 16  ;;  %v7660_v53 = vld [vmem:[%s8929_s0 + $0x138] sm:$0xff]  }
  0x75   :  { %v706_v55 = vor.u32 %v704_v42, %v702_v45 }
  0x76   :  { %v694_v28 = vrot.slane %v692_v14, 1 }
  0x78   :  { %v698_v44 = vor.u32 %v696_v32, %v694_v28 }
  0x7a   :  { %6265 = vmatmul.mubr.msk.bf16.gmra.mrb[52].mxu1 %vm867_vm2, %v639_v20  ;;  %v686_v20 = vrot.slane %v684_v7, 1  ;;  %v703_v58 = vsel %vm411_vm0, %v698_v44, %v702_v45  ;;  %v718_v7 = vrot.slane %v716_v60, 1  ;;  %v7727_v44 = vld [vmem:[%s8929_s0 + $0x158] sm:$0xff]  }
  0x7b   :  { %6268 = vmatprep.mubr.msk.bf16.mxu1 %vm867_vm2, %v647_v24  ;;  %6497 = vmatmul.mubr.msk.bf16.gmra.mrb[52].mxu0 %vm867_vm2, %v2747_v31  ;;  %v2796_v24 = vrot.slane %v2794_v11, 2  ;;  %v7631_v31 = vld [vmem:[%s8929_s0 + $0x128] sm:$0xff]   ;;  %v7732_v45 = vld [vmem:[%s8929_s0 + $0x158] sm:$0xff]  }
  0x7c   :  { %6500 = vmatprep.mubr.msk.bf16.mxu0 %vm867_vm2, %v2756_v35  ;;  %v690_v27 = vor.u32 %v688_v12, %v686_v20  ;;  %v2815_v35 = vshll.u32 %v7618_v21, 16  ;;  %v687_v36 = vsel %vm411_vm0, %v682_v19, %v686_v20  ;;  %v708_v43 = vshll.u32 %v7631_v31, 16 }
  0x7d   :  { %v2800_v37 = vor.u32 %v2799_v25, %v2796_v24  ;;  %v712_v59 = vshrl.u32 %v7631_v31, 16  ;;  %v722_v16 = vor.u32 %v720_v1, %v718_v7  ;;  %v2841_v19 = vrot.slane %v2839_v4, 2 }
  0x7e   :  { %v695_v40 = vsel %vm411_vm0, %v690_v27, %v694_v28  ;;  %v2817_v50 = vrot.slane %v2815_v35, 3  ;;  %v710_v56 = vrot.slane %v708_v43, 1  ;;  %v2844_v20 = vrot.slane %v2842_v5, 3 }
  0x7f   :  { %v2801_v49 = vsel %vm2487_vm1, %v2791_v10, %v2800_v37  ;;  %v2810_v54 = vsel %vm2487_vm1, %v2800_v37, %v2809_v41  ;;  %v7694_v10 = vld [vmem:[%s8929_s0 + $0x148] sm:$0xff]   ;;  %v2848_v24 = vshrl.u32 %v7689_v9, 16  ;;  %v2851_v25 = vshll.u32 %v7689_v9, 16 }
  0x80   :  { %v2818_v63 = vor.u32 %v2817_v50, %v2814_v46  ;;  %v711_v3 = vsel %vm411_vm0, %v706_v55, %v710_v56  ;;  %v714_v13 = vor.u32 %v712_v59, %v710_v56  ;;  %v740_v29 = vshll.u32 %v7694_v10, 16 }
  0x81   :  { %v2845_v33 = vor.u32 %v2844_v20, %v2841_v19  ;;  %v2860_v35 = vshll.u32 %v7702_v15, 16  ;;  %v2850_v39 = vrot.slane %v2848_v24, 2  ;;  %v2859_v43 = vrot.slane %v2857_v30, 2  ;;  %v7769_v19 = vld [vmem:[%s8929_s0 + $0x168] sm:$0xff]   ;;  %v7774_v20 = vld [vmem:[%s8929_s0 + $0x170] sm:$0xff]  }
  0x82   :  { %6269 = vmatmul.mubr.msk.bf16.gmra.mrb[56].mxu1 %vm867_vm2, %v655_v48  ;;  %v7653_v48 = vld [vmem:[%s8929_s0 + $0x138] sm:$0xff]   ;;  %v2819_v11 = vsel %vm2487_vm1, %v2809_v41, %v2818_v63  ;;  %v719_v27 = vsel %vm411_vm0, %v714_v13, %v718_v7  ;;  %v742_v42 = vrot.slane %v740_v29, 1  ;;  %v744_v56 = vshrl.u32 %v7694_v10, 16  ;;  %v7762_v7 = vld [vmem:[%s8929_s0 + $0x168] sm:$0xff]  }
  0x83   :  { %6272 = vmatprep.mubr.msk.bf16.mxu1 %vm867_vm2, %v663_v51  ;;  %6501 = vmatmul.mubr.msk.bf16.gmra.mrb[56].mxu0 %vm867_vm2, %v2765_v0  ;;  %v2823_v51 = vrot.slane %v2821_v38, 2  ;;  %v2830_v61 = vshrl.u32 %v7653_v48, 16  ;;  %v2833_v62 = vshll.u32 %v7653_v48, 16  ;;  %v2862_v50 = vrot.slane %v2860_v35, 3 }
  0x84   :  { %6504 = vmatprep.mubr.msk.bf16.mxu0 %vm867_vm2, %v2774_v2  ;;  %v724_v2 = vshll.u32 %v7660_v53, 16  ;;  %v2869_v59 = vshll.u32 %v7727_v44, 16  ;;  %v746_v5 = vor.u32 %v744_v56, %v742_v42  ;;  %v2884_v24 = vshrl.u32 %v7762_v7, 16 }
  0x85   :  { %v2827_v0 = vor.u32 %v2826_v52, %v2823_v51  ;;  %v2832_v8 = vrot.slane %v2830_v61, 2  ;;  %v2835_v14 = vrot.slane %v2833_v62, 3  ;;  %v7738_v51 = vld [vmem:[%s8929_s0 + $0x160] sm:$0xff]   ;;  %v756_v61 = vshll.u32 %v7732_v45, 16 }
  0x86   :  { %v2878_v1 = vshll.u32 %v7738_v51, 16  ;;  %v2896_v35 = vshll.u32 %v7774_v20, 16 }
  0x87   :  { %v2828_v12 = vsel %vm2487_vm1, %v2818_v63, %v2827_v0  ;;  %v2836_v28 = vor.u32 %v2835_v14, %v2832_v8  ;;  %v2863_v63 = vor.u32 %v2862_v50, %v2859_v43  ;;  %v758_v13 = vrot.slane %v756_v61, 1  ;;  %v7809_v50 = vld [vmem:[%s8929_s0 + $0x180] sm:$0xff]  }
  0x88   :  { %v2898_v56 = vrot.slane %v2896_v35, 3  ;;  %v776_v61 = vshrl.u32 %v7769_v19, 16 }
  0x89   :  { %v2837_v41 = vsel %vm2487_vm1, %v2827_v0, %v2836_v28  ;;  %v2846_v46 = vsel %vm2487_vm1, %v2836_v28, %v2845_v33  ;;  %v2875_v0 = vshrl.u32 %v7738_v51, 16 }
  0x8a   :  { %6273 = vmatmul.mubr.msk.bf16.gmra.mrb[60].mxu1 %vm867_vm2, %v671_v6  ;;  %v7683_v6 = vld [vmem:[%s8929_s0 + $0x140] sm:$0xff]  }
  0x8b   :  { %6276 = vmatprep.mubr.msk.bf16.mxu1 %vm867_vm2, %v679_v17  ;;  %6505 = vmatmul.mubr.msk.bf16.gmra.mrb[60].mxu0 %vm867_vm2, %v2783_v22  ;;  %v726_v17 = vrot.slane %v724_v2, 1  ;;  %v728_v22 = vshrl.u32 %v7660_v53, 16  ;;  %v736_v34 = vshrl.u32 %v7683_v6, 16 }
  0x8c   :  { %6508 = vmatprep.mubr.msk.bf16.mxu0 %vm867_vm2, %v2792_v23  ;;  %v732_v23 = vshll.u32 %v7683_v6, 16 }
  0x8d   :  { %v727_v32 = vsel %vm411_vm0, %v722_v16, %v726_v17  ;;  %v730_v37 = vor.u32 %v728_v22, %v726_v17  ;;  %v2877_v16 = vrot.slane %v2875_v0, 2  ;;  %v2880_v17 = vrot.slane %v2878_v1, 3 }
  0x8e   :  { %v734_v38 = vrot.slane %v732_v23, 1  ;;  %v760_v22 = vshrl.u32 %v7732_v45, 16 }
  0x92   :  { %6277 = vmatmul.mubr.msk.bf16.gmra.mrb[64].mxu1 %vm867_vm2, %v687_v36  ;;  %v7719_v36 = vld [vmem:[%s8929_s0 + $0x150] sm:$0xff]  }
  0x93   :  { %6280 = vmatprep.mubr.msk.bf16.mxu1 %vm867_vm2, %v695_v40  ;;  %6509 = vmatmul.mubr.msk.bf16.gmra.mrb[64].mxu0 %vm867_vm2, %v2801_v49  ;;  %v2853_v40 = vrot.slane %v2851_v25, 3  ;;  %v738_v49 = vor.u32 %v736_v34, %v734_v38  ;;  %v748_v52 = vshll.u32 %v7719_v36, 16  ;;  %v752_v60 = vshrl.u32 %v7719_v36, 16 }
  0x94   :  { %6512 = vmatprep.mubr.msk.bf16.mxu0 %vm867_vm2, %v2810_v54  ;;  %v735_v54 = vsel %vm411_vm0, %v730_v37, %v734_v38  ;;  %v2887_v25 = vshll.u32 %v7762_v7, 16  ;;  %v2893_v34 = vshrl.u32 %v7774_v20, 16  ;;  %v762_v37 = vor.u32 %v760_v22, %v758_v13  ;;  %v7834_v22 = vld [vmem:[%s8929_s0 + $0x188] sm:$0xff]  }
  0x95   :  { %v2854_v55 = vor.u32 %v2853_v40, %v2850_v39  ;;  %v743_v62 = vsel %vm411_vm0, %v738_v49, %v742_v42  ;;  %v750_v2 = vrot.slane %v748_v52, 1  ;;  %v7791_v39 = vld [vmem:[%s8929_s0 + $0x170] sm:$0xff]   ;;  %v2886_v40 = vrot.slane %v2884_v24, 2  ;;  %v7797_v42 = vld [vmem:[%s8929_s0 + $0x178] sm:$0xff]  }
  0x96   :  { %v7804_v49 = vld [vmem:[%s8929_s0 + $0x178] sm:$0xff]   ;;  %v784_v0 = vshrl.u32 %v7791_v39, 16  ;;  %v2923_v35 = vshll.u32 %v7834_v22, 16 }
  0x97   :  { %v2855_v4 = vsel %vm2487_vm1, %v2845_v33, %v2854_v55  ;;  %v2864_v14 = vsel %vm2487_vm1, %v2854_v55, %v2863_v63  ;;  %v772_v33 = vshll.u32 %v7769_v19, 16  ;;  %v2895_v55 = vrot.slane %v2893_v34, 2 }
  0x98   :  { %v788_v1 = vshll.u32 %v7804_v49, 16  ;;  %v2920_v34 = vshrl.u32 %v7834_v22, 16 }
  0x9a   :  { %6281 = vmatmul.mubr.msk.bf16.gmra.mrb[68].mxu1 %vm867_vm2, %v703_v58  ;;  %v2866_v58 = vshrl.u32 %v7727_v44, 16  ;;  %v790_v24 = vrot.slane %v788_v1, 1  ;;  %v7882_v1 = vld [vmem:[%s8929_s0 + $0x1a0] sm:$0xff]  }
  0x9b   :  { %6284 = vmatprep.mubr.msk.bf16.mxu1 %vm867_vm2, %v711_v3  ;;  %6513 = vmatmul.mubr.msk.bf16.gmra.mrb[68].mxu0 %vm867_vm2, %v2819_v11  ;;  %v7755_v3 = vld [vmem:[%s8929_s0 + $0x160] sm:$0xff]   ;;  %v2871_v11 = vrot.slane %v2869_v59, 3  ;;  %v780_v59 = vshll.u32 %v7791_v39, 16 }
  0x9c   :  { %6516 = vmatprep.mubr.msk.bf16.mxu0 %vm867_vm2, %v2828_v12  ;;  %v2868_v8 = vrot.slane %v2866_v58, 2  ;;  %v754_v12 = vor.u32 %v752_v60, %v750_v2  ;;  %v764_v23 = vshll.u32 %v7755_v3, 16  ;;  %v768_v30 = vshrl.u32 %v7755_v3, 16 }
  0x9e   :  { %v2872_v28 = vor.u32 %v2871_v11, %v2868_v8  ;;  %v759_v29 = vsel %vm411_vm0, %v754_v12, %v758_v13  ;;  %v766_v38 = vrot.slane %v764_v23, 1  ;;  %v2899_v8 = vor.u32 %v2898_v56, %v2895_v55  ;;  %v7863_v55 = vld [vmem:[%s8929_s0 + $0x190] sm:$0xff]  }
  0x9f   :  { %v782_v11 = vrot.slane %v780_v59, 1  ;;  %v2922_v59 = vrot.slane %v2920_v34, 2 }
  0xa0   :  { %v2873_v43 = vsel %vm2487_vm1, %v2863_v63, %v2872_v28  ;;  %v767_v58 = vsel %vm411_vm0, %v762_v37, %v766_v38  ;;  %v2905_v63 = vshll.u32 %v7797_v42, 16 }
  0xa1   :  { %v786_v23 = vor.u32 %v784_v0, %v782_v11  ;;  %v7877_v0 = vld [vmem:[%s8929_s0 + $0x198] sm:$0xff]  }
  0xa2   :  { %6285 = vmatmul.mubr.msk.bf16.gmra.mrb[72].mxu1 %vm867_vm2, %v719_v27  ;;  %v751_v27 = vsel %vm411_vm0, %v746_v5, %v750_v2  ;;  %v2911_v2 = vshrl.u32 %v7809_v50, 16 }
  0xa3   :  { %6288 = vmatprep.mubr.msk.bf16.mxu1 %vm867_vm2, %v727_v32  ;;  %6517 = vmatmul.mubr.msk.bf16.gmra.mrb[72].mxu0 %vm867_vm2, %v2837_v41  ;;  %v2881_v32 = vor.u32 %v2880_v17, %v2877_v16  ;;  %v2889_v41 = vrot.slane %v2887_v25, 3  ;;  %v2907_v16 = vrot.slane %v2905_v63, 3  ;;  %v7829_v17 = vld [vmem:[%s8929_s0 + $0x180] sm:$0xff]  }
  0xa4   :  { %6520 = vmatprep.mubr.msk.bf16.mxu0 %vm867_vm2, %v2846_v46  ;;  %v770_v46 = vor.u32 %v768_v30, %v766_v38  ;;  %v2913_v25 = vrot.slane %v2911_v2, 2  ;;  %v7846_v30 = vld [vmem:[%s8929_s0 + $0x190] sm:$0xff]  }
  0xa5   :  { %v2882_v52 = vsel %vm2487_vm1, %v2872_v28, %v2881_v32  ;;  %v2890_v60 = vor.u32 %v2889_v41, %v2886_v40  ;;  %v791_v40 = vsel %vm411_vm0, %v786_v23, %v790_v24 }
  0xa7   :  { %v2891_v12 = vsel %vm2487_vm1, %v2881_v32, %v2890_v60  ;;  %v2900_v28 = vsel %vm2487_vm1, %v2890_v60, %v2899_v8  ;;  %v792_v32 = vshrl.u32 %v7804_v49, 16  ;;  %v2925_v60 = vrot.slane %v2923_v35, 3  ;;  %v7899_v35 = vld [vmem:[%s8929_s0 + $0x1a8] sm:$0xf] }
  0xa9   :  { %v794_v56 = vor.u32 %v792_v32, %v790_v24  ;;  %v816_v24 = vshrl.u32 %v7863_v55, 16 }
  0xaa   :  { %6289 = vmatmul.mubr.msk.bf16.gmra.mrb[76].mxu1 %vm867_vm2, %v735_v54  ;;  %v774_v54 = vrot.slane %v772_v33, 1  ;;  %v796_v33 = vshll.u32 %v7829_v17, 16 }
  0xab   :  { %6292 = vmatprep.mubr.msk.bf16.mxu1 %vm867_vm2, %v743_v62  ;;  %6521 = vmatmul.mubr.msk.bf16.gmra.mrb[76].mxu0 %vm867_vm2, %v2855_v4  ;;  %v2902_v62 = vshrl.u32 %v7797_v42, 16  ;;  %v2914_v4 = vshll.u32 %v7809_v50, 16 }
  0xac   :  { %6524 = vmatprep.mubr.msk.bf16.mxu0 %vm867_vm2, %v2864_v14  ;;  %v775_v5 = vsel %vm411_vm0, %v770_v46, %v774_v54  ;;  %v778_v13 = vor.u32 %v776_v61, %v774_v54  ;;  %v2932_v54 = vshll.u32 %v7846_v30, 16  ;;  %v7869_v61 = vld [vmem:[%s8929_s0 + $0x198] sm:$0xff]  }
  0xad   :  { %v2904_v14 = vrot.slane %v2902_v62, 2  ;;  %v2941_v23 = vshll.u32 %v7869_v61, 16 }
  0xae   :  { %v783_v37 = vsel %vm411_vm0, %v778_v13, %v782_v11  ;;  %v2934_v11 = vrot.slane %v2932_v54, 3 }
  0xaf   :  { %v2908_v38 = vor.u32 %v2907_v16, %v2904_v14  ;;  %v2926_v14 = vor.u32 %v2925_v60, %v2922_v59  ;;  %v2938_v16 = vshrl.u32 %v7869_v61, 16  ;;  %v7915_v60 = vld [vmem:[%s8929_s0 + $0x1a8] sm:$0xff]  }
  0xb1   :  { %v2909_v62 = vsel %vm2487_vm1, %v2899_v8, %v2908_v38 }
  0xb2   :  { %6293 = vmatmul.mubr.msk.bf16.gmra.mrb[80].mxu1 %vm867_vm2, %v751_v27  ;;  %v2916_v27 = vrot.slane %v2914_v4, 3 }
  0xb3   :  { %6296 = vmatprep.mubr.msk.bf16.mxu1 %vm867_vm2, %v759_v29  ;;  %6525 = vmatmul.mubr.msk.bf16.gmra.mrb[80].mxu0 %vm867_vm2, %v2873_v43  ;;  %v7841_v29 = vld [vmem:[%s8929_s0 + $0x188] sm:$0xff]   ;;  %v800_v43 = vshrl.u32 %v7829_v17, 16 }
  0xb4   :  { %6528 = vmatprep.mubr.msk.bf16.mxu0 %vm867_vm2, %v2882_v52  ;;  %v2917_v41 = vor.u32 %v2916_v27, %v2913_v25  ;;  %v804_v46 = vshll.u32 %v7841_v29, 16  ;;  %v2929_v52 = vshrl.u32 %v7846_v30, 16  ;;  %v808_v8 = vshrl.u32 %v7841_v29, 16 }
  0xb5   :  { %v820_v25 = vshll.u32 %v7877_v0, 16  ;;  %v2947_v27 = vshrl.u32 %v7882_v1, 16 }
  0xb6   :  { %v2918_v63 = vsel %vm2487_vm1, %v2908_v38, %v2917_v41  ;;  %v806_v4 = vrot.slane %v804_v46, 1  ;;  %v2927_v38 = vsel %vm2487_vm1, %v2917_v41, %v2926_v14  ;;  %v2943_v46 = vrot.slane %v2941_v23, 3 }
  0xba   :  { %6297 = vmatmul.mubr.msk.bf16.gmra.mrb[84].mxu1 %vm867_vm2, %v767_v58  ;;  %v798_v58 = vrot.slane %v796_v33, 1 }
  0xbb   :  { %6300 = vmatprep.mubr.msk.bf16.mxu1 %vm867_vm2, %v775_v5  ;;  %6529 = vmatmul.mubr.msk.bf16.gmra.mrb[84].mxu0 %vm867_vm2, %v2891_v12  ;;  %v2931_v5 = vrot.slane %v2929_v52, 2  ;;  %v812_v12 = vshll.u32 %v7863_v55, 16  ;;  %v7909_v52 = vld [vmem:[%s8929_s0 + $0x1a0] sm:$0xff]  }
  0xbc   :  { %6532 = vmatprep.mubr.msk.bf16.mxu0 %vm867_vm2, %v2900_v28  ;;  %v802_v2 = vor.u32 %v800_v43, %v798_v58  ;;  %v799_v13 = vsel %vm411_vm0, %v794_v56, %v798_v58  ;;  %v2950_v28 = vshll.u32 %v7882_v1, 16  ;;  %v2940_v43 = vrot.slane %v2938_v16, 2 }
  0xbd   :  { %v2935_v33 = vor.u32 %v2934_v11, %v2931_v5  ;;  %v814_v34 = vrot.slane %v812_v12, 1  ;;  %v822_v56 = vrot.slane %v820_v25, 1  ;;  %v2949_v58 = vrot.slane %v2947_v27, 2 }
  0xbe   :  { %v807_v32 = vsel %vm411_vm0, %v802_v2, %v806_v4  ;;  %v2952_v59 = vrot.slane %v2950_v28, 3  ;;  %v824_v5 = vshrl.u32 %v7877_v0, 16  ;;  %v828_v11 = vshll.u32 %v7909_v52, 16 }
  0xbf   :  { %v818_v54 = vor.u32 %v816_v24, %v814_v34  ;;  %v2936_v41 = vsel %vm2487_vm1, %v2926_v14, %v2935_v33  ;;  %v2959_v14 = vshll.u32 %v7915_v60, 16  ;;  %v832_v16 = vshrl.u32 %v7909_v52, 16 }
  0xc0   :  { %v2953_v12 = vor.u32 %v2952_v59, %v2949_v58  ;;  %v830_v28 = vrot.slane %v828_v11, 1 }
  0xc2   :  { %6301 = vmatmul.mubr.msk.bf16.gmra.mrb[88].mxu1 %vm867_vm2, %v783_v37  ;;  %v131_v37 = vld [vmem:[%s8929_s0 + $0x1ac] sm:$0x7] }
  0xc3   :  { %6304 = vmatprep.mubr.msk.bf16.mxu1 %vm867_vm2, %v791_v40  ;;  %6533 = vmatmul.mubr.msk.bf16.gmra.mrb[88].mxu0 %vm867_vm2, %v2909_v62  ;;  %v810_v40 = vor.u32 %v808_v8, %v806_v4  ;;  %v5449_v62 = vcombine.low %v7899_v35, %v131_v37  ;;  %v2944_v4 = vor.u32 %v2943_v46, %v2940_v43 }
  0xc4   :  { %6536 = vmatprep.mubr.msk.bf16.mxu0 %vm867_vm2, %v2918_v63  ;;  %v7922_v63 = vld [vmem:[%s8929_s0 + $0x1b0] sm:$0xff]   ;;  %v823_v8 = vsel %vm411_vm0, %v818_v54, %v822_v56 }
  0xc5   :  { %v815_v2 = vsel %vm411_vm0, %v810_v40, %v814_v34  ;;  %v836_v23 = vshll.u32 %v5449_v62, 16  ;;  %v2965_v24 = vshrl.u32 %v7922_v63, 16  ;;  %v2968_v25 = vshll.u32 %v7922_v63, 16 }
  0xc6   :  { %v2945_v27 = vsel %vm2487_vm1, %v2935_v33, %v2944_v4  ;;  %v826_v34 = vor.u32 %v824_v5, %v822_v56  ;;  %v834_v40 = vor.u32 %v832_v16, %v830_v28  ;;  %v7945_v33 = vld [vmem:[%s8929_s0 + $0x1b8] ss:$0 sps:$4 sm:$0x11]  }
  0xc7   :  { %v838_v43 = vrot.slane %v836_v23, 1  ;;  %v2967_v46 = vrot.slane %v2965_v24, 2  ;;  %v2970_v54 = vrot.slane %v2968_v25, 3  ;;  %v2974_v11 = vshll.u32 %v7945_v33, 16 }
  0xc8   :  { %v831_v58 = vsel %vm411_vm0, %v826_v34, %v830_v28 }
  0xc9   :  { %v839_v56 = vsel %vm411_vm0, %v834_v40, %v838_v43  ;;  %v2976_v23 = vrot.slane %v2974_v11, 3  ;;  %v7124_v40 = vld [vmem:[%s8929_s0 + $0x8] sm:$0xff]  }
  0xca   :  { %6305 = vmatmul.mubr.msk.bf16.gmra.mrb[92].mxu1 %vm867_vm2, %v799_v13  ;;  %v2956_v13 = vshrl.u32 %v7915_v60, 16 }
  0xcb   :  { %6308 = vmatprep.mubr.msk.bf16.mxu1 %vm867_vm2, %v807_v32  ;;  %6537 = vmatmul.mubr.msk.bf16.gmra.mrb[92].mxu0 %vm867_vm2, %v2927_v38  ;;  %v2954_v32 = vsel %vm2487_vm1, %v2944_v4, %v2953_v12  ;;  %v2961_v38 = vrot.slane %v2959_v14, 3  ;;  %v840_v4 = vshrl.u32 %v5449_v62, 16 }
  0xcc   :  { %6540 = vmatprep.mubr.msk.bf16.mxu0 %vm867_vm2, %v2936_v41  ;;  %v2958_v37 = vrot.slane %v2956_v13, 2  ;;  %v2971_v41 = vor.u32 %v2970_v54, %v2967_v46  ;;  %v7119_v13 = vld [vmem:[%s8929_s0 + $0xc] sm:$0xf]  ;;  %v7125_v46 = vld [vmem:[%s8929_s0 + $0x10] sm:$0xff]  }
  0xcd   :  { %v842_v16 = vor.u32 %v840_v4, %v838_v43 }
  0xce   :  { %v2962_v59 = vor.u32 %v2961_v38, %v2958_v37  ;;  %v2977_v25 = vsel %vm2487_vm1, %v2971_v41, %v2976_v23  ;;  %v7123_v37 = vld [vmem:[%s8929_s0 + $0x20] sm:$0xff]   ;;  %v7132_v23 = vld [vmem:[%s8929_s0 + $0x28] sm:$0xff]  }
  0xcf   :  { %v3756_v38 = vrot.slane %v7123_v37, 3 }
  0xd0   :  { %v2963_v5 = vsel %vm2487_vm1, %v2953_v12, %v2962_v59  ;;  %v7120_v12 = vld [vmem:[%s8929_s0 + $0x10] sm:$0xff]  }
  0xd1   :  { %v3752_v24 = vrot.slane %v7120_v12, 3  ;;  %v7133_v12 = vld [vmem:[%s8929_s0 + $0x30] sm:$0xff]  }
  0xd2   :  { %6309 = vmatmul.mubr.msk.bf16.gmra.mrb[96].mxu1 %vm867_vm2, %v815_v2  ;;  %v3737_v2 = vld [vmem:[%s8929_s0 + $0x8] sm:$0x8] }
  0xd3   :  { %6312 = vmatprep.mubr.msk.bf16.mxu1 %vm867_vm2, %v823_v8  ;;  %6541 = vmatmul.mubr.msk.bf16.gmra.mrb[96].mxu0 %vm867_vm2, %v2945_v27  ;;  %v2972_v8 = vsel %vm2487_vm1, %v2962_v59, %v2971_v41  ;;  %v5696_v14 = vcombine.low %v3737_v2, %v7119_v13  ;;  %v7121_v27 = vld [vmem:[%s8929_s0] sm:$0xff]   ;;  %v7128_v2 = vld [vmem:[%s8929_s0 + $0x18] sm:$0xff]  }
  0xd4   :  { %6544 = vmatprep.mubr.msk.bf16.mxu0 %vm867_vm2, %v2954_v32  ;;  %v7122_v32 = vld [vmem:[%s8929_s0 + $0x18] sm:$0xff]  }
  0xd5   :  { %v3751_v62 = vrot.slane %v5696_v14, 3  ;;  %v3754_v34 = vrot.slane %v7122_v32, 3  ;;  %v7131_v14 = vld [vmem:[%s8929_s0 + $0x40] sm:$0xff]  }
  0xd7   :  { %v3753_v28 = vsel %vm3750_vm3, %v3751_v62, %v3752_v24  ;;  %v3755_v43 = vsel %vm3750_vm3, %v3752_v24, %v3754_v34  ;;  %v3757_v54 = vsel %vm3750_vm3, %v3754_v34, %v3756_v38  ;;  %v7136_v34 = vld [vmem:[%s8929_s0 + $0x38] sm:$0xff]  }
  0xda   :  { %6313 = vmatmul.mubr.msk.bf16.gmra.mrb[100].mxu1 %vm867_vm2, %v831_v58  ;;  %v7126_v58 = vld [vmem:[%s8929_s0 + $0x28] sm:$0xff]  }
  0xdb   :  { %6316 = vmatprep.mubr.msk.bf16.mxu1 %vm867_vm2, %v839_v56  ;;  %6545 = vmatmul.mubr.msk.bf16.gmra.mrb[100].mxu0 %vm867_vm2, %v2963_v5  ;;  %v3758_v59 = vrot.slane %v7126_v58, 3  ;;  %v7127_v56 = vld [vmem:[%s8929_s0 + $0x30] sm:$0xff]   ;;  %v7129_v5 = vld [vmem:[%s8929_s0 + $0x20] sm:$0xff]  }
  0xdc   :  { %6548 = vmatprep.mubr.msk.bf16.mxu0 %vm867_vm2, %v2972_v8  ;;  %v3760_v41 = vrot.slane %v7127_v56, 3  ;;  %v7130_v8 = vld [vmem:[%s8929_s0 + $0x38] sm:$0xff]  }
  0xdd   :  { %v3759_v4 = vsel %vm3750_vm3, %v3756_v38, %v3758_v59  ;;  %v3762_v13 = vrot.slane %v7130_v8, 3  ;;  %v7137_v38 = vld [vmem:[%s8929_s0 + $0x40] sm:$0xff]  }
  0xde   :  { %v3761_v11 = vsel %vm3750_vm3, %v3758_v59, %v3760_v41  ;;  %v7140_v59 = vld [vmem:[%s8929_s0 + $0x48] sm:$0xff]  }
  0xdf   :  { %v3763_v62 = vsel %vm3750_vm3, %v3760_v41, %v3762_v13  ;;  %v7141_v41 = vld [vmem:[%s8929_s0 + $0x50] sm:$0xff]  }
  0xe2   :  { %6317 = vmatmul.mubr.msk.bf16.gmra.mrb[104].mxu1 %vm867_vm2, %v842_v16  ;;  %v3764_v16 = vrot.slane %v7131_v14, 3 }
  0xe3   :  { %6328 = vmatprep.mubr.msk.bf16.mxu1 %vm867_vm2, %v7121_v27  ;;  %6549 = vmatmul.mubr.msk.bf16.gmra.mrb[104].mxu0 %vm867_vm2, %v2977_v25  ;;  %v7134_v25 = vld [vmem:[%s8929_s0 + $0x48] sm:$0xff]  }
  0xe4   :  { %6560 = vmatprep.mubr.msk.bf16.mxu0 %vm867_vm2, %v3753_v28  ;;  %v3765_v24 = vsel %vm3750_vm3, %v3762_v13, %v3764_v16  ;;  %v3766_v27 = vrot.slane %v7134_v25, 3  ;;  %v7135_v28 = vld [vmem:[%s8929_s0 + $0x50] sm:$0xff]   ;;  %v7144_v13 = vld [vmem:[%s8929_s0 + $0x58] sm:$0xff]  }
  0xe5   :  { %v3768_v32 = vrot.slane %v7135_v28, 3 }
  0xe6   :  { %v3767_v37 = vsel %vm3750_vm3, %v3764_v16, %v3766_v27  ;;  %v7145_v16 = vld [vmem:[%s8929_s0 + $0x60] sm:$0xff]  }
  0xea   :  { %6329 = vmatmul.mubr.msk.bf16.vlgmr.msra.gmra.mrb[0].mxu1 %vm867_vm2, %v7124_v40  ;;  %v3769_v40 = vsel %vm3750_vm3, %v3766_v27, %v3768_v32  ;;  %v7148_v27 = vld [vmem:[%s8929_s0 + $0x68] sm:$0xff]  }
  0xeb   :  { %6332 = vmatprep.mubr.msk.bf16.mxu1 %vm867_vm2, %v7125_v46  ;;  %6561 = vmatmul.mubr.msk.bf16.vlgmr.msra.gmra.mrb[0].mxu0 %vm867_vm2, %v3755_v43  ;;  %v7138_v43 = vld [vmem:[%s8929_s0 + $0x58] sm:$0xff]  }
  0xec   :  { %6564 = vmatprep.mubr.msk.bf16.mxu0 %vm867_vm2, %v3757_v54  ;;  %v3770_v46 = vrot.slane %v7138_v43, 3  ;;  %v7139_v54 = vld [vmem:[%s8929_s0 + $0x60] sm:$0xff]  }
  0xed   :  { %v3772_v58 = vrot.slane %v7139_v54, 3 }
  0xee   :  { %v3771_v56 = vsel %vm3750_vm3, %v3768_v32, %v3770_v46  ;;  %v7149_v32 = vld [vmem:[%s8929_s0 + $0x70] sm:$0xff]  }
  0xf2   :  { %6333 = vmatmul.mubr.msk.bf16.gmra.mrb[4].mxu1 %vm867_vm2, %v7128_v2  ;;  %v3773_v2 = vsel %vm3750_vm3, %v3770_v46, %v3772_v58  ;;  %v7152_v46 = vld [vmem:[%s8929_s0 + $0x78] sm:$0xff]  }
  0xf3   :  { %6336 = vmatprep.mubr.msk.bf16.mxu1 %vm867_vm2, %v7129_v5  ;;  %6565 = vmatmul.mubr.msk.bf16.gmra.mrb[4].mxu0 %vm867_vm2, %v3759_v4  ;;  %v7142_v4 = vld [vmem:[%s8929_s0 + $0x68] sm:$0xff]  }
  0xf4   :  { %6568 = vmatprep.mubr.msk.bf16.mxu0 %vm867_vm2, %v3761_v11  ;;  %v3774_v5 = vrot.slane %v7142_v4, 3  ;;  %v7143_v11 = vld [vmem:[%s8929_s0 + $0x70] sm:$0xff]  }
  0xf5   :  { %v3776_v8 = vrot.slane %v7143_v11, 3 }
  0xf6   :  { %v3775_v14 = vsel %vm3750_vm3, %v3772_v58, %v3774_v5  ;;  %v7153_v58 = vld [vmem:[%s8929_s0 + $0x80] sm:$0xff]  }
  0xfa   :  { %6337 = vmatmul.mubr.msk.bf16.gmra.mrb[8].mxu1 %vm867_vm2, %v7132_v23  ;;  %v3777_v23 = vsel %vm3750_vm3, %v3774_v5, %v3776_v8  ;;  %v7156_v5 = vld [vmem:[%s8929_s0 + $0x88] sm:$0xff]  }
  0xfb   :  { %6340 = vmatprep.mubr.msk.bf16.mxu1 %vm867_vm2, %v7133_v12  ;;  %6569 = vmatmul.mubr.msk.bf16.gmra.mrb[8].mxu0 %vm867_vm2, %v3763_v62  ;;  %v7146_v62 = vld [vmem:[%s8929_s0 + $0x78] sm:$0xff]  }
  0xfc   :  { %6572 = vmatprep.mubr.msk.bf16.mxu0 %vm867_vm2, %v3765_v24  ;;  %v3778_v12 = vrot.slane %v7146_v62, 3  ;;  %v7147_v24 = vld [vmem:[%s8929_s0 + $0x80] sm:$0xff]  }
  0xfd   :  { %v3780_v25 = vrot.slane %v7147_v24, 3 }
  0xfe   :  { %v3779_v28 = vsel %vm3750_vm3, %v3776_v8, %v3778_v12  ;;  %v7157_v8 = vld [vmem:[%s8929_s0 + $0x90] sm:$0xff]  }
 0x102   :  { %6341 = vmatmul.mubr.msk.bf16.gmra.mrb[12].mxu1 %vm867_vm2, %v7136_v34  ;;  %v3781_v34 = vsel %vm3750_vm3, %v3778_v12, %v3780_v25  ;;  %v7160_v12 = vld [vmem:[%s8929_s0 + $0x98] sm:$0xff]  }
 0x103   :  { %6344 = vmatprep.mubr.msk.bf16.mxu1 %vm867_vm2, %v7137_v38  ;;  %6573 = vmatmul.mubr.msk.bf16.gmra.mrb[12].mxu0 %vm867_vm2, %v3767_v37  ;;  %v7150_v37 = vld [vmem:[%s8929_s0 + $0x88] sm:$0xff]  }
 0x104   :  { %6576 = vmatprep.mubr.msk.bf16.mxu0 %vm867_vm2, %v3769_v40  ;;  %v3782_v38 = vrot.slane %v7150_v37, 3  ;;  %v7151_v40 = vld [vmem:[%s8929_s0 + $0x90] sm:$0xff]  }
 0x105   :  { %v3784_v43 = vrot.slane %v7151_v40, 3 }
 0x106   :  { %v3783_v54 = vsel %vm3750_vm3, %v3780_v25, %v3782_v38  ;;  %v7161_v25 = vld [vmem:[%s8929_s0 + $0xa0] sm:$0xff]  }
 0x10a   :  { %6345 = vmatmul.mubr.msk.bf16.gmra.mrb[16].mxu1 %vm867_vm2, %v7140_v59  ;;  %v3785_v59 = vsel %vm3750_vm3, %v3782_v38, %v3784_v43  ;;  %v7164_v38 = vld [vmem:[%s8929_s0 + $0xa8] sm:$0xff]  }
 0x10b   :  { %6348 = vmatprep.mubr.msk.bf16.mxu1 %vm867_vm2, %v7141_v41  ;;  %6577 = vmatmul.mubr.msk.bf16.gmra.mrb[16].mxu0 %vm867_vm2, %v3771_v56  ;;  %v7154_v56 = vld [vmem:[%s8929_s0 + $0x98] sm:$0xff]  }
 0x10c   :  { %6580 = vmatprep.mubr.msk.bf16.mxu0 %vm867_vm2, %v3773_v2  ;;  %v3786_v41 = vrot.slane %v7154_v56, 3  ;;  %v7155_v2 = vld [vmem:[%s8929_s0 + $0xa0] sm:$0xff]  }
 0x10d   :  { %v3788_v4 = vrot.slane %v7155_v2, 3 }
 0x10e   :  { %v3787_v11 = vsel %vm3750_vm3, %v3784_v43, %v3786_v41  ;;  %v7165_v43 = vld [vmem:[%s8929_s0 + $0xb0] sm:$0xff]  }
 0x112   :  { %6349 = vmatmul.mubr.msk.bf16.gmra.mrb[20].mxu1 %vm867_vm2, %v7144_v13  ;;  %v3789_v13 = vsel %vm3750_vm3, %v3786_v41, %v3788_v4  ;;  %v7168_v41 = vld [vmem:[%s8929_s0 + $0xb8] sm:$0xff]  }
 0x113   :  { %6352 = vmatprep.mubr.msk.bf16.mxu1 %vm867_vm2, %v7145_v16  ;;  %6581 = vmatmul.mubr.msk.bf16.gmra.mrb[20].mxu0 %vm867_vm2, %v3775_v14  ;;  %v7158_v14 = vld [vmem:[%s8929_s0 + $0xa8] sm:$0xff]  }
 0x114   :  { %6584 = vmatprep.mubr.msk.bf16.mxu0 %vm867_vm2, %v3777_v23  ;;  %v3790_v16 = vrot.slane %v7158_v14, 3  ;;  %v7159_v23 = vld [vmem:[%s8929_s0 + $0xb0] sm:$0xff]  }
 0x115   :  { %v3792_v62 = vrot.slane %v7159_v23, 3 }
 0x116   :  { %v3791_v24 = vsel %vm3750_vm3, %v3788_v4, %v3790_v16  ;;  %v7169_v4 = vld [vmem:[%s8929_s0 + $0xc0] sm:$0xff]  }
 0x11a   :  { %6353 = vmatmul.mubr.msk.bf16.gmra.mrb[24].mxu1 %vm867_vm2, %v7148_v27  ;;  %v3793_v27 = vsel %vm3750_vm3, %v3790_v16, %v3792_v62  ;;  %v7172_v16 = vld [vmem:[%s8929_s0 + $0xc8] sm:$0xff]  }
 0x11b   :  { %6356 = vmatprep.mubr.msk.bf16.mxu1 %vm867_vm2, %v7149_v32  ;;  %6585 = vmatmul.mubr.msk.bf16.gmra.mrb[24].mxu0 %vm867_vm2, %v3779_v28  ;;  %v7162_v28 = vld [vmem:[%s8929_s0 + $0xb8] sm:$0xff]  }
 0x11c   :  { %6588 = vmatprep.mubr.msk.bf16.mxu0 %vm867_vm2, %v3781_v34  ;;  %v3794_v32 = vrot.slane %v7162_v28, 3  ;;  %v7163_v34 = vld [vmem:[%s8929_s0 + $0xc0] sm:$0xff]  }
 0x11d   :  { %v3796_v37 = vrot.slane %v7163_v34, 3 }
 0x11e   :  { %v3795_v40 = vsel %vm3750_vm3, %v3792_v62, %v3794_v32  ;;  %v7173_v62 = vld [vmem:[%s8929_s0 + $0xd0] sm:$0xff]  }
 0x122   :  { %6357 = vmatmul.mubr.msk.bf16.gmra.mrb[28].mxu1 %vm867_vm2, %v7152_v46  ;;  %v3797_v46 = vsel %vm3750_vm3, %v3794_v32, %v3796_v37  ;;  %v7176_v32 = vld [vmem:[%s8929_s0 + $0xd8] sm:$0xff]  }
 0x123   :  { %6360 = vmatprep.mubr.msk.bf16.mxu1 %vm867_vm2, %v7153_v58  ;;  %6589 = vmatmul.mubr.msk.bf16.gmra.mrb[28].mxu0 %vm867_vm2, %v3783_v54  ;;  %v7166_v54 = vld [vmem:[%s8929_s0 + $0xc8] sm:$0xff]  }
 0x124   :  { %6592 = vmatprep.mubr.msk.bf16.mxu0 %vm867_vm2, %v3785_v59  ;;  %v3798_v58 = vrot.slane %v7166_v54, 3  ;;  %v7167_v59 = vld [vmem:[%s8929_s0 + $0xd0] sm:$0xff]  }
 0x125   :  { %v3800_v56 = vrot.slane %v7167_v59, 3 }
 0x126   :  { %v3799_v2 = vsel %vm3750_vm3, %v3796_v37, %v3798_v58  ;;  %v7177_v37 = vld [vmem:[%s8929_s0 + $0xe0] sm:$0xff]  }
 0x12a   :  { %6361 = vmatmul.mubr.msk.bf16.gmra.mrb[32].mxu1 %vm867_vm2, %v7156_v5  ;;  %v3801_v5 = vsel %vm3750_vm3, %v3798_v58, %v3800_v56  ;;  %v7180_v58 = vld [vmem:[%s8929_s0 + $0xe8] sm:$0xff]  }
 0x12b   :  { %6364 = vmatprep.mubr.msk.bf16.mxu1 %vm867_vm2, %v7157_v8  ;;  %6593 = vmatmul.mubr.msk.bf16.gmra.mrb[32].mxu0 %vm867_vm2, %v3787_v11  ;;  %v7170_v11 = vld [vmem:[%s8929_s0 + $0xd8] sm:$0xff]  }
 0x12c   :  { %6596 = vmatprep.mubr.msk.bf16.mxu0 %vm867_vm2, %v3789_v13  ;;  %v3802_v8 = vrot.slane %v7170_v11, 3  ;;  %v7171_v13 = vld [vmem:[%s8929_s0 + $0xe0] sm:$0xff]  }
 0x12d   :  { %v3804_v14 = vrot.slane %v7171_v13, 3 }
 0x12e   :  { %v3803_v23 = vsel %vm3750_vm3, %v3800_v56, %v3802_v8  ;;  %v7181_v56 = vld [vmem:[%s8929_s0 + $0xf0] sm:$0xff]  }
 0x132   :  { %6365 = vmatmul.mubr.msk.bf16.gmra.mrb[36].mxu1 %vm867_vm2, %v7160_v12  ;;  %v3805_v12 = vsel %vm3750_vm3, %v3802_v8, %v3804_v14  ;;  %v7184_v8 = vld [vmem:[%s8929_s0 + $0xf8] sm:$0xff]  }
 0x133   :  { %6368 = vmatprep.mubr.msk.bf16.mxu1 %vm867_vm2, %v7161_v25  ;;  %6597 = vmatmul.mubr.msk.bf16.gmra.mrb[36].mxu0 %vm867_vm2, %v3791_v24  ;;  %v7174_v24 = vld [vmem:[%s8929_s0 + $0xe8] sm:$0xff]  }
 0x134   :  { %6600 = vmatprep.mubr.msk.bf16.mxu0 %vm867_vm2, %v3793_v27  ;;  %v3806_v25 = vrot.slane %v7174_v24, 3  ;;  %v7175_v27 = vld [vmem:[%s8929_s0 + $0xf0] sm:$0xff]  }
 0x135   :  { %v3808_v28 = vrot.slane %v7175_v27, 3 }
 0x136   :  { %v3807_v34 = vsel %vm3750_vm3, %v3804_v14, %v3806_v25  ;;  %v7185_v14 = vld [vmem:[%s8929_s0 + $0x100] sm:$0xff]  }
 0x13a   :  { %6369 = vmatmul.mubr.msk.bf16.gmra.mrb[40].mxu1 %vm867_vm2, %v7164_v38  ;;  %v3809_v38 = vsel %vm3750_vm3, %v3806_v25, %v3808_v28  ;;  %v7188_v25 = vld [vmem:[%s8929_s0 + $0x108] sm:$0xff]  }
 0x13b   :  { %6372 = vmatprep.mubr.msk.bf16.mxu1 %vm867_vm2, %v7165_v43  ;;  %6601 = vmatmul.mubr.msk.bf16.gmra.mrb[40].mxu0 %vm867_vm2, %v3795_v40  ;;  %v7178_v40 = vld [vmem:[%s8929_s0 + $0xf8] sm:$0xff]  }
 0x13c   :  { %6604 = vmatprep.mubr.msk.bf16.mxu0 %vm867_vm2, %v3797_v46  ;;  %v3810_v43 = vrot.slane %v7178_v40, 3  ;;  %v7179_v46 = vld [vmem:[%s8929_s0 + $0x100] sm:$0xff]  }
 0x13d   :  { %v3812_v54 = vrot.slane %v7179_v46, 3 }
 0x13e   :  { %v3811_v59 = vsel %vm3750_vm3, %v3808_v28, %v3810_v43  ;;  %v7189_v28 = vld [vmem:[%s8929_s0 + $0x110] sm:$0xff]  }
 0x142   :  { %6373 = vmatmul.mubr.msk.bf16.gmra.mrb[44].mxu1 %vm867_vm2, %v7168_v41  ;;  %v3813_v41 = vsel %vm3750_vm3, %v3810_v43, %v3812_v54 }
 0x143   :  { %6376 = vmatprep.mubr.msk.bf16.mxu1 %vm867_vm2, %v7169_v4  ;;  %6605 = vmatmul.mubr.msk.bf16.gmra.mrb[44].mxu0 %vm867_vm2, %v3799_v2  ;;  %v7182_v2 = vld [vmem:[%s8929_s0 + $0x108] sm:$0xff]  }
 0x144   :  { %6608 = vmatprep.mubr.msk.bf16.mxu0 %vm867_vm2, %v3801_v5  ;;  %v3814_v4 = vrot.slane %v7182_v2, 3  ;;  %v7183_v5 = vld [vmem:[%s8929_s0 + $0x110] sm:$0xff]   ;;  %v8382_v2 = vld [vmem:[%s8930_s2] ss:$0 sm:$0xff] }
 0x145   :  { %v3816_v11 = vrot.slane %v7183_v5, 3 }
 0x146   :  { %v3815_v13 = vsel %vm3750_vm3, %v3812_v54, %v3814_v4  ;;  %v3830_v54 = vrot.slane %v7689_v9, 3  ;;  %v3836_v9 = vrot.slane %v7738_v51, 3  ;;  %v3842_v51 = vrot.slane %v7797_v42, 3 }
 0x147   :  { %v3848_v42 = vrot.slane %v7846_v30, 3  ;;  %v3854_v30 = vrot.slane %v7915_v60, 3 }
 0x14a   :  { %6377 = vmatmul.mubr.msk.bf16.gmra.mrb[48].mxu1 %vm867_vm2, %v7172_v16  ;;  %v3817_v16 = vsel %vm3750_vm3, %v3814_v4, %v3816_v11 }
 0x14b   :  { %6380 = vmatprep.mubr.msk.bf16.mxu1 %vm867_vm2, %v7173_v62  ;;  %6609 = vmatmul.mubr.msk.bf16.gmra.mrb[48].mxu0 %vm867_vm2, %v3803_v23  ;;  %v7186_v23 = vld [vmem:[%s8929_s0 + $0x118] sm:$0xff]  }
 0x14c   :  { %6612 = vmatprep.mubr.msk.bf16.mxu0 %vm867_vm2, %v3805_v12  ;;  %v3818_v62 = vrot.slane %v7186_v23, 3  ;;  %v7187_v12 = vld [vmem:[%s8929_s0 + $0x120] sm:$0xff]  }
 0x14d   :  { %v3820_v24 = vrot.slane %v7187_v12, 3 }
 0x14e   :  { %v3819_v27 = vsel %vm3750_vm3, %v3816_v11, %v3818_v62 }
 0x152   :  { %6381 = vmatmul.mubr.msk.bf16.gmra.mrb[52].mxu1 %vm867_vm2, %v7176_v32  ;;  %v3821_v32 = vsel %vm3750_vm3, %v3818_v62, %v3820_v24 }
 0x153   :  { %6384 = vmatprep.mubr.msk.bf16.mxu1 %vm867_vm2, %v7177_v37  ;;  %6613 = vmatmul.mubr.msk.bf16.gmra.mrb[52].mxu0 %vm867_vm2, %v3807_v34  ;;  %v3822_v34 = vrot.slane %v7618_v21, 3  ;;  %v3824_v37 = vrot.slane %v7626_v26, 3  ;;  %v3826_v21 = vrot.slane %v7653_v48, 3  ;;  %v3828_v26 = vrot.slane %v7666_v57, 3 }
 0x154   :  { %6616 = vmatprep.mubr.msk.bf16.mxu0 %vm867_vm2, %v3809_v38  ;;  %v7190_v38 = vld [vmem:[%s8929_s0 + $0x118] sm:$0xff]   ;;  %v3832_v48 = vrot.slane %v7702_v15, 3  ;;  %v3834_v57 = vrot.slane %v7727_v44, 3  ;;  %v3838_v15 = vrot.slane %v7762_v7, 3  ;;  %v3840_v44 = vrot.slane %v7774_v20, 3 }
 0x155   :  { %v3823_v40 = vsel %vm3750_vm3, %v3820_v24, %v3822_v34  ;;  %v3825_v43 = vsel %vm3750_vm3, %v3822_v34, %v3824_v37  ;;  %v3827_v46 = vsel %vm3750_vm3, %v3824_v37, %v3826_v21  ;;  %v3844_v7 = vrot.slane %v7809_v50, 3 }
 0x156   :  { %v3846_v20 = vrot.slane %v7834_v22, 3  ;;  %v3850_v50 = vrot.slane %v7869_v61, 3  ;;  %v3852_v22 = vrot.slane %v7882_v1, 3  ;;  %v3856_v61 = vrot.slane %v7922_v63, 3 }
 0x157   :  { %v3858_v63 = vrot.slane %v7945_v33, 3 }
 0x158   :  { %v3857_v1 = vsel %vm3750_vm3, %v3854_v30, %v3856_v61 }
 0x15a   :  { %6385 = vmatmul.mubr.msk.bf16.gmra.mrb[56].mxu1 %vm867_vm2, %v7180_v58 }
 0x15b   :  { %6388 = vmatprep.mubr.msk.bf16.mxu1 %vm867_vm2, %v7181_v56  ;;  %6617 = vmatmul.mubr.msk.bf16.gmra.mrb[56].mxu0 %vm867_vm2, %v3811_v59 }
 0x15c   :  { %6620 = vmatprep.mubr.msk.bf16.mxu0 %vm867_vm2, %v3813_v41 }
 0x162   :  { %6389 = vmatmul.mubr.msk.bf16.gmra.mrb[60].mxu1 %vm867_vm2, %v7184_v8 }
 0x163   :  { %6392 = vmatprep.mubr.msk.bf16.mxu1 %vm867_vm2, %v7185_v14  ;;  %6621 = vmatmul.mubr.msk.bf16.gmra.mrb[60].mxu0 %vm867_vm2, %v3815_v13 }
 0x164   :  { %6624 = vmatprep.mubr.msk.bf16.mxu0 %vm867_vm2, %v3817_v16 }
 0x16a   :  { %6393 = vmatmul.mubr.msk.bf16.gmra.mrb[64].mxu1 %vm867_vm2, %v7188_v25 }
 0x16b   :  { %6396 = vmatprep.mubr.msk.bf16.mxu1 %vm867_vm2, %v7189_v28  ;;  %6625 = vmatmul.mubr.msk.bf16.gmra.mrb[64].mxu0 %vm867_vm2, %v3819_v27 }
 0x16c   :  { %6628 = vmatprep.mubr.msk.bf16.mxu0 %vm867_vm2, %v3821_v32 }
 0x172   :  { %6397 = vmatmul.mubr.msk.bf16.gmra.mrb[68].mxu1 %vm867_vm2, %v7190_v38 }
 0x173   :  { %6400 = vmatprep.mubr.msk.bf16.mxu1 %vm867_vm2, %v7612_v18  ;;  %6629 = vmatmul.mubr.msk.bf16.gmra.mrb[68].mxu0 %vm867_vm2, %v3823_v40  ;;  %v3829_v18 = vsel %vm3750_vm3, %v3826_v21, %v3828_v26 }
 0x174   :  { %6632 = vmatprep.mubr.msk.bf16.mxu0 %vm867_vm2, %v3825_v43 }
 0x17a   :  { %6401 = vmatmul.mubr.msk.bf16.gmra.mrb[72].mxu1 %vm867_vm2, %v7631_v31  ;;  %v3831_v31 = vsel %vm3750_vm3, %v3828_v26, %v3830_v54 }
 0x17b   :  { %6404 = vmatprep.mubr.msk.bf16.mxu1 %vm867_vm2, %v7648_v47  ;;  %6633 = vmatmul.mubr.msk.bf16.gmra.mrb[72].mxu0 %vm867_vm2, %v3827_v46  ;;  %v3833_v47 = vsel %vm3750_vm3, %v3830_v54, %v3832_v48 }
 0x17c   :  { %6636 = vmatprep.mubr.msk.bf16.mxu0 %vm867_vm2, %v3829_v18 }
 0x182   :  { %6405 = vmatmul.mubr.msk.bf16.gmra.mrb[76].mxu1 %vm867_vm2, %v7660_v53  ;;  %v3835_v53 = vsel %vm3750_vm3, %v3832_v48, %v3834_v57 }
 0x183   :  { %6408 = vmatprep.mubr.msk.bf16.mxu1 %vm867_vm2, %v7683_v6  ;;  %6637 = vmatmul.mubr.msk.bf16.gmra.mrb[76].mxu0 %vm867_vm2, %v3831_v31  ;;  %v3837_v6 = vsel %vm3750_vm3, %v3834_v57, %v3836_v9 }
 0x184   :  { %6640 = vmatprep.mubr.msk.bf16.mxu0 %vm867_vm2, %v3833_v47 }
 0x18a   :  { %6409 = vmatmul.mubr.msk.bf16.gmra.mrb[80].mxu1 %vm867_vm2, %v7694_v10  ;;  %v3839_v10 = vsel %vm3750_vm3, %v3836_v9, %v3838_v15 }
 0x18b   :  { %6412 = vmatprep.mubr.msk.bf16.mxu1 %vm867_vm2, %v7719_v36  ;;  %6641 = vmatmul.mubr.msk.bf16.gmra.mrb[80].mxu0 %vm867_vm2, %v3835_v53  ;;  %v3841_v36 = vsel %vm3750_vm3, %v3838_v15, %v3840_v44 }
 0x18c   :  { %6644 = vmatprep.mubr.msk.bf16.mxu0 %vm867_vm2, %v3837_v6 }
 0x192   :  { %6413 = vmatmul.mubr.msk.bf16.gmra.mrb[84].mxu1 %vm867_vm2, %v7732_v45  ;;  %v3843_v45 = vsel %vm3750_vm3, %v3840_v44, %v3842_v51 }
 0x193   :  { %6416 = vmatprep.mubr.msk.bf16.mxu1 %vm867_vm2, %v7755_v3  ;;  %6645 = vmatmul.mubr.msk.bf16.gmra.mrb[84].mxu0 %vm867_vm2, %v3839_v10  ;;  %v3845_v3 = vsel %vm3750_vm3, %v3842_v51, %v3844_v7 }
 0x194   :  { %6648 = vmatprep.mubr.msk.bf16.mxu0 %vm867_vm2, %v3841_v36 }
 0x19a   :  { %6417 = vmatmul.mubr.msk.bf16.gmra.mrb[88].mxu1 %vm867_vm2, %v7769_v19  ;;  %v3847_v19 = vsel %vm3750_vm3, %v3844_v7, %v3846_v20 }
 0x19b   :  { %6420 = vmatprep.mubr.msk.bf16.mxu1 %vm867_vm2, %v7791_v39  ;;  %6649 = vmatmul.mubr.msk.bf16.gmra.mrb[88].mxu0 %vm867_vm2, %v3843_v45  ;;  %v3849_v39 = vsel %vm3750_vm3, %v3846_v20, %v3848_v42 }
 0x19c   :  { %6652 = vmatprep.mubr.msk.bf16.mxu0 %vm867_vm2, %v3845_v3 }
 0x1a2   :  { %6421 = vmatmul.mubr.msk.bf16.gmra.mrb[92].mxu1 %vm867_vm2, %v7804_v49  ;;  %v3851_v49 = vsel %vm3750_vm3, %v3848_v42, %v3850_v50 }
 0x1a3   :  { %6424 = vmatprep.mubr.msk.bf16.mxu1 %vm867_vm2, %v7829_v17  ;;  %6653 = vmatmul.mubr.msk.bf16.gmra.mrb[92].mxu0 %vm867_vm2, %v3847_v19  ;;  %v3853_v17 = vsel %vm3750_vm3, %v3850_v50, %v3852_v22 }
 0x1a4   :  { %6656 = vmatprep.mubr.msk.bf16.mxu0 %vm867_vm2, %v3849_v39 }
 0x1aa   :  { %6425 = vmatmul.mubr.msk.bf16.gmra.mrb[96].mxu1 %vm867_vm2, %v7841_v29  ;;  %v3855_v29 = vsel %vm3750_vm3, %v3852_v22, %v3854_v30 }
 0x1ab   :  { %6428 = vmatprep.mubr.msk.bf16.mxu1 %vm867_vm2, %v7863_v55  ;;  %6657 = vmatmul.mubr.msk.bf16.gmra.mrb[96].mxu0 %vm867_vm2, %v3851_v49  ;;  %v122_v55 = vld [vmem:[%s8929_s0 + $0x1ac] sm:$0x3] }
 0x1ac   :  { %6660 = vmatprep.mubr.msk.bf16.mxu0 %vm867_vm2, %v3853_v17  ;;  %v5508_v60 = vcombine.low %v7899_v35, %v122_v55 }
 0x1b2   :  { %6429 = vmatmul.mubr.msk.bf16.gmra.mrb[100].mxu1 %vm867_vm2, %v7877_v0  ;;  %v3859_v0 = vsel %vm3750_vm3, %v3856_v61, %v3858_v63 }
 0x1b3   :  { %6432 = vmatprep.mubr.msk.bf16.mxu1 %vm867_vm2, %v7909_v52  ;;  %6661 = vmatmul.mubr.msk.bf16.gmra.mrb[100].mxu0 %vm867_vm2, %v3855_v29 }
 0x1b4   :  { %6664 = vmatprep.mubr.msk.bf16.mxu0 %vm867_vm2, %v3857_v1 }
 0x1ba   :  { %6433 = vmatmul.mubr.msk.bf16.gmra.mrb[104].mxu1 %vm867_vm2, %v5508_v60 }
 0x1bb   :  { %6665 = vmatmul.mubr.msk.bf16.gmra.mrb[104].mxu0 %vm867_vm2, %v3859_v0 }
 0x1bd   :  { %v6330_v58 = vpop.f32.mrb[0].mxu1 }
 0x1be   :  { %v1665_v52 = vpop.f32.mrb[1].mxu1  ;;  %v6562_v41 = vpop.f32.mrb[0].mxu0 }
 0x1bf   :  { %v6331_v59 = vpop.f32.mrb[2].mxu1  ;;  %v6668_v35 = vadd.f32 %v6562_v41, %v6330_v58  ;;  %v4080_v4 = vpop.f32.mrb[1].mxu0 }
 0x1c0   :  { %v1668_v56 = vpop.f32.mrb[3].mxu1  ;;  %v6669_v5 = vadd.f32 %v4080_v4, %v1665_v52  ;;  %v6563_v33 = vpop.f32.mrb[2].mxu0 }
 0x1c1   :  { %v4628_v11 = vadd.f32 %v6668_v35, %v8382_v2  ;;  %v6670_v8 = vadd.f32 %v6563_v33, %v6331_v59  ;;  %v4083_v13 = vpop.f32.mrb[3].mxu0 }
 0x1c2   :  { %v4626_v14 = vadd.f32 %v6669_v5, %v8382_v2  ;;  %v6671_v16 = vadd.f32 %v4083_v13, %v1668_v56 }
 0x1c3   :  { %v4736_v62 = vmax.f32 %v4628_v11, 0.0  ;;  %v4629_v12 = vadd.f32 %v6670_v8, %v8382_v2 }
 0x1c4   :  { %v4734_v25 = vmax.f32 %v4626_v14, 0.0  ;;  %v4627_v27 = vadd.f32 %v6671_v16, %v8382_v2 }
 0x1c5   :  { %v6334_v23 = vpop.f32.mrb[4].mxu1  ;;  %v5866_v32 = vpack.c.bf16 %v4736_v62, %v4736_v62  ;;  %v4737_v34 = vmax.f32 %v4629_v12, 0.0 }
 0x1c6   :  { %v1681_v24 = vpop.f32.mrb[5].mxu1  ;;  %v5864_v38 = vpack.c.bf16 %v4734_v25, %v4734_v25  ;;  %v4735_v40 = vmax.f32 %v4627_v27, 0.0  ;;  %v6566_v43 = vpop.f32.mrb[4].mxu0 }
 0x1c7   :  { %v6335_v28 = vpop.f32.mrb[6].mxu1  ;;  %5277 = vst.msk [vmem:[%s8931_s3 + $0x8] sm:$0xf] %vm5274_vm4, %v5866_v32  ;;  %v5867_v21 = vpack.c.bf16 %v4737_v34, %v4737_v34  ;;  %v6672_v26 = vadd.f32 %v6566_v43, %v6334_v23  ;;  %v4096_v46 = vpop.f32.mrb[5].mxu0 }
 0x1c8   :  { %v1684_v37 = vpop.f32.mrb[7].mxu1  ;;  %5275 = vst.msk [vmem:[%s8931_s3] sm:$0xf] %vm5274_vm4, %v5864_v38  ;;  %v5865_v18 = vpack.c.bf16 %v4735_v40, %v4735_v40  ;;  %v6673_v54 = vadd.f32 %v4096_v46, %v1681_v24  ;;  %v6567_v48 = vpop.f32.mrb[6].mxu0 }
 0x1c9   :  { %5278 = vst.msk [vmem:[%s8931_s3 + $0xc] sm:$0xf] %vm5274_vm4, %v5867_v21  ;;  %v4632_v31 = vadd.f32 %v6672_v26, %v8382_v2  ;;  %v6674_v47 = vadd.f32 %v6567_v48, %v6335_v28  ;;  %v4099_v57 = vpop.f32.mrb[7].mxu0 }
 0x1ca   :  { %5276 = vst.msk [vmem:[%s8931_s3 + $0x4] sm:$0xf] %vm5274_vm4, %v5865_v18  ;;  %v4630_v9 = vadd.f32 %v6673_v54, %v8382_v2  ;;  %v6675_v53 = vadd.f32 %v4099_v57, %v1684_v37 }
 0x1cb   :  { %v4740_v15 = vmax.f32 %v4632_v31, 0.0  ;;  %v4633_v44 = vadd.f32 %v6674_v47, %v8382_v2 }
 0x1cc   :  { %v4738_v36 = vmax.f32 %v4630_v9, 0.0  ;;  %v4631_v51 = vadd.f32 %v6675_v53, %v8382_v2 }
 0x1cd   :  { %v6338_v6 = vpop.f32.mrb[8].mxu1  ;;  %v5870_v45 = vpack.c.bf16 %v4740_v15, %v4740_v15  ;;  %v4741_v3 = vmax.f32 %v4633_v44, 0.0 }
 0x1ce   :  { %v1697_v10 = vpop.f32.mrb[9].mxu1  ;;  %v5868_v42 = vpack.c.bf16 %v4738_v36, %v4738_v36  ;;  %v4739_v19 = vmax.f32 %v4631_v51, 0.0  ;;  %v6570_v39 = vpop.f32.mrb[8].mxu0 }
 0x1cf   :  { %v6339_v7 = vpop.f32.mrb[10].mxu1  ;;  %5281 = vst.msk [vmem:[%s8931_s3 + $0x18] sm:$0xf] %vm5274_vm4, %v5870_v45  ;;  %v5871_v50 = vpack.c.bf16 %v4741_v3, %v4741_v3  ;;  %v6676_v22 = vadd.f32 %v6570_v39, %v6338_v6  ;;  %v4112_v49 = vpop.f32.mrb[9].mxu0 }
 0x1d0   :  { %v1700_v20 = vpop.f32.mrb[11].mxu1  ;;  %5279 = vst.msk [vmem:[%s8931_s3 + $0x10] sm:$0xf] %vm5274_vm4, %v5868_v42  ;;  %v5869_v17 = vpack.c.bf16 %v4739_v19, %v4739_v19  ;;  %v6677_v30 = vadd.f32 %v4112_v49, %v1697_v10  ;;  %v6571_v61 = vpop.f32.mrb[10].mxu0 }
 0x1d1   :  { %5282 = vst.msk [vmem:[%s8931_s3 + $0x1c] sm:$0xf] %vm5274_vm4, %v5871_v50  ;;  %v4636_v29 = vadd.f32 %v6676_v22, %v8382_v2  ;;  %v6678_v55 = vadd.f32 %v6571_v61, %v6339_v7  ;;  %v4115_v1 = vpop.f32.mrb[11].mxu0 }
 0x1d2   :  { %5280 = vst.msk [vmem:[%s8931_s3 + $0x14] sm:$0xf] %vm5274_vm4, %v5869_v17  ;;  %v4634_v60 = vadd.f32 %v6677_v30, %v8382_v2  ;;  %v6679_v63 = vadd.f32 %v4115_v1, %v1700_v20 }
 0x1d3   :  { %v4744_v58 = vmax.f32 %v4636_v29, 0.0  ;;  %v4637_v52 = vadd.f32 %v6678_v55, %v8382_v2 }
 0x1d4   :  { %v4742_v56 = vmax.f32 %v4634_v60, 0.0  ;;  %v4635_v41 = vadd.f32 %v6679_v63, %v8382_v2 }
 0x1d5   :  { %v6342_v0 = vpop.f32.mrb[12].mxu1  ;;  %v5874_v4 = vpack.c.bf16 %v4744_v58, %v4744_v58  ;;  %v4745_v5 = vmax.f32 %v4637_v52, 0.0 }
 0x1d6   :  { %v1713_v59 = vpop.f32.mrb[13].mxu1  ;;  %v5872_v11 = vpack.c.bf16 %v4742_v56, %v4742_v56  ;;  %v4743_v8 = vmax.f32 %v4635_v41, 0.0  ;;  %v6574_v13 = vpop.f32.mrb[12].mxu0 }
 0x1d7   :  { %v6343_v35 = vpop.f32.mrb[14].mxu1  ;;  %5285 = vst.msk [vmem:[%s8931_s3 + $0x28] sm:$0xf] %vm5274_vm4, %v5874_v4  ;;  %v5875_v14 = vpack.c.bf16 %v4745_v5, %v4745_v5  ;;  %v6680_v16 = vadd.f32 %v6574_v13, %v6342_v0  ;;  %v4128_v23 = vpop.f32.mrb[13].mxu0 }
 0x1d8   :  { %v1716_v33 = vpop.f32.mrb[15].mxu1  ;;  %5283 = vst.msk [vmem:[%s8931_s3 + $0x20] sm:$0xf] %vm5274_vm4, %v5872_v11  ;;  %v5873_v62 = vpack.c.bf16 %v4743_v8, %v4743_v8  ;;  %v6681_v12 = vadd.f32 %v4128_v23, %v1713_v59  ;;  %v6575_v24 = vpop.f32.mrb[14].mxu0 }
 0x1d9   :  { %5286 = vst.msk [vmem:[%s8931_s3 + $0x2c] sm:$0xf] %vm5274_vm4, %v5875_v14  ;;  %v4640_v25 = vadd.f32 %v6680_v16, %v8382_v2  ;;  %v6682_v27 = vadd.f32 %v6575_v24, %v6343_v35  ;;  %v4131_v28 = vpop.f32.mrb[15].mxu0 }
 0x1da   :  { %5284 = vst.msk [vmem:[%s8931_s3 + $0x24] sm:$0xf] %vm5274_vm4, %v5873_v62  ;;  %v4638_v32 = vadd.f32 %v6681_v12, %v8382_v2  ;;  %v6683_v34 = vadd.f32 %v4131_v28, %v1716_v33 }
 0x1db   :  { %v4748_v38 = vmax.f32 %v4640_v25, 0.0  ;;  %v4641_v40 = vadd.f32 %v6682_v27, %v8382_v2 }
 0x1dc   :  { %v4746_v21 = vmax.f32 %v4638_v32, 0.0  ;;  %v4639_v26 = vadd.f32 %v6683_v34, %v8382_v2 }
 0x1dd   :  { %v6346_v37 = vpop.f32.mrb[16].mxu1  ;;  %v5878_v18 = vpack.c.bf16 %v4748_v38, %v4748_v38  ;;  %v4749_v54 = vmax.f32 %v4641_v40, 0.0 }
 0x1de   :  { %v1729_v43 = vpop.f32.mrb[17].mxu1  ;;  %v5876_v31 = vpack.c.bf16 %v4746_v21, %v4746_v21  ;;  %v4747_v47 = vmax.f32 %v4639_v26, 0.0  ;;  %v6578_v57 = vpop.f32.mrb[16].mxu0 }
 0x1df   :  { %v6347_v46 = vpop.f32.mrb[18].mxu1  ;;  %5289 = vst.msk [vmem:[%s8931_s3 + $0x38] sm:$0xf] %vm5274_vm4, %v5878_v18  ;;  %v5879_v9 = vpack.c.bf16 %v4749_v54, %v4749_v54  ;;  %v6684_v53 = vadd.f32 %v6578_v57, %v6346_v37  ;;  %v4144_v6 = vpop.f32.mrb[17].mxu0 }
 0x1e0   :  { %v1732_v48 = vpop.f32.mrb[19].mxu1  ;;  %5287 = vst.msk [vmem:[%s8931_s3 + $0x30] sm:$0xf] %vm5274_vm4, %v5876_v31  ;;  %v5877_v15 = vpack.c.bf16 %v4747_v47, %v4747_v47  ;;  %v6685_v44 = vadd.f32 %v4144_v6, %v1729_v43  ;;  %v6579_v10 = vpop.f32.mrb[18].mxu0 }
 0x1e1   :  { %5290 = vst.msk [vmem:[%s8931_s3 + $0x3c] sm:$0xf] %vm5274_vm4, %v5879_v9  ;;  %v4644_v36 = vadd.f32 %v6684_v53, %v8382_v2  ;;  %v6686_v51 = vadd.f32 %v6579_v10, %v6347_v46  ;;  %v4147_v7 = vpop.f32.mrb[19].mxu0 }
 0x1e2   :  { %5288 = vst.msk [vmem:[%s8931_s3 + $0x34] sm:$0xf] %vm5274_vm4, %v5877_v15  ;;  %v4642_v45 = vadd.f32 %v6685_v44, %v8382_v2  ;;  %v6687_v3 = vadd.f32 %v4147_v7, %v1732_v48 }
 0x1e3   :  { %v4752_v42 = vmax.f32 %v4644_v36, 0.0  ;;  %v4645_v19 = vadd.f32 %v6686_v51, %v8382_v2 }
 0x1e4   :  { %v4750_v50 = vmax.f32 %v4642_v45, 0.0  ;;  %v4643_v22 = vadd.f32 %v6687_v3, %v8382_v2 }
 0x1e5   :  { %v6350_v20 = vpop.f32.mrb[20].mxu1  ;;  %v5882_v17 = vpack.c.bf16 %v4752_v42, %v4752_v42  ;;  %v4753_v30 = vmax.f32 %v4645_v19, 0.0 }
 0x1e6   :  { %v1745_v39 = vpop.f32.mrb[21].mxu1  ;;  %v5880_v29 = vpack.c.bf16 %v4750_v50, %v4750_v50  ;;  %v4751_v55 = vmax.f32 %v4643_v22, 0.0  ;;  %v6582_v1 = vpop.f32.mrb[20].mxu0 }
 0x1e7   :  { %v6351_v49 = vpop.f32.mrb[22].mxu1  ;;  %5293 = vst.msk [vmem:[%s8931_s3 + $0x48] sm:$0xf] %vm5274_vm4, %v5882_v17  ;;  %v5883_v60 = vpack.c.bf16 %v4753_v30, %v4753_v30  ;;  %v6688_v63 = vadd.f32 %v6582_v1, %v6350_v20  ;;  %v4160_v0 = vpop.f32.mrb[21].mxu0 }
 0x1e8   :  { %v1748_v61 = vpop.f32.mrb[23].mxu1  ;;  %5291 = vst.msk [vmem:[%s8931_s3 + $0x40] sm:$0xf] %vm5274_vm4, %v5880_v29  ;;  %v5881_v58 = vpack.c.bf16 %v4751_v55, %v4751_v55  ;;  %v6689_v52 = vadd.f32 %v4160_v0, %v1745_v39  ;;  %v6583_v59 = vpop.f32.mrb[22].mxu0 }
 0x1e9   :  { %5294 = vst.msk [vmem:[%s8931_s3 + $0x4c] sm:$0xf] %vm5274_vm4, %v5883_v60  ;;  %v4648_v56 = vadd.f32 %v6688_v63, %v8382_v2  ;;  %v6690_v41 = vadd.f32 %v6583_v59, %v6351_v49  ;;  %v4163_v35 = vpop.f32.mrb[23].mxu0 }
 0x1ea   :  { %5292 = vst.msk [vmem:[%s8931_s3 + $0x44] sm:$0xf] %vm5274_vm4, %v5881_v58  ;;  %v4646_v4 = vadd.f32 %v6689_v52, %v8382_v2  ;;  %v6691_v5 = vadd.f32 %v4163_v35, %v1748_v61 }
 0x1eb   :  { %v4756_v11 = vmax.f32 %v4648_v56, 0.0  ;;  %v4649_v8 = vadd.f32 %v6690_v41, %v8382_v2 }
 0x1ec   :  { %v4754_v14 = vmax.f32 %v4646_v4, 0.0  ;;  %v4647_v16 = vadd.f32 %v6691_v5, %v8382_v2 }
 0x1ed   :  { %v6354_v33 = vpop.f32.mrb[24].mxu1  ;;  %v5886_v62 = vpack.c.bf16 %v4756_v11, %v4756_v11  ;;  %v4757_v12 = vmax.f32 %v4649_v8, 0.0 }
 0x1ee   :  { %v1761_v13 = vpop.f32.mrb[25].mxu1  ;;  %v5884_v25 = vpack.c.bf16 %v4754_v14, %v4754_v14  ;;  %v4755_v27 = vmax.f32 %v4647_v16, 0.0  ;;  %v6586_v28 = vpop.f32.mrb[24].mxu0 }
 0x1ef   :  { %v6355_v23 = vpop.f32.mrb[26].mxu1  ;;  %5297 = vst.msk [vmem:[%s8931_s3 + $0x58] sm:$0xf] %vm5274_vm4, %v5886_v62  ;;  %v5887_v32 = vpack.c.bf16 %v4757_v12, %v4757_v12  ;;  %v6692_v34 = vadd.f32 %v6586_v28, %v6354_v33  ;;  %v4176_v37 = vpop.f32.mrb[25].mxu0 }
 0x1f0   :  { %v1764_v24 = vpop.f32.mrb[27].mxu1  ;;  %5295 = vst.msk [vmem:[%s8931_s3 + $0x50] sm:$0xf] %vm5274_vm4, %v5884_v25  ;;  %v5885_v38 = vpack.c.bf16 %v4755_v27, %v4755_v27  ;;  %v6693_v40 = vadd.f32 %v4176_v37, %v1761_v13  ;;  %v6587_v43 = vpop.f32.mrb[26].mxu0 }
 0x1f1   :  { %5298 = vst.msk [vmem:[%s8931_s3 + $0x5c] sm:$0xf] %vm5274_vm4, %v5887_v32  ;;  %v4652_v21 = vadd.f32 %v6692_v34, %v8382_v2  ;;  %v6694_v26 = vadd.f32 %v6587_v43, %v6355_v23  ;;  %v4179_v46 = vpop.f32.mrb[27].mxu0 }
 0x1f2   :  { %5296 = vst.msk [vmem:[%s8931_s3 + $0x54] sm:$0xf] %vm5274_vm4, %v5885_v38  ;;  %v4650_v18 = vadd.f32 %v6693_v40, %v8382_v2  ;;  %v6695_v54 = vadd.f32 %v4179_v46, %v1764_v24 }
 0x1f3   :  { %v4760_v31 = vmax.f32 %v4652_v21, 0.0  ;;  %v4653_v47 = vadd.f32 %v6694_v26, %v8382_v2 }
 0x1f4   :  { %v4758_v9 = vmax.f32 %v4650_v18, 0.0  ;;  %v4651_v53 = vadd.f32 %v6695_v54, %v8382_v2 }
 0x1f5   :  { %v6358_v48 = vpop.f32.mrb[28].mxu1  ;;  %v5890_v15 = vpack.c.bf16 %v4760_v31, %v4760_v31  ;;  %v4761_v44 = vmax.f32 %v4653_v47, 0.0 }
 0x1f6   :  { %v1777_v57 = vpop.f32.mrb[29].mxu1  ;;  %v5888_v36 = vpack.c.bf16 %v4758_v9, %v4758_v9  ;;  %v4759_v51 = vmax.f32 %v4651_v53, 0.0  ;;  %v6590_v7 = vpop.f32.mrb[28].mxu0 }
 0x1f7   :  { %v6359_v6 = vpop.f32.mrb[30].mxu1  ;;  %5301 = vst.msk [vmem:[%s8931_s3 + $0x68] sm:$0xf] %vm5274_vm4, %v5890_v15  ;;  %v5891_v45 = vpack.c.bf16 %v4761_v44, %v4761_v44  ;;  %v6696_v3 = vadd.f32 %v6590_v7, %v6358_v48  ;;  %v4192_v20 = vpop.f32.mrb[29].mxu0 }
 0x1f8   :  { %v1780_v10 = vpop.f32.mrb[31].mxu1  ;;  %5299 = vst.msk [vmem:[%s8931_s3 + $0x60] sm:$0xf] %vm5274_vm4, %v5888_v36  ;;  %v5889_v42 = vpack.c.bf16 %v4759_v51, %v4759_v51  ;;  %v6697_v19 = vadd.f32 %v4192_v20, %v1777_v57  ;;  %v6591_v39 = vpop.f32.mrb[30].mxu0 }
 0x1f9   :  { %5302 = vst.msk [vmem:[%s8931_s3 + $0x6c] sm:$0xf] %vm5274_vm4, %v5891_v45  ;;  %v4656_v50 = vadd.f32 %v6696_v3, %v8382_v2  ;;  %v6698_v22 = vadd.f32 %v6591_v39, %v6359_v6  ;;  %v4195_v49 = vpop.f32.mrb[31].mxu0 }
 0x1fa   :  { %5300 = vst.msk [vmem:[%s8931_s3 + $0x64] sm:$0xf] %vm5274_vm4, %v5889_v42  ;;  %v4654_v17 = vadd.f32 %v6697_v19, %v8382_v2  ;;  %v6699_v30 = vadd.f32 %v4195_v49, %v1780_v10 }
 0x1fb   :  { %v4764_v29 = vmax.f32 %v4656_v50, 0.0  ;;  %v4657_v55 = vadd.f32 %v6698_v22, %v8382_v2 }
 0x1fc   :  { %v4762_v60 = vmax.f32 %v4654_v17, 0.0  ;;  %v4655_v63 = vadd.f32 %v6699_v30, %v8382_v2 }
 0x1fd   :  { %v6362_v61 = vpop.f32.mrb[32].mxu1  ;;  %v5894_v58 = vpack.c.bf16 %v4764_v29, %v4764_v29  ;;  %v4765_v52 = vmax.f32 %v4657_v55, 0.0 }
 0x1fe   :  { %v1793_v1 = vpop.f32.mrb[33].mxu1  ;;  %v5892_v56 = vpack.c.bf16 %v4762_v60, %v4762_v60  ;;  %v4763_v41 = vmax.f32 %v4655_v63, 0.0  ;;  %v6594_v35 = vpop.f32.mrb[32].mxu0 }
 0x1ff   :  { %v6363_v0 = vpop.f32.mrb[34].mxu1  ;;  %5305 = vst.msk [vmem:[%s8931_s3 + $0x78] sm:$0xf] %vm5274_vm4, %v5894_v58  ;;  %v5895_v4 = vpack.c.bf16 %v4765_v52, %v4765_v52  ;;  %v6700_v5 = vadd.f32 %v6594_v35, %v6362_v61  ;;  %v4208_v33 = vpop.f32.mrb[33].mxu0 }
 0x200   :  { %v1796_v59 = vpop.f32.mrb[35].mxu1  ;;  %5303 = vst.msk [vmem:[%s8931_s3 + $0x70] sm:$0xf] %vm5274_vm4, %v5892_v56  ;;  %v5893_v11 = vpack.c.bf16 %v4763_v41, %v4763_v41  ;;  %v6701_v8 = vadd.f32 %v4208_v33, %v1793_v1  ;;  %v6595_v13 = vpop.f32.mrb[34].mxu0 }
 0x201   :  { %5306 = vst.msk [vmem:[%s8931_s3 + $0x7c] sm:$0xf] %vm5274_vm4, %v5895_v4  ;;  %v4660_v14 = vadd.f32 %v6700_v5, %v8382_v2  ;;  %v6702_v16 = vadd.f32 %v6595_v13, %v6363_v0  ;;  %v4211_v23 = vpop.f32.mrb[35].mxu0 }
 0x202   :  { %5304 = vst.msk [vmem:[%s8931_s3 + $0x74] sm:$0xf] %vm5274_vm4, %v5893_v11  ;;  %v4658_v62 = vadd.f32 %v6701_v8, %v8382_v2  ;;  %v6703_v12 = vadd.f32 %v4211_v23, %v1796_v59 }
 0x203   :  { %v4768_v25 = vmax.f32 %v4660_v14, 0.0  ;;  %v4661_v27 = vadd.f32 %v6702_v16, %v8382_v2 }
 0x204   :  { %v4766_v32 = vmax.f32 %v4658_v62, 0.0  ;;  %v4659_v34 = vadd.f32 %v6703_v12, %v8382_v2 }
 0x205   :  { %v6366_v24 = vpop.f32.mrb[36].mxu1  ;;  %v5898_v38 = vpack.c.bf16 %v4768_v25, %v4768_v25  ;;  %v4769_v40 = vmax.f32 %v4661_v27, 0.0 }
 0x206   :  { %v1809_v28 = vpop.f32.mrb[37].mxu1  ;;  %v5896_v21 = vpack.c.bf16 %v4766_v32, %v4766_v32  ;;  %v4767_v26 = vmax.f32 %v4659_v34, 0.0  ;;  %v6598_v46 = vpop.f32.mrb[36].mxu0 }
 0x207   :  { %v6367_v37 = vpop.f32.mrb[38].mxu1  ;;  %5309 = vst.msk [vmem:[%s8931_s3 + $0x88] sm:$0xf] %vm5274_vm4, %v5898_v38  ;;  %v5899_v18 = vpack.c.bf16 %v4769_v40, %v4769_v40  ;;  %v6704_v54 = vadd.f32 %v6598_v46, %v6366_v24  ;;  %v4224_v48 = vpop.f32.mrb[37].mxu0 }
 0x208   :  { %v1812_v43 = vpop.f32.mrb[39].mxu1  ;;  %5307 = vst.msk [vmem:[%s8931_s3 + $0x80] sm:$0xf] %vm5274_vm4, %v5896_v21  ;;  %v5897_v31 = vpack.c.bf16 %v4767_v26, %v4767_v26  ;;  %v6705_v47 = vadd.f32 %v4224_v48, %v1809_v28  ;;  %v6599_v57 = vpop.f32.mrb[38].mxu0 }
 0x209   :  { %5310 = vst.msk [vmem:[%s8931_s3 + $0x8c] sm:$0xf] %vm5274_vm4, %v5899_v18  ;;  %v4664_v9 = vadd.f32 %v6704_v54, %v8382_v2  ;;  %v6706_v53 = vadd.f32 %v6599_v57, %v6367_v37  ;;  %v4227_v6 = vpop.f32.mrb[39].mxu0 }
 0x20a   :  { %5308 = vst.msk [vmem:[%s8931_s3 + $0x84] sm:$0xf] %vm5274_vm4, %v5897_v31  ;;  %v4662_v15 = vadd.f32 %v6705_v47, %v8382_v2  ;;  %v6707_v44 = vadd.f32 %v4227_v6, %v1812_v43 }
 0x20b   :  { %v4772_v36 = vmax.f32 %v4664_v9, 0.0  ;;  %v4665_v51 = vadd.f32 %v6706_v53, %v8382_v2 }
 0x20c   :  { %v4770_v45 = vmax.f32 %v4662_v15, 0.0  ;;  %v4663_v3 = vadd.f32 %v6707_v44, %v8382_v2 }
 0x20d   :  { %v6370_v10 = vpop.f32.mrb[40].mxu1  ;;  %v5902_v42 = vpack.c.bf16 %v4772_v36, %v4772_v36  ;;  %v4773_v19 = vmax.f32 %v4665_v51, 0.0 }
 0x20e   :  { %v1825_v7 = vpop.f32.mrb[41].mxu1  ;;  %v5900_v50 = vpack.c.bf16 %v4770_v45, %v4770_v45  ;;  %v4771_v22 = vmax.f32 %v4663_v3, 0.0  ;;  %v6602_v49 = vpop.f32.mrb[40].mxu0 }
 0x20f   :  { %v6371_v20 = vpop.f32.mrb[42].mxu1  ;;  %5313 = vst.msk [vmem:[%s8931_s3 + $0x98] sm:$0xf] %vm5274_vm4, %v5902_v42  ;;  %v5903_v17 = vpack.c.bf16 %v4773_v19, %v4773_v19  ;;  %v6708_v30 = vadd.f32 %v6602_v49, %v6370_v10  ;;  %v4240_v61 = vpop.f32.mrb[41].mxu0 }
 0x210   :  { %v1828_v39 = vpop.f32.mrb[43].mxu1  ;;  %5311 = vst.msk [vmem:[%s8931_s3 + $0x90] sm:$0xf] %vm5274_vm4, %v5900_v50  ;;  %v5901_v29 = vpack.c.bf16 %v4771_v22, %v4771_v22  ;;  %v6709_v55 = vadd.f32 %v4240_v61, %v1825_v7  ;;  %v6603_v1 = vpop.f32.mrb[42].mxu0 }
 0x211   :  { %5314 = vst.msk [vmem:[%s8931_s3 + $0x9c] sm:$0xf] %vm5274_vm4, %v5903_v17  ;;  %v4668_v60 = vadd.f32 %v6708_v30, %v8382_v2  ;;  %v6710_v63 = vadd.f32 %v6603_v1, %v6371_v20  ;;  %v4243_v0 = vpop.f32.mrb[43].mxu0 }
 0x212   :  { %5312 = vst.msk [vmem:[%s8931_s3 + $0x94] sm:$0xf] %vm5274_vm4, %v5901_v29  ;;  %v4666_v58 = vadd.f32 %v6709_v55, %v8382_v2  ;;  %v6711_v52 = vadd.f32 %v4243_v0, %v1828_v39 }
 0x213   :  { %v4776_v56 = vmax.f32 %v4668_v60, 0.0  ;;  %v4669_v41 = vadd.f32 %v6710_v63, %v8382_v2 }
 0x214   :  { %v4774_v4 = vmax.f32 %v4666_v58, 0.0  ;;  %v4667_v5 = vadd.f32 %v6711_v52, %v8382_v2 }
 0x215   :  { %v6374_v59 = vpop.f32.mrb[44].mxu1  ;;  %v5906_v11 = vpack.c.bf16 %v4776_v56, %v4776_v56  ;;  %v4777_v8 = vmax.f32 %v4669_v41, 0.0 }
 0x216   :  { %v1841_v35 = vpop.f32.mrb[45].mxu1  ;;  %v5904_v14 = vpack.c.bf16 %v4774_v4, %v4774_v4  ;;  %v4775_v16 = vmax.f32 %v4667_v5, 0.0  ;;  %v6606_v23 = vpop.f32.mrb[44].mxu0 }
 0x217   :  { %v6375_v33 = vpop.f32.mrb[46].mxu1  ;;  %5317 = vst.msk [vmem:[%s8931_s3 + $0xa8] sm:$0xf] %vm5274_vm4, %v5906_v11  ;;  %v5907_v62 = vpack.c.bf16 %v4777_v8, %v4777_v8  ;;  %v6712_v12 = vadd.f32 %v6606_v23, %v6374_v59  ;;  %v4256_v24 = vpop.f32.mrb[45].mxu0 }
 0x218   :  { %v1844_v13 = vpop.f32.mrb[47].mxu1  ;;  %5315 = vst.msk [vmem:[%s8931_s3 + $0xa0] sm:$0xf] %vm5274_vm4, %v5904_v14  ;;  %v5905_v25 = vpack.c.bf16 %v4775_v16, %v4775_v16  ;;  %v6713_v27 = vadd.f32 %v4256_v24, %v1841_v35  ;;  %v6607_v28 = vpop.f32.mrb[46].mxu0 }
 0x219   :  { %5318 = vst.msk [vmem:[%s8931_s3 + $0xac] sm:$0xf] %vm5274_vm4, %v5907_v62  ;;  %v4672_v32 = vadd.f32 %v6712_v12, %v8382_v2  ;;  %v6714_v34 = vadd.f32 %v6607_v28, %v6375_v33  ;;  %v4259_v37 = vpop.f32.mrb[47].mxu0 }
 0x21a   :  { %5316 = vst.msk [vmem:[%s8931_s3 + $0xa4] sm:$0xf] %vm5274_vm4, %v5905_v25  ;;  %v4670_v38 = vadd.f32 %v6713_v27, %v8382_v2  ;;  %v6715_v40 = vadd.f32 %v4259_v37, %v1844_v13 }
 0x21b   :  { %v4780_v21 = vmax.f32 %v4672_v32, 0.0  ;;  %v4673_v26 = vadd.f32 %v6714_v34, %v8382_v2 }
 0x21c   :  { %v4778_v18 = vmax.f32 %v4670_v38, 0.0  ;;  %v4671_v54 = vadd.f32 %v6715_v40, %v8382_v2 }
 0x21d   :  { %v6378_v43 = vpop.f32.mrb[48].mxu1  ;;  %v5910_v31 = vpack.c.bf16 %v4780_v21, %v4780_v21  ;;  %v4781_v47 = vmax.f32 %v4673_v26, 0.0 }
 0x21e   :  { %v1857_v46 = vpop.f32.mrb[49].mxu1  ;;  %v5908_v9 = vpack.c.bf16 %v4778_v18, %v4778_v18  ;;  %v4779_v53 = vmax.f32 %v4671_v54, 0.0  ;;  %v6610_v6 = vpop.f32.mrb[48].mxu0 }
 0x21f   :  { %v6379_v48 = vpop.f32.mrb[50].mxu1  ;;  %5321 = vst.msk [vmem:[%s8931_s3 + $0xb8] sm:$0xf] %vm5274_vm4, %v5910_v31  ;;  %v5911_v15 = vpack.c.bf16 %v4781_v47, %v4781_v47  ;;  %v6716_v44 = vadd.f32 %v6610_v6, %v6378_v43  ;;  %v4272_v10 = vpop.f32.mrb[49].mxu0 }
 0x220   :  { %v1860_v57 = vpop.f32.mrb[51].mxu1  ;;  %5319 = vst.msk [vmem:[%s8931_s3 + $0xb0] sm:$0xf] %vm5274_vm4, %v5908_v9  ;;  %v5909_v36 = vpack.c.bf16 %v4779_v53, %v4779_v53  ;;  %v6717_v51 = vadd.f32 %v4272_v10, %v1857_v46  ;;  %v6611_v7 = vpop.f32.mrb[50].mxu0 }
 0x221   :  { %5322 = vst.msk [vmem:[%s8931_s3 + $0xbc] sm:$0xf] %vm5274_vm4, %v5911_v15  ;;  %v4676_v45 = vadd.f32 %v6716_v44, %v8382_v2  ;;  %v6718_v3 = vadd.f32 %v6611_v7, %v6379_v48  ;;  %v4275_v20 = vpop.f32.mrb[51].mxu0 }
 0x222   :  { %5320 = vst.msk [vmem:[%s8931_s3 + $0xb4] sm:$0xf] %vm5274_vm4, %v5909_v36  ;;  %v4674_v42 = vadd.f32 %v6717_v51, %v8382_v2  ;;  %v6719_v19 = vadd.f32 %v4275_v20, %v1860_v57 }
 0x223   :  { %v4784_v50 = vmax.f32 %v4676_v45, 0.0  ;;  %v4677_v22 = vadd.f32 %v6718_v3, %v8382_v2 }
 0x224   :  { %v4782_v17 = vmax.f32 %v4674_v42, 0.0  ;;  %v4675_v30 = vadd.f32 %v6719_v19, %v8382_v2 }
 0x225   :  { %v6382_v39 = vpop.f32.mrb[52].mxu1  ;;  %v5914_v29 = vpack.c.bf16 %v4784_v50, %v4784_v50  ;;  %v4785_v55 = vmax.f32 %v4677_v22, 0.0 }
 0x226   :  { %v1873_v49 = vpop.f32.mrb[53].mxu1  ;;  %v5912_v60 = vpack.c.bf16 %v4782_v17, %v4782_v17  ;;  %v4783_v63 = vmax.f32 %v4675_v30, 0.0  ;;  %v6614_v0 = vpop.f32.mrb[52].mxu0 }
 0x227   :  { %v6383_v61 = vpop.f32.mrb[54].mxu1  ;;  %5325 = vst.msk [vmem:[%s8931_s3 + $0xc8] sm:$0xf] %vm5274_vm4, %v5914_v29  ;;  %v5915_v58 = vpack.c.bf16 %v4785_v55, %v4785_v55  ;;  %v6720_v52 = vadd.f32 %v6614_v0, %v6382_v39  ;;  %v4288_v59 = vpop.f32.mrb[53].mxu0 }
 0x228   :  { %v1876_v1 = vpop.f32.mrb[55].mxu1  ;;  %5323 = vst.msk [vmem:[%s8931_s3 + $0xc0] sm:$0xf] %vm5274_vm4, %v5912_v60  ;;  %v5913_v56 = vpack.c.bf16 %v4783_v63, %v4783_v63  ;;  %v6721_v41 = vadd.f32 %v4288_v59, %v1873_v49  ;;  %v6615_v35 = vpop.f32.mrb[54].mxu0 }
 0x229   :  { %5326 = vst.msk [vmem:[%s8931_s3 + $0xcc] sm:$0xf] %vm5274_vm4, %v5915_v58  ;;  %v4680_v4 = vadd.f32 %v6720_v52, %v8382_v2  ;;  %v6722_v5 = vadd.f32 %v6615_v35, %v6383_v61  ;;  %v4291_v33 = vpop.f32.mrb[55].mxu0 }
 0x22a   :  { %5324 = vst.msk [vmem:[%s8931_s3 + $0xc4] sm:$0xf] %vm5274_vm4, %v5913_v56  ;;  %v4678_v11 = vadd.f32 %v6721_v41, %v8382_v2  ;;  %v6723_v8 = vadd.f32 %v4291_v33, %v1876_v1 }
 0x22b   :  { %v4788_v14 = vmax.f32 %v4680_v4, 0.0  ;;  %v4681_v16 = vadd.f32 %v6722_v5, %v8382_v2 }
 0x22c   :  { %v4786_v62 = vmax.f32 %v4678_v11, 0.0  ;;  %v4679_v12 = vadd.f32 %v6723_v8, %v8382_v2 }
 0x22d   :  { %v6386_v13 = vpop.f32.mrb[56].mxu1  ;;  %v5918_v25 = vpack.c.bf16 %v4788_v14, %v4788_v14  ;;  %v4789_v27 = vmax.f32 %v4681_v16, 0.0 }
 0x22e   :  { %v1889_v23 = vpop.f32.mrb[57].mxu1  ;;  %v5916_v32 = vpack.c.bf16 %v4786_v62, %v4786_v62  ;;  %v4787_v34 = vmax.f32 %v4679_v12, 0.0  ;;  %v6618_v37 = vpop.f32.mrb[56].mxu0 }
 0x22f   :  { %v6387_v24 = vpop.f32.mrb[58].mxu1  ;;  %5329 = vst.msk [vmem:[%s8931_s3 + $0xd8] sm:$0xf] %vm5274_vm4, %v5918_v25  ;;  %v5919_v38 = vpack.c.bf16 %v4789_v27, %v4789_v27  ;;  %v6724_v40 = vadd.f32 %v6618_v37, %v6386_v13  ;;  %v4304_v43 = vpop.f32.mrb[57].mxu0 }
 0x230   :  { %v1892_v28 = vpop.f32.mrb[59].mxu1  ;;  %5327 = vst.msk [vmem:[%s8931_s3 + $0xd0] sm:$0xf] %vm5274_vm4, %v5916_v32  ;;  %v5917_v21 = vpack.c.bf16 %v4787_v34, %v4787_v34  ;;  %v6725_v26 = vadd.f32 %v4304_v43, %v1889_v23  ;;  %v6619_v46 = vpop.f32.mrb[58].mxu0 }
 0x231   :  { %5330 = vst.msk [vmem:[%s8931_s3 + $0xdc] sm:$0xf] %vm5274_vm4, %v5919_v38  ;;  %v4684_v18 = vadd.f32 %v6724_v40, %v8382_v2  ;;  %v6726_v54 = vadd.f32 %v6619_v46, %v6387_v24  ;;  %v4307_v48 = vpop.f32.mrb[59].mxu0 }
 0x232   :  { %5328 = vst.msk [vmem:[%s8931_s3 + $0xd4] sm:$0xf] %vm5274_vm4, %v5917_v21  ;;  %v4682_v31 = vadd.f32 %v6725_v26, %v8382_v2  ;;  %v6727_v47 = vadd.f32 %v4307_v48, %v1892_v28 }
 0x233   :  { %v4792_v9 = vmax.f32 %v4684_v18, 0.0  ;;  %v4685_v53 = vadd.f32 %v6726_v54, %v8382_v2 }
 0x234   :  { %v4790_v15 = vmax.f32 %v4682_v31, 0.0  ;;  %v4683_v44 = vadd.f32 %v6727_v47, %v8382_v2 }
 0x235   :  { %v6390_v57 = vpop.f32.mrb[60].mxu1  ;;  %v5922_v36 = vpack.c.bf16 %v4792_v9, %v4792_v9  ;;  %v4793_v51 = vmax.f32 %v4685_v53, 0.0 }
 0x236   :  { %v1905_v6 = vpop.f32.mrb[61].mxu1  ;;  %v5920_v45 = vpack.c.bf16 %v4790_v15, %v4790_v15  ;;  %v4791_v3 = vmax.f32 %v4683_v44, 0.0  ;;  %v6622_v20 = vpop.f32.mrb[60].mxu0 }
 0x237   :  { %v6391_v10 = vpop.f32.mrb[62].mxu1  ;;  %5333 = vst.msk [vmem:[%s8931_s3 + $0xe8] sm:$0xf] %vm5274_vm4, %v5922_v36  ;;  %v5923_v42 = vpack.c.bf16 %v4793_v51, %v4793_v51  ;;  %v6728_v19 = vadd.f32 %v6622_v20, %v6390_v57  ;;  %v4320_v39 = vpop.f32.mrb[61].mxu0 }
 0x238   :  { %v1908_v7 = vpop.f32.mrb[63].mxu1  ;;  %5331 = vst.msk [vmem:[%s8931_s3 + $0xe0] sm:$0xf] %vm5274_vm4, %v5920_v45  ;;  %v5921_v50 = vpack.c.bf16 %v4791_v3, %v4791_v3  ;;  %v6729_v22 = vadd.f32 %v4320_v39, %v1905_v6  ;;  %v6623_v49 = vpop.f32.mrb[62].mxu0 }
 0x239   :  { %5334 = vst.msk [vmem:[%s8931_s3 + $0xec] sm:$0xf] %vm5274_vm4, %v5923_v42  ;;  %v4688_v17 = vadd.f32 %v6728_v19, %v8382_v2  ;;  %v6730_v30 = vadd.f32 %v6623_v49, %v6391_v10  ;;  %v4323_v61 = vpop.f32.mrb[63].mxu0 }
 0x23a   :  { %5332 = vst.msk [vmem:[%s8931_s3 + $0xe4] sm:$0xf] %vm5274_vm4, %v5921_v50  ;;  %v4686_v29 = vadd.f32 %v6729_v22, %v8382_v2  ;;  %v6731_v55 = vadd.f32 %v4323_v61, %v1908_v7 }
 0x23b   :  { %v4796_v60 = vmax.f32 %v4688_v17, 0.0  ;;  %v4689_v63 = vadd.f32 %v6730_v30, %v8382_v2 }
 0x23c   :  { %v4794_v58 = vmax.f32 %v4686_v29, 0.0  ;;  %v4687_v52 = vadd.f32 %v6731_v55, %v8382_v2 }
 0x23d   :  { %v6394_v1 = vpop.f32.mrb[64].mxu1  ;;  %v5926_v56 = vpack.c.bf16 %v4796_v60, %v4796_v60  ;;  %v4797_v41 = vmax.f32 %v4689_v63, 0.0 }
 0x23e   :  { %v1921_v0 = vpop.f32.mrb[65].mxu1  ;;  %v5924_v4 = vpack.c.bf16 %v4794_v58, %v4794_v58  ;;  %v4795_v5 = vmax.f32 %v4687_v52, 0.0  ;;  %v6626_v33 = vpop.f32.mrb[64].mxu0 }
 0x23f   :  { %v6395_v59 = vpop.f32.mrb[66].mxu1  ;;  %5337 = vst.msk [vmem:[%s8931_s3 + $0xf8] sm:$0xf] %vm5274_vm4, %v5926_v56  ;;  %v5927_v11 = vpack.c.bf16 %v4797_v41, %v4797_v41  ;;  %v6732_v8 = vadd.f32 %v6626_v33, %v6394_v1  ;;  %v4336_v13 = vpop.f32.mrb[65].mxu0  ;;  %v8748_v56 = vld [vmem:[%s8930_s2] ss:$0 sm:$0xff] }
 0x240   :  { %v1924_v35 = vpop.f32.mrb[67].mxu1  ;;  %5335 = vst.msk [vmem:[%s8931_s3 + $0xf0] sm:$0xf] %vm5274_vm4, %v5924_v4  ;;  %v5925_v14 = vpack.c.bf16 %v4795_v5, %v4795_v5  ;;  %v6733_v16 = vadd.f32 %v4336_v13, %v1921_v0  ;;  %v6627_v23 = vpop.f32.mrb[66].mxu0 }
 0x241   :  { %5338 = vst.msk [vmem:[%s8931_s3 + $0xfc] sm:$0xf] %vm5274_vm4, %v5927_v11  ;;  %v4692_v62 = vadd.f32 %v6732_v8, %v8382_v2  ;;  %v6734_v12 = vadd.f32 %v6627_v23, %v6395_v59  ;;  %v4339_v24 = vpop.f32.mrb[67].mxu0 }
 0x242   :  { %5336 = vst.msk [vmem:[%s8931_s3 + $0xf4] sm:$0xf] %vm5274_vm4, %v5925_v14  ;;  %v4690_v25 = vadd.f32 %v6733_v16, %v8382_v2  ;;  %v6735_v27 = vadd.f32 %v4339_v24, %v1924_v35 }
 0x243   :  { %v4800_v32 = vmax.f32 %v4692_v62, 0.0  ;;  %v4693_v34 = vadd.f32 %v6734_v12, %v8382_v2 }
 0x244   :  { %v4798_v38 = vmax.f32 %v4690_v25, 0.0  ;;  %v4691_v40 = vadd.f32 %v6735_v27, %v8382_v2 }
 0x245   :  { %v6398_v28 = vpop.f32.mrb[68].mxu1  ;;  %v5930_v21 = vpack.c.bf16 %v4800_v32, %v4800_v32  ;;  %v4801_v26 = vmax.f32 %v4693_v34, 0.0 }
 0x246   :  { %v1937_v37 = vpop.f32.mrb[69].mxu1  ;;  %v5928_v18 = vpack.c.bf16 %v4798_v38, %v4798_v38  ;;  %v4799_v54 = vmax.f32 %v4691_v40, 0.0  ;;  %v6630_v48 = vpop.f32.mrb[68].mxu0 }
 0x247   :  { %v6399_v43 = vpop.f32.mrb[70].mxu1  ;;  %5341 = vst.msk [vmem:[%s8931_s3 + $0x108] sm:$0xf] %vm5274_vm4, %v5930_v21  ;;  %v5931_v31 = vpack.c.bf16 %v4801_v26, %v4801_v26  ;;  %v6736_v47 = vadd.f32 %v6630_v48, %v6398_v28  ;;  %v4352_v57 = vpop.f32.mrb[69].mxu0 }
 0x248   :  { %v1940_v46 = vpop.f32.mrb[71].mxu1  ;;  %5339 = vst.msk [vmem:[%s8931_s3 + $0x100] sm:$0xf] %vm5274_vm4, %v5928_v18  ;;  %v5929_v9 = vpack.c.bf16 %v4799_v54, %v4799_v54  ;;  %v6737_v53 = vadd.f32 %v4352_v57, %v1937_v37  ;;  %v6631_v6 = vpop.f32.mrb[70].mxu0 }
 0x249   :  { %5342 = vst.msk [vmem:[%s8931_s3 + $0x10c] sm:$0xf] %vm5274_vm4, %v5931_v31  ;;  %v4696_v15 = vadd.f32 %v6736_v47, %v8382_v2  ;;  %v6738_v44 = vadd.f32 %v6631_v6, %v6399_v43  ;;  %v4355_v10 = vpop.f32.mrb[71].mxu0 }
 0x24a   :  { %5340 = vst.msk [vmem:[%s8931_s3 + $0x104] sm:$0xf] %vm5274_vm4, %v5929_v9  ;;  %v4694_v36 = vadd.f32 %v6737_v53, %v8382_v2  ;;  %v6739_v51 = vadd.f32 %v4355_v10, %v1940_v46 }
 0x24b   :  { %v4804_v45 = vmax.f32 %v4696_v15, 0.0  ;;  %v4697_v3 = vadd.f32 %v6738_v44, %v8382_v2 }
 0x24c   :  { %v4802_v42 = vmax.f32 %v4694_v36, 0.0  ;;  %v4695_v19 = vadd.f32 %v6739_v51, %v8382_v2 }
 0x24d   :  { %v6402_v7 = vpop.f32.mrb[72].mxu1  ;;  %v5934_v50 = vpack.c.bf16 %v4804_v45, %v4804_v45  ;;  %v4805_v22 = vmax.f32 %v4697_v3, 0.0 }
 0x24e   :  { %v1953_v20 = vpop.f32.mrb[73].mxu1  ;;  %v5932_v17 = vpack.c.bf16 %v4802_v42, %v4802_v42  ;;  %v4803_v30 = vmax.f32 %v4695_v19, 0.0  ;;  %v6634_v61 = vpop.f32.mrb[72].mxu0 }
 0x24f   :  { %v6403_v39 = vpop.f32.mrb[74].mxu1  ;;  %5345 = vst.msk [vmem:[%s8931_s3 + $0x118] sm:$0xf] %vm5274_vm4, %v5934_v50  ;;  %v5935_v29 = vpack.c.bf16 %v4805_v22, %v4805_v22  ;;  %v6740_v55 = vadd.f32 %v6634_v61, %v6402_v7  ;;  %v4368_v1 = vpop.f32.mrb[73].mxu0 }
 0x250   :  { %v1956_v49 = vpop.f32.mrb[75].mxu1  ;;  %5343 = vst.msk [vmem:[%s8931_s3 + $0x110] sm:$0xf] %vm5274_vm4, %v5932_v17  ;;  %v5933_v60 = vpack.c.bf16 %v4803_v30, %v4803_v30  ;;  %v6741_v63 = vadd.f32 %v4368_v1, %v1953_v20  ;;  %v6635_v0 = vpop.f32.mrb[74].mxu0 }
 0x251   :  { %5346 = vst.msk [vmem:[%s8931_s3 + $0x11c] sm:$0xf] %vm5274_vm4, %v5935_v29  ;;  %v4700_v58 = vadd.f32 %v6740_v55, %v8382_v2  ;;  %v6742_v52 = vadd.f32 %v6635_v0, %v6403_v39  ;;  %v4371_v59 = vpop.f32.mrb[75].mxu0 }
 0x252   :  { %5344 = vst.msk [vmem:[%s8931_s3 + $0x114] sm:$0xf] %vm5274_vm4, %v5933_v60  ;;  %v4698_v41 = vadd.f32 %v8748_v56, %v6741_v63  ;;  %v6743_v35 = vadd.f32 %v4371_v59, %v1956_v49 }
 0x253   :  { %v4808_v5 = vmax.f32 %v4700_v58, 0.0  ;;  %v4701_v33 = vadd.f32 %v8748_v56, %v6742_v52 }
 0x254   :  { %v4806_v11 = vmax.f32 %v4698_v41, 0.0  ;;  %v4699_v8 = vadd.f32 %v8748_v56, %v6743_v35 }
 0x255   :  { %v6406_v4 = vpop.f32.mrb[76].mxu1  ;;  %v5938_v14 = vpack.c.bf16 %v4808_v5, %v4808_v5  ;;  %v4809_v16 = vmax.f32 %v4701_v33, 0.0 }
 0x256   :  { %v1969_v2 = vpop.f32.mrb[77].mxu1  ;;  %v5936_v62 = vpack.c.bf16 %v4806_v11, %v4806_v11  ;;  %v4807_v12 = vmax.f32 %v4699_v8, 0.0  ;;  %v6638_v24 = vpop.f32.mrb[76].mxu0 }
 0x257   :  { %v6407_v13 = vpop.f32.mrb[78].mxu1  ;;  %5349 = vst.msk [vmem:[%s8931_s3 + $0x128] sm:$0xf] %vm5274_vm4, %v5938_v14  ;;  %v5939_v25 = vpack.c.bf16 %v4809_v16, %v4809_v16  ;;  %v6744_v27 = vadd.f32 %v6638_v24, %v6406_v4  ;;  %v4384_v28 = vpop.f32.mrb[77].mxu0 }
 0x258   :  { %v1972_v23 = vpop.f32.mrb[79].mxu1  ;;  %5347 = vst.msk [vmem:[%s8931_s3 + $0x120] sm:$0xf] %vm5274_vm4, %v5936_v62  ;;  %v5937_v32 = vpack.c.bf16 %v4807_v12, %v4807_v12  ;;  %v6745_v34 = vadd.f32 %v4384_v28, %v1969_v2  ;;  %v6639_v37 = vpop.f32.mrb[78].mxu0 }
 0x259   :  { %5350 = vst.msk [vmem:[%s8931_s3 + $0x12c] sm:$0xf] %vm5274_vm4, %v5939_v25  ;;  %v4704_v38 = vadd.f32 %v8748_v56, %v6744_v27  ;;  %v6746_v40 = vadd.f32 %v6639_v37, %v6407_v13  ;;  %v4387_v43 = vpop.f32.mrb[79].mxu0 }
 0x25a   :  { %5348 = vst.msk [vmem:[%s8931_s3 + $0x124] sm:$0xf] %vm5274_vm4, %v5937_v32  ;;  %v4702_v21 = vadd.f32 %v8748_v56, %v6745_v34  ;;  %v6747_v26 = vadd.f32 %v4387_v43, %v1972_v23 }
 0x25b   :  { %v4812_v18 = vmax.f32 %v4704_v38, 0.0  ;;  %v4705_v54 = vadd.f32 %v8748_v56, %v6746_v40 }
 0x25c   :  { %v4810_v31 = vmax.f32 %v4702_v21, 0.0  ;;  %v4703_v47 = vadd.f32 %v8748_v56, %v6747_v26 }
 0x25d   :  { %v6410_v46 = vpop.f32.mrb[80].mxu1  ;;  %v5942_v9 = vpack.c.bf16 %v4812_v18, %v4812_v18  ;;  %v4813_v53 = vmax.f32 %v4705_v54, 0.0 }
 0x25e   :  { %v1985_v48 = vpop.f32.mrb[81].mxu1  ;;  %v5940_v15 = vpack.c.bf16 %v4810_v31, %v4810_v31  ;;  %v4811_v44 = vmax.f32 %v4703_v47, 0.0  ;;  %v6642_v10 = vpop.f32.mrb[80].mxu0 }
 0x25f   :  { %v6411_v57 = vpop.f32.mrb[82].mxu1  ;;  %5353 = vst.msk [vmem:[%s8931_s3 + $0x138] sm:$0xf] %vm5274_vm4, %v5942_v9  ;;  %v5943_v36 = vpack.c.bf16 %v4813_v53, %v4813_v53  ;;  %v6748_v51 = vadd.f32 %v6642_v10, %v6410_v46  ;;  %v4400_v7 = vpop.f32.mrb[81].mxu0 }
 0x260   :  { %v1988_v6 = vpop.f32.mrb[83].mxu1  ;;  %5351 = vst.msk [vmem:[%s8931_s3 + $0x130] sm:$0xf] %vm5274_vm4, %v5940_v15  ;;  %v5941_v45 = vpack.c.bf16 %v4811_v44, %v4811_v44  ;;  %v6749_v3 = vadd.f32 %v4400_v7, %v1985_v48  ;;  %v6643_v20 = vpop.f32.mrb[82].mxu0 }
 0x261   :  { %5354 = vst.msk [vmem:[%s8931_s3 + $0x13c] sm:$0xf] %vm5274_vm4, %v5943_v36  ;;  %v4708_v42 = vadd.f32 %v8748_v56, %v6748_v51  ;;  %v6750_v19 = vadd.f32 %v6643_v20, %v6411_v57  ;;  %v4403_v39 = vpop.f32.mrb[83].mxu0 }
 0x262   :  { %5352 = vst.msk [vmem:[%s8931_s3 + $0x134] sm:$0xf] %vm5274_vm4, %v5941_v45  ;;  %v4706_v50 = vadd.f32 %v8748_v56, %v6749_v3  ;;  %v6751_v22 = vadd.f32 %v4403_v39, %v1988_v6 }
 0x263   :  { %v4816_v17 = vmax.f32 %v4708_v42, 0.0  ;;  %v4709_v30 = vadd.f32 %v8748_v56, %v6750_v19 }
 0x264   :  { %v4814_v29 = vmax.f32 %v4706_v50, 0.0  ;;  %v4707_v55 = vadd.f32 %v8748_v56, %v6751_v22 }
 0x265   :  { %v6414_v49 = vpop.f32.mrb[84].mxu1  ;;  %v5946_v60 = vpack.c.bf16 %v4816_v17, %v4816_v17  ;;  %v4817_v63 = vmax.f32 %v4709_v30, 0.0 }
 0x266   :  { %v2001_v61 = vpop.f32.mrb[85].mxu1  ;;  %v5944_v58 = vpack.c.bf16 %v4814_v29, %v4814_v29  ;;  %v4815_v52 = vmax.f32 %v4707_v55, 0.0  ;;  %v6646_v59 = vpop.f32.mrb[84].mxu0 }
 0x267   :  { %v6415_v1 = vpop.f32.mrb[86].mxu1  ;;  %5357 = vst.msk [vmem:[%s8931_s3 + $0x148] sm:$0xf] %vm5274_vm4, %v5946_v60  ;;  %v5947_v41 = vpack.c.bf16 %v4817_v63, %v4817_v63  ;;  %v6752_v35 = vadd.f32 %v6646_v59, %v6414_v49  ;;  %v4416_v4 = vpop.f32.mrb[85].mxu0 }
 0x268   :  { %v2004_v0 = vpop.f32.mrb[87].mxu1  ;;  %5355 = vst.msk [vmem:[%s8931_s3 + $0x140] sm:$0xf] %vm5274_vm4, %v5944_v58  ;;  %v5945_v5 = vpack.c.bf16 %v4815_v52, %v4815_v52  ;;  %v6753_v33 = vadd.f32 %v4416_v4, %v2001_v61  ;;  %v6647_v2 = vpop.f32.mrb[86].mxu0 }
 0x269   :  { %5358 = vst.msk [vmem:[%s8931_s3 + $0x14c] sm:$0xf] %vm5274_vm4, %v5947_v41  ;;  %v4712_v11 = vadd.f32 %v8748_v56, %v6752_v35  ;;  %v6754_v8 = vadd.f32 %v6647_v2, %v6415_v1  ;;  %v4419_v13 = vpop.f32.mrb[87].mxu0 }
 0x26a   :  { %5356 = vst.msk [vmem:[%s8931_s3 + $0x144] sm:$0xf] %vm5274_vm4, %v5945_v5  ;;  %v4710_v14 = vadd.f32 %v8748_v56, %v6753_v33  ;;  %v6755_v16 = vadd.f32 %v4419_v13, %v2004_v0 }
 0x26b   :  { %v4820_v62 = vmax.f32 %v4712_v11, 0.0  ;;  %v4713_v12 = vadd.f32 %v8748_v56, %v6754_v8 }
 0x26c   :  { %v4818_v25 = vmax.f32 %v4710_v14, 0.0  ;;  %v4711_v27 = vadd.f32 %v8748_v56, %v6755_v16 }
 0x26d   :  { %v6418_v23 = vpop.f32.mrb[88].mxu1  ;;  %v5950_v32 = vpack.c.bf16 %v4820_v62, %v4820_v62  ;;  %v4821_v34 = vmax.f32 %v4713_v12, 0.0 }
 0x26e   :  { %v2017_v24 = vpop.f32.mrb[89].mxu1  ;;  %v5948_v38 = vpack.c.bf16 %v4818_v25, %v4818_v25  ;;  %v4819_v40 = vmax.f32 %v4711_v27, 0.0  ;;  %v6650_v43 = vpop.f32.mrb[88].mxu0 }
 0x26f   :  { %v6419_v28 = vpop.f32.mrb[90].mxu1  ;;  %5361 = vst.msk [vmem:[%s8931_s3 + $0x158] sm:$0xf] %vm5274_vm4, %v5950_v32  ;;  %v5951_v21 = vpack.c.bf16 %v4821_v34, %v4821_v34  ;;  %v6756_v26 = vadd.f32 %v6650_v43, %v6418_v23  ;;  %v4432_v46 = vpop.f32.mrb[89].mxu0 }
 0x270   :  { %v2020_v37 = vpop.f32.mrb[91].mxu1  ;;  %5359 = vst.msk [vmem:[%s8931_s3 + $0x150] sm:$0xf] %vm5274_vm4, %v5948_v38  ;;  %v5949_v18 = vpack.c.bf16 %v4819_v40, %v4819_v40  ;;  %v6757_v54 = vadd.f32 %v4432_v46, %v2017_v24  ;;  %v6651_v48 = vpop.f32.mrb[90].mxu0 }
 0x271   :  { %5362 = vst.msk [vmem:[%s8931_s3 + $0x15c] sm:$0xf] %vm5274_vm4, %v5951_v21  ;;  %v4716_v31 = vadd.f32 %v8748_v56, %v6756_v26  ;;  %v6758_v47 = vadd.f32 %v6651_v48, %v6419_v28  ;;  %v4435_v57 = vpop.f32.mrb[91].mxu0 }
 0x272   :  { %5360 = vst.msk [vmem:[%s8931_s3 + $0x154] sm:$0xf] %vm5274_vm4, %v5949_v18  ;;  %v4714_v9 = vadd.f32 %v8748_v56, %v6757_v54  ;;  %v6759_v53 = vadd.f32 %v4435_v57, %v2020_v37 }
 0x273   :  { %v4824_v15 = vmax.f32 %v4716_v31, 0.0  ;;  %v4717_v44 = vadd.f32 %v8748_v56, %v6758_v47 }
 0x274   :  { %v4822_v36 = vmax.f32 %v4714_v9, 0.0  ;;  %v4715_v51 = vadd.f32 %v8748_v56, %v6759_v53 }
 0x275   :  { %v6422_v6 = vpop.f32.mrb[92].mxu1  ;;  %v5954_v45 = vpack.c.bf16 %v4824_v15, %v4824_v15  ;;  %v4825_v3 = vmax.f32 %v4717_v44, 0.0 }
 0x276   :  { %v2033_v10 = vpop.f32.mrb[93].mxu1  ;;  %v5952_v42 = vpack.c.bf16 %v4822_v36, %v4822_v36  ;;  %v4823_v19 = vmax.f32 %v4715_v51, 0.0  ;;  %v6654_v39 = vpop.f32.mrb[92].mxu0 }
 0x277   :  { %v6423_v7 = vpop.f32.mrb[94].mxu1  ;;  %5365 = vst.msk [vmem:[%s8931_s3 + $0x168] sm:$0xf] %vm5274_vm4, %v5954_v45  ;;  %v5955_v50 = vpack.c.bf16 %v4825_v3, %v4825_v3  ;;  %v6760_v22 = vadd.f32 %v6654_v39, %v6422_v6  ;;  %v4448_v49 = vpop.f32.mrb[93].mxu0 }
 0x278   :  { %v2036_v20 = vpop.f32.mrb[95].mxu1  ;;  %5363 = vst.msk [vmem:[%s8931_s3 + $0x160] sm:$0xf] %vm5274_vm4, %v5952_v42  ;;  %v5953_v17 = vpack.c.bf16 %v4823_v19, %v4823_v19  ;;  %v6761_v30 = vadd.f32 %v4448_v49, %v2033_v10  ;;  %v6655_v61 = vpop.f32.mrb[94].mxu0 }
 0x279   :  { %5366 = vst.msk [vmem:[%s8931_s3 + $0x16c] sm:$0xf] %vm5274_vm4, %v5955_v50  ;;  %v4720_v29 = vadd.f32 %v8748_v56, %v6760_v22  ;;  %v6762_v55 = vadd.f32 %v6655_v61, %v6423_v7  ;;  %v4451_v1 = vpop.f32.mrb[95].mxu0 }
 0x27a   :  { %5364 = vst.msk [vmem:[%s8931_s3 + $0x164] sm:$0xf] %vm5274_vm4, %v5953_v17  ;;  %v4718_v60 = vadd.f32 %v8748_v56, %v6761_v30  ;;  %v6763_v63 = vadd.f32 %v4451_v1, %v2036_v20 }
 0x27b   :  { %v4828_v58 = vmax.f32 %v4720_v29, 0.0  ;;  %v4721_v52 = vadd.f32 %v8748_v56, %v6762_v55 }
 0x27c   :  { %v4826_v41 = vmax.f32 %v4718_v60, 0.0  ;;  %v4719_v35 = vadd.f32 %v8748_v56, %v6763_v63 }
 0x27d   :  { %v6426_v0 = vpop.f32.mrb[96].mxu1  ;;  %v5958_v5 = vpack.c.bf16 %v4828_v58, %v4828_v58  ;;  %v4829_v33 = vmax.f32 %v4721_v52, 0.0 }
 0x27e   :  { %v2049_v59 = vpop.f32.mrb[97].mxu1  ;;  %v5956_v11 = vpack.c.bf16 %v4826_v41, %v4826_v41  ;;  %v4827_v8 = vmax.f32 %v4719_v35, 0.0  ;;  %v6658_v13 = vpop.f32.mrb[96].mxu0 }
 0x27f   :  { %v6427_v4 = vpop.f32.mrb[98].mxu1  ;;  %5369 = vst.msk [vmem:[%s8931_s3 + $0x178] sm:$0xf] %vm5274_vm4, %v5958_v5  ;;  %v5959_v14 = vpack.c.bf16 %v4829_v33, %v4829_v33  ;;  %v6764_v16 = vadd.f32 %v6658_v13, %v6426_v0  ;;  %v4464_v23 = vpop.f32.mrb[97].mxu0 }
 0x280   :  { %v2052_v2 = vpop.f32.mrb[99].mxu1  ;;  %5367 = vst.msk [vmem:[%s8931_s3 + $0x170] sm:$0xf] %vm5274_vm4, %v5956_v11  ;;  %v5957_v62 = vpack.c.bf16 %v4827_v8, %v4827_v8  ;;  %v6765_v12 = vadd.f32 %v4464_v23, %v2049_v59  ;;  %v6659_v24 = vpop.f32.mrb[98].mxu0 }
 0x281   :  { %5370 = vst.msk [vmem:[%s8931_s3 + $0x17c] sm:$0xf] %vm5274_vm4, %v5959_v14  ;;  %v4724_v25 = vadd.f32 %v8748_v56, %v6764_v16  ;;  %v6766_v27 = vadd.f32 %v6659_v24, %v6427_v4  ;;  %v4467_v28 = vpop.f32.mrb[99].mxu0 }
 0x282   :  { %5368 = vst.msk [vmem:[%s8931_s3 + $0x174] sm:$0xf] %vm5274_vm4, %v5957_v62  ;;  %v4722_v32 = vadd.f32 %v8748_v56, %v6765_v12  ;;  %v6767_v34 = vadd.f32 %v4467_v28, %v2052_v2 }
 0x283   :  { %v4832_v38 = vmax.f32 %v4724_v25, 0.0  ;;  %v4725_v40 = vadd.f32 %v8748_v56, %v6766_v27 }
 0x284   :  { %v4830_v21 = vmax.f32 %v4722_v32, 0.0  ;;  %v4723_v26 = vadd.f32 %v8748_v56, %v6767_v34 }
 0x285   :  { %v6430_v37 = vpop.f32.mrb[100].mxu1  ;;  %v5962_v18 = vpack.c.bf16 %v4832_v38, %v4832_v38  ;;  %v4833_v54 = vmax.f32 %v4725_v40, 0.0 }
 0x286   :  { %v2065_v43 = vpop.f32.mrb[101].mxu1  ;;  %v5960_v31 = vpack.c.bf16 %v4830_v21, %v4830_v21  ;;  %v4831_v47 = vmax.f32 %v4723_v26, 0.0  ;;  %v6662_v57 = vpop.f32.mrb[100].mxu0 }
 0x287   :  { %v6431_v46 = vpop.f32.mrb[102].mxu1  ;;  %5373 = vst.msk [vmem:[%s8931_s3 + $0x188] sm:$0xf] %vm5274_vm4, %v5962_v18  ;;  %v5963_v9 = vpack.c.bf16 %v4833_v54, %v4833_v54  ;;  %v6768_v53 = vadd.f32 %v6662_v57, %v6430_v37  ;;  %v4480_v6 = vpop.f32.mrb[101].mxu0 }
 0x288   :  { %v2068_v48 = vpop.f32.mrb[103].mxu1  ;;  %5371 = vst.msk [vmem:[%s8931_s3 + $0x180] sm:$0xf] %vm5274_vm4, %v5960_v31  ;;  %v5961_v15 = vpack.c.bf16 %v4831_v47, %v4831_v47  ;;  %v6769_v44 = vadd.f32 %v4480_v6, %v2065_v43  ;;  %v6663_v10 = vpop.f32.mrb[102].mxu0 }
 0x289   :  { %5374 = vst.msk [vmem:[%s8931_s3 + $0x18c] sm:$0xf] %vm5274_vm4, %v5963_v9  ;;  %v4728_v36 = vadd.f32 %v8748_v56, %v6768_v53  ;;  %v6770_v51 = vadd.f32 %v6663_v10, %v6431_v46  ;;  %v4483_v7 = vpop.f32.mrb[103].mxu0 }
 0x28a   :  { %5372 = vst.msk [vmem:[%s8931_s3 + $0x184] sm:$0xf] %vm5274_vm4, %v5961_v15  ;;  %v4726_v45 = vadd.f32 %v8748_v56, %v6769_v44  ;;  %v6771_v3 = vadd.f32 %v4483_v7, %v2068_v48 }
 0x28b   :  { %v4836_v42 = vmax.f32 %v4728_v36, 0.0  ;;  %v4729_v19 = vadd.f32 %v8748_v56, %v6770_v51 }
 0x28c   :  { %v4834_v50 = vmax.f32 %v4726_v45, 0.0  ;;  %v4727_v22 = vadd.f32 %v8748_v56, %v6771_v3 }
 0x28d   :  { %v6434_v20 = vpop.f32.mrb[104].mxu1  ;;  %v5966_v17 = vpack.c.bf16 %v4836_v42, %v4836_v42  ;;  %v4837_v30 = vmax.f32 %v4729_v19, 0.0 }
 0x28e   :  { %v2081_v39 = vpop.f32.mrb[105].mxu1  ;;  %v5964_v29 = vpack.c.bf16 %v4834_v50, %v4834_v50  ;;  %v4835_v55 = vmax.f32 %v4727_v22, 0.0  ;;  %v6666_v1 = vpop.f32.mrb[104].mxu0 }
 0x28f   :  { %v6435_v49 = vpop.f32.mrb[106].mxu1  ;;  %5377 = vst.msk [vmem:[%s8931_s3 + $0x198] sm:$0xf] %vm5274_vm4, %v5966_v17  ;;  %v5967_v60 = vpack.c.bf16 %v4837_v30, %v4837_v30  ;;  %v6772_v63 = vadd.f32 %v6666_v1, %v6434_v20  ;;  %v4496_v0 = vpop.f32.mrb[105].mxu0 }
 0x290   :  { %v2084_v61 = vpop.f32.mrb[107].mxu1  ;;  %5375 = vst.msk [vmem:[%s8931_s3 + $0x190] sm:$0xf] %vm5274_vm4, %v5964_v29  ;;  %v5965_v58 = vpack.c.bf16 %v4835_v55, %v4835_v55  ;;  %v6773_v52 = vadd.f32 %v4496_v0, %v2081_v39  ;;  %v6667_v59 = vpop.f32.mrb[106].mxu0 }
 0x291   :  { %5378 = vst.msk [vmem:[%s8931_s3 + $0x19c] sm:$0xf] %vm5274_vm4, %v5967_v60  ;;  %v4732_v41 = vadd.f32 %v8748_v56, %v6772_v63  ;;  %v6774_v35 = vadd.f32 %v6667_v59, %v6435_v49  ;;  %v4499_v4 = vpop.f32.mrb[107].mxu0 }
 0x292   :  { %5376 = vst.msk [vmem:[%s8931_s3 + $0x194] sm:$0xf] %vm5274_vm4, %v5965_v58  ;;  %v4730_v5 = vadd.f32 %v8748_v56, %v6773_v52  ;;  %v6775_v33 = vadd.f32 %v4499_v4, %v2084_v61 }
 0x293   :  { %v4840_v2 = vmax.f32 %v4732_v41, 0.0  ;;  %v4733_v11 = vadd.f32 %v8748_v56, %v6774_v35 }
 0x294   :  { %v4838_v8 = vmax.f32 %v4730_v5, 0.0  ;;  %v4731_v13 = vadd.f32 %v8748_v56, %v6775_v33 }
 0x295   :  { %v5970_v14 = vpack.c.bf16 %v4840_v2, %v4840_v2  ;;  %v4841_v16 = vmax.f32 %v4733_v11, 0.0 }
 0x296   :  { %v5968_v23 = vpack.c.bf16 %v4838_v8, %v4838_v8  ;;  %v4839_v62 = vmax.f32 %v4731_v13, 0.0 }
 0x297   :  { %5381 = vst.msk [vmem:[%s8931_s3 + $0x1a8] sm:$0xf] %vm5274_vm4, %v5970_v14  ;;  %v5971_v12 = vpack.c.bf16 %v4841_v16, %v4841_v16 }
 0x298   :  { %5379 = vst.msk [vmem:[%s8931_s3 + $0x1a0] sm:$0xf] %vm5274_vm4, %v5968_v23  ;;  %v5969_v24 = vpack.c.bf16 %v4839_v62, %v4839_v62 }
 0x299   :  { %5383 = vst.msk [vmem:[%s8931_s3 + $0x1ac] sm:$0x3] %vm5382_vm5, %v5971_v12 }
 0x29a   :  { %5380 = vst.msk [vmem:[%s8931_s3 + $0x1a4] sm:$0xf] %vm5274_vm4, %v5969_v24 }

// kernel: agent_forward.4
= control target key start
LH: loop header
LB: loop body
LE: loop exit
PB: predicated region body
PF: predicated region fallthrough
CT: control target
= control target key end

     0   :  { %vm138_vm0 = vsmask.f32 7424  ;;  %vm713_vm1 = vcmask 1046528   ;;  %vm967_vm2 = vsmask.f32 6400  ;;  %vm5004_vm3 = vmmov 0   ;;  %s6884_s1 = inlined_call_operand.vmem [shape: bf16[4,128,64], index: 1, kind: input, shape index: {}]   ;;  %s6885_s0 = inlined_call_operand.vmem [shape: bf16[200,128], index: 0, kind: input, shape index: {}]   ;;  %s6886_s3 = inlined_call_operand.vmem [shape: bf16[9,64,64], index: 3, kind: input, shape index: {}]   ;;  %s6887_s2 = inlined_call_operand.vmem [shape: f32[1,64], index: 2, kind: input, shape index: {}]   ;;  %s6888_s4 = inlined_call_operand.vmem [shape: f32[1,64], index: 4, kind: input, shape index: {}]   ;;  %s6889_s5 = inlined_call_operand.vmem [shape: bf16[200,64], index: 5, kind: output, shape index: {}]  }
   0x1   :  { %v4911_v0 = vld [vmem:[%s6884_s1 + $0x40] sm:$0xff]   ;;  %v4912_v1 = vld [vmem:[%s6884_s1 + $0x48] sm:$0xff]   ;;  %v4913_v2 = vld [vmem:[%s6884_s1 + $0x50] sm:$0xff]   ;;  %vm1483_vm4 = vcmask 523264   ;;  %vm2052_vm5 = vcmask 1042432   ;;  %vm2543_vm7 = vcmask 1041408  }
   0x2   :  { %4201 = vmatprep.subr.bf16.mxu0 %v4911_v0  ;;  %v4914_v3 = vld [vmem:[%s6884_s1 + $0x58] sm:$0xff]   ;;  %v5050_v4 = vld [vmem:[%s6885_s0] sm:$0xff]   ;;  %v5055_v5 = vld [vmem:[%s6885_s0 + $0x8] sm:$0xff]   ;;  %vm3003_vm6 = vsmask.f32 5376  ;;  %vm2774_vm9 = vcmask 1045504  }
   0x3   :  { %4202 = vmatpush3.bf16.msra.mxu0 %v4911_v0  ;;  %v140_v6 = vshrl.u32 %v5050_v4, 16  ;;  %v142_v7 = vshll.u32 %v5050_v4, 16  ;;  %v147_v8 = vshll.u32 %v5055_v5, 16  ;;  %v4915_v9 = vld [vmem:[%s6884_s1 + $0x60] sm:$0xff]   ;;  %v4916_v13 = vld [vmem:[%s6884_s1 + $0x68] sm:$0xff]   ;;  %v5070_v15 = vld [vmem:[%s6885_s0 + $0x10] sm:$0xff]  }
   0x4   :  { %4203 = vmatprep.subr.bf16.mxu0 %v4912_v1  ;;  %v4917_v16 = vld [vmem:[%s6884_s1 + $0x70] sm:$0xff]   ;;  %v5078_v17 = vld [vmem:[%s6885_s0 + $0x18] sm:$0xff]   ;;  %v155_v18 = vshll.u32 %v5070_v15, 16  ;;  %v151_v20 = vshrl.u32 %v5055_v5, 16  ;;  %v159_v21 = vshrl.u32 %v5070_v15, 16  ;;  %v5090_v24 = vld [vmem:[%s6885_s0 + $0x20] sm:$0xff]  }
   0x5   :  { %v144_v10 = vrot.slane %v142_v7, 1  ;;  %v149_v11 = vrot.slane %v147_v8, 1  ;;  %v4918_v19 = vld [vmem:[%s6884_s1 + $0x78] sm:$0xff]   ;;  %v163_v22 = vshll.u32 %v5078_v17, 16  ;;  %v5095_v26 = vld [vmem:[%s6885_s0 + $0x28] sm:$0xff]   ;;  %v4922_v27 = vld [vmem:[%s6884_s1] sm:$0xff]  }
   0x6   :  { %v157_v23 = vrot.slane %v155_v18, 1  ;;  %v171_v30 = vshll.u32 %v5090_v24, 16  ;;  %v4923_v32 = vld [vmem:[%s6884_s1 + $0x8] sm:$0xff]   ;;  %v167_v33 = vshrl.u32 %v5078_v17, 16  ;;  %v175_v34 = vshrl.u32 %v5090_v24, 16  ;;  %v5112_v38 = vld [vmem:[%s6885_s0 + $0x30] sm:$0xff]  }
   0x7   :  { %4204 = vmatpush3.bf16.msra.mxu0 %v4912_v1  ;;  %v145_v12 = vor.u32 %v144_v10, %v140_v6  ;;  %v153_v25 = vor.u32 %v151_v20, %v149_v11  ;;  %v165_v29 = vrot.slane %v163_v22, 1  ;;  %v179_v35 = vshll.u32 %v5095_v26, 16  ;;  %v4926_v40 = vld [vmem:[%s6884_s1 + $0x10] sm:$0xff]   ;;  %v5120_v43 = vld [vmem:[%s6885_s0 + $0x38] sm:$0xff]   ;;  %v5134_v52 = vld [vmem:[%s6885_s0 + $0x40] sm:$0xff]  }
   0x8   :  { %4205 = vmatprep.subr.bf16.mxu0 %v4913_v2  ;;  %v161_v28 = vor.u32 %v159_v21, %v157_v23  ;;  %v173_v37 = vrot.slane %v171_v30, 1  ;;  %v183_v44 = vshrl.u32 %v5095_v26, 16  ;;  %v187_v45 = vshll.u32 %v5112_v38, 16  ;;  %v4929_v48 = vld [vmem:[%s6884_s1 + $0x18] sm:$0xff]   ;;  %v4932_v54 = vld [vmem:[%s6884_s1 + $0x20] sm:$0xff]   ;;  %v5142_v57 = vld [vmem:[%s6885_s0 + $0x48] sm:$0xff]  }
   0x9   :  { %v150_v14 = vsel %vm138_vm0, %v145_v12, %v149_v11  ;;  %v158_v31 = vsel %vm138_vm0, %v153_v25, %v157_v23  ;;  %v169_v39 = vor.u32 %v167_v33, %v165_v29  ;;  %v181_v42 = vrot.slane %v179_v35, 1  ;;  %v4933_v61 = vld [vmem:[%s6884_s1 + $0x28] sm:$0xff]   ;;  %v5161_v6 = vld [vmem:[%s6885_s0 + $0x58] sm:$0x7f]   ;;  %v4939_v23 = vld [vmem:[%s6884_s1 + $0x80] sm:$0xff]  }
   0xa   :  { %4217 = vmatprep.mubr.bf16.mxu0 %v150_v14  ;;  %v166_v36 = vsel %vm138_vm0, %v161_v28, %v165_v29  ;;  %v177_v41 = vor.u32 %v175_v34, %v173_v37  ;;  %v191_v49 = vshrl.u32 %v5112_v38, 16  ;;  %v195_v50 = vshll.u32 %v5120_v43, 16  ;;  %v4940_v30 = vld [vmem:[%s6884_s1 + $0x88] sm:$0xff]  }
   0xb   :  { %4206 = vmatpush3.bf16.msra.mxu0 %v4913_v2  ;;  %v174_v46 = vsel %vm138_vm0, %v169_v39, %v173_v37  ;;  %v189_v51 = vrot.slane %v187_v45, 1  ;;  %v185_v53 = vor.u32 %v183_v44, %v181_v42  ;;  %v203_v58 = vshll.u32 %v5134_v52, 16  ;;  %v5156_v2 = vld [vmem:[%s6885_s0 + $0x50] sm:$0xff]  }
   0xc   :  { %4207 = vmatprep.subr.bf16.mxu0 %v4914_v3  ;;  %v182_v47 = vsel %vm138_vm0, %v177_v41, %v181_v42  ;;  %v197_v56 = vrot.slane %v195_v50, 1  ;;  %v199_v60 = vshrl.u32 %v5120_v43, 16  ;;  %v207_v63 = vshrl.u32 %v5134_v52, 16  ;;  %v5222_v33 = vld [vmem:[%s6885_s0 + $0xc] sm:$0xff]   ;;  %v5246_v42 = vld [vmem:[%s6885_s0 + $0x24] sm:$0xff]   ;;  %v5266_v50 = vld [vmem:[%s6885_s0 + $0x34] sm:$0xff]  }
   0xd   :  { %v193_v55 = vor.u32 %v191_v49, %v189_v51  ;;  %v190_v59 = vsel %vm138_vm0, %v185_v53, %v189_v51  ;;  %v211_v0 = vshll.u32 %v5142_v57, 16  ;;  %v205_v1 = vrot.slane %v203_v58, 1  ;;  %v5255_v45 = vld [vmem:[%s6885_s0 + $0x2c] sm:$0xff]   ;;  %v5275_v53 = vld [vmem:[%s6885_s0 + $0x3c] sm:$0xff]   ;;  %v5286_v58 = vld [vmem:[%s6885_s0 + $0x44] sm:$0xff]  }
   0xe   :  { %v219_v10 = vshll.u32 %v5156_v2, 16  ;;  %v215_v12 = vshrl.u32 %v5142_v57, 16  ;;  %v227_v18 = vshll.u32 %v5161_v6, 16  ;;  %v231_v28 = vshrl.u32 %v5161_v6, 16 }
   0xf   :  { %4208 = vmatpush3.bf16.msra.mxu0 %v4914_v3  ;;  %v198_v62 = vsel %vm138_vm0, %v193_v55, %v197_v56  ;;  %v201_v3 = vor.u32 %v199_v60, %v197_v56  ;;  %v209_v7 = vor.u32 %v207_v63, %v205_v1  ;;  %v213_v8 = vrot.slane %v211_v0, 1  ;;  %v4960_v56 = vld [vmem:[%s6884_s1 + $0xe0] sm:$0xff]   ;;  %v4961_v60 = vld [vmem:[%s6884_s1 + $0xe8] sm:$0xff]   ;;  %v4964_v0 = vld [vmem:[%s6884_s1 + $0xf0] sm:$0xff]  }
  0x10   :  { %4209 = vmatprep.subr.bf16.mxu0 %v4915_v9  ;;  %v229_v22 = vrot.slane %v227_v18, 1  ;;  %v715_v35 = vrot.slane %v5222_v33, 1  ;;  %v727_v55 = vrot.slane %v5275_v53, 1  ;;  %vm2283_vm8 = vsmask.f32 2304 }
  0x11   :  { %v206_v11 = vsel %vm138_vm0, %v201_v3, %v205_v1  ;;  %v214_v14 = vsel %vm138_vm0, %v209_v7, %v213_v8  ;;  %v217_v20 = vor.u32 %v215_v12, %v213_v8  ;;  %v4966_v7 = vld [vmem:[%s6884_s1 + $0xf8] sm:$0xff]   ;;  %v977_v12 = vshrl.u32 %v5222_v33, 16 }
  0x12   :  { %v233_v29 = vor.u32 %v231_v28, %v229_v22  ;;  %vm3254_vm10 = vcmask 1044480   ;;  %vm3608_vm11 = vcmask 519168   ;;  %vm3630_vm12 = vsmask.f32 3328 }
  0x13   :  { %4210 = vmatpush3.bf16.msra.mxu0 %v4915_v9  ;;  %v4936_v9 = vld [vmem:[%s6884_s1 + $0x30] sm:$0xff]   ;;  %vm3631_vm13 = vmand %vm3608_vm11, %vm3630_vm12 }
  0x14   :  { %4211 = vmatprep.subr.bf16.mxu0 %v4916_v13 }
  0x17   :  { %4212 = vmatpush3.bf16.msra.mxu0 %v4916_v13  ;;  %v4938_v13 = vld [vmem:[%s6884_s1 + $0x38] sm:$0xff]  }
  0x18   :  { %4213 = vmatprep.subr.bf16.mxu0 %v4917_v16 }
  0x1b   :  { %4214 = vmatpush3.bf16.msra.mxu0 %v4917_v16  ;;  %v223_v16 = vshrl.u32 %v5156_v2, 16 }
  0x1c   :  { %4215 = vmatprep.subr.bf16.mxu0 %v4918_v19 }
  0x1f   :  { %4216 = vmatpush3.bf16.msra.mxu0 %v4918_v19  ;;  %v221_v19 = vrot.slane %v219_v10, 1 }
  0x20   :  { %4241 = vmatprep.subr.bf16.mxu0 %v4922_v27 }
  0x21   :  { %v225_v21 = vor.u32 %v223_v16, %v221_v19  ;;  %v222_v25 = vsel %vm138_vm0, %v217_v20, %v221_v19  ;;  %v979_v20 = vrot.slane %v977_v12, 1 }
  0x22   :  { %4218 = vmatmul.mubr.bf16.vlgmr.msra.gmra.mrb[0].mxu0 %v158_v31  ;;  %v4941_v31 = vld [vmem:[%s6884_s1 + $0x90] sm:$0xff]  }
  0x23   :  { %4242 = vmatpush3.bf16.msra.mxu0 %v4922_v27  ;;  %4221 = vmatprep.mubr.bf16.mxu0 %v166_v36  ;;  %v230_v27 = vsel %vm138_vm0, %v225_v21, %v229_v22  ;;  %v5231_v36 = vld [vmem:[%s6885_s0 + $0x14] sm:$0xff]  }
  0x24   :  { %4243 = vmatprep.subr.bf16.mxu0 %v4923_v32  ;;  %v717_v39 = vrot.slane %v5231_v36, 1  ;;  %v986_v22 = vshrl.u32 %v5231_v36, 16 }
  0x26   :  { %v718_v41 = vsel %vm713_vm1, %v715_v35, %v717_v39 }
  0x27   :  { %4244 = vmatpush3.bf16.msra.mxu0 %v4923_v32  ;;  %v5217_v32 = vld [vmem:[%s6885_s0 + $0x4] sm:$0xfe]  }
  0x28   :  { %4245 = vmatprep.subr.bf16.mxu0 %v4926_v40  ;;  %v714_v34 = vrot.slane %v5217_v32, 1 }
  0x2a   :  { %4222 = vmatmul.mubr.bf16.gmra.mrb[4].mxu0 %v174_v46  ;;  %v716_v37 = vsel %vm713_vm1, %v714_v34, %v715_v35  ;;  %v721_v46 = vrot.slane %v5246_v42, 1  ;;  %v1016_v34 = vshll.u32 %v5255_v45, 16 }
  0x2b   :  { %4246 = vmatpush3.bf16.msra.mxu0 %v4926_v40  ;;  %4225 = vmatprep.mubr.bf16.mxu0 %v182_v47  ;;  %v4954_v47 = vld [vmem:[%s6884_s1 + $0xd0] sm:$0xff]  }
  0x2c   :  { %4247 = vmatprep.subr.bf16.mxu0 %v4929_v48 }
  0x2f   :  { %4248 = vmatpush3.bf16.msra.mxu0 %v4929_v48  ;;  %v723_v48 = vrot.slane %v5255_v45, 1 }
  0x30   :  { %4249 = vmatprep.subr.bf16.mxu0 %v4932_v54 }
  0x31   :  { %v724_v51 = vsel %vm713_vm1, %v721_v46, %v723_v48 }
  0x32   :  { %4226 = vmatmul.mubr.bf16.gmra.mrb[8].mxu0 %v190_v59 }
  0x33   :  { %4229 = vmatprep.mubr.bf16.mxu0 %v198_v62  ;;  %4250 = vmatpush3.bf16.msra.mxu0 %v4932_v54  ;;  %v725_v54 = vrot.slane %v5266_v50, 1  ;;  %v729_v62 = vrot.slane %v5286_v58, 1 }
  0x34   :  { %4251 = vmatprep.subr.bf16.mxu0 %v4933_v61 }
  0x35   :  { %v728_v59 = vsel %vm713_vm1, %v725_v54, %v727_v55  ;;  %v730_v1 = vsel %vm713_vm1, %v727_v55, %v729_v62 }
  0x37   :  { %4252 = vmatpush3.bf16.msra.mxu0 %v4933_v61  ;;  %v5295_v61 = vld [vmem:[%s6885_s0 + $0x4c] sm:$0xff]  }
  0x38   :  { %4253 = vmatprep.subr.bf16.mxu0 %v4936_v9  ;;  %v731_v63 = vrot.slane %v5295_v61, 1 }
  0x3a   :  { %4230 = vmatmul.mubr.bf16.gmra.mrb[12].mxu0 %v206_v11  ;;  %v732_v3 = vsel %vm713_vm1, %v729_v62, %v731_v63  ;;  %v972_v11 = vshll.u32 %v5217_v32, 16 }
  0x3b   :  { %4233 = vmatprep.mubr.bf16.mxu0 %v214_v14  ;;  %4254 = vmatpush3.bf16.msra.mxu0 %v4936_v9  ;;  %v969_v9 = vshrl.u32 %v5217_v32, 16 }
  0x3c   :  { %4255 = vmatprep.subr.bf16.mxu0 %v4938_v13  ;;  %v974_v19 = vrot.slane %v972_v11, 2 }
  0x3d   :  { %v971_v16 = vrot.slane %v969_v9, 1 }
  0x3f   :  { %4256 = vmatpush3.bf16.msra.mxu0 %v4938_v13  ;;  %v980_v13 = vshll.u32 %v5222_v33, 16  ;;  %v1013_v33 = vshrl.u32 %v5255_v45, 16  ;;  %v1034_v45 = vshll.u32 %v5275_v53, 16 }
  0x40   :  { %4281 = vmatprep.subr.bf16.mxu0 %v4939_v23 }
  0x41   :  { %v982_v21 = vrot.slane %v980_v13, 2 }
  0x42   :  { %4234 = vmatmul.mubr.bf16.gmra.mrb[16].mxu0 %v222_v25  ;;  %v975_v25 = vor.u32 %v974_v19, %v971_v16 }
  0x43   :  { %4237 = vmatprep.mubr.bf16.mxu0 %v230_v27  ;;  %v983_v27 = vor.u32 %v982_v21, %v979_v20 }
  0x4a   :  { %4238 = vmatmul.mubr.bf16.gmra.mrb[20].mxu0 %v233_v29 }
  0x4b   :  { %4257 = vmatprep.mubr.bf16.mxu0 %v5050_v4  ;;  %v4942_v4 = vld [vmem:[%s6884_s1 + $0x98] sm:$0xff]  }
  0x52   :  { %4258 = vmatmul.mubr.bf16.vlgmr.msra.gmra.mrb[0].mxu0 %v5055_v5  ;;  %v4943_v5 = vld [vmem:[%s6884_s1 + $0xa0] sm:$0xff]  }
  0x53   :  { %4282 = vmatpush3.bf16.msra.mxu0 %v4939_v23  ;;  %4261 = vmatprep.mubr.bf16.mxu0 %v5070_v15  ;;  %v4944_v15 = vld [vmem:[%s6884_s1 + $0xa8] sm:$0xff]   ;;  %v989_v23 = vshll.u32 %v5231_v36, 16 }
  0x54   :  { %4283 = vmatprep.subr.bf16.mxu0 %v4940_v30 }
  0x57   :  { %4284 = vmatpush3.bf16.msra.mxu0 %v4940_v30  ;;  %v988_v30 = vrot.slane %v986_v22, 1  ;;  %v6896_v22 = vmov 0.0  }
  0x58   :  { %4285 = vmatprep.subr.bf16.mxu0 %v4941_v31  ;;  %4829 = vmatprep.subr.bf16.mxu1 %v6896_v22 }
  0x59   :  { %4381 = vmatprep.mubr.msk.bf16.mxu1 %vm5004_vm3, %v6896_v22 }
  0x5a   :  { %4262 = vmatmul.mubr.bf16.gmra.mrb[4].mxu0 %v5078_v17  ;;  %v4945_v17 = vld [vmem:[%s6884_s1 + $0xb0] sm:$0xff]  }
  0x5b   :  { %4286 = vmatpush3.bf16.msra.mxu0 %v4941_v31  ;;  %4265 = vmatprep.mubr.bf16.mxu0 %v5090_v24  ;;  %v4946_v24 = vld [vmem:[%s6884_s1 + $0xb8] sm:$0xff]   ;;  %v991_v31 = vrot.slane %v989_v23, 2  ;;  %v4968_v23 = vld [vmem:[%s6886_s3 + $0x28] sm:$0xff]  }
  0x5c   :  { %4287 = vmatprep.subr.bf16.mxu0 %v4942_v4 }
  0x5f   :  { %4288 = vmatpush3.bf16.msra.mxu0 %v4942_v4  ;;  %v984_v4 = vsel %vm967_vm2, %v975_v25, %v983_v27  ;;  %v4969_v25 = vld [vmem:[%s6886_s3 + $0x30] sm:$0xff]  }
  0x60   :  { %4289 = vmatprep.subr.bf16.mxu0 %v4943_v5 }
  0x62   :  { %4266 = vmatmul.mubr.bf16.gmra.mrb[8].mxu0 %v5095_v26  ;;  %v4950_v26 = vld [vmem:[%s6884_s1 + $0xc0] sm:$0xff]  }
  0x63   :  { %4269 = vmatprep.mubr.bf16.mxu0 %v5112_v38  ;;  %4290 = vmatpush3.bf16.msra.mxu0 %v4943_v5  ;;  %v5237_v38 = vld [vmem:[%s6885_s0 + $0x1c] sm:$0xff]  }
  0x64   :  { %4291 = vmatprep.subr.bf16.mxu0 %v4944_v15  ;;  %v719_v40 = vrot.slane %v5237_v38, 1  ;;  %v995_v28 = vshrl.u32 %v5237_v38, 16  ;;  %v998_v29 = vshll.u32 %v5237_v38, 16 }
  0x66   :  { %v720_v44 = vsel %vm713_vm1, %v717_v39, %v719_v40  ;;  %v722_v49 = vsel %vm713_vm1, %v719_v40, %v721_v46  ;;  %v997_v5 = vrot.slane %v995_v28, 1  ;;  %v1015_v39 = vrot.slane %v1013_v33, 1  ;;  %v5385_v28 = vld [vmem:[%s6887_s2] ss:$0 sm:$0xff] }
  0x67   :  { %4292 = vmatpush3.bf16.msra.mxu0 %v4944_v15  ;;  %v1000_v15 = vrot.slane %v998_v29, 2  ;;  %v1018_v40 = vrot.slane %v1016_v34, 2  ;;  %v1031_v46 = vshrl.u32 %v5275_v53, 16  ;;  %v1052_v53 = vshll.u32 %v5295_v61, 16 }
  0x68   :  { %4293 = vmatprep.subr.bf16.mxu0 %v4945_v17 }
  0x69   :  { %v1001_v32 = vor.u32 %v1000_v15, %v997_v5 }
  0x6a   :  { %4270 = vmatmul.mubr.bf16.gmra.mrb[12].mxu0 %v5120_v43  ;;  %v4951_v43 = vld [vmem:[%s6884_s1 + $0xc8] sm:$0xff]  }
  0x6b   :  { %4273 = vmatprep.mubr.bf16.mxu0 %v5134_v52  ;;  %4294 = vmatpush3.bf16.msra.mxu0 %v4945_v17  ;;  %v4957_v52 = vld [vmem:[%s6884_s1 + $0xd8] sm:$0xff]   ;;  %v992_v17 = vor.u32 %v991_v31, %v988_v30 }
  0x6c   :  { %4295 = vmatprep.subr.bf16.mxu0 %v4946_v24 }
  0x6d   :  { %v993_v35 = vsel %vm967_vm2, %v983_v27, %v992_v17  ;;  %v1002_v38 = vsel %vm967_vm2, %v992_v17, %v1001_v32  ;;  %v4970_v27 = vld [vmem:[%s6886_s3 + $0x38] sm:$0xff]  }
  0x6f   :  { %4296 = vmatpush3.bf16.msra.mxu0 %v4946_v24  ;;  %v1004_v24 = vshrl.u32 %v5246_v42, 16 }
  0x70   :  { %4321 = vmatprep.subr.bf16.mxu0 %v4950_v26 }
  0x71   :  { %v1006_v36 = vrot.slane %v1004_v24, 1 }
  0x72   :  { %4274 = vmatmul.mubr.bf16.gmra.mrb[16].mxu0 %v5142_v57  ;;  %v726_v57 = vsel %vm713_vm1, %v723_v48, %v725_v54  ;;  %v1036_v54 = vrot.slane %v1034_v45, 2 }
  0x73   :  { %4277 = vmatprep.mubr.bf16.mxu0 %v5156_v2  ;;  %v5306_v2 = vld [vmem:[%s6885_s0 + $0x54] sm:$0xff]  }
  0x74   :  { %v733_v8 = vrot.slane %v5306_v2, 1 }
  0x76   :  { %v734_v14 = vsel %vm713_vm1, %v731_v63, %v733_v8 }
  0x7a   :  { %4278 = vmatmul.mubr.bf16.gmra.mrb[20].mxu0 %v5161_v6  ;;  %v5312_v6 = vld [vmem:[%s6885_s0 + $0x5c] sm:$0xff]  }
  0x7b   :  { %4297 = vmatprep.mubr.bf16.mxu0 %v716_v37  ;;  %v735_v10 = vrot.slane %v5312_v6, 1 }
  0x7d   :  { %v736_v18 = vsel %vm713_vm1, %v733_v8, %v735_v10  ;;  %v1058_v8 = vshrl.u32 %v5306_v2, 16 }
  0x7f   :  { %v1060_v12 = vrot.slane %v1058_v8, 1  ;;  %v4972_v8 = vld [vmem:[%s6886_s3 + $0x68] sm:$0xff]  }
  0x82   :  { %4298 = vmatmul.mubr.bf16.vlgmr.msra.gmra.mrb[0].mxu0 %v718_v41 }
  0x83   :  { %4322 = vmatpush3.bf16.msra.mxu0 %v4950_v26  ;;  %4301 = vmatprep.mubr.bf16.mxu0 %v720_v44  ;;  %v1007_v26 = vshll.u32 %v5246_v42, 16  ;;  %v1025_v42 = vshll.u32 %v5266_v50, 16  ;;  %v1019_v44 = vor.u32 %v1018_v40, %v1015_v39 }
  0x84   :  { %4323 = vmatprep.subr.bf16.mxu0 %v4951_v43 }
  0x85   :  { %v1009_v37 = vrot.slane %v1007_v26, 2 }
  0x87   :  { %4324 = vmatpush3.bf16.msra.mxu0 %v4951_v43  ;;  %v1010_v41 = vor.u32 %v1009_v37, %v1006_v36  ;;  %v1022_v43 = vshrl.u32 %v5266_v50, 16  ;;  %v1043_v50 = vshll.u32 %v5286_v58, 16 }
  0x88   :  { %4325 = vmatprep.subr.bf16.mxu0 %v4954_v47 }
  0x89   :  { %v1024_v48 = vrot.slane %v1022_v43, 1  ;;  %v1045_v63 = vrot.slane %v1043_v50, 2  ;;  %v4971_v50 = vld [vmem:[%s6886_s3 + $0x60] sm:$0xff]  }
  0x8a   :  { %4302 = vmatmul.mubr.bf16.gmra.mrb[4].mxu0 %v722_v49  ;;  %v1027_v49 = vrot.slane %v1025_v42, 2 }
  0x8b   :  { %4326 = vmatpush3.bf16.msra.mxu0 %v4954_v47  ;;  %4305 = vmatprep.mubr.bf16.mxu0 %v724_v51  ;;  %v1011_v47 = vsel %vm967_vm2, %v1001_v32, %v1010_v41  ;;  %v1020_v51 = vsel %vm967_vm2, %v1010_v41, %v1019_v44 }
  0x8c   :  { %4327 = vmatprep.subr.bf16.mxu0 %v4957_v52  ;;  %v1028_v55 = vor.u32 %v1027_v49, %v1024_v48 }
  0x8f   :  { %4328 = vmatpush3.bf16.msra.mxu0 %v4957_v52  ;;  %v1033_v52 = vrot.slane %v1031_v46, 1 }
  0x90   :  { %4329 = vmatprep.subr.bf16.mxu0 %v4960_v56 }
  0x92   :  { %4306 = vmatmul.mubr.bf16.gmra.mrb[8].mxu0 %v726_v57  ;;  %v1037_v57 = vor.u32 %v1036_v54, %v1033_v52 }
  0x93   :  { %4309 = vmatprep.mubr.bf16.mxu0 %v728_v59  ;;  %4330 = vmatpush3.bf16.msra.mxu0 %v4960_v56  ;;  %v1040_v56 = vshrl.u32 %v5286_v58, 16  ;;  %v1049_v59 = vshrl.u32 %v5295_v61, 16  ;;  %v1061_v58 = vshll.u32 %v5306_v2, 16  ;;  %v1070_v61 = vshll.u32 %v5312_v6, 16 }
  0x94   :  { %4331 = vmatprep.subr.bf16.mxu0 %v4961_v60 }
  0x95   :  { %v1042_v62 = vrot.slane %v1040_v56, 1  ;;  %v1063_v13 = vrot.slane %v1061_v58, 2 }
  0x97   :  { %4332 = vmatpush3.bf16.msra.mxu0 %v4961_v60  ;;  %v1029_v60 = vsel %vm967_vm2, %v1019_v44, %v1028_v55  ;;  %v1064_v19 = vor.u32 %v1063_v13, %v1060_v12 }
  0x98   :  { %4333 = vmatprep.subr.bf16.mxu0 %v4964_v0 }
  0x9a   :  { %4310 = vmatmul.mubr.bf16.gmra.mrb[12].mxu0 %v730_v1  ;;  %v1051_v1 = vrot.slane %v1049_v59, 1 }
  0x9b   :  { %4313 = vmatprep.mubr.bf16.mxu0 %v732_v3  ;;  %4334 = vmatpush3.bf16.msra.mxu0 %v4964_v0  ;;  %v1038_v0 = vsel %vm967_vm2, %v1028_v55, %v1037_v57  ;;  %v1054_v3 = vrot.slane %v1052_v53, 2 }
  0x9c   :  { %4335 = vmatprep.subr.bf16.mxu0 %v4966_v7 }
  0x9d   :  { %v1055_v9 = vor.u32 %v1054_v3, %v1051_v1 }
  0x9f   :  { %4336 = vmatpush3.bf16.msra.mxu0 %v4966_v7  ;;  %v1046_v7 = vor.u32 %v1045_v63, %v1042_v62  ;;  %v1065_v21 = vsel %vm967_vm2, %v1055_v9, %v1064_v19 }
  0xa0   :  { %4361 = vmatprep.subr.bf16.mxu0 %v6896_v22 }
  0xa1   :  { %v1047_v11 = vsel %vm967_vm2, %v1037_v57, %v1046_v7 }
  0xa2   :  { %4314 = vmatmul.mubr.bf16.gmra.mrb[16].mxu0 %v734_v14  ;;  %v1056_v14 = vsel %vm967_vm2, %v1046_v7, %v1055_v9 }
  0xa3   :  { %4317 = vmatprep.mubr.bf16.mxu0 %v736_v18  ;;  %v1072_v18 = vrot.slane %v1070_v61, 2 }
  0xaa   :  { %4318 = vmatmul.mubr.bf16.gmra.mrb[20].mxu0 %v735_v10  ;;  %v1067_v10 = vshrl.u32 %v5312_v6, 16  ;;  %v4967_v6 = vld [vmem:[%s6886_s3 + $0x20] sm:$0xff]  }
  0xab   :  { %4337 = vmatprep.mubr.bf16.mxu0 %v984_v4  ;;  %4833 = vmatpush3.bf16.msra.mxu1 %v4967_v6 }
  0xac   :  { %v1069_v16 = vrot.slane %v1067_v10, 1  ;;  %4830 = vmatprep.subr.bf16.mxu1 %v6896_v22 }
  0xae   :  { %v1073_v20 = vor.u32 %v1072_v18, %v1069_v16 }
  0xaf   :  { %4834 = vmatpush3.bf16.msra.mxu1 %v4968_v23 }
  0xb0   :  { %v1074_v2 = vsel %vm967_vm2, %v1064_v19, %v1073_v20  ;;  %4831 = vmatprep.subr.bf16.mxu1 %v6896_v22 }
  0xb2   :  { %4338 = vmatmul.mubr.bf16.vlgmr.msra.gmra.mrb[0].mxu0 %v993_v35 }
  0xb3   :  { %4341 = vmatprep.mubr.bf16.mxu0 %v1002_v38  ;;  %4362 = vmatpush3.bf16.msra.mxu0 %v4967_v6 }
  0xb4   :  { %4363 = vmatprep.subr.bf16.mxu0 %v6896_v22  ;;  %4835 = vmatpush3.bf16.msra.mxu1 %v4969_v25 }
  0xb5   :  { %4832 = vmatprep.subr.bf16.mxu1 %v6896_v22 }
  0xb7   :  { %4364 = vmatpush3.bf16.msra.mxu0 %v4968_v23 }
  0xb8   :  { %4365 = vmatprep.subr.bf16.mxu0 %v6896_v22  ;;  %4836 = vmatpush3.bf16.msra.mxu1 %v4970_v27 }
  0xb9   :  { %4413 = vmatprep.subr.bf16.mxu1 %v6896_v22 }
  0xba   :  { %4342 = vmatmul.mubr.bf16.gmra.mrb[4].mxu0 %v1011_v47 }
  0xbb   :  { %4345 = vmatprep.mubr.bf16.mxu0 %v1020_v51  ;;  %4366 = vmatpush3.bf16.msra.mxu0 %v4969_v25 }
  0xbc   :  { %4367 = vmatprep.subr.bf16.mxu0 %v6896_v22 }
  0xbf   :  { %4368 = vmatpush3.bf16.msra.mxu0 %v4970_v27 }
  0xc0   :  { %4517 = vmatprep.subr.bf16.mxu0 %v6896_v22 }
  0xc2   :  { %4346 = vmatmul.mubr.bf16.gmra.mrb[8].mxu0 %v1029_v60 }
  0xc3   :  { %4349 = vmatprep.mubr.bf16.mxu0 %v1038_v0 }
  0xca   :  { %4350 = vmatmul.mubr.bf16.gmra.mrb[12].mxu0 %v1047_v11 }
  0xcb   :  { %4353 = vmatprep.mubr.bf16.mxu0 %v1056_v14 }
  0xd2   :  { %4354 = vmatmul.mubr.bf16.gmra.mrb[16].mxu0 %v1065_v21  ;;  %v4974_v21 = vld [vmem:[%s6886_s3 + $0x70] sm:$0xff]  }
  0xd3   :  { %4357 = vmatprep.mubr.bf16.mxu0 %v1074_v2 }
  0xda   :  { %4358 = vmatmul.mubr.bf16.gmra.mrb[20].mxu0 %v1073_v20 }
  0xdb   :  { %4369 = vmatprep.mubr.msk.bf16.mxu0 %vm5004_vm3, %v6896_v22 }
 0x185   :  { %v4339_v29 = vpop.f32.mrb[0].mxu0 }
 0x186   :  { %v1297_v30 = vadd.f32 %v4339_v29, %v5385_v28  ;;  %v1169_v31 = vpop.f32.mrb[1].mxu0 }
 0x187   :  { %v1295_v4 = vadd.f32 %v5385_v28, %v1169_v31  ;;  %v4340_v5 = vpop.f32.mrb[2].mxu0 }
 0x188   :  { %v1298_v15 = vadd.f32 %v4340_v5, %v5385_v28  ;;  %v1172_v17 = vpop.f32.mrb[3].mxu0  ;;  %v1321_v26 = vmax.f32 %v1297_v30, 0.0 }
 0x189   :  { %v1296_v24 = vadd.f32 %v5385_v28, %v1172_v17  ;;  %v1319_v33 = vmax.f32 %v1295_v4, 0.0 }
 0x18a   :  { %v1322_v32 = vmax.f32 %v1298_v15, 0.0 }
 0x18b   :  { %v1320_v34 = vmax.f32 %v1296_v24, 0.0 }
 0x18c   :  { %v5391_v35 = vpack.c.bf16 %v1322_v32, %v1321_v26  ;;  %v4975_v26 = vld [vmem:[%s6886_s3 + $0x78] sm:$0xff]  }
 0x18d   :  { %v5393_v36 = vpack.c.bf16 %v1320_v34, %v1319_v33  ;;  %v4343_v37 = vpop.f32.mrb[4].mxu0 }
 0x18e   :  { %v1301_v38 = vadd.f32 %v4343_v37, %v5385_v28  ;;  %v1185_v39 = vpop.f32.mrb[5].mxu0  ;;  %v5399_v42 = vshll.u32 %v5391_v35, 16  ;;  %v5415_v59 = vshrl.u32 %v5391_v35, 16 }
 0x18f   :  { %v1299_v40 = vadd.f32 %v5385_v28, %v1185_v39  ;;  %v4344_v41 = vpop.f32.mrb[6].mxu0  ;;  %v1375_v43 = vshll.u32 %v5393_v36, 16  ;;  %v1373_v47 = vshrl.u32 %v5393_v36, 16  ;;  %v4973_v39 = vld [vmem:[%s6886_s3] sm:$0xff]  }
 0x190   :  { %v1302_v44 = vadd.f32 %v4344_v41, %v5385_v28  ;;  %v1188_v46 = vpop.f32.mrb[7].mxu0  ;;  %v1325_v49 = vmax.f32 %v1301_v38, 0.0  ;;  %v1382_v56 = vrot.slane %v5399_v42, 1  ;;  %v3004_v10 = vrot.slane %v5415_v59, 2 }
 0x191   :  { %v1300_v45 = vadd.f32 %v5385_v28, %v1188_v46  ;;  %v1377_v48 = vrot.slane %v1375_v43, 1  ;;  %v1323_v52 = vmax.f32 %v1299_v40, 0.0  ;;  %v3005_v61 = vrot.slane %v5399_v42, 3 }
 0x192   :  { %v1326_v51 = vmax.f32 %v1302_v44, 0.0  ;;  %v1386_v20 = vor.u32 %v5415_v59, %v1382_v56 }
 0x193   :  { %v1324_v54 = vmax.f32 %v1300_v45, 0.0  ;;  %v1378_v55 = vor.u32 %v1377_v48, %v1373_v47  ;;  %v5447_v6 = vor.u32 %v3005_v61, %v3004_v10  ;;  %v2053_v10 = vrot.slane %v5393_v36, 5 }
 0x194   :  { %v5412_v57 = vpack.c.bf16 %v1326_v51, %v1325_v49  ;;  %v2054_v61 = vrot.slane %v5391_v35, 5 }
 0x195   :  { %v5417_v53 = vpack.c.bf16 %v1324_v54, %v1323_v52  ;;  %v4347_v60 = vpop.f32.mrb[8].mxu0  ;;  %v1383_v62 = vsel %vm138_vm0, %v1378_v55, %v1382_v56 }
 0x196   :  { %v1305_v63 = vadd.f32 %v4347_v60, %v5385_v28  ;;  %v1201_v0 = vpop.f32.mrb[9].mxu0  ;;  %4370 = vmatmul.mubr.msk.bf16.vlgmr.msra.gmra.mrb[24].mxu0 %vm1483_vm4, %v1383_v62  ;;  %v5438_v13 = vshll.u32 %v5412_v57, 16  ;;  %v5457_v15 = vshrl.u32 %v5412_v57, 16 }
 0x197   :  { %v1303_v1 = vadd.f32 %v5385_v28, %v1201_v0  ;;  %v4348_v3 = vpop.f32.mrb[10].mxu0  ;;  %4373 = vmatprep.mubr.msk.bf16.mxu0 %vm5004_vm3, %v6896_v22  ;;  %v5426_v7 = vshll.u32 %v5417_v53, 16  ;;  %4518 = vmatpush3.bf16.msra.mxu0 %v4971_v50  ;;  %v5465_v24 = vshrl.u32 %v5417_v53, 16  ;;  %v4976_v50 = vld [vmem:[%s6886_s3 + $0x8] sm:$0xff]  }
 0x198   :  { %v1306_v58 = vadd.f32 %v4348_v3, %v5385_v28  ;;  %v1204_v9 = vpop.f32.mrb[11].mxu0  ;;  %4519 = vmatprep.subr.bf16.mxu0 %v6896_v22  ;;  %v1329_v14 = vmax.f32 %v1305_v63, 0.0  ;;  %v1398_v29 = vrot.slane %v5438_v13, 1 }
 0x199   :  { %v1304_v11 = vadd.f32 %v5385_v28, %v1204_v9  ;;  %v1390_v12 = vrot.slane %v5426_v7, 1  ;;  %v1327_v18 = vmax.f32 %v1303_v1, 0.0 }
 0x19a   :  { %v1330_v16 = vmax.f32 %v1306_v58, 0.0  ;;  %v1402_v37 = vor.u32 %v5457_v15, %v1398_v29 }
 0x19b   :  { %v1328_v19 = vmax.f32 %v1304_v11, 0.0  ;;  %4520 = vmatpush3.bf16.msra.mxu0 %v4972_v8  ;;  %v1391_v27 = vsel %vm138_vm0, %v1386_v20, %v1390_v12  ;;  %v1394_v40 = vor.u32 %v5465_v24, %v1390_v12  ;;  %v4977_v11 = vld [vmem:[%s6886_s3 + $0x10] sm:$0xff]  }
 0x19c   :  { %v5444_v2 = vpack.c.bf16 %v1330_v16, %v1329_v14  ;;  %4521 = vmatprep.subr.bf16.mxu0 %v6896_v22 }
 0x19d   :  { %v5449_v23 = vpack.c.bf16 %v1328_v19, %v1327_v18  ;;  %v4351_v25 = vpop.f32.mrb[12].mxu0  ;;  %v1399_v54 = vsel %vm138_vm0, %v1394_v40, %v1398_v29  ;;  %v4982_v40 = vld [vmem:[%s6886_s3 + $0xa8] sm:$0xff]  }
 0x19e   :  { %v1309_v30 = vadd.f32 %v4351_v25, %v5385_v28  ;;  %v1217_v31 = vpop.f32.mrb[13].mxu0  ;;  %4374 = vmatmul.mubr.msk.bf16.gmra.mrb[28].mxu0 %vm1483_vm4, %v1391_v27  ;;  %v5493_v56 = vshll.u32 %v5444_v2, 16  ;;  %v2056_v27 = vrot.slane %v5417_v53, 5 }
 0x19f   :  { %v1307_v4 = vadd.f32 %v5385_v28, %v1217_v31  ;;  %v4352_v5 = vpop.f32.mrb[14].mxu0  ;;  %v5460_v17 = vshll.u32 %v5449_v23, 16  ;;  %4377 = vmatprep.mubr.msk.bf16.mxu0 %vm5004_vm3, %v6896_v22  ;;  %4522 = vmatpush3.bf16.msra.mxu0 %v4974_v21  ;;  %v5490_v55 = vshrl.u32 %v5449_v23, 16  ;;  %v4980_v21 = vld [vmem:[%s6886_s3 + $0xa0] sm:$0xff]   ;;  %v2055_v31 = vsel %vm2052_vm5, %v2053_v10, %v2054_v61 }
 0x1a0   :  { %v1310_v32 = vadd.f32 %v4352_v5, %v5385_v28  ;;  %v1220_v33 = vpop.f32.mrb[15].mxu0  ;;  %4523 = vmatprep.subr.bf16.mxu0 %v6896_v22  ;;  %v1333_v41 = vmax.f32 %v1309_v30, 0.0  ;;  %v1414_v9 = vrot.slane %v5493_v56, 1 }
 0x1a1   :  { %v1308_v34 = vadd.f32 %v5385_v28, %v1220_v33  ;;  %v1406_v38 = vrot.slane %v5460_v17, 1  ;;  %v1331_v46 = vmax.f32 %v1307_v4, 0.0  ;;  %v4978_v4 = vld [vmem:[%s6886_s3 + $0x18] sm:$0xff]   ;;  %v5539_v33 = vrot.slane %v1373_v47, 5 }
 0x1a2   :  { %v1334_v44 = vmax.f32 %v1310_v32, 0.0  ;;  %v2058_v32 = vrot.slane %v5412_v57, 5  ;;  %v5553_v47 = vrot.slane %v1375_v43, 6 }
 0x1a3   :  { %v1332_v45 = vmax.f32 %v1308_v34, 0.0  ;;  %v1407_v48 = vsel %vm138_vm0, %v1402_v37, %v1406_v38  ;;  %4524 = vmatpush3.bf16.msra.mxu0 %v4975_v26  ;;  %v1410_v1 = vor.u32 %v5490_v55, %v1406_v38  ;;  %v5543_v38 = vshrl.u32 %v5444_v2, 16 }
 0x1a4   :  { %v5480_v49 = vpack.c.bf16 %v1334_v44, %v1333_v41  ;;  %4382 = vmatmul.mubr.msk.bf16.vlgmr.msra.gmra.mrb[0].mxu1 %vm1483_vm4, %v1407_v48  ;;  %4621 = vmatprep.subr.bf16.mxu0 %v6896_v22  ;;  %v3008_v48 = vrot.slane %v5426_v7, 3 }
 0x1a5   :  { %v5484_v51 = vpack.c.bf16 %v1332_v45, %v1331_v46  ;;  %v4355_v52 = vpop.f32.mrb[16].mxu0  ;;  %4414 = vmatpush3.bf16.msra.mxu1 %v4973_v39  ;;  %4385 = vmatprep.mubr.msk.bf16.mxu1 %vm5004_vm3, %v6896_v22  ;;  %v1415_v19 = vsel %vm138_vm0, %v1410_v1, %v1414_v9  ;;  %v2057_v46 = vsel %vm2052_vm5, %v2054_v61, %v2056_v27  ;;  %v3007_v45 = vrot.slane %v5465_v24, 2 }
 0x1a6   :  { %v1313_v60 = vadd.f32 %v4355_v52, %v5385_v28  ;;  %v1233_v62 = vpop.f32.mrb[17].mxu0  ;;  %4378 = vmatmul.mubr.msk.bf16.gmra.mrb[32].mxu0 %vm1483_vm4, %v1399_v54  ;;  %4415 = vmatprep.subr.bf16.mxu1 %v6896_v22  ;;  %v1418_v54 = vor.u32 %v5543_v38, %v1414_v9 }
 0x1a7   :  { %v1311_v63 = vadd.f32 %v5385_v28, %v1233_v62  ;;  %v4356_v0 = vpop.f32.mrb[18].mxu0  ;;  %4525 = vmatprep.mubr.msk.bf16.mxu0 %vm5004_vm3, %v6896_v22  ;;  %v5516_v20 = vshll.u32 %v5484_v51, 16  ;;  %v5582_v10 = vshrl.u32 %v5484_v51, 16  ;;  %v3009_v61 = vor.u32 %v3008_v48, %v3007_v45 }
 0x1a8   :  { %v1314_v3 = vadd.f32 %v4356_v0, %v5385_v28  ;;  %v1236_v8 = vpop.f32.mrb[19].mxu0  ;;  %v1337_v12 = vmax.f32 %v1313_v60, 0.0  ;;  %v2062_v0 = vrot.slane %v5444_v2, 5 }
 0x1a9   :  { %v1312_v58 = vadd.f32 %v5385_v28, %v1236_v8  ;;  %4416 = vmatpush3.bf16.msra.mxu1 %v4976_v50  ;;  %v1335_v16 = vmax.f32 %v1311_v63, 0.0  ;;  %v1422_v39 = vrot.slane %v5516_v20, 1  ;;  %v5563_v50 = vshll.u32 %v5480_v49, 16 }
 0x1aa   :  { %v1338_v14 = vmax.f32 %v1314_v3, 0.0  ;;  %4417 = vmatprep.subr.bf16.mxu1 %v6896_v22  ;;  %v2059_v63 = vsel %vm2052_vm5, %v2056_v27, %v2058_v32  ;;  %v2060_v8 = vrot.slane %v5449_v23, 5 }
 0x1ab   :  { %v1336_v18 = vmax.f32 %v1312_v58, 0.0  ;;  %v1423_v3 = vsel %vm138_vm0, %v1418_v54, %v1422_v39  ;;  %v4983_v58 = vld [vmem:[%s6886_s3 + $0xb0] sm:$0xff]  }
 0x1ac   :  { %v5521_v25 = vpack.c.bf16 %v1338_v14, %v1337_v12  ;;  %4386 = vmatmul.mubr.msk.bf16.gmra.mrb[4].mxu1 %vm1483_vm4, %v1415_v19  ;;  %v1430_v14 = vrot.slane %v5563_v50, 1  ;;  %v1426_v19 = vor.u32 %v5582_v10, %v1422_v39  ;;  %v3015_v39 = vrot.slane %v5490_v55, 2 }
 0x1ad   :  { %v5525_v29 = vpack.c.bf16 %v1336_v18, %v1335_v16  ;;  %v4359_v30 = vpop.f32.mrb[20].mxu0  ;;  %4389 = vmatprep.mubr.msk.bf16.mxu1 %vm5004_vm3, %v6896_v22  ;;  %4418 = vmatpush3.bf16.msra.mxu1 %v4977_v11  ;;  %v3011_v11 = vrot.slane %v5457_v15, 2  ;;  %v3012_v18 = vrot.slane %v5438_v13, 3 }
 0x1ae   :  { %v1317_v5 = vadd.f32 %v4359_v30, %v5385_v28  ;;  %v1249_v26 = vpop.f32.mrb[21].mxu0  ;;  %4526 = vmatmul.mubr.msk.bf16.vlgmr.msra.gmra.mrb[36].mxu0 %vm1483_vm4, %v2055_v31  ;;  %4419 = vmatprep.subr.bf16.mxu1 %v6896_v22  ;;  %v5599_v30 = vsel %vm3003_vm6, %v5447_v6, %v3009_v61  ;;  %v5615_v6 = vshrl.u32 %v5480_v49, 16 }
 0x1af   :  { %v1315_v34 = vadd.f32 %v5385_v28, %v1249_v26  ;;  %v4360_v37 = vpop.f32.mrb[22].mxu0  ;;  %4529 = vmatprep.mubr.msk.bf16.mxu0 %vm5004_vm3, %v6896_v22  ;;  %4622 = vmatpush3.bf16.msra.mxu0 %v4980_v21  ;;  %v5566_v43 = vshll.u32 %v5525_v29, 16  ;;  %v5604_v31 = vshrl.u32 %v5525_v29, 16  ;;  %v4984_v26 = vld [vmem:[%s6886_s3 + $0xb8] sm:$0xff]  }
 0x1b0   :  { %v1318_v41 = vadd.f32 %v4360_v37, %v5385_v28  ;;  %v1252_v44 = vpop.f32.mrb[23].mxu0  ;;  %4623 = vmatprep.subr.bf16.mxu0 %v6896_v22  ;;  %v1341_v60 = vmax.f32 %v1317_v5, 0.0  ;;  %v3013_v37 = vor.u32 %v3012_v18, %v3011_v11  ;;  %v1434_v48 = vor.u32 %v5615_v6, %v1430_v14 }
 0x1b1   :  { %v1316_v52 = vadd.f32 %v5385_v28, %v1252_v44  ;;  %4420 = vmatpush3.bf16.msra.mxu1 %v4978_v4  ;;  %v1339_v28 = vmax.f32 %v1315_v34, 0.0  ;;  %v1438_v16 = vrot.slane %v5566_v43, 1  ;;  %v5607_v4 = vshll.u32 %v5521_v25, 16 }
 0x1b2   :  { %v1342_v62 = vmax.f32 %v1318_v41, 0.0  ;;  %4465 = vmatprep.subr.bf16.mxu1 %v6896_v22  ;;  %v2061_v41 = vsel %vm2052_vm5, %v2058_v32, %v2060_v8  ;;  %v5641_v32 = vsel %vm3003_vm6, %v3009_v61, %v3013_v37  ;;  %v3023_v61 = vrot.slane %v5582_v10, 2 }
 0x1b3   :  { %v1340_v1 = vmax.f32 %v1316_v52, 0.0  ;;  %4624 = vmatpush3.bf16.msra.mxu0 %v4982_v40  ;;  %v3016_v40 = vrot.slane %v5460_v17, 3  ;;  %v1442_v44 = vor.u32 %v5604_v31, %v1438_v16  ;;  %v3027_v18 = vrot.slane %v5615_v6, 2 }
 0x1b4   :  { %v5578_v9 = vpack.c.bf16 %v1342_v62, %v1341_v60  ;;  %4390 = vmatmul.mubr.msk.bf16.gmra.mrb[8].mxu1 %vm1483_vm4, %v1423_v3  ;;  %4625 = vmatprep.subr.bf16.mxu0 %v6896_v22  ;;  %v1431_v60 = vsel %vm138_vm0, %v1426_v19, %v1430_v14  ;;  %v1446_v62 = vrot.slane %v5607_v4, 1  ;;  %v1439_v3 = vsel %vm138_vm0, %v1434_v48, %v1438_v16 }
 0x1b5   :  { %v5586_v12 = vpack.c.bf16 %v1340_v1, %v1339_v28  ;;  %4393 = vmatprep.mubr.msk.bf16.mxu1 %vm5004_vm3, %v6896_v22  ;;  %v3017_v54 = vor.u32 %v3016_v40, %v3015_v39  ;;  %v3019_v28 = vrot.slane %v5543_v38, 2  ;;  %v3020_v1 = vrot.slane %v5493_v56, 3 }
 0x1b6   :  { %4530 = vmatmul.mubr.msk.bf16.gmra.mrb[40].mxu0 %vm1483_vm4, %v2057_v46  ;;  %v2074_v21 = vrot.slane %v5578_v9, 5  ;;  %v2565_v27 = vrot.slane %v5578_v9, 6  ;;  %v5627_v46 = vsel %vm2052_vm5, %v2060_v8, %v2062_v0  ;;  %v5650_v8 = vshrl.u32 %v5521_v25, 16 }
 0x1b7   :  { %4533 = vmatprep.mubr.msk.bf16.mxu0 %vm5004_vm3, %v6896_v22  ;;  %v6891_v5 = vrot.slane %v5586_v12, 5  ;;  %4626 = vmatpush3.bf16.msra.mxu0 %v4983_v58  ;;  %v6890_v34 = vrot.slane %v5586_v12, 6  ;;  %v5654_v58 = vsel %vm3003_vm6, %v3013_v37, %v3017_v54  ;;  %v5662_v11 = vsel %vm138_vm0, %v1442_v44, %v1446_v62 }
 0x1b8   :  { %4627 = vmatprep.subr.bf16.mxu0 %v6896_v22  ;;  %v3021_v14 = vor.u32 %v3020_v1, %v3019_v28  ;;  %v3024_v16 = vrot.slane %v5516_v20, 3  ;;  %v5668_v19 = vshll.u32 %v5586_v12, 16  ;;  %v5676_v37 = vshrl.u32 %v5586_v12, 16 }
 0x1b9   :  { %v5632_v45 = vsel %vm2052_vm5, %v6891_v5, %v2074_v21  ;;  %v5638_v52 = vsel %vm2543_vm7, %v6890_v34, %v2565_v27  ;;  %v3028_v21 = vrot.slane %v5563_v50, 3  ;;  %v3031_v27 = vrot.slane %v5604_v31, 2 }
 0x1ba   :  { %v5679_v39 = vsel %vm3003_vm6, %v3017_v54, %v3021_v14  ;;  %v3025_v40 = vor.u32 %v3024_v16, %v3023_v61  ;;  %v2288_v28 = vrot.slane %v5399_v42, 6  ;;  %v3035_v34 = vrot.slane %v5650_v8, 2 }
 0x1bb   :  { %4628 = vmatpush3.bf16.msra.mxu0 %v4984_v26  ;;  %v3032_v26 = vrot.slane %v5566_v43, 3  ;;  %v3029_v44 = vor.u32 %v3028_v21, %v3027_v18  ;;  %v3036_v5 = vrot.slane %v5607_v4, 3  ;;  %v2291_v54 = vrot.slane %v5465_v24, 5 }
 0x1bc   :  { %4394 = vmatmul.mubr.msk.bf16.gmra.mrb[12].mxu1 %vm1483_vm4, %v1431_v60  ;;  %4725 = vmatprep.subr.bf16.mxu0 %v6896_v22  ;;  %v2287_v60 = vrot.slane %v5415_v59, 5  ;;  %v5686_v1 = vsel %vm3003_vm6, %v3021_v14, %v3025_v40  ;;  %v2292_v59 = vrot.slane %v5426_v7, 6  ;;  %v3039_v42 = vrot.slane %v5676_v37, 2 }
 0x1bd   :  { %4397 = vmatprep.mubr.msk.bf16.mxu1 %vm5004_vm3, %v6896_v22  ;;  %v3033_v48 = vor.u32 %v3032_v26, %v3031_v27  ;;  %v5692_v61 = vsel %vm3003_vm6, %v3025_v40, %v3029_v44  ;;  %v3037_v16 = vor.u32 %v3036_v5, %v3035_v34  ;;  %v3040_v14 = vrot.slane %v5668_v19, 3 }
 0x1be   :  { %4534 = vmatmul.mubr.msk.bf16.gmra.mrb[44].mxu0 %vm1483_vm4, %v2059_v63  ;;  %v2286_v63 = vor.u32 %v5553_v47, %v5539_v33  ;;  %v2289_v47 = vor.u32 %v2288_v28, %v2287_v60  ;;  %v2295_v18 = vrot.slane %v5457_v15, 5  ;;  %v2293_v21 = vor.u32 %v2292_v59, %v2291_v54 }
 0x1bf   :  { %4537 = vmatprep.mubr.msk.bf16.mxu0 %vm5004_vm3, %v6896_v22  ;;  %v5695_v33 = vsel %vm3003_vm6, %v3029_v44, %v3033_v48  ;;  %v2296_v27 = vrot.slane %v5438_v13, 6  ;;  %v2328_v26 = vshrl.u32 %v5578_v9, 16  ;;  %v5710_v7 = vsel %vm3003_vm6, %v3033_v48, %v3037_v16 }
 0x1c0   :  { %v5703_v24 = vsel %vm2283_vm8, %v2286_v63, %v2289_v47  ;;  %v3041_v5 = vor.u32 %v3040_v14, %v3039_v42  ;;  %v2331_v34 = vshll.u32 %v5578_v9, 16  ;;  %v2299_v15 = vrot.slane %v5490_v55, 5 }
 0x1c1   :  { %v2297_v40 = vor.u32 %v2296_v27, %v2295_v18  ;;  %v3043_v13 = vrot.slane %v2328_v26, 2  ;;  %v2300_v63 = vrot.slane %v5460_v17, 6  ;;  %v2303_v60 = vrot.slane %v5543_v38, 5 }
 0x1c2   :  { %v5722_v44 = vsel %vm3003_vm6, %v3037_v16, %v3041_v5  ;;  %v3044_v48 = vrot.slane %v2331_v34, 3  ;;  %v2304_v55 = vrot.slane %v5493_v56, 6  ;;  %v2307_v54 = vrot.slane %v5582_v10, 5 }
 0x1c3   :  { %v2301_v28 = vor.u32 %v2300_v63, %v2299_v15  ;;  %v2311_v42 = vrot.slane %v5615_v6, 5  ;;  %v2312_v16 = vrot.slane %v5563_v50, 6  ;;  %v2315_v56 = vrot.slane %v5604_v31, 5 }
 0x1c4   :  { %4398 = vmatmul.mubr.msk.bf16.gmra.mrb[16].mxu1 %vm1483_vm4, %v1439_v3  ;;  %v5716_v3 = vsel %vm2283_vm8, %v2289_v47, %v2293_v21  ;;  %v2308_v47 = vrot.slane %v5516_v20, 6  ;;  %v5731_v17 = vor.u32 %v3044_v48, %v3043_v13  ;;  %v2305_v59 = vor.u32 %v2304_v55, %v2303_v60 }
 0x1c5   :  { %4401 = vmatprep.mubr.msk.bf16.mxu1 %vm5004_vm3, %v6896_v22  ;;  %v5736_v14 = vsel %vm2283_vm8, %v2297_v40, %v2301_v28  ;;  %v2316_v18 = vrot.slane %v5566_v43, 6  ;;  %v2319_v6 = vrot.slane %v5650_v8, 5  ;;  %v2320_v31 = vrot.slane %v5607_v4, 6 }
 0x1c6   :  { %4538 = vmatmul.mubr.msk.bf16.gmra.mrb[48].mxu0 %vm1483_vm4, %v2061_v41  ;;  %v5727_v41 = vsel %vm2283_vm8, %v2293_v21, %v2297_v40  ;;  %v2309_v38 = vor.u32 %v2308_v47, %v2307_v54  ;;  %v5742_v10 = vsel %vm3003_vm6, %v3041_v5, %v5731_v17  ;;  %v5745_v20 = vsel %vm2283_vm8, %v2301_v28, %v2305_v59 }
 0x1c7   :  { %4541 = vmatprep.mubr.msk.bf16.mxu0 %vm5004_vm3, %v6896_v22  ;;  %v2313_v21 = vor.u32 %v2312_v16, %v2311_v42  ;;  %v2317_v27 = vor.u32 %v2316_v18, %v2315_v56  ;;  %v2323_v43 = vrot.slane %v5676_v37, 5  ;;  %v2324_v15 = vrot.slane %v5668_v19, 6 }
 0x1c8   :  { %v5751_v50 = vsel %vm2283_vm8, %v2305_v59, %v2309_v38  ;;  %v2330_v40 = vrot.slane %v2328_v26, 5  ;;  %v2333_v13 = vrot.slane %v2331_v34, 6  ;;  %v2321_v63 = vor.u32 %v2320_v31, %v2319_v6  ;;  %v4981_v6 = vld [vmem:[%s6886_s3 + $0x48] sm:$0xff]   ;;  %v4985_v31 = vld [vmem:[%s6886_s3 + $0x50] sm:$0xff]  }
 0x1c9   :  { %v5758_v5 = vsel %vm2283_vm8, %v2309_v38, %v2313_v21  ;;  %v1454_v48 = vrot.slane %v5668_v19, 1  ;;  %v2325_v60 = vor.u32 %v2324_v15, %v2323_v43  ;;  %v1450_v26 = vor.u32 %v5650_v8, %v1446_v62  ;;  %v4986_v15 = vld [vmem:[%s6886_s3 + $0x58] sm:$0xff]  }
 0x1ca   :  { %v2334_v55 = vor.u32 %v2333_v13, %v2330_v40  ;;  %v5770_v28 = vsel %vm2283_vm8, %v2317_v27, %v2321_v63  ;;  %v6895_v47 = vrot.slane %v5586_v12, 2  ;;  %v6894_v59 = vrot.slane %v5578_v9, 2 }
 0x1cb   :  { %v5777_v34 = vsel %vm2283_vm8, %v2321_v63, %v2325_v60  ;;  %v1455_v19 = vsel %vm138_vm0, %v1450_v26, %v1454_v48  ;;  %v6893_v8 = vrot.slane %v5586_v12, 3  ;;  %v6892_v42 = vrot.slane %v5578_v9, 3 }
 0x1cc   :  { %4402 = vmatmul.mubr.msk.bf16.gmra.mrb[20].mxu1 %vm1483_vm4, %v5662_v11  ;;  %v5764_v11 = vsel %vm2283_vm8, %v2313_v21, %v2317_v27  ;;  %v5780_v54 = vsel %vm2283_vm8, %v2325_v60, %v2334_v55  ;;  %v5796_v62 = vsel %vm2774_vm9, %v6895_v47, %v6894_v59  ;;  %v1458_v16 = vor.u32 %v5676_v37, %v1454_v48  ;;  %v4979_v37 = vld [vmem:[%s6886_s3 + $0x40] sm:$0xff]  }
 0x1cd   :  { %4405 = vmatprep.mubr.msk.bf16.mxu1 %vm5004_vm3, %v6896_v22  ;;  %v5810_v38 = vsel %vm3254_vm10, %v6893_v8, %v6892_v42  ;;  %v2068_v18 = vrot.slane %v5525_v29, 5  ;;  %v2070_v27 = vrot.slane %v5521_v25, 5  ;;  %v6899_v40 = vrot.slane %v5586_v12, 5  ;;  %v4988_v60 = vld [vmem:[%s6886_s3 + $0xe0] sm:$0xff]  }
 0x1ce   :  { %4542 = vmatmul.mubr.msk.bf16.gmra.mrb[52].mxu0 %vm1483_vm4, %v5627_v46  ;;  %v2064_v46 = vrot.slane %v5484_v51, 5  ;;  %6898 = vst [vmem:[#allocation2_spill] sm:$0xff] %v5810_v38  ;;  %v2544_v63 = vrot.slane %v5393_v36, 6  ;;  %v2545_v48 = vrot.slane %v5391_v35, 6  ;;  %v2547_v26 = vrot.slane %v5417_v53, 6 }
 0x1cf   :  { %4545 = vmatprep.mubr.msk.bf16.mxu0 %vm5004_vm3, %v6896_v22  ;;  %v2071_v43 = vsel %vm2052_vm5, %v2068_v18, %v2070_v27  ;;  %v2073_v13 = vsel %vm2052_vm5, %v2070_v27, %v6899_v40  ;;  %v1824_v40 = vrot.slane %v5391_v35, 1 }
 0x1d0   :  { %v2065_v4 = vsel %vm2052_vm5, %v2062_v0, %v2064_v46  ;;  %v2066_v0 = vrot.slane %v5480_v49, 5  ;;  %v2546_v55 = vsel %vm2543_vm7, %v2544_v63, %v2545_v48  ;;  %v2559_v63 = vrot.slane %v5525_v29, 6 }
 0x1d2   :  { %v2067_v56 = vsel %vm2052_vm5, %v2064_v46, %v2066_v0  ;;  %v2069_v21 = vsel %vm2052_vm5, %v2066_v0, %v2068_v18  ;;  %v4991_v46 = vld [vmem:[%s6886_s3 + $0xf0] sm:$0xff]   ;;  %v2549_v0 = vrot.slane %v5412_v57, 6  ;;  %v2553_v18 = vrot.slane %v5444_v2, 6 }
 0x1d4   :  { %4406 = vmatmul.mubr.msk.bf16.gmra.mrb[24].mxu1 %vm1483_vm4, %v1455_v19  ;;  %v2548_v19 = vsel %vm2543_vm7, %v2545_v48, %v2547_v26 }
 0x1d5   :  { %4409 = vmatprep.mubr.msk.bf16.mxu1 %vm5004_vm3, %v6896_v22 }
 0x1d6   :  { %4546 = vmatmul.mubr.msk.bf16.gmra.mrb[56].mxu0 %vm1483_vm4, %v2065_v4  ;;  %v4992_v4 = vld [vmem:[%s6886_s3 + $0xf8] sm:$0xff]  }
 0x1d7   :  { %4549 = vmatprep.mubr.msk.bf16.mxu0 %vm5004_vm3, %v6896_v22 }
 0x1dc   :  { %4410 = vmatmul.mubr.msk.bf16.gmra.mrb[28].mxu1 %vm1483_vm4, %v1458_v16  ;;  %v2550_v16 = vsel %vm2543_vm7, %v2547_v26, %v2549_v0  ;;  %v4993_v26 = vld [vmem:[%s6886_s3 + $0x90] sm:$0xff]  }
 0x1dd   :  { %4421 = vmatprep.mubr.msk.bf16.mxu1 %vm5004_vm3, %v6896_v22 }
 0x1de   :  { %4550 = vmatmul.mubr.msk.bf16.gmra.mrb[60].mxu0 %vm1483_vm4, %v2067_v56  ;;  %v2551_v56 = vrot.slane %v5449_v23, 6 }
 0x1df   :  { %4553 = vmatprep.mubr.msk.bf16.mxu0 %vm5004_vm3, %v6896_v22 }
 0x1e4   :  { %4422 = vmatmul.mubr.msk.bf16.vlgmr.msra.gmra.mrb[32].mxu1 %vm1483_vm4, %v5393_v36 }
 0x1e5   :  { %4466 = vmatpush3.bf16.msra.mxu1 %v4979_v37  ;;  %4425 = vmatprep.mubr.msk.bf16.mxu1 %vm5004_vm3, %v6896_v22  ;;  %v2552_v37 = vsel %vm2543_vm7, %v2549_v0, %v2551_v56  ;;  %v1828_v0 = vrot.slane %v5412_v57, 1 }
 0x1e6   :  { %4554 = vmatmul.mubr.msk.bf16.gmra.mrb[64].mxu0 %vm1483_vm4, %v2069_v21  ;;  %4467 = vmatprep.subr.bf16.mxu1 %v6896_v22  ;;  %v2554_v21 = vsel %vm2543_vm7, %v2551_v56, %v2553_v18  ;;  %v6900_v56 = vrot.slane %v5586_v12, 6 }
 0x1e7   :  { %4557 = vmatprep.mubr.msk.bf16.mxu0 %vm5004_vm3, %v6896_v22 }
 0x1e9   :  { %4468 = vmatpush3.bf16.msra.mxu1 %v4981_v6  ;;  %v2555_v6 = vrot.slane %v5484_v51, 6 }
 0x1ea   :  { %4469 = vmatprep.subr.bf16.mxu1 %v6896_v22 }
 0x1eb   :  { %v2556_v27 = vsel %vm2543_vm7, %v2553_v18, %v2555_v6  ;;  %v1830_v18 = vrot.slane %v5449_v23, 1 }
 0x1ec   :  { %4426 = vmatmul.mubr.msk.bf16.gmra.mrb[36].mxu1 %vm1483_vm4, %v5391_v35 }
 0x1ed   :  { %4429 = vmatprep.mubr.msk.bf16.mxu1 %vm5004_vm3, %v6896_v22  ;;  %4470 = vmatpush3.bf16.msra.mxu1 %v4985_v31  ;;  %v2557_v31 = vrot.slane %v5480_v49, 6 }
 0x1ee   :  { %4558 = vmatmul.mubr.msk.bf16.gmra.mrb[68].mxu0 %vm1483_vm4, %v2071_v43  ;;  %4471 = vmatprep.subr.bf16.mxu1 %v6896_v22 }
 0x1ef   :  { %4561 = vmatprep.mubr.msk.bf16.mxu0 %vm5004_vm3, %v6896_v22  ;;  %v2558_v43 = vsel %vm2543_vm7, %v2555_v6, %v2557_v31  ;;  %v1832_v6 = vrot.slane %v5444_v2, 1 }
 0x1f1   :  { %4472 = vmatpush3.bf16.msra.mxu1 %v4986_v15  ;;  %v1823_v15 = vrot.slane %v5393_v36, 1  ;;  %v4989_v36 = vld [vmem:[%s6886_s3 + $0x88] sm:$0xff]  }
 0x1f2   :  { %4569 = vmatprep.subr.bf16.mxu1 %v6896_v22 }
 0x1f3   :  { %v1825_v48 = vsel %vm713_vm1, %v1823_v15, %v1824_v40 }
 0x1f4   :  { %4430 = vmatmul.mubr.msk.bf16.gmra.mrb[40].mxu1 %vm1483_vm4, %v5417_v53 }
 0x1f5   :  { %4433 = vmatprep.mubr.msk.bf16.mxu1 %vm5004_vm3, %v6896_v22 }
 0x1f6   :  { %4562 = vmatmul.mubr.msk.bf16.gmra.mrb[72].mxu0 %vm1483_vm4, %v2073_v13  ;;  %v4987_v13 = vld [vmem:[%s6886_s3 + $0x80] sm:$0xff]  }
 0x1f7   :  { %4565 = vmatprep.mubr.msk.bf16.mxu0 %vm5004_vm3, %v6896_v22 }
 0x1fc   :  { %4434 = vmatmul.mubr.msk.bf16.gmra.mrb[44].mxu1 %vm1483_vm4, %v5412_v57 }
 0x1fd   :  { %4437 = vmatprep.mubr.msk.bf16.mxu1 %vm5004_vm3, %v6896_v22 }
 0x1fe   :  { %4566 = vmatmul.mubr.msk.bf16.gmra.mrb[76].mxu0 %vm1483_vm4, %v5632_v45  ;;  %v4990_v45 = vld [vmem:[%s6886_s3 + $0xe8] sm:$0xff]  }
 0x1ff   :  { %4629 = vmatprep.mubr.msk.bf16.mxu0 %vm5004_vm3, %v6896_v22 }
 0x204   :  { %4438 = vmatmul.mubr.msk.bf16.gmra.mrb[48].mxu1 %vm1483_vm4, %v5449_v23 }
 0x205   :  { %4441 = vmatprep.mubr.msk.bf16.mxu1 %vm5004_vm3, %v6896_v22 }
 0x206   :  { %4630 = vmatmul.mubr.msk.bf16.vlgmr.msra.gmra.mrb[80].mxu0 %vm1483_vm4, %v2546_v55  ;;  %v1826_v55 = vrot.slane %v5417_v53, 1 }
 0x207   :  { %4633 = vmatprep.mubr.msk.bf16.mxu0 %vm5004_vm3, %v6896_v22  ;;  %4726 = vmatpush3.bf16.msra.mxu0 %v4988_v60  ;;  %v2560_v60 = vsel %vm2543_vm7, %v2557_v31, %v2559_v63  ;;  %v1834_v31 = vrot.slane %v5484_v51, 1 }
 0x208   :  { %4727 = vmatprep.subr.bf16.mxu0 %v6896_v22 }
 0x20b   :  { %4728 = vmatpush3.bf16.msra.mxu0 %v4990_v45  ;;  %v2561_v45 = vrot.slane %v5521_v25, 6 }
 0x20c   :  { %4442 = vmatmul.mubr.msk.bf16.gmra.mrb[52].mxu1 %vm1483_vm4, %v5444_v2  ;;  %4729 = vmatprep.subr.bf16.mxu0 %v6896_v22 }
 0x20d   :  { %4445 = vmatprep.mubr.msk.bf16.mxu1 %vm5004_vm3, %v6896_v22 }
 0x20e   :  { %4634 = vmatmul.mubr.msk.bf16.gmra.mrb[84].mxu0 %vm1483_vm4, %v2548_v19  ;;  %v2562_v19 = vsel %vm2543_vm7, %v2559_v63, %v2561_v45 }
 0x20f   :  { %4637 = vmatprep.mubr.msk.bf16.mxu0 %vm5004_vm3, %v6896_v22  ;;  %4730 = vmatpush3.bf16.msra.mxu0 %v4991_v46  ;;  %v1827_v46 = vsel %vm713_vm1, %v1824_v40, %v1826_v55 }
 0x210   :  { %4731 = vmatprep.subr.bf16.mxu0 %v6896_v22 }
 0x213   :  { %4732 = vmatpush3.bf16.msra.mxu0 %v4992_v4  ;;  %v4994_v4 = vld [vmem:[%s6886_s3 + $0x98] sm:$0xff]  }
 0x214   :  { %4446 = vmatmul.mubr.msk.bf16.gmra.mrb[56].mxu1 %vm1483_vm4, %v5484_v51 }
 0x215   :  { %4449 = vmatprep.mubr.msk.bf16.mxu1 %vm5004_vm3, %v6896_v22 }
 0x216   :  { %4638 = vmatmul.mubr.msk.bf16.gmra.mrb[88].mxu0 %vm1483_vm4, %v2550_v16  ;;  %v1829_v16 = vsel %vm713_vm1, %v1826_v55, %v1828_v0 }
 0x217   :  { %4641 = vmatprep.mubr.msk.bf16.mxu0 %vm5004_vm3, %v6896_v22 }
 0x21c   :  { %4450 = vmatmul.mubr.msk.bf16.gmra.mrb[60].mxu1 %vm1483_vm4, %v5480_v49 }
 0x21d   :  { %4453 = vmatprep.mubr.msk.bf16.mxu1 %vm5004_vm3, %v6896_v22 }
 0x21e   :  { %4642 = vmatmul.mubr.msk.bf16.gmra.mrb[92].mxu0 %vm1483_vm4, %v2552_v37  ;;  %v2564_v37 = vsel %vm2543_vm7, %v2561_v45, %v6900_v56 }
 0x21f   :  { %4645 = vmatprep.mubr.msk.bf16.mxu0 %vm5004_vm3, %v6896_v22 }
 0x224   :  { %4454 = vmatmul.mubr.msk.bf16.gmra.mrb[64].mxu1 %vm1483_vm4, %v5525_v29 }
 0x225   :  { %4457 = vmatprep.mubr.msk.bf16.mxu1 %vm5004_vm3, %v6896_v22 }
 0x226   :  { %4646 = vmatmul.mubr.msk.bf16.gmra.mrb[96].mxu0 %vm1483_vm4, %v2554_v21  ;;  %v1831_v21 = vsel %vm713_vm1, %v1828_v0, %v1830_v18 }
 0x227   :  { %4649 = vmatprep.mubr.msk.bf16.mxu0 %vm5004_vm3, %v6896_v22 }
 0x22c   :  { %4458 = vmatmul.mubr.msk.bf16.gmra.mrb[68].mxu1 %vm1483_vm4, %v5521_v25 }
 0x22d   :  { %4461 = vmatprep.mubr.msk.bf16.mxu1 %vm5004_vm3, %v6896_v22 }
 0x22e   :  { %4650 = vmatmul.mubr.msk.bf16.gmra.mrb[100].mxu0 %vm1483_vm4, %v2556_v27  ;;  %v1833_v27 = vsel %vm713_vm1, %v1830_v18, %v1832_v6 }
 0x22f   :  { %4653 = vmatprep.mubr.msk.bf16.mxu0 %vm5004_vm3, %v6896_v22 }
 0x234   :  { %4462 = vmatmul.mubr.msk.bf16.gmra.mrb[72].mxu1 %vm1483_vm4, %v5586_v12 }
 0x235   :  { %4473 = vmatprep.mubr.msk.bf16.mxu1 %vm5004_vm3, %v6896_v22 }
 0x236   :  { %4654 = vmatmul.mubr.msk.bf16.gmra.mrb[104].mxu0 %vm1483_vm4, %v2558_v43  ;;  %v1836_v43 = vrot.slane %v5480_v49, 1 }
 0x237   :  { %4657 = vmatprep.mubr.msk.bf16.mxu0 %vm5004_vm3, %v6896_v22 }
 0x23c   :  { %4474 = vmatmul.mubr.msk.bf16.vlgmr.msra.gmra.mrb[76].mxu1 %vm1483_vm4, %v1825_v48 }
 0x23d   :  { %4570 = vmatpush3.bf16.msra.mxu1 %v4987_v13  ;;  %4477 = vmatprep.mubr.msk.bf16.mxu1 %vm5004_vm3, %v6896_v22  ;;  %v1837_v13 = vsel %vm713_vm1, %v1834_v31, %v1836_v43 }
 0x23e   :  { %4658 = vmatmul.mubr.msk.bf16.gmra.mrb[108].mxu0 %vm1483_vm4, %v2560_v60  ;;  %4571 = vmatprep.subr.bf16.mxu1 %v6896_v22 }
 0x23f   :  { %4661 = vmatprep.mubr.msk.bf16.mxu0 %vm5004_vm3, %v6896_v22 }
 0x241   :  { %4572 = vmatpush3.bf16.msra.mxu1 %v4989_v36 }
 0x242   :  { %4573 = vmatprep.subr.bf16.mxu1 %v6896_v22 }
 0x244   :  { %4478 = vmatmul.mubr.msk.bf16.gmra.mrb[80].mxu1 %vm1483_vm4, %v1827_v46 }
 0x245   :  { %4481 = vmatprep.mubr.msk.bf16.mxu1 %vm5004_vm3, %v6896_v22  ;;  %4574 = vmatpush3.bf16.msra.mxu1 %v4993_v26  ;;  %v1840_v26 = vrot.slane %v5521_v25, 1 }
 0x246   :  { %4662 = vmatmul.mubr.msk.bf16.gmra.mrb[112].mxu0 %vm1483_vm4, %v2562_v19  ;;  %4575 = vmatprep.subr.bf16.mxu1 %v6896_v22 }
 0x247   :  { %4665 = vmatprep.mubr.msk.bf16.mxu0 %vm5004_vm3, %v6896_v22 }
 0x249   :  { %4576 = vmatpush3.bf16.msra.mxu1 %v4994_v4 }
 0x24a   :  { %4673 = vmatprep.subr.bf16.mxu1 %v6896_v22 }
 0x24c   :  { %4482 = vmatmul.mubr.msk.bf16.gmra.mrb[84].mxu1 %vm1483_vm4, %v1829_v16 }
 0x24d   :  { %4485 = vmatprep.mubr.msk.bf16.mxu1 %vm5004_vm3, %v6896_v22 }
 0x24e   :  { %4666 = vmatmul.mubr.msk.bf16.gmra.mrb[116].mxu0 %vm1483_vm4, %v2564_v37 }
 0x24f   :  { %4669 = vmatprep.mubr.msk.bf16.mxu0 %vm5004_vm3, %v6896_v22 }
 0x254   :  { %4486 = vmatmul.mubr.msk.bf16.gmra.mrb[88].mxu1 %vm1483_vm4, %v1831_v21  ;;  %v1842_v21 = vrot.slane %v5586_v12, 1 }
 0x255   :  { %4489 = vmatprep.mubr.msk.bf16.mxu1 %vm5004_vm3, %v6896_v22 }
 0x256   :  { %4670 = vmatmul.mubr.msk.bf16.gmra.mrb[120].mxu0 %vm1483_vm4, %v5638_v52  ;;  %v1835_v52 = vsel %vm713_vm1, %v1832_v6, %v1834_v31 }
 0x257   :  { %4733 = vmatprep.mubr.msk.bf16.mxu0 %vm5004_vm3, %v6896_v22 }
 0x25c   :  { %4490 = vmatmul.mubr.msk.bf16.gmra.mrb[92].mxu1 %vm1483_vm4, %v1833_v27 }
 0x25d   :  { %4493 = vmatprep.mubr.msk.bf16.mxu1 %vm5004_vm3, %v6896_v22 }
 0x25e   :  { %4734 = vmatmul.mubr.msk.bf16.vlgmr.msra.gmra.mrb[124].mxu0 %vm1483_vm4, %v5599_v30 }
 0x25f   :  { %4737 = vmatprep.mubr.msk.bf16.mxu0 %vm5004_vm3, %v6896_v22 }
 0x264   :  { %4494 = vmatmul.mubr.msk.bf16.gmra.mrb[96].mxu1 %vm1483_vm4, %v1835_v52 }
 0x265   :  { %4497 = vmatprep.mubr.msk.bf16.mxu1 %vm5004_vm3, %v6896_v22 }
 0x266   :  { %4738 = vmatmul.mubr.msk.bf16.gmra.mrb[128].mxu0 %vm1483_vm4, %v5641_v32  ;;  %v1838_v32 = vrot.slane %v5525_v29, 1 }
 0x267   :  { %4741 = vmatprep.mubr.msk.bf16.mxu0 %vm5004_vm3, %v6896_v22 }
 0x268   :  { %v1839_v55 = vsel %vm713_vm1, %v1836_v43, %v1838_v32  ;;  %v1841_v37 = vsel %vm713_vm1, %v1838_v32, %v1840_v26 }
 0x269   :  { %v6026_v30 = vpop.f32.mrb[24].mxu0 }
 0x26a   :  { %v4371_v15 = vpop.f32.mrb[25].mxu0 }
 0x26b   :  { %v6028_v40 = vpop.f32.mrb[26].mxu0 }
 0x26c   :  { %v4372_v63 = vpop.f32.mrb[27].mxu0  ;;  %4498 = vmatmul.mubr.msk.bf16.gmra.mrb[100].mxu1 %vm1483_vm4, %v1837_v13  ;;  %v1843_v13 = vsel %vm713_vm1, %v1840_v26, %v1842_v21 }
 0x26d   :  { %4501 = vmatprep.mubr.msk.bf16.mxu1 %vm5004_vm3, %v6896_v22 }
 0x26e   :  { %4742 = vmatmul.mubr.msk.bf16.gmra.mrb[132].mxu0 %vm1483_vm4, %v5654_v58 }
 0x26f   :  { %4745 = vmatprep.mubr.msk.bf16.mxu0 %vm5004_vm3, %v6896_v22 }
 0x271   :  { %v6039_v48 = vpop.f32.mrb[28].mxu0 }
 0x272   :  { %v4375_v60 = vpop.f32.mrb[29].mxu0 }
 0x273   :  { %v6041_v36 = vpop.f32.mrb[30].mxu0 }
 0x274   :  { %v4376_v45 = vpop.f32.mrb[31].mxu0  ;;  %4502 = vmatmul.mubr.msk.bf16.gmra.mrb[104].mxu1 %vm1483_vm4, %v1839_v55 }
 0x275   :  { %4505 = vmatprep.mubr.msk.bf16.mxu1 %vm5004_vm3, %v6896_v22 }
 0x276   :  { %4746 = vmatmul.mubr.msk.bf16.gmra.mrb[136].mxu0 %vm1483_vm4, %v5679_v39 }
 0x277   :  { %v6049_v58 = vpop.f32.mrb[0].mxu1  ;;  %4749 = vmatprep.mubr.msk.bf16.mxu0 %vm5004_vm3, %v6896_v22 }
 0x278   :  { %v4383_v46 = vpop.f32.mrb[1].mxu1 }
 0x279   :  { %v6054_v19 = vpop.f32.mrb[32].mxu0  ;;  %v6056_v4 = vpop.f32.mrb[2].mxu1 }
 0x27a   :  { %v4379_v0 = vpop.f32.mrb[33].mxu0  ;;  %v4384_v16 = vpop.f32.mrb[3].mxu1 }
 0x27b   :  { %v6058_v56 = vpop.f32.mrb[34].mxu0 }
 0x27c   :  { %v4380_v18 = vpop.f32.mrb[35].mxu0  ;;  %4506 = vmatmul.mubr.msk.bf16.gmra.mrb[108].mxu1 %vm1483_vm4, %v1841_v37 }
 0x27d   :  { %4509 = vmatprep.mubr.msk.bf16.mxu1 %vm5004_vm3, %v6896_v22 }
 0x27e   :  { %4750 = vmatmul.mubr.msk.bf16.gmra.mrb[140].mxu0 %vm1483_vm4, %v5686_v1 }
 0x27f   :  { %v6066_v39 = vpop.f32.mrb[4].mxu1  ;;  %4753 = vmatprep.mubr.msk.bf16.mxu0 %vm5004_vm3, %v6896_v22 }
 0x280   :  { %v4387_v6 = vpop.f32.mrb[5].mxu1 }
 0x281   :  { %v6071_v27 = vpop.f32.mrb[6].mxu1  ;;  %v6073_v31 = vpop.f32.mrb[36].mxu0 }
 0x282   :  { %v4388_v52 = vpop.f32.mrb[7].mxu1  ;;  %v4527_v43 = vpop.f32.mrb[37].mxu0 }
 0x283   :  { %v6075_v15 = vpop.f32.mrb[38].mxu0 }
 0x284   :  { %4510 = vmatmul.mubr.msk.bf16.gmra.mrb[112].mxu1 %vm1483_vm4, %v1843_v13  ;;  %v4528_v1 = vpop.f32.mrb[39].mxu0 }
 0x285   :  { %4513 = vmatprep.mubr.msk.bf16.mxu1 %vm5004_vm3, %v6896_v22 }
 0x286   :  { %4754 = vmatmul.mubr.msk.bf16.gmra.mrb[144].mxu0 %vm1483_vm4, %v5692_v61 }
 0x287   :  { %v6083_v63 = vpop.f32.mrb[8].mxu1  ;;  %4757 = vmatprep.mubr.msk.bf16.mxu0 %vm5004_vm3, %v6896_v22 }
 0x288   :  { %v4391_v32 = vpop.f32.mrb[9].mxu1 }
 0x289   :  { %v6087_v60 = vpop.f32.mrb[10].mxu1  ;;  %v6089_v55 = vpop.f32.mrb[40].mxu0 }
 0x28a   :  { %v4392_v45 = vpop.f32.mrb[11].mxu1  ;;  %v4531_v26 = vpop.f32.mrb[41].mxu0 }
 0x28b   :  { %v6091_v46 = vpop.f32.mrb[42].mxu0  ;;  %v4997_v26 = vld [vmem:[%s6886_s3 + $0xd0] sm:$0xff]  }
 0x28c   :  { %4514 = vmatmul.mubr.msk.bf16.gmra.mrb[116].mxu1 %vm1483_vm4, %v1842_v21  ;;  %v4532_v0 = vpop.f32.mrb[43].mxu0  ;;  %v4995_v21 = vld [vmem:[%s6886_s3 + $0xc0] sm:$0xff]  }
 0x28d   :  { %4577 = vmatprep.mubr.msk.bf16.mxu1 %vm5004_vm3, %v6896_v22 }
 0x28e   :  { %4758 = vmatmul.mubr.msk.bf16.gmra.mrb[148].mxu0 %vm1483_vm4, %v5695_v33  ;;  %v4996_v33 = vld [vmem:[%s6886_s3 + $0xc8] sm:$0xff]  }
 0x28f   :  { %v6098_v61 = vpop.f32.mrb[12].mxu1  ;;  %4761 = vmatprep.mubr.msk.bf16.mxu0 %vm5004_vm3, %v6896_v22 }
 0x290   :  { %v4395_v16 = vpop.f32.mrb[13].mxu1 }
 0x291   :  { %v6102_v37 = vpop.f32.mrb[14].mxu1  ;;  %v6104_v18 = vpop.f32.mrb[44].mxu0 }
 0x292   :  { %v4396_v6 = vpop.f32.mrb[15].mxu1  ;;  %v4535_v52 = vpop.f32.mrb[45].mxu0 }
 0x293   :  { %v6109_v43 = vpop.f32.mrb[46].mxu0  ;;  %v4998_v6 = vld [vmem:[%s6886_s3 + $0xd8] sm:$0xff]  }
 0x294   :  { %v4536_v13 = vpop.f32.mrb[47].mxu0  ;;  %4578 = vmatmul.mubr.msk.bf16.vlgmr.msra.gmra.mrb[120].mxu1 %vm1483_vm4, %v5703_v24 }
 0x295   :  { %4674 = vmatpush3.bf16.msra.mxu1 %v4995_v21  ;;  %4581 = vmatprep.mubr.msk.bf16.mxu1 %vm5004_vm3, %v6896_v22 }
 0x296   :  { %4762 = vmatmul.mubr.msk.bf16.gmra.mrb[152].mxu0 %vm1483_vm4, %v5710_v7  ;;  %4675 = vmatprep.subr.bf16.mxu1 %v6896_v22 }
 0x297   :  { %v6121_v1 = vpop.f32.mrb[16].mxu1  ;;  %4765 = vmatprep.mubr.msk.bf16.mxu0 %vm5004_vm3, %v6896_v22 }
 0x298   :  { %v4399_v32 = vpop.f32.mrb[17].mxu1 }
 0x299   :  { %v6125_v24 = vpop.f32.mrb[18].mxu1  ;;  %v6127_v45 = vpop.f32.mrb[48].mxu0  ;;  %4676 = vmatpush3.bf16.msra.mxu1 %v4996_v33 }
 0x29a   :  { %v4400_v0 = vpop.f32.mrb[19].mxu1  ;;  %v4539_v16 = vpop.f32.mrb[49].mxu0  ;;  %4677 = vmatprep.subr.bf16.mxu1 %v6896_v22 }
 0x29b   :  { %v6133_v7 = vpop.f32.mrb[50].mxu0 }
 0x29c   :  { %v4540_v21 = vpop.f32.mrb[51].mxu0  ;;  %4582 = vmatmul.mubr.msk.bf16.gmra.mrb[124].mxu1 %vm1483_vm4, %v5716_v3 }
 0x29d   :  { %4585 = vmatprep.mubr.msk.bf16.mxu1 %vm5004_vm3, %v6896_v22  ;;  %4678 = vmatpush3.bf16.msra.mxu1 %v4997_v26 }
 0x29e   :  { %4766 = vmatmul.mubr.msk.bf16.gmra.mrb[156].mxu0 %vm1483_vm4, %v5722_v44  ;;  %4679 = vmatprep.subr.bf16.mxu1 %v6896_v22 }
 0x29f   :  { %v6145_v52 = vpop.f32.mrb[20].mxu1  ;;  %4769 = vmatprep.mubr.msk.bf16.mxu0 %vm5004_vm3, %v6896_v22 }
 0x2a0   :  { %v4403_v13 = vpop.f32.mrb[21].mxu1 }
 0x2a1   :  { %v6149_v3 = vpop.f32.mrb[22].mxu1  ;;  %v6151_v33 = vpop.f32.mrb[52].mxu0  ;;  %4680 = vmatpush3.bf16.msra.mxu1 %v4998_v6 }
 0x2a2   :  { %v4404_v32 = vpop.f32.mrb[23].mxu1  ;;  %v4543_v26 = vpop.f32.mrb[53].mxu0  ;;  %4777 = vmatprep.subr.bf16.mxu1 %v6896_v22 }
 0x2a3   :  { %v6154_v0 = vpop.f32.mrb[54].mxu0 }
 0x2a4   :  { %v4544_v44 = vpop.f32.mrb[55].mxu0  ;;  %4586 = vmatmul.mubr.msk.bf16.gmra.mrb[128].mxu1 %vm1483_vm4, %v5727_v41 }
 0x2a5   :  { %4589 = vmatprep.mubr.msk.bf16.mxu1 %vm5004_vm3, %v6896_v22 }
 0x2a6   :  { %4770 = vmatmul.mubr.msk.bf16.gmra.mrb[160].mxu0 %vm1483_vm4, %v5742_v10 }
 0x2a7   :  { %v6162_v16 = vpop.f32.mrb[24].mxu1  ;;  %4773 = vmatprep.mubr.msk.bf16.mxu0 %vm5004_vm3, %v6896_v22 }
 0x2a8   :  { %v4407_v21 = vpop.f32.mrb[25].mxu1 }
 0x2a9   :  { %v6166_v6 = vpop.f32.mrb[26].mxu1  ;;  %v6168_v13 = vpop.f32.mrb[56].mxu0 }
 0x2aa   :  { %v4408_v32 = vpop.f32.mrb[27].mxu1  ;;  %v4547_v26 = vpop.f32.mrb[57].mxu0 }
 0x2ab   :  { %v6170_v44 = vpop.f32.mrb[58].mxu0 }
 0x2ac   :  { %v4548_v41 = vpop.f32.mrb[59].mxu0  ;;  %4590 = vmatmul.mubr.msk.bf16.gmra.mrb[132].mxu1 %vm1483_vm4, %v5736_v14 }
 0x2ad   :  { %4593 = vmatprep.mubr.msk.bf16.mxu1 %vm5004_vm3, %v6896_v22 }
 0x2ae   :  { %4774 = vmatmul.mubr.msk.bf16.gmra.mrb[164].mxu0 %vm1483_vm4, %v5731_v17 }
 0x2af   :  { %v6178_v10 = vpop.f32.mrb[28].mxu1 }
 0x2b0   :  { %v4411_v21 = vpop.f32.mrb[29].mxu1 }
 0x2b1   :  { %v1634_v42 = vpop.f32.mrb[30].mxu1  ;;  %v6180_v8 = vpop.f32.mrb[60].mxu0 }
 0x2b2   :  { %v4412_v32 = vpop.f32.mrb[31].mxu1  ;;  %v4551_v26 = vpop.f32.mrb[61].mxu0 }
 0x2b3   :  { %v6182_v59 = vpop.f32.mrb[62].mxu0 }
 0x2b4   :  { %6901 = vst [vmem:[#allocation3_spill] sm:$0xff] %v6182_v59  ;;  %v4552_v41 = vpop.f32.mrb[63].mxu0  ;;  %4594 = vmatmul.mubr.msk.bf16.gmra.mrb[136].mxu1 %vm1483_vm4, %v5745_v20 }
 0x2b5   :  { %4597 = vmatprep.mubr.msk.bf16.mxu1 %vm5004_vm3, %v6896_v22 }
 0x2b7   :  { %v1717_v14 = vpop.f32.mrb[32].mxu1 }
 0x2b8   :  { %v6189_v17 = vadd.f32 %v1717_v14, %v6026_v30  ;;  %v4423_v47 = vpop.f32.mrb[33].mxu1 }
 0x2b9   :  { %v1720_v21 = vpop.f32.mrb[34].mxu1  ;;  %v6191_v42 = vpop.f32.mrb[64].mxu0 }
 0x2ba   :  { %6902 = vst [vmem:[#allocation4_spill] sm:$0xff] %v6191_v42  ;;  %v6194_v32 = vadd.f32 %v1720_v21, %v6028_v40  ;;  %v4424_v26 = vpop.f32.mrb[35].mxu1  ;;  %v4555_v38 = vpop.f32.mrb[65].mxu0 }
 0x2bb   :  { %v6196_v41 = vpop.f32.mrb[66].mxu0 }
 0x2bc   :  { %v4556_v59 = vpop.f32.mrb[67].mxu0  ;;  %4598 = vmatmul.mubr.msk.bf16.gmra.mrb[140].mxu1 %vm1483_vm4, %v5751_v50 }
 0x2bd   :  { %4601 = vmatprep.mubr.msk.bf16.mxu1 %vm5004_vm3, %v6896_v22 }
 0x2bf   :  { %v1725_v20 = vpop.f32.mrb[36].mxu1 }
 0x2c0   :  { %v6203_v47 = vadd.f32 %v1725_v20, %v6039_v48  ;;  %v4427_v30 = vpop.f32.mrb[37].mxu1 }
 0x2c1   :  { %v1728_v14 = vpop.f32.mrb[38].mxu1  ;;  %v6205_v42 = vpop.f32.mrb[68].mxu0 }
 0x2c2   :  { %6903 = vst [vmem:[#allocation5_spill] sm:$0xff] %v6205_v42  ;;  %v6208_v40 = vadd.f32 %v1728_v14, %v6041_v36  ;;  %v4428_v38 = vpop.f32.mrb[39].mxu1  ;;  %v4559_v21 = vpop.f32.mrb[69].mxu0 }
 0x2c3   :  { %v6210_v59 = vpop.f32.mrb[70].mxu0 }
 0x2c4   :  { %v4560_v26 = vpop.f32.mrb[71].mxu0  ;;  %4602 = vmatmul.mubr.msk.bf16.gmra.mrb[144].mxu1 %vm1483_vm4, %v5758_v5 }
 0x2c5   :  { %4605 = vmatprep.mubr.msk.bf16.mxu1 %vm5004_vm3, %v6896_v22 }
 0x2c7   :  { %v1733_v50 = vpop.f32.mrb[40].mxu1 }
 0x2c8   :  { %v6217_v48 = vadd.f32 %v1733_v50, %v6054_v19  ;;  %v4431_v20 = vpop.f32.mrb[41].mxu1 }
 0x2c9   :  { %v1736_v30 = vpop.f32.mrb[42].mxu1  ;;  %v6219_v42 = vpop.f32.mrb[72].mxu0 }
 0x2ca   :  { %6904 = vst [vmem:[#allocation6_spill] sm:$0xff] %v6219_v42  ;;  %v6222_v36 = vadd.f32 %v1736_v30, %v6058_v56  ;;  %v4432_v14 = vpop.f32.mrb[43].mxu1  ;;  %v4563_v38 = vpop.f32.mrb[73].mxu0 }
 0x2cb   :  { %v6224_v21 = vpop.f32.mrb[74].mxu0 }
 0x2cc   :  { %v4564_v26 = vpop.f32.mrb[75].mxu0  ;;  %4606 = vmatmul.mubr.msk.bf16.gmra.mrb[148].mxu1 %vm1483_vm4, %v5764_v11 }
 0x2cd   :  { %4609 = vmatprep.mubr.msk.bf16.mxu1 %vm5004_vm3, %v6896_v22 }
 0x2cf   :  { %v1741_v5 = vpop.f32.mrb[44].mxu1 }
 0x2d0   :  { %v6231_v19 = vadd.f32 %v1741_v5, %v6049_v58  ;;  %v4435_v50 = vpop.f32.mrb[45].mxu1 }
 0x2d1   :  { %v1744_v20 = vpop.f32.mrb[46].mxu1  ;;  %v6233_v42 = vpop.f32.mrb[76].mxu0 }
 0x2d2   :  { %6905 = vst [vmem:[#allocation7_spill] sm:$0xff] %v6233_v42  ;;  %v6236_v56 = vadd.f32 %v1744_v20, %v6056_v4  ;;  %v4436_v30 = vpop.f32.mrb[47].mxu1  ;;  %v4567_v14 = vpop.f32.mrb[77].mxu0 }
 0x2d3   :  { %v2250_v38 = vpop.f32.mrb[78].mxu0 }
 0x2d4   :  { %v4568_v26 = vpop.f32.mrb[79].mxu0  ;;  %4610 = vmatmul.mubr.msk.bf16.gmra.mrb[152].mxu1 %vm1483_vm4, %v5770_v28 }
 0x2d5   :  { %4613 = vmatprep.mubr.msk.bf16.mxu1 %vm5004_vm3, %v6896_v22 }
 0x2d7   :  { %v1749_v11 = vpop.f32.mrb[48].mxu1 }
 0x2d8   :  { %v6243_v58 = vadd.f32 %v1749_v11, %v6066_v39  ;;  %v4439_v5 = vpop.f32.mrb[49].mxu1 }
 0x2d9   :  { %v1752_v50 = vpop.f32.mrb[50].mxu1  ;;  %v6245_v42 = vpop.f32.mrb[80].mxu0 }
 0x2da   :  { %6906 = vst [vmem:[#allocation8_spill] sm:$0xff] %v6245_v42  ;;  %v6248_v4 = vadd.f32 %v1752_v50, %v6071_v27  ;;  %v4440_v20 = vpop.f32.mrb[51].mxu1  ;;  %v4631_v30 = vpop.f32.mrb[81].mxu0 }
 0x2db   :  { %v6250_v14 = vpop.f32.mrb[82].mxu0 }
 0x2dc   :  { %6907 = vst [vmem:[#allocation9_spill] sm:$0xff] %v6250_v14  ;;  %4614 = vmatmul.mubr.msk.bf16.gmra.mrb[156].mxu1 %vm1483_vm4, %v5777_v34  ;;  %v4632_v28 = vpop.f32.mrb[83].mxu0 }
 0x2dd   :  { %4617 = vmatprep.mubr.msk.bf16.mxu1 %vm5004_vm3, %v6896_v22  ;;  %v2776_v28 = vrot.slane %v5417_v53, 2 }
 0x2df   :  { %v1757_v39 = vpop.f32.mrb[52].mxu1 }
 0x2e0   :  { %v6257_v38 = vadd.f32 %v1757_v39, %v6083_v63  ;;  %v4443_v26 = vpop.f32.mrb[53].mxu1 }
 0x2e1   :  { %v1760_v11 = vpop.f32.mrb[54].mxu1  ;;  %v6259_v5 = vpop.f32.mrb[84].mxu0 }
 0x2e2   :  { %6908 = vst [vmem:[#allocation10_spill] sm:$0xff] %v6259_v5  ;;  %v6262_v27 = vadd.f32 %v1760_v11, %v6087_v60  ;;  %v4444_v50 = vpop.f32.mrb[55].mxu1  ;;  %v4635_v20 = vpop.f32.mrb[85].mxu0 }
 0x2e3   :  { %v6264_v30 = vpop.f32.mrb[86].mxu0  ;;  %v2775_v50 = vrot.slane %v5391_v35, 2 }
 0x2e4   :  { %6909 = vst [vmem:[#allocation11_spill] sm:$0xff] %v6264_v30  ;;  %4618 = vmatmul.mubr.msk.bf16.gmra.mrb[160].mxu1 %vm1483_vm4, %v5780_v54  ;;  %v4636_v34 = vpop.f32.mrb[87].mxu0  ;;  %v4999_v54 = vld [vmem:[%s6886_s3 + $0x100] sm:$0xff]  }
 0x2e5   :  { %4681 = vmatprep.mubr.msk.bf16.mxu1 %vm5004_vm3, %v6896_v22 }
 0x2e7   :  { %v1765_v63 = vpop.f32.mrb[56].mxu1 }
 0x2e8   :  { %v6272_v39 = vadd.f32 %v1765_v63, %v6098_v61  ;;  %v4447_v26 = vpop.f32.mrb[57].mxu1  ;;  %v2777_v61 = vsel %vm2774_vm9, %v2775_v50, %v2776_v28 }
 0x2e9   :  { %v1768_v60 = vpop.f32.mrb[58].mxu1  ;;  %v6274_v11 = vpop.f32.mrb[88].mxu0  ;;  %v6912_v26 = vmov 0.0  }
 0x2ea   :  { %6910 = vst [vmem:[#allocation12_spill] sm:$0xff] %v6274_v11  ;;  %v6281_v20 = vadd.f32 %v1768_v60, %v6102_v37  ;;  %v4448_v34 = vpop.f32.mrb[59].mxu1  ;;  %v4639_v22 = vpop.f32.mrb[89].mxu0  ;;  %v5000_v11 = vld [vmem:[%s6886_s3 + $0x108] sm:$0xff]  }
 0x2eb   :  { %v6283_v30 = vpop.f32.mrb[90].mxu0  ;;  %v2778_v22 = vrot.slane %v5412_v57, 2 }
 0x2ec   :  { %6911 = vst [vmem:[#allocation13_spill] sm:$0xff] %v6283_v30  ;;  %v4640_v63 = vpop.f32.mrb[91].mxu0  ;;  %4682 = vmatmul.mubr.msk.bf16.vlgmr.msra.gmra.mrb[164].mxu1 %vm1483_vm4, %v2777_v61 }
 0x2ed   :  { %4778 = vmatpush3.bf16.msra.mxu1 %v4999_v54  ;;  %4685 = vmatprep.mubr.msk.bf16.mxu1 %vm5004_vm3, %v6912_v26  ;;  %v5001_v54 = vld [vmem:[%s6886_s3 + $0x110] sm:$0xff]  }
 0x2ee   :  { %4779 = vmatprep.subr.bf16.mxu1 %v6912_v26 }
 0x2ef   :  { %v1773_v37 = vpop.f32.mrb[60].mxu1 }
 0x2f0   :  { %v6295_v60 = vadd.f32 %v1773_v37, %v6121_v1  ;;  %v4451_v50 = vpop.f32.mrb[61].mxu1  ;;  %v2779_v1 = vsel %vm2774_vm9, %v2776_v28, %v2778_v22 }
 0x2f1   :  { %v1776_v34 = vpop.f32.mrb[62].mxu1  ;;  %v6297_v63 = vpop.f32.mrb[92].mxu0  ;;  %4780 = vmatpush3.bf16.msra.mxu1 %v5000_v11 }
 0x2f2   :  { %6913 = vst [vmem:[#allocation14_spill] sm:$0xff] %v6297_v63  ;;  %v6303_v61 = vadd.f32 %v1776_v34, %v6125_v24  ;;  %v4452_v30 = vpop.f32.mrb[63].mxu1  ;;  %v4643_v5 = vpop.f32.mrb[93].mxu0  ;;  %4781 = vmatprep.subr.bf16.mxu1 %v6912_v26  ;;  %v5002_v24 = vld [vmem:[%s6886_s3 + $0x118] sm:$0xff]  }
 0x2f3   :  { %v6306_v14 = vpop.f32.mrb[94].mxu0  ;;  %v2780_v30 = vrot.slane %v5449_v23, 2 }
 0x2f4   :  { %6914 = vst [vmem:[#allocation15_spill] sm:$0xff] %v6306_v14  ;;  %v4644_v37 = vpop.f32.mrb[95].mxu0  ;;  %4686 = vmatmul.mubr.msk.bf16.gmra.mrb[168].mxu1 %vm1483_vm4, %v2779_v1 }
 0x2f5   :  { %4689 = vmatprep.mubr.msk.bf16.mxu1 %vm5004_vm3, %v6912_v26  ;;  %4782 = vmatpush3.bf16.msra.mxu1 %v5001_v54  ;;  %v2781_v63 = vsel %vm2774_vm9, %v2778_v22, %v2780_v30 }
 0x2f6   :  { %4783 = vmatprep.subr.bf16.mxu1 %v6912_v26 }
 0x2f7   :  { %v1781_v5 = vpop.f32.mrb[64].mxu1 }
 0x2f8   :  { %v6318_v11 = vadd.f32 %v1781_v5, %v6145_v52  ;;  %v4455_v28 = vpop.f32.mrb[65].mxu1  ;;  %v2782_v5 = vrot.slane %v5444_v2, 2 }
 0x2f9   :  { %v1784_v50 = vpop.f32.mrb[66].mxu1  ;;  %v6320_v34 = vpop.f32.mrb[96].mxu0  ;;  %4784 = vmatpush3.bf16.msra.mxu1 %v5002_v24 }
 0x2fa   :  { %6915 = vst [vmem:[#allocation16_spill] sm:$0xff] %v6320_v34  ;;  %v6323_v1 = vadd.f32 %v1784_v50, %v6149_v3  ;;  %v4456_v54 = vpop.f32.mrb[67].mxu1  ;;  %v4647_v37 = vpop.f32.mrb[97].mxu0 }
 0x2fb   :  { %v6325_v14 = vpop.f32.mrb[98].mxu0 }
 0x2fc   :  { %6916 = vst [vmem:[#allocation17_spill] sm:$0xff] %v6325_v14  ;;  %v4648_v42 = vpop.f32.mrb[99].mxu0  ;;  %4690 = vmatmul.mubr.msk.bf16.gmra.mrb[172].mxu1 %vm1483_vm4, %v2781_v63  ;;  %v2783_v63 = vsel %vm2774_vm9, %v2780_v30, %v2782_v5 }
 0x2fd   :  { %4693 = vmatprep.mubr.msk.bf16.mxu1 %vm5004_vm3, %v6912_v26 }
 0x2ff   :  { %v1789_v52 = vpop.f32.mrb[68].mxu1 }
 0x300   :  { %v6333_v24 = vadd.f32 %v1789_v52, %v6162_v16  ;;  %v4459_v3 = vpop.f32.mrb[69].mxu1  ;;  %v2784_v52 = vrot.slane %v5484_v51, 2 }
 0x301   :  { %v1792_v28 = vpop.f32.mrb[70].mxu1  ;;  %v6335_v50 = vpop.f32.mrb[100].mxu0 }
 0x302   :  { %6917 = vst [vmem:[#allocation18_spill] sm:$0xff] %v6335_v50  ;;  %v6338_v54 = vadd.f32 %v1792_v28, %v6166_v6  ;;  %v4460_v22 = vpop.f32.mrb[71].mxu1  ;;  %v4651_v42 = vpop.f32.mrb[101].mxu0 }
 0x303   :  { %v6340_v37 = vpop.f32.mrb[102].mxu0 }
 0x304   :  { %6918 = vst [vmem:[#allocation19_spill] sm:$0xff] %v6340_v37  ;;  %v4652_v14 = vpop.f32.mrb[103].mxu0  ;;  %4694 = vmatmul.mubr.msk.bf16.gmra.mrb[176].mxu1 %vm1483_vm4, %v2783_v63 }
 0x305   :  { %4697 = vmatprep.mubr.msk.bf16.mxu1 %vm5004_vm3, %v6912_v26  ;;  %v2785_v14 = vsel %vm2774_vm9, %v2782_v5, %v2784_v52 }
 0x307   :  { %v1797_v16 = vpop.f32.mrb[72].mxu1 }
 0x308   :  { %v6348_v3 = vadd.f32 %v1797_v16, %v6178_v10  ;;  %v4463_v6 = vpop.f32.mrb[73].mxu1  ;;  %v2786_v10 = vrot.slane %v5480_v49, 2 }
 0x309   :  { %v1800_v28 = vpop.f32.mrb[74].mxu1  ;;  %v6350_v22 = vpop.f32.mrb[104].mxu0 }
 0x30a   :  { %6919 = vst [vmem:[#allocation20_spill] sm:$0xff] %v6350_v22  ;;  %v4464_v42 = vpop.f32.mrb[75].mxu1  ;;  %v4655_v37 = vpop.f32.mrb[105].mxu0 }
 0x30b   :  { %v6352_v50 = vpop.f32.mrb[106].mxu0 }
 0x30c   :  { %6920 = vst [vmem:[#allocation21_spill] sm:$0xff] %v6352_v50  ;;  %v4656_v30 = vpop.f32.mrb[107].mxu0  ;;  %4698 = vmatmul.mubr.msk.bf16.gmra.mrb[180].mxu1 %vm1483_vm4, %v2785_v14 }
 0x30d   :  { %4701 = vmatprep.mubr.msk.bf16.mxu1 %vm5004_vm3, %v6912_v26  ;;  %v2787_v30 = vsel %vm2774_vm9, %v2784_v52, %v2786_v10 }
 0x30f   :  { %v1935_v63 = vpop.f32.mrb[76].mxu1 }
 0x310   :  { %v2021_v16 = vadd.f32 %v1935_v63, %v6189_v17  ;;  %v4475_v6 = vpop.f32.mrb[77].mxu1 }
 0x311   :  { %v1938_v28 = vpop.f32.mrb[78].mxu1  ;;  %v6360_v22 = vpop.f32.mrb[108].mxu0 }
 0x312   :  { %v2022_v37 = vadd.f32 %v1938_v28, %v6194_v32  ;;  %v4476_v42 = vpop.f32.mrb[79].mxu1  ;;  %v4659_v50 = vpop.f32.mrb[109].mxu0  ;;  %v6364_v5 = vadd.f32 %v6073_v31, %v2021_v16  ;;  %v2788_v32 = vrot.slane %v5525_v29, 2 }
 0x313   :  { %v6366_v14 = vpop.f32.mrb[110].mxu0 }
 0x314   :  { %v4660_v34 = vpop.f32.mrb[111].mxu0  ;;  %4702 = vmatmul.mubr.msk.bf16.gmra.mrb[184].mxu1 %vm1483_vm4, %v2787_v30  ;;  %v6371_v17 = vadd.f32 %v6075_v15, %v2022_v37  ;;  %v2789_v37 = vsel %vm2774_vm9, %v2786_v10, %v2788_v32 }
 0x315   :  { %4705 = vmatprep.mubr.msk.bf16.mxu1 %vm5004_vm3, %v6912_v26 }
 0x317   :  { %v1943_v63 = vpop.f32.mrb[80].mxu1 }
 0x318   :  { %v2023_v50 = vadd.f32 %v1943_v63, %v6203_v47  ;;  %v4479_v31 = vpop.f32.mrb[81].mxu1 }
 0x319   :  { %v1946_v16 = vpop.f32.mrb[82].mxu1  ;;  %v6377_v6 = vpop.f32.mrb[112].mxu0 }
 0x31a   :  { %v2024_v52 = vadd.f32 %v1946_v16, %v6208_v40  ;;  %v4480_v34 = vpop.f32.mrb[83].mxu1  ;;  %v4663_v28 = vpop.f32.mrb[113].mxu0  ;;  %v6381_v42 = vadd.f32 %v6089_v55, %v2023_v50  ;;  %v2790_v40 = vrot.slane %v5521_v25, 2 }
 0x31b   :  { %v6383_v15 = vpop.f32.mrb[114].mxu0 }
 0x31c   :  { %v4664_v30 = vpop.f32.mrb[115].mxu0  ;;  %4706 = vmatmul.mubr.msk.bf16.gmra.mrb[188].mxu1 %vm1483_vm4, %v2789_v37  ;;  %v6388_v47 = vadd.f32 %v6091_v46, %v2024_v52  ;;  %v2791_v52 = vsel %vm2774_vm9, %v2788_v32, %v2790_v40 }
 0x31d   :  { %4709 = vmatprep.mubr.msk.bf16.mxu1 %vm5004_vm3, %v6912_v26 }
 0x31f   :  { %v1951_v63 = vpop.f32.mrb[84].mxu1 }
 0x320   :  { %v2025_v31 = vadd.f32 %v1951_v63, %v6217_v48  ;;  %v4483_v55 = vpop.f32.mrb[85].mxu1 }
 0x321   :  { %v1954_v50 = vpop.f32.mrb[86].mxu1  ;;  %v6394_v16 = vpop.f32.mrb[116].mxu0 }
 0x322   :  { %v2026_v10 = vadd.f32 %v1954_v50, %v6222_v36  ;;  %v4484_v34 = vpop.f32.mrb[87].mxu1  ;;  %v4667_v28 = vpop.f32.mrb[117].mxu0  ;;  %v6398_v37 = vadd.f32 %v6104_v18, %v2025_v31 }
 0x323   :  { %v6400_v46 = vpop.f32.mrb[118].mxu0 }
 0x324   :  { %v4668_v30 = vpop.f32.mrb[119].mxu0  ;;  %4710 = vmatmul.mubr.msk.bf16.gmra.mrb[192].mxu1 %vm1483_vm4, %v2791_v52  ;;  %v6405_v48 = vadd.f32 %v6109_v43, %v2026_v10  ;;  %v6921_v43 = vrot.slane %v5586_v12, 2 }
 0x325   :  { %4713 = vmatprep.mubr.msk.bf16.mxu1 %vm5004_vm3, %v6912_v26 }
 0x326   :  { %v2793_v10 = vsel %vm2774_vm9, %v2790_v40, %v6921_v43 }
 0x327   :  { %v1959_v63 = vpop.f32.mrb[88].mxu1 }
 0x328   :  { %v2027_v36 = vadd.f32 %v1959_v63, %v6231_v19  ;;  %v4487_v55 = vpop.f32.mrb[89].mxu1 }
 0x329   :  { %v1962_v50 = vpop.f32.mrb[90].mxu1  ;;  %v6410_v18 = vpop.f32.mrb[120].mxu0 }
 0x32a   :  { %v2028_v31 = vadd.f32 %v1962_v50, %v6236_v56  ;;  %v4488_v34 = vpop.f32.mrb[91].mxu1  ;;  %v4671_v32 = vpop.f32.mrb[121].mxu0  ;;  %v6414_v28 = vadd.f32 %v6127_v45, %v2027_v36 }
 0x32b   :  { %v2741_v52 = vpop.f32.mrb[122].mxu0 }
 0x32c   :  { %v4672_v30 = vpop.f32.mrb[123].mxu0  ;;  %4714 = vmatmul.mubr.msk.bf16.gmra.mrb[196].mxu1 %vm1483_vm4, %v2793_v10  ;;  %v6421_v19 = vadd.f32 %v6133_v7, %v2028_v31 }
 0x32d   :  { %4717 = vmatprep.mubr.msk.bf16.mxu1 %vm5004_vm3, %v6912_v26 }
 0x32f   :  { %v1967_v56 = vpop.f32.mrb[92].mxu1 }
 0x330   :  { %v2029_v63 = vadd.f32 %v1967_v56, %v6243_v58  ;;  %v4491_v55 = vpop.f32.mrb[93].mxu1 }
 0x331   :  { %v1970_v45 = vpop.f32.mrb[94].mxu1  ;;  %v6426_v36 = vpop.f32.mrb[124].mxu0 }
 0x332   :  { %v2030_v50 = vadd.f32 %v1970_v45, %v6248_v4  ;;  %v4492_v34 = vpop.f32.mrb[95].mxu1  ;;  %v4735_v40 = vpop.f32.mrb[125].mxu0  ;;  %v6430_v32 = vadd.f32 %v6151_v33, %v2029_v63 }
 0x333   :  { %v6432_v52 = vpop.f32.mrb[126].mxu0 }
 0x334   :  { %4718 = vmatmul.mubr.msk.bf16.gmra.mrb[200].mxu1 %vm1483_vm4, %v5796_v62  ;;  %v4736_v7 = vpop.f32.mrb[127].mxu0  ;;  %v6437_v31 = vadd.f32 %v6154_v0, %v2030_v50  ;;  %v6922_v0 = vrot.slane %v5578_v9, 2 }
 0x335   :  { %4721 = vmatprep.mubr.msk.bf16.mxu1 %vm5004_vm3, %v6912_v26 }
 0x337   :  { %v1975_v58 = vpop.f32.mrb[96].mxu1 }
 0x338   :  { %v2031_v4 = vadd.f32 %v1975_v58, %v6257_v38  ;;  %v4495_v43 = vpop.f32.mrb[97].mxu1  ;;  %v3255_v58 = vrot.slane %v5391_v35, 3 }
 0x339   :  { %v1978_v10 = vpop.f32.mrb[98].mxu1  ;;  %v6442_v30 = vpop.f32.mrb[128].mxu0 }
 0x33a   :  { %v2032_v33 = vadd.f32 %v1978_v10, %v6262_v27  ;;  %v4496_v56 = vpop.f32.mrb[99].mxu1  ;;  %v4739_v63 = vpop.f32.mrb[129].mxu0  ;;  %v6446_v62 = vadd.f32 %v6168_v13, %v2031_v4  ;;  %v3256_v27 = vrot.slane %v5417_v53, 3 }
 0x33b   :  { %v6448_v55 = vpop.f32.mrb[130].mxu0 }
 0x33c   :  { %4722 = vmatmul.mubr.msk.bf16.gmra.mrb[204].mxu1 %vm1483_vm4, %v6922_v0  ;;  %v4740_v45 = vpop.f32.mrb[131].mxu0  ;;  %v6454_v38 = vadd.f32 %v6170_v44, %v2032_v33  ;;  %v3257_v56 = vsel %vm3254_vm10, %v3255_v58, %v3256_v27  ;;  %v6924_v58 = vld [vmem:[#allocation4_spill] sm:$0xff] }
 0x33d   :  { %4785 = vmatprep.mubr.msk.bf16.mxu1 %vm5004_vm3, %v6912_v26 }
 0x33f   :  { %v1983_v50 = vpop.f32.mrb[100].mxu1 }
 0x340   :  { %v2033_v34 = vadd.f32 %v1983_v50, %v6272_v39  ;;  %v4499_v13 = vpop.f32.mrb[101].mxu1  ;;  %v6923_v39 = vld [vmem:[#allocation3_spill] sm:$0xff] }
 0x341   :  { %v1986_v40 = vpop.f32.mrb[102].mxu1  ;;  %v6460_v7 = vpop.f32.mrb[132].mxu0 }
 0x342   :  { %v2034_v4 = vadd.f32 %v1986_v40, %v6281_v20  ;;  %v4500_v43 = vpop.f32.mrb[103].mxu1  ;;  %v4743_v10 = vpop.f32.mrb[133].mxu0  ;;  %v6465_v44 = vadd.f32 %v6180_v8, %v2033_v34  ;;  %v3258_v20 = vrot.slane %v5412_v57, 3 }
 0x343   :  { %v6467_v33 = vpop.f32.mrb[134].mxu0 }
 0x344   :  { %v4744_v53 = vpop.f32.mrb[135].mxu0  ;;  %4786 = vmatmul.mubr.msk.bf16.vlgmr.msra.gmra.mrb[208].mxu1 %vm1483_vm4, %v3257_v56  ;;  %v6472_v63 = vadd.f32 %v6923_v39, %v2034_v4  ;;  %v3259_v10 = vsel %vm3254_vm10, %v3256_v27, %v3258_v20 }
 0x345   :  { %4789 = vmatprep.mubr.msk.bf16.mxu1 %vm5004_vm3, %v6912_v26 }
 0x347   :  { %v1991_v35 = vpop.f32.mrb[104].mxu1 }
 0x348   :  { %v2035_v0 = vadd.f32 %v1991_v35, %v6295_v60  ;;  %v4503_v8 = vpop.f32.mrb[105].mxu1 }
 0x349   :  { %v1994_v45 = vpop.f32.mrb[106].mxu1  ;;  %v6478_v50 = vpop.f32.mrb[136].mxu0 }
 0x34a   :  { %v2036_v34 = vadd.f32 %v1994_v45, %v6303_v61  ;;  %v4504_v13 = vpop.f32.mrb[107].mxu1  ;;  %v4747_v40 = vpop.f32.mrb[137].mxu0  ;;  %v6482_v43 = vadd.f32 %v6924_v58, %v2035_v0  ;;  %v3260_v61 = vrot.slane %v5449_v23, 3 }
 0x34b   :  { %v6484_v4 = vpop.f32.mrb[138].mxu0  ;;  %v6925_v13 = vld [vmem:[#allocation5_spill] sm:$0xff] }
 0x34c   :  { %v4748_v56 = vpop.f32.mrb[139].mxu0  ;;  %4790 = vmatmul.mubr.msk.bf16.gmra.mrb[212].mxu1 %vm1483_vm4, %v3259_v10  ;;  %v6489_v57 = vadd.f32 %v6196_v41, %v2036_v34  ;;  %v3261_v34 = vsel %vm3254_vm10, %v3258_v20, %v3260_v61 }
 0x34d   :  { %4793 = vmatprep.mubr.msk.bf16.mxu1 %vm5004_vm3, %v6912_v26 }
 0x34f   :  { %v1999_v60 = vpop.f32.mrb[108].mxu1 }
 0x350   :  { %v2037_v53 = vadd.f32 %v1999_v60, %v6318_v11  ;;  %v4507_v39 = vpop.f32.mrb[109].mxu1 }
 0x351   :  { %v2002_v35 = vpop.f32.mrb[110].mxu1  ;;  %v6495_v0 = vpop.f32.mrb[140].mxu0 }
 0x352   :  { %v2038_v27 = vadd.f32 %v2002_v35, %v6323_v1  ;;  %v4508_v8 = vpop.f32.mrb[111].mxu1  ;;  %v4751_v45 = vpop.f32.mrb[141].mxu0  ;;  %v6499_v40 = vadd.f32 %v6925_v13, %v2037_v53  ;;  %v3262_v1 = vrot.slane %v5444_v2, 3 }
 0x353   :  { %v6501_v41 = vpop.f32.mrb[142].mxu0  ;;  %v6926_v8 = vld [vmem:[#allocation6_spill] sm:$0xff] }
 0x354   :  { %v4752_v58 = vpop.f32.mrb[143].mxu0  ;;  %4794 = vmatmul.mubr.msk.bf16.gmra.mrb[216].mxu1 %vm1483_vm4, %v3261_v34  ;;  %v6506_v23 = vadd.f32 %v6210_v59, %v2038_v27  ;;  %v3263_v27 = vsel %vm3254_vm10, %v3260_v61, %v3262_v1 }
 0x355   :  { %4797 = vmatprep.mubr.msk.bf16.mxu1 %vm5004_vm3, %v6912_v26 }
 0x357   :  { %v2007_v11 = vpop.f32.mrb[112].mxu1 }
 0x358   :  { %v2039_v10 = vadd.f32 %v2007_v11, %v6333_v24  ;;  %v4511_v56 = vpop.f32.mrb[113].mxu1 }
 0x359   :  { %v2010_v60 = vpop.f32.mrb[114].mxu1  ;;  %v6512_v53 = vpop.f32.mrb[144].mxu0 }
 0x35a   :  { %v2040_v20 = vadd.f32 %v2010_v60, %v6338_v54  ;;  %v4512_v39 = vpop.f32.mrb[115].mxu1  ;;  %v4755_v35 = vpop.f32.mrb[145].mxu0  ;;  %v6516_v45 = vadd.f32 %v6926_v8, %v2039_v10  ;;  %v3264_v54 = vrot.slane %v5484_v51, 3  ;;  %v6927_v60 = vld [vmem:[#allocation7_spill] sm:$0xff] }
 0x35b   :  { %v6518_v59 = vpop.f32.mrb[146].mxu0 }
 0x35c   :  { %v4756_v13 = vpop.f32.mrb[147].mxu0  ;;  %4798 = vmatmul.mubr.msk.bf16.gmra.mrb[220].mxu1 %vm1483_vm4, %v3263_v27  ;;  %v6523_v2 = vadd.f32 %v6224_v21, %v2040_v20  ;;  %v3265_v21 = vsel %vm3254_vm10, %v3262_v1, %v3264_v54  ;;  %v6928_v1 = vld [vmem:[#allocation8_spill] sm:$0xff] }
 0x35d   :  { %4801 = vmatprep.mubr.msk.bf16.mxu1 %vm5004_vm3, %v6912_v26 }
 0x35f   :  { %v2015_v24 = vpop.f32.mrb[116].mxu1 }
 0x360   :  { %v2041_v34 = vadd.f32 %v2015_v24, %v6348_v3  ;;  %v4515_v58 = vpop.f32.mrb[117].mxu1  ;;  %v3266_v3 = vrot.slane %v5480_v49, 3  ;;  %v6929_v49 = vld [vmem:[#allocation9_spill] sm:$0xff] }
 0x361   :  { %v2018_v11 = vpop.f32.mrb[118].mxu1  ;;  %v6529_v10 = vpop.f32.mrb[148].mxu0 }
 0x362   :  { %v4516_v56 = vpop.f32.mrb[119].mxu1  ;;  %v4759_v61 = vpop.f32.mrb[149].mxu0  ;;  %v6532_v39 = vadd.f32 %v6927_v60, %v2041_v34  ;;  %v3267_v60 = vsel %vm3254_vm10, %v3264_v54, %v3266_v3 }
 0x363   :  { %v6534_v35 = vpop.f32.mrb[150].mxu0 }
 0x364   :  { %v4760_v20 = vpop.f32.mrb[151].mxu0  ;;  %4802 = vmatmul.mubr.msk.bf16.gmra.mrb[224].mxu1 %vm1483_vm4, %v3265_v21 }
 0x365   :  { %4805 = vmatprep.mubr.msk.bf16.mxu1 %vm5004_vm3, %v6912_v26 }
 0x367   :  { %v2427_v51 = vpop.f32.mrb[120].mxu1 }
 0x368   :  { %v2513_v8 = vadd.f32 %v2427_v51, %v6364_v5  ;;  %v4579_v27 = vpop.f32.mrb[121].mxu1 }
 0x369   :  { %v2430_v13 = vpop.f32.mrb[122].mxu1  ;;  %v6542_v24 = vpop.f32.mrb[152].mxu0 }
 0x36a   :  { %v2514_v34 = vadd.f32 %v2430_v13, %v6371_v17  ;;  %v4580_v58 = vpop.f32.mrb[123].mxu1  ;;  %v4763_v11 = vpop.f32.mrb[153].mxu0  ;;  %v6546_v56 = vadd.f32 %v6928_v1, %v2513_v8  ;;  %v3268_v17 = vrot.slane %v5525_v29, 3  ;;  %v6930_v1 = vld [vmem:[#allocation10_spill] sm:$0xff]  ;;  %v6932_v29 = vld [vmem:[#allocation11_spill] sm:$0xff] }
 0x36b   :  { %v6548_v61 = vpop.f32.mrb[154].mxu0 }
 0x36c   :  { %v4764_v21 = vpop.f32.mrb[155].mxu0  ;;  %4806 = vmatmul.mubr.msk.bf16.gmra.mrb[228].mxu1 %vm1483_vm4, %v3267_v60  ;;  %v6553_v5 = vadd.f32 %v6929_v49, %v2514_v34 }
 0x36d   :  { %4809 = vmatprep.mubr.msk.bf16.mxu1 %vm5004_vm3, %v6912_v26  ;;  %v3269_v21 = vsel %vm3254_vm10, %v3266_v3, %v3268_v17 }
 0x36f   :  { %v2435_v20 = vpop.f32.mrb[124].mxu1 }
 0x370   :  { %v2515_v51 = vadd.f32 %v2435_v20, %v6381_v42  ;;  %v4583_v8 = vpop.f32.mrb[125].mxu1 }
 0x371   :  { %v2438_v27 = vpop.f32.mrb[126].mxu1  ;;  %v6559_v13 = vpop.f32.mrb[156].mxu0 }
 0x372   :  { %v2516_v54 = vadd.f32 %v2438_v27, %v6388_v47  ;;  %v4584_v58 = vpop.f32.mrb[127].mxu1  ;;  %v4767_v11 = vpop.f32.mrb[157].mxu0  ;;  %v6563_v60 = vadd.f32 %v6930_v1, %v2515_v51  ;;  %v3270_v47 = vrot.slane %v5521_v25, 3  ;;  %v6935_v25 = vld [vmem:[#allocation13_spill] sm:$0xff] }
 0x373   :  { %v6565_v34 = vpop.f32.mrb[158].mxu0 }
 0x374   :  { %6931 = vst [vmem:[#allocation3_spill] sm:$0xff] %v6565_v34  ;;  %v4768_v49 = vpop.f32.mrb[159].mxu0  ;;  %4810 = vmatmul.mubr.msk.bf16.gmra.mrb[232].mxu1 %vm1483_vm4, %v3269_v21  ;;  %v6570_v42 = vadd.f32 %v6932_v29, %v2516_v54  ;;  %v6933_v21 = vld [vmem:[#allocation12_spill] sm:$0xff]  ;;  %v3271_v29 = vsel %vm3254_vm10, %v3268_v17, %v3270_v47 }
 0x375   :  { %4813 = vmatprep.mubr.msk.bf16.mxu1 %vm5004_vm3, %v6912_v26 }
 0x377   :  { %v2443_v20 = vpop.f32.mrb[128].mxu1 }
 0x378   :  { %v2517_v8 = vadd.f32 %v2443_v20, %v6398_v37  ;;  %v4587_v51 = vpop.f32.mrb[129].mxu1 }
 0x379   :  { %v2446_v27 = vpop.f32.mrb[130].mxu1  ;;  %v6576_v58 = vpop.f32.mrb[160].mxu0 }
 0x37a   :  { %v2518_v3 = vadd.f32 %v2446_v27, %v6405_v48  ;;  %v4588_v11 = vpop.f32.mrb[131].mxu1  ;;  %v4771_v1 = vpop.f32.mrb[161].mxu0  ;;  %v6580_v49 = vadd.f32 %v6933_v21, %v2517_v8 }
 0x37b   :  { %v6582_v54 = vpop.f32.mrb[162].mxu0 }
 0x37c   :  { %6934 = vst [vmem:[#allocation4_spill] sm:$0xff] %v6582_v54  ;;  %v4772_v34 = vpop.f32.mrb[163].mxu0  ;;  %4814 = vmatmul.mubr.msk.bf16.gmra.mrb[236].mxu1 %vm1483_vm4, %v3271_v29  ;;  %v6587_v37 = vadd.f32 %v6935_v25, %v2518_v3  ;;  %v6937_v3 = vrot.slane %v5586_v12, 3  ;;  %v6939_v12 = vld [vmem:[#allocation16_spill] sm:$0xff] }
 0x37d   :  { %4817 = vmatprep.mubr.msk.bf16.mxu1 %vm5004_vm3, %v6912_v26  ;;  %v6936_v34 = vld [vmem:[#allocation14_spill] sm:$0xff] }
 0x37e   :  { %v3273_v25 = vsel %vm3254_vm10, %v3270_v47, %v6937_v3  ;;  %v6940_v47 = vld [vmem:[#allocation2_spill] sm:$0xff] }
 0x37f   :  { %v2451_v20 = vpop.f32.mrb[132].mxu1 }
 0x380   :  { %v2519_v48 = vadd.f32 %v2451_v20, %v6414_v28  ;;  %v4591_v51 = vpop.f32.mrb[133].mxu1  ;;  %v6938_v28 = vld [vmem:[#allocation15_spill] sm:$0xff] }
 0x381   :  { %v2454_v27 = vpop.f32.mrb[134].mxu1  ;;  %v6592_v8 = vpop.f32.mrb[164].mxu0 }
 0x382   :  { %v2520_v11 = vadd.f32 %v2454_v27, %v6421_v19  ;;  %v4592_v1 = vpop.f32.mrb[135].mxu1  ;;  %v4775_v17 = vpop.f32.mrb[165].mxu0  ;;  %v6596_v21 = vadd.f32 %v6936_v34, %v2519_v48 }
 0x383   :  { %v3221_v29 = vpop.f32.mrb[166].mxu0 }
 0x384   :  { %v4776_v54 = vpop.f32.mrb[167].mxu0  ;;  %4818 = vmatmul.mubr.msk.bf16.gmra.mrb[240].mxu1 %vm1483_vm4, %v3273_v25  ;;  %v6603_v20 = vadd.f32 %v6938_v28, %v2520_v11 }
 0x385   :  { %4821 = vmatprep.mubr.msk.bf16.mxu1 %vm5004_vm3, %v6912_v26  ;;  %v6941_v54 = vld [vmem:[#allocation17_spill] sm:$0xff] }
 0x387   :  { %v2459_v19 = vpop.f32.mrb[136].mxu1 }
 0x388   :  { %v2521_v51 = vadd.f32 %v2459_v19, %v6430_v32  ;;  %v4595_v27 = vpop.f32.mrb[137].mxu1  ;;  %v6942_v19 = vld [vmem:[#allocation18_spill] sm:$0xff] }
 0x389   :  { %v2462_v48 = vpop.f32.mrb[138].mxu1  ;;  %v6943_v27 = vrot.slane %v5578_v9, 3 }
 0x38a   :  { %v2522_v1 = vadd.f32 %v2462_v48, %v6437_v31  ;;  %v4596_v17 = vpop.f32.mrb[139].mxu1  ;;  %v6610_v34 = vadd.f32 %v6939_v12, %v2521_v51  ;;  %v6944_v48 = vld [vmem:[#allocation19_spill] sm:$0xff] }
 0x38c   :  { %4822 = vmatmul.mubr.msk.bf16.gmra.mrb[244].mxu1 %vm1483_vm4, %v6940_v47  ;;  %v6615_v11 = vadd.f32 %v6941_v54, %v2522_v1 }
 0x38d   :  { %4825 = vmatprep.mubr.msk.bf16.mxu1 %vm5004_vm3, %v6912_v26 }
 0x38f   :  { %v2467_v29 = vpop.f32.mrb[140].mxu1 }
 0x390   :  { %v2523_v32 = vadd.f32 %v2467_v29, %v6446_v62  ;;  %v4599_v3 = vpop.f32.mrb[141].mxu1 }
 0x391   :  { %v2470_v25 = vpop.f32.mrb[142].mxu1 }
 0x392   :  { %v2524_v31 = vadd.f32 %v2470_v25, %v6454_v38  ;;  %v4600_v28 = vpop.f32.mrb[143].mxu1  ;;  %v6622_v51 = vadd.f32 %v6942_v19, %v2523_v32  ;;  %v6945_v38 = vld [vmem:[#allocation20_spill] sm:$0xff]  ;;  %v6946_v32 = vld [vmem:[#allocation21_spill] sm:$0xff] }
 0x394   :  { %4826 = vmatmul.mubr.msk.bf16.gmra.mrb[248].mxu1 %vm1483_vm4, %v6943_v27  ;;  %v6628_v1 = vadd.f32 %v6944_v48, %v2524_v31 }
 0x397   :  { %v2475_v17 = vpop.f32.mrb[144].mxu1 }
 0x398   :  { %v2525_v26 = vadd.f32 %v2475_v17, %v6465_v44  ;;  %v4603_v12 = vpop.f32.mrb[145].mxu1 }
 0x399   :  { %v2478_v62 = vpop.f32.mrb[146].mxu1 }
 0x39a   :  { %v2526_v47 = vadd.f32 %v2478_v62, %v6472_v63  ;;  %v4604_v54 = vpop.f32.mrb[147].mxu1  ;;  %v6633_v29 = vadd.f32 %v6945_v38, %v2525_v26 }
 0x39c   :  { %v6636_v3 = vadd.f32 %v6946_v32, %v2526_v47 }
 0x39f   :  { %v2483_v9 = vpop.f32.mrb[148].mxu1 }
 0x3a0   :  { %v2527_v25 = vadd.f32 %v2483_v9, %v6482_v43  ;;  %v4607_v28 = vpop.f32.mrb[149].mxu1 }
 0x3a1   :  { %v2486_v31 = vpop.f32.mrb[150].mxu1 }
 0x3a2   :  { %v2528_v19 = vadd.f32 %v2486_v31, %v6489_v57  ;;  %v4608_v27 = vpop.f32.mrb[151].mxu1  ;;  %v6641_v44 = vadd.f32 %v6360_v22, %v2527_v25 }
 0x3a4   :  { %v6644_v63 = vadd.f32 %v6366_v14, %v2528_v19 }
 0x3a7   :  { %v2491_v48 = vpop.f32.mrb[152].mxu1 }
 0x3a8   :  { %v2529_v17 = vadd.f32 %v2491_v48, %v6499_v40  ;;  %v4611_v26 = vpop.f32.mrb[153].mxu1 }
 0x3a9   :  { %v2494_v12 = vpop.f32.mrb[154].mxu1 }
 0x3aa   :  { %v2530_v62 = vadd.f32 %v2494_v12, %v6506_v23  ;;  %v4612_v47 = vpop.f32.mrb[155].mxu1  ;;  %v6649_v43 = vadd.f32 %v6377_v6, %v2529_v17 }
 0x3ac   :  { %v6652_v57 = vadd.f32 %v6383_v15, %v2530_v62 }
 0x3af   :  { %v2499_v54 = vpop.f32.mrb[156].mxu1 }
 0x3b0   :  { %v2531_v22 = vadd.f32 %v2499_v54, %v6516_v45  ;;  %v4615_v38 = vpop.f32.mrb[157].mxu1 }
 0x3b1   :  { %v2502_v14 = vpop.f32.mrb[158].mxu1 }
 0x3b2   :  { %v2532_v32 = vadd.f32 %v2502_v14, %v6523_v2  ;;  %v4616_v9 = vpop.f32.mrb[159].mxu1  ;;  %v6657_v40 = vadd.f32 %v6394_v16, %v2531_v22 }
 0x3b4   :  { %v6660_v23 = vadd.f32 %v6400_v46, %v2532_v32 }
 0x3b7   :  { %v2507_v25 = vpop.f32.mrb[160].mxu1 }
 0x3b8   :  { %v2533_v6 = vadd.f32 %v2507_v25, %v6532_v39  ;;  %v4619_v28 = vpop.f32.mrb[161].mxu1 }
 0x3b9   :  { %v2510_v15 = vpop.f32.mrb[162].mxu1 }
 0x3ba   :  { %v4620_v31 = vpop.f32.mrb[163].mxu1  ;;  %v6664_v19 = vadd.f32 %v6410_v18, %v2533_v6 }
 0x3bf   :  { %v2887_v45 = vpop.f32.mrb[164].mxu1 }
 0x3c0   :  { %v2973_v27 = vadd.f32 %v2887_v45, %v6546_v56  ;;  %v4683_v2 = vpop.f32.mrb[165].mxu1 }
 0x3c1   :  { %v2890_v48 = vpop.f32.mrb[166].mxu1 }
 0x3c2   :  { %v2974_v16 = vadd.f32 %v2890_v48, %v6553_v5  ;;  %v4684_v17 = vpop.f32.mrb[167].mxu1  ;;  %v6669_v46 = vadd.f32 %v6426_v36, %v2973_v27 }
 0x3c4   :  { %v6672_v26 = vadd.f32 %v6432_v52, %v2974_v16 }
 0x3c7   :  { %v2895_v39 = vpop.f32.mrb[168].mxu1 }
 0x3c8   :  { %v2975_v12 = vadd.f32 %v2895_v39, %v6563_v60  ;;  %v4687_v62 = vpop.f32.mrb[169].mxu1 }
 0x3c9   :  { %v2898_v18 = vpop.f32.mrb[170].mxu1 }
 0x3ca   :  { %v2976_v47 = vadd.f32 %v2898_v18, %v6570_v42  ;;  %v4688_v54 = vpop.f32.mrb[171].mxu1  ;;  %v6677_v56 = vadd.f32 %v6442_v30, %v2975_v12 }
 0x3cc   :  { %v6680_v5 = vadd.f32 %v6448_v55, %v2976_v47 }
 0x3cf   :  { %v2903_v22 = vpop.f32.mrb[172].mxu1 }
 0x3d0   :  { %v2977_v36 = vadd.f32 %v2903_v22, %v6580_v49  ;;  %v4691_v38 = vpop.f32.mrb[173].mxu1 }
 0x3d1   :  { %v2906_v52 = vpop.f32.mrb[174].mxu1 }
 0x3d2   :  { %v2978_v14 = vadd.f32 %v2906_v52, %v6587_v37  ;;  %v4692_v32 = vpop.f32.mrb[175].mxu1  ;;  %v6685_v60 = vadd.f32 %v6460_v7, %v2977_v36 }
 0x3d4   :  { %v6688_v42 = vadd.f32 %v6467_v33, %v2978_v14 }
 0x3d7   :  { %v2911_v9 = vpop.f32.mrb[176].mxu1 }
 0x3d8   :  { %v2979_v30 = vadd.f32 %v2911_v9, %v6596_v21  ;;  %v4695_v25 = vpop.f32.mrb[177].mxu1  ;;  %v6947_v9 = vld [vmem:[#allocation3_spill] sm:$0xff] }
 0x3d9   :  { %v2914_v55 = vpop.f32.mrb[178].mxu1 }
 0x3da   :  { %v2980_v6 = vadd.f32 %v2914_v55, %v6603_v20  ;;  %v4696_v28 = vpop.f32.mrb[179].mxu1  ;;  %v6693_v49 = vadd.f32 %v6478_v50, %v2979_v30 }
 0x3db   :  { %v6948_v28 = vld [vmem:[#allocation4_spill] sm:$0xff] }
 0x3dc   :  { %v6696_v37 = vadd.f32 %v6484_v4, %v2980_v6 }
 0x3df   :  { %v2919_v15 = vpop.f32.mrb[180].mxu1 }
 0x3e0   :  { %v2981_v7 = vadd.f32 %v2919_v15, %v6610_v34  ;;  %v4699_v31 = vpop.f32.mrb[181].mxu1 }
 0x3e1   :  { %v2922_v33 = vpop.f32.mrb[182].mxu1 }
 0x3e2   :  { %v2982_v45 = vadd.f32 %v2922_v33, %v6615_v11  ;;  %v4700_v27 = vpop.f32.mrb[183].mxu1  ;;  %v6701_v21 = vadd.f32 %v6495_v0, %v2981_v7 }
 0x3e4   :  { %v6704_v20 = vadd.f32 %v6501_v41, %v2982_v45 }
 0x3e7   :  { %v2927_v2 = vpop.f32.mrb[184].mxu1 }
 0x3e8   :  { %v2983_v50 = vadd.f32 %v2927_v2, %v6622_v51  ;;  %v4703_v48 = vpop.f32.mrb[185].mxu1 }
 0x3e9   :  { %v2930_v4 = vpop.f32.mrb[186].mxu1 }
 0x3ea   :  { %v2984_v16 = vadd.f32 %v2930_v4, %v6628_v1  ;;  %v4704_v17 = vpop.f32.mrb[187].mxu1  ;;  %v6709_v34 = vadd.f32 %v6512_v53, %v2983_v50 }
 0x3ec   :  { %v6712_v11 = vadd.f32 %v6518_v59, %v2984_v16 }
 0x3ef   :  { %v2935_v39 = vpop.f32.mrb[188].mxu1 }
 0x3f0   :  { %v2985_v0 = vadd.f32 %v2935_v39, %v6633_v29  ;;  %v4707_v12 = vpop.f32.mrb[189].mxu1 }
 0x3f1   :  { %v2938_v41 = vpop.f32.mrb[190].mxu1 }
 0x3f2   :  { %v2986_v62 = vadd.f32 %v2938_v41, %v6636_v3  ;;  %v4708_v18 = vpop.f32.mrb[191].mxu1  ;;  %v6717_v51 = vadd.f32 %v6529_v10, %v2985_v0 }
 0x3f4   :  { %v6720_v1 = vadd.f32 %v6534_v35, %v2986_v62 }
 0x3f7   :  { %v2943_v47 = vpop.f32.mrb[192].mxu1 }
 0x3f8   :  { %v2987_v53 = vadd.f32 %v2943_v47, %v6641_v44  ;;  %v4711_v54 = vpop.f32.mrb[193].mxu1 }
 0x3f9   :  { %v2946_v59 = vpop.f32.mrb[194].mxu1 }
 0x3fa   :  { %v2988_v22 = vadd.f32 %v2946_v59, %v6644_v63  ;;  %v4712_v36 = vpop.f32.mrb[195].mxu1  ;;  %v6725_v29 = vadd.f32 %v6542_v24, %v2987_v53 }
 0x3fc   :  { %v6728_v3 = vadd.f32 %v6548_v61, %v2988_v22 }
 0x3ff   :  { %v2951_v38 = vpop.f32.mrb[196].mxu1 }
 0x400   :  { %v2989_v10 = vadd.f32 %v2951_v38, %v6649_v43  ;;  %v4715_v52 = vpop.f32.mrb[197].mxu1 }
 0x401   :  { %v2954_v35 = vpop.f32.mrb[198].mxu1 }
 0x402   :  { %v2990_v14 = vadd.f32 %v2954_v35, %v6652_v57  ;;  %v4716_v32 = vpop.f32.mrb[199].mxu1  ;;  %v6733_v44 = vadd.f32 %v6559_v13, %v2989_v10 }
 0x404   :  { %v6736_v63 = vadd.f32 %v6947_v9, %v2990_v14 }
 0x407   :  { %v2959_v30 = vpop.f32.mrb[200].mxu1 }
 0x408   :  { %v2991_v24 = vadd.f32 %v2959_v30, %v6657_v40  ;;  %v4719_v25 = vpop.f32.mrb[201].mxu1 }
 0x409   :  { %v2962_v61 = vpop.f32.mrb[202].mxu1 }
 0x40a   :  { %v2992_v55 = vadd.f32 %v2962_v61, %v6660_v23  ;;  %v4720_v6 = vpop.f32.mrb[203].mxu1  ;;  %v6741_v43 = vadd.f32 %v6576_v58, %v2991_v24  ;;  %v6753_v23 = vld [vmem:[%s6888_s4] ss:$0 sm:$0xff] }
 0x40c   :  { %v6744_v57 = vadd.f32 %v6948_v28, %v2992_v55 }
 0x40f   :  { %v2967_v15 = vpop.f32.mrb[204].mxu1 }
 0x410   :  { %v2993_v13 = vadd.f32 %v2967_v15, %v6664_v19  ;;  %v4723_v7 = vpop.f32.mrb[205].mxu1 }
 0x411   :  { %v2970_v31 = vpop.f32.mrb[206].mxu1 }
 0x412   :  { %v4724_v33 = vpop.f32.mrb[207].mxu1  ;;  %v6748_v45 = vadd.f32 %v6592_v8, %v2993_v13 }
 0x417   :  { %v3367_v40 = vpop.f32.mrb[208].mxu1 }
 0x418   :  { %v3453_v58 = vadd.f32 %v3367_v40, %v6669_v46  ;;  %v4787_v27 = vpop.f32.mrb[209].mxu1 }
 0x419   :  { %v3370_v2 = vpop.f32.mrb[210].mxu1 }
 0x41a   :  { %v3481_v50 = vadd.f32 %v6753_v23, %v3453_v58  ;;  %v3454_v19 = vadd.f32 %v3370_v2, %v6672_v26  ;;  %v4788_v48 = vpop.f32.mrb[211].mxu1 }
 0x41c   :  { %v3502_v4 = vmax.f32 %v3481_v50, 0.0  ;;  %v3482_v16 = vadd.f32 %v6753_v23, %v3454_v19 }
 0x41e   :  { %v3965_v8 = vpack.c.bf16 %v3502_v4, %v3502_v4  ;;  %v3503_v17 = vmax.f32 %v3482_v16, 0.0 }
 0x41f   :  { %v3375_v39 = vpop.f32.mrb[212].mxu1 }
 0x420   :  { %3609 = vst.msk [vmem:[%s6889_s5] sm:$0xf] %vm3608_vm11, %v3965_v8  ;;  %v3966_v46 = vpack.c.bf16 %v3503_v17, %v3503_v17  ;;  %v3455_v0 = vadd.f32 %v3375_v39, %v6677_v56  ;;  %v4791_v12 = vpop.f32.mrb[213].mxu1 }
 0x421   :  { %v3378_v41 = vpop.f32.mrb[214].mxu1 }
 0x422   :  { %3610 = vst.msk [vmem:[%s6889_s5 + $0x4] sm:$0xf] %vm3608_vm11, %v3966_v46  ;;  %v3483_v26 = vadd.f32 %v6753_v23, %v3455_v0  ;;  %v3456_v62 = vadd.f32 %v3378_v41, %v6680_v5  ;;  %v4792_v18 = vpop.f32.mrb[215].mxu1 }
 0x424   :  { %v3504_v47 = vmax.f32 %v3483_v26, 0.0  ;;  %v3484_v53 = vadd.f32 %v6753_v23, %v3456_v62 }
 0x426   :  { %v3967_v54 = vpack.c.bf16 %v3504_v47, %v3504_v47  ;;  %v3505_v59 = vmax.f32 %v3484_v53, 0.0 }
 0x427   :  { %v3383_v22 = vpop.f32.mrb[216].mxu1 }
 0x428   :  { %3611 = vst.msk [vmem:[%s6889_s5 + $0x8] sm:$0xf] %vm3608_vm11, %v3967_v54  ;;  %v3968_v56 = vpack.c.bf16 %v3505_v59, %v3505_v59  ;;  %v3457_v36 = vadd.f32 %v3383_v22, %v6685_v60  ;;  %v4795_v38 = vpop.f32.mrb[217].mxu1 }
 0x429   :  { %v3386_v10 = vpop.f32.mrb[218].mxu1 }
 0x42a   :  { %3612 = vst.msk [vmem:[%s6889_s5 + $0xc] sm:$0xf] %vm3608_vm11, %v3968_v56  ;;  %v3485_v5 = vadd.f32 %v6753_v23, %v3457_v36  ;;  %v3458_v52 = vadd.f32 %v3386_v10, %v6688_v42  ;;  %v4796_v35 = vpop.f32.mrb[219].mxu1 }
 0x42c   :  { %v3506_v14 = vmax.f32 %v3485_v5, 0.0  ;;  %v3486_v32 = vadd.f32 %v6753_v23, %v3458_v52 }
 0x42e   :  { %v3969_v9 = vpack.c.bf16 %v3506_v14, %v3506_v14  ;;  %v3507_v30 = vmax.f32 %v3486_v32, 0.0 }
 0x42f   :  { %v3391_v24 = vpop.f32.mrb[220].mxu1 }
 0x430   :  { %3613 = vst.msk [vmem:[%s6889_s5 + $0x10] sm:$0xf] %vm3608_vm11, %v3969_v9  ;;  %v3970_v60 = vpack.c.bf16 %v3507_v30, %v3507_v30  ;;  %v3459_v25 = vadd.f32 %v3391_v24, %v6693_v49  ;;  %v4799_v61 = vpop.f32.mrb[221].mxu1 }
 0x431   :  { %v3394_v55 = vpop.f32.mrb[222].mxu1 }
 0x432   :  { %3614 = vst.msk [vmem:[%s6889_s5 + $0x14] sm:$0xf] %vm3608_vm11, %v3970_v60  ;;  %v3487_v42 = vadd.f32 %v6753_v23, %v3459_v25  ;;  %v3460_v6 = vadd.f32 %v3394_v55, %v6696_v37  ;;  %v4800_v28 = vpop.f32.mrb[223].mxu1 }
 0x434   :  { %v3508_v15 = vmax.f32 %v3487_v42, 0.0  ;;  %v3488_v13 = vadd.f32 %v6753_v23, %v3460_v6 }
 0x436   :  { %v3971_v7 = vpack.c.bf16 %v3508_v15, %v3508_v15  ;;  %v3509_v31 = vmax.f32 %v3488_v13, 0.0 }
 0x437   :  { %v3399_v33 = vpop.f32.mrb[224].mxu1 }
 0x438   :  { %3615 = vst.msk [vmem:[%s6889_s5 + $0x18] sm:$0xf] %vm3608_vm11, %v3971_v7  ;;  %v3972_v49 = vpack.c.bf16 %v3509_v31, %v3509_v31  ;;  %v3461_v40 = vadd.f32 %v3399_v33, %v6701_v21  ;;  %v4803_v58 = vpop.f32.mrb[225].mxu1 }
 0x439   :  { %v3402_v27 = vpop.f32.mrb[226].mxu1 }
 0x43a   :  { %3616 = vst.msk [vmem:[%s6889_s5 + $0x1c] sm:$0xf] %vm3608_vm11, %v3972_v49  ;;  %v3489_v37 = vadd.f32 %v6753_v23, %v3461_v40  ;;  %v3462_v2 = vadd.f32 %v3402_v27, %v6704_v20  ;;  %v4804_v50 = vpop.f32.mrb[227].mxu1 }
 0x43c   :  { %v3510_v19 = vmax.f32 %v3489_v37, 0.0  ;;  %v3490_v48 = vadd.f32 %v6753_v23, %v3462_v2 }
 0x43e   :  { %v3973_v4 = vpack.c.bf16 %v3510_v19, %v3510_v19  ;;  %v3511_v16 = vmax.f32 %v3490_v48, 0.0 }
 0x43f   :  { %v3407_v8 = vpop.f32.mrb[228].mxu1 }
 0x440   :  { %3617 = vst.msk [vmem:[%s6889_s5 + $0x20] sm:$0xf] %vm3608_vm11, %v3973_v4  ;;  %v3974_v21 = vpack.c.bf16 %v3511_v16, %v3511_v16  ;;  %v3463_v17 = vadd.f32 %v3407_v8, %v6709_v34  ;;  %v4807_v39 = vpop.f32.mrb[229].mxu1 }
 0x441   :  { %v3410_v46 = vpop.f32.mrb[230].mxu1 }
 0x442   :  { %3618 = vst.msk [vmem:[%s6889_s5 + $0x24] sm:$0xf] %vm3608_vm11, %v3974_v21  ;;  %v3491_v20 = vadd.f32 %v6753_v23, %v3463_v17  ;;  %v3464_v0 = vadd.f32 %v3410_v46, %v6712_v11  ;;  %v4808_v12 = vpop.f32.mrb[231].mxu1 }
 0x444   :  { %v3512_v41 = vmax.f32 %v3491_v20, 0.0  ;;  %v3492_v26 = vadd.f32 %v6753_v23, %v3464_v0  ;;  %v3632_v0 = vld [vmem:[%s6889_s5 + $0x50] sm:$0xf] }
 0x446   :  { %v3975_v62 = vpack.c.bf16 %v3512_v41, %v3512_v41  ;;  %v3513_v18 = vmax.f32 %v3492_v26, 0.0 }
 0x447   :  { %v3415_v47 = vpop.f32.mrb[232].mxu1 }
 0x448   :  { %3619 = vst.msk [vmem:[%s6889_s5 + $0x28] sm:$0xf] %vm3608_vm11, %v3975_v62  ;;  %v3976_v34 = vpack.c.bf16 %v3513_v18, %v3513_v18  ;;  %v3465_v53 = vadd.f32 %v3415_v47, %v6717_v51  ;;  %v4811_v54 = vpop.f32.mrb[233].mxu1 }
 0x449   :  { %v3418_v59 = vpop.f32.mrb[234].mxu1 }
 0x44a   :  { %3620 = vst.msk [vmem:[%s6889_s5 + $0x2c] sm:$0xf] %vm3608_vm11, %v3976_v34  ;;  %v3493_v11 = vadd.f32 %v6753_v23, %v3465_v53  ;;  %v3466_v22 = vadd.f32 %v3418_v59, %v6720_v1  ;;  %v4812_v56 = vpop.f32.mrb[235].mxu1 }
 0x44c   :  { %v3514_v36 = vmax.f32 %v3493_v11, 0.0  ;;  %v3494_v38 = vadd.f32 %v6753_v23, %v3466_v22 }
 0x44e   :  { %v3977_v10 = vpack.c.bf16 %v3514_v36, %v3514_v36  ;;  %v3515_v5 = vmax.f32 %v3494_v38, 0.0 }
 0x44f   :  { %v3423_v52 = vpop.f32.mrb[236].mxu1 }
 0x450   :  { %3621 = vst.msk [vmem:[%s6889_s5 + $0x30] sm:$0xf] %vm3608_vm11, %v3977_v10  ;;  %v3978_v51 = vpack.c.bf16 %v3515_v5, %v3515_v5  ;;  %v3467_v35 = vadd.f32 %v3423_v52, %v6725_v29  ;;  %v4815_v14 = vpop.f32.mrb[237].mxu1 }
 0x451   :  { %v3426_v32 = vpop.f32.mrb[238].mxu1 }
 0x452   :  { %3622 = vst.msk [vmem:[%s6889_s5 + $0x34] sm:$0xf] %vm3608_vm11, %v3978_v51  ;;  %v3495_v1 = vadd.f32 %v6753_v23, %v3467_v35  ;;  %v3468_v9 = vadd.f32 %v3426_v32, %v6728_v3  ;;  %v4816_v30 = vpop.f32.mrb[239].mxu1 }
 0x454   :  { %v3516_v24 = vmax.f32 %v3495_v1, 0.0  ;;  %v3496_v60 = vadd.f32 %v6753_v23, %v3468_v9 }
 0x456   :  { %v3979_v25 = vpack.c.bf16 %v3516_v24, %v3516_v24  ;;  %v3517_v61 = vmax.f32 %v3496_v60, 0.0 }
 0x457   :  { %v3431_v55 = vpop.f32.mrb[240].mxu1 }
 0x458   :  { %3623 = vst.msk [vmem:[%s6889_s5 + $0x38] sm:$0xf] %vm3608_vm11, %v3979_v25  ;;  %v3980_v29 = vpack.c.bf16 %v3517_v61, %v3517_v61  ;;  %v3469_v42 = vadd.f32 %v3431_v55, %v6733_v44  ;;  %v4819_v6 = vpop.f32.mrb[241].mxu1 }
 0x459   :  { %v3434_v28 = vpop.f32.mrb[242].mxu1 }
 0x45a   :  { %3624 = vst.msk [vmem:[%s6889_s5 + $0x3c] sm:$0xf] %vm3608_vm11, %v3980_v29  ;;  %v3497_v3 = vadd.f32 %v6753_v23, %v3469_v42  ;;  %v3470_v15 = vadd.f32 %v3434_v28, %v6736_v63  ;;  %v4820_v13 = vpop.f32.mrb[243].mxu1 }
 0x45c   :  { %v3518_v7 = vmax.f32 %v3497_v3, 0.0  ;;  %v3498_v31 = vadd.f32 %v6753_v23, %v3470_v15 }
 0x45e   :  { %v3981_v33 = vpack.c.bf16 %v3518_v7, %v3518_v7  ;;  %v3519_v49 = vmax.f32 %v3498_v31, 0.0 }
 0x45f   :  { %v3439_v40 = vpop.f32.mrb[244].mxu1 }
 0x460   :  { %3625 = vst.msk [vmem:[%s6889_s5 + $0x40] sm:$0xf] %vm3608_vm11, %v3981_v33  ;;  %v3982_v44 = vpack.c.bf16 %v3519_v49, %v3519_v49  ;;  %v3471_v58 = vadd.f32 %v3439_v40, %v6741_v43  ;;  %v4823_v27 = vpop.f32.mrb[245].mxu1 }
 0x461   :  { %v3442_v37 = vpop.f32.mrb[246].mxu1 }
 0x462   :  { %3626 = vst.msk [vmem:[%s6889_s5 + $0x44] sm:$0xf] %vm3608_vm11, %v3982_v44  ;;  %v3499_v63 = vadd.f32 %v6753_v23, %v3471_v58  ;;  %v3472_v2 = vadd.f32 %v3442_v37, %v6744_v57  ;;  %v4824_v50 = vpop.f32.mrb[247].mxu1 }
 0x464   :  { %v3520_v19 = vmax.f32 %v3499_v63, 0.0  ;;  %v3500_v48 = vadd.f32 %v6753_v23, %v3472_v2 }
 0x466   :  { %v3983_v4 = vpack.c.bf16 %v3520_v19, %v3520_v19  ;;  %v3521_v16 = vmax.f32 %v3500_v48, 0.0 }
 0x467   :  { %v3447_v8 = vpop.f32.mrb[248].mxu1 }
 0x468   :  { %3627 = vst.msk [vmem:[%s6889_s5 + $0x48] sm:$0xf] %vm3608_vm11, %v3983_v4  ;;  %v3984_v43 = vpack.c.bf16 %v3521_v16, %v3521_v16  ;;  %v3473_v21 = vadd.f32 %v3447_v8, %v6748_v45  ;;  %v4827_v17 = vpop.f32.mrb[249].mxu1 }
 0x469   :  { %v3450_v39 = vpop.f32.mrb[250].mxu1 }
 0x46a   :  { %3628 = vst.msk [vmem:[%s6889_s5 + $0x4c] sm:$0xf] %vm3608_vm11, %v3984_v43  ;;  %v3501_v57 = vadd.f32 %v6753_v23, %v3473_v21  ;;  %v4828_v46 = vpop.f32.mrb[251].mxu1 }
 0x46c   :  { %v3522_v20 = vmax.f32 %v3501_v57, 0.0 }
 0x46e   :  { %v3985_v12 = vpack.c.bf16 %v3522_v20, %v3522_v20 }
 0x470   :  { %v3633_v45 = vsel %vm3631_vm13, %v3985_v12, %v3632_v0 }
 0x471   :  { %3634 = vst [vmem:[%s6889_s5 + $0x50] sm:$0xf] %v3633_v45 }

// kernel: agent_forward.5
= control target key start
LH: loop header
LB: loop body
LE: loop exit
PB: predicated region body
PF: predicated region fallthrough
CT: control target
= control target key end

     0   :  { %v827_v36 = vlaneseq  ;;  %v8676_v37 = vmov 1966171168   ;;  %s11356_s1 = inlined_call_operand.vmem [shape: bf16[3200,512], index: 1, kind: input, shape index: {}]   ;;  %s11357_s0 = inlined_call_operand.vmem [shape: bf16[2,3200], index: 0, kind: input, shape index: {}]   ;;  %s11358_s3 = inlined_call_operand.vmem [shape: bf16[512,128], index: 3, kind: input, shape index: {}]   ;;  %s11359_s2 = inlined_call_operand.vmem [shape: f32[1,512], index: 2, kind: input, shape index: {}]   ;;  %s11360_s4 = inlined_call_operand.vmem [shape: f32[1,128], index: 4, kind: input, shape index: {}]   ;;  %s11361_s5 = inlined_call_operand.vmem [shape: f32[2,128], index: 5, kind: output, shape index: {}]  }
   0x1   :  { %v7439_v0 = vld [vmem:[%s11356_s1 + $0x4] ss:$16 sps:$4 sm:$0xff]   ;;  %v7441_v1 = vld [vmem:[%s11356_s1 + $0xc] ss:$16 sps:$4 sm:$0xff]   ;;  %v7443_v2 = vld [vmem:[%s11356_s1] ss:$16 sps:$4 sm:$0xff]   ;;  %v853_v38 = vunpack.c.l.s4 %v8676_v37 }
   0x2   :  { %5037 = vmatprep.subr.bf16.mxu0 %v7439_v0  ;;  %v7444_v3 = vld [vmem:[%s11356_s1 + $0x8] ss:$16 sps:$4 sm:$0xff]   ;;  %5570 = vmatprep.subr.bf16.mxu1 %v7441_v1  ;;  %v7445_v4 = vld [vmem:[%s11356_s1 + $0x24] ss:$16 sps:$4 sm:$0xff]   ;;  %v7447_v5 = vld [vmem:[%s11356_s1 + $0x2c] ss:$16 sps:$4 sm:$0xff]  }
   0x3   :  { %5038 = vmatpush1.bf16.msra.mxu0 %v7443_v2  ;;  %5571 = vmatpush1.bf16.msra.mxu1 %v7444_v3  ;;  %v7449_v6 = vld [vmem:[%s11356_s1 + $0x20] ss:$16 sps:$4 sm:$0xff]   ;;  %v7450_v7 = vld [vmem:[%s11356_s1 + $0x28] ss:$16 sps:$4 sm:$0xff]   ;;  %v7451_v8 = vld [vmem:[%s11356_s1 + $0x44] ss:$16 sps:$4 sm:$0xff]   ;;  %v854_v43 = vunpack.c.0.s8 %v853_v38 }
   0x4   :  { %5039 = vmatprep.subr.bf16.mxu0 %v7445_v4  ;;  %5572 = vmatprep.subr.bf16.mxu1 %v7447_v5  ;;  %v7453_v9 = vld [vmem:[%s11356_s1 + $0x4c] ss:$16 sps:$4 sm:$0xff]   ;;  %v7455_v10 = vld [vmem:[%s11356_s1 + $0x40] ss:$16 sps:$4 sm:$0xff]   ;;  %v7456_v11 = vld [vmem:[%s11356_s1 + $0x48] ss:$16 sps:$4 sm:$0xff]  }
   0x5   :  { %v7457_v12 = vld [vmem:[%s11356_s1 + $0x64] ss:$16 sps:$4 sm:$0xff]   ;;  %v7459_v13 = vld [vmem:[%s11356_s1 + $0x6c] ss:$16 sps:$4 sm:$0xff]   ;;  %v7461_v14 = vld [vmem:[%s11356_s1 + $0x60] ss:$16 sps:$4 sm:$0xff]  }
   0x6   :  { %v7462_v15 = vld [vmem:[%s11356_s1 + $0x68] ss:$16 sps:$4 sm:$0xff]   ;;  %v7463_v16 = vld [vmem:[%s11356_s1 + $0x84] ss:$16 sps:$4 sm:$0xff]   ;;  %v7465_v17 = vld [vmem:[%s11356_s1 + $0x8c] ss:$16 sps:$4 sm:$0xff]  }
   0x7   :  { %5040 = vmatpush1.bf16.msra.mxu0 %v7449_v6  ;;  %5573 = vmatpush1.bf16.msra.mxu1 %v7450_v7  ;;  %v7467_v18 = vld [vmem:[%s11356_s1 + $0x80] ss:$16 sps:$4 sm:$0xff]   ;;  %v7468_v19 = vld [vmem:[%s11356_s1 + $0x88] ss:$16 sps:$4 sm:$0xff]   ;;  %v7469_v20 = vld [vmem:[%s11356_s1 + $0xa4] ss:$16 sps:$4 sm:$0xff]  }
   0x8   :  { %5041 = vmatprep.subr.bf16.mxu0 %v7451_v8  ;;  %5574 = vmatprep.subr.bf16.mxu1 %v7453_v9  ;;  %v7471_v21 = vld [vmem:[%s11356_s1 + $0xac] ss:$16 sps:$4 sm:$0xff]   ;;  %v7473_v22 = vld [vmem:[%s11356_s1 + $0xa0] ss:$16 sps:$4 sm:$0xff]   ;;  %v7474_v23 = vld [vmem:[%s11356_s1 + $0xa8] ss:$16 sps:$4 sm:$0xff]  }
   0x9   :  { %v7475_v24 = vld [vmem:[%s11356_s1 + $0xc4] ss:$16 sps:$4 sm:$0xff]   ;;  %v7477_v25 = vld [vmem:[%s11356_s1 + $0xcc] ss:$16 sps:$4 sm:$0xff]   ;;  %v7479_v26 = vld [vmem:[%s11356_s1 + $0xc0] ss:$16 sps:$4 sm:$0xff]  }
   0xa   :  { %v7480_v27 = vld [vmem:[%s11356_s1 + $0xc8] ss:$16 sps:$4 sm:$0xff]   ;;  %v7481_v28 = vld [vmem:[%s11356_s1 + $0xe4] ss:$16 sps:$4 sm:$0xff]   ;;  %v7483_v29 = vld [vmem:[%s11356_s1 + $0xec] ss:$16 sps:$4 sm:$0xff]  }
   0xb   :  { %5042 = vmatpush1.bf16.msra.mxu0 %v7455_v10  ;;  %5575 = vmatpush1.bf16.msra.mxu1 %v7456_v11  ;;  %v7485_v30 = vld [vmem:[%s11356_s1 + $0xe0] ss:$16 sps:$4 sm:$0xff]   ;;  %v7486_v31 = vld [vmem:[%s11356_s1 + $0xe8] ss:$16 sps:$4 sm:$0xff]   ;;  %v7487_v32 = vld [vmem:[%s11356_s1 + $0x104] ss:$16 sps:$4 sm:$0xff]  }
   0xc   :  { %5043 = vmatprep.subr.bf16.mxu0 %v7457_v12  ;;  %5576 = vmatprep.subr.bf16.mxu1 %v7459_v13  ;;  %v7489_v33 = vld [vmem:[%s11356_s1 + $0x10c] ss:$16 sps:$4 sm:$0xff]   ;;  %v7491_v34 = vld [vmem:[%s11356_s1 + $0x100] ss:$16 sps:$4 sm:$0xff]   ;;  %v7492_v35 = vld [vmem:[%s11356_s1 + $0x108] ss:$16 sps:$4 sm:$0xff]  }
   0xd   :  { %v7493_v39 = vld [vmem:[%s11356_s1 + $0x124] ss:$16 sps:$4 sm:$0xff]   ;;  %v7495_v40 = vld [vmem:[%s11356_s1 + $0x12c] ss:$16 sps:$4 sm:$0xff]   ;;  %v7497_v41 = vld [vmem:[%s11356_s1 + $0x120] ss:$16 sps:$4 sm:$0xff]  }
   0xe   :  { %v8825_v42 = vshrl.u32 %v827_v36, 7  ;;  %v7498_v44 = vld [vmem:[%s11356_s1 + $0x128] ss:$16 sps:$4 sm:$0xff]   ;;  %v7499_v45 = vld [vmem:[%s11356_s1 + $0x144] ss:$16 sps:$4 sm:$0xff]  }
   0xf   :  { %5044 = vmatpush1.bf16.msra.mxu0 %v7461_v14  ;;  %5577 = vmatpush1.bf16.msra.mxu1 %v7462_v15  ;;  %v7501_v46 = vld [vmem:[%s11356_s1 + $0x14c] ss:$16 sps:$4 sm:$0xff]   ;;  %v7503_v47 = vld [vmem:[%s11356_s1 + $0x140] ss:$16 sps:$4 sm:$0xff]   ;;  %v7504_v48 = vld [vmem:[%s11356_s1 + $0x148] ss:$16 sps:$4 sm:$0xff]  }
  0x10   :  { %5045 = vmatprep.subr.bf16.mxu0 %v7463_v16  ;;  %5578 = vmatprep.subr.bf16.mxu1 %v7465_v17  ;;  %v8843_v49 = vsub.s32 %v854_v43, %v8825_v42  ;;  %v7505_v50 = vld [vmem:[%s11356_s1 + $0x164] ss:$16 sps:$4 sm:$0xff]   ;;  %v7507_v51 = vld [vmem:[%s11356_s1 + $0x16c] ss:$16 sps:$4 sm:$0xff]   ;;  %v7509_v53 = vld [vmem:[%s11356_s1 + $0x160] ss:$16 sps:$4 sm:$0xff]  }
  0x11   :  { %v8854_v52 = vld [vmem:[%s11357_s0] sm:$0xff]  ;;  %v7510_v55 = vld [vmem:[%s11356_s1 + $0x168] ss:$16 sps:$4 sm:$0xff]   ;;  %v7513_v57 = vld [vmem:[%s11356_s1 + $0x18c] ss:$16 sps:$4 sm:$0xff]  }
  0x12   :  { %v858_v54 = vrot.slane %v8854_v52, %v8843_v49  ;;  %v7511_v56 = vld [vmem:[%s11356_s1 + $0x184] ss:$16 sps:$4 sm:$0xff]   ;;  %v7515_v59 = vld [vmem:[%s11356_s1 + $0x180] ss:$16 sps:$4 sm:$0xff]   ;;  %v7516_v61 = vld [vmem:[%s11356_s1 + $0x188] ss:$16 sps:$4 sm:$0xff]  }
  0x13   :  { %5046 = vmatpush1.bf16.msra.mxu0 %v7467_v18  ;;  %5579 = vmatpush1.bf16.msra.mxu1 %v7468_v19  ;;  %v7517_v62 = vld [vmem:[%s11356_s1 + $0x1a4] ss:$16 sps:$4 sm:$0xff]   ;;  %v7519_v63 = vld [vmem:[%s11356_s1 + $0x1ac] ss:$16 sps:$4 sm:$0xff]   ;;  %v7521_v0 = vld [vmem:[%s11356_s1 + $0x1a0] ss:$16 sps:$4 sm:$0xff]  }
  0x14   :  { %5047 = vmatprep.subr.bf16.mxu0 %v7469_v20  ;;  %5580 = vmatprep.subr.bf16.mxu1 %v7471_v21  ;;  %v866_v58 = vcombine.high %v858_v54, %v858_v54  ;;  %v7522_v1 = vld [vmem:[%s11356_s1 + $0x1a8] ss:$16 sps:$4 sm:$0xff]   ;;  %v7523_v2 = vld [vmem:[%s11356_s1 + $0x1c4] ss:$16 sps:$4 sm:$0xff]   ;;  %v7525_v3 = vld [vmem:[%s11356_s1 + $0x1cc] ss:$16 sps:$4 sm:$0xff]   ;;  %v8923_v13 = vrot.slane %v858_v54, %v8843_v49 }
  0x15   :  { %v7527_v4 = vld [vmem:[%s11356_s1 + $0x1c0] ss:$16 sps:$4 sm:$0xff]   ;;  %v7528_v5 = vld [vmem:[%s11356_s1 + $0x1c8] ss:$16 sps:$4 sm:$0xff]   ;;  %v7529_v6 = vld [vmem:[%s11356_s1 + $0x1e4] ss:$16 sps:$4 sm:$0xff]  }
  0x16   :  { %v888_v60 = vrot.slane %v866_v58, %v8843_v49  ;;  %v7531_v7 = vld [vmem:[%s11356_s1 + $0x1ec] ss:$16 sps:$4 sm:$0xff]   ;;  %v7533_v8 = vld [vmem:[%s11356_s1 + $0x1e0] ss:$16 sps:$4 sm:$0xff]   ;;  %v7534_v9 = vld [vmem:[%s11356_s1 + $0x1e8] ss:$16 sps:$4 sm:$0xff]  }
  0x17   :  { %5048 = vmatpush1.bf16.msra.mxu0 %v7473_v22  ;;  %5581 = vmatpush1.bf16.msra.mxu1 %v7474_v23  ;;  %v7537_v10 = vld [vmem:[%s11356_s1 + $0x204] ss:$16 sps:$4 sm:$0xff]   ;;  %v7540_v11 = vld [vmem:[%s11356_s1 + $0x20c] ss:$16 sps:$4 sm:$0xff]   ;;  %v7535_v12 = vld [vmem:[%s11356_s1 + $0x200] ss:$16 sps:$4 sm:$0xff]  }
  0x18   :  { %5049 = vmatprep.subr.bf16.mxu0 %v7475_v24  ;;  %5582 = vmatprep.subr.bf16.mxu1 %v7477_v25  ;;  %v7538_v14 = vld [vmem:[%s11356_s1 + $0x208] ss:$16 sps:$4 sm:$0xff]   ;;  %v7543_v15 = vld [vmem:[%s11356_s1 + $0x224] ss:$16 sps:$4 sm:$0xff]   ;;  %v7546_v16 = vld [vmem:[%s11356_s1 + $0x22c] ss:$16 sps:$4 sm:$0xff]   ;;  %v898_v17 = vcombine.high %v888_v60, %v888_v60 }
  0x19   :  { %5069 = vmatprep.mubr.bf16.mxu0 %v888_v60  ;;  %5602 = vmatprep.mubr.bf16.mxu1 %v888_v60  ;;  %v7541_v18 = vld [vmem:[%s11356_s1 + $0x220] ss:$16 sps:$4 sm:$0xff]   ;;  %v7544_v19 = vld [vmem:[%s11356_s1 + $0x228] ss:$16 sps:$4 sm:$0xff]   ;;  %v7549_v20 = vld [vmem:[%s11356_s1 + $0x244] ss:$16 sps:$4 sm:$0xff]  }
  0x1a   :  { %v7552_v21 = vld [vmem:[%s11356_s1 + $0x24c] ss:$16 sps:$4 sm:$0xff]   ;;  %v7547_v22 = vld [vmem:[%s11356_s1 + $0x240] ss:$16 sps:$4 sm:$0xff]   ;;  %v7550_v23 = vld [vmem:[%s11356_s1 + $0x248] ss:$16 sps:$4 sm:$0xff]  }
  0x1b   :  { %5050 = vmatpush1.bf16.msra.mxu0 %v7479_v26  ;;  %5583 = vmatpush1.bf16.msra.mxu1 %v7480_v27  ;;  %v7555_v24 = vld [vmem:[%s11356_s1 + $0x264] ss:$16 sps:$4 sm:$0xff]   ;;  %v7558_v25 = vld [vmem:[%s11356_s1 + $0x26c] ss:$16 sps:$4 sm:$0xff]   ;;  %v7553_v26 = vld [vmem:[%s11356_s1 + $0x260] ss:$16 sps:$4 sm:$0xff]  }
  0x1c   :  { %5051 = vmatprep.subr.bf16.mxu0 %v7481_v28  ;;  %5584 = vmatprep.subr.bf16.mxu1 %v7483_v29  ;;  %v7556_v27 = vld [vmem:[%s11356_s1 + $0x268] ss:$16 sps:$4 sm:$0xff]   ;;  %v7561_v28 = vld [vmem:[%s11356_s1 + $0x284] ss:$16 sps:$4 sm:$0xff]   ;;  %v7564_v29 = vld [vmem:[%s11356_s1 + $0x28c] ss:$16 sps:$4 sm:$0xff]  }
  0x1d   :  { %v7573_v36 = vld [vmem:[%s11356_s1 + $0x2c4] ss:$16 sps:$4 sm:$0xff]   ;;  %v7576_v37 = vld [vmem:[%s11356_s1 + $0x2cc] ss:$16 sps:$4 sm:$0xff]   ;;  %v7571_v38 = vld [vmem:[%s11356_s1 + $0x2c0] ss:$16 sps:$4 sm:$0xff]  }
  0x1e   :  { %v7577_v43 = vld [vmem:[%s11356_s1 + $0x2e0] ss:$16 sps:$4 sm:$0xff]   ;;  %v7592_v54 = vld [vmem:[%s11356_s1 + $0x328] ss:$16 sps:$4 sm:$0xff]   ;;  %v7606_v60 = vld [vmem:[%s11356_s1 + $0x36c] ss:$16 sps:$4 sm:$0xff]  }
  0x1f   :  { %5052 = vmatpush1.bf16.msra.mxu0 %v7485_v30  ;;  %5585 = vmatpush1.bf16.msra.mxu1 %v7486_v31  ;;  %v7559_v30 = vld [vmem:[%s11356_s1 + $0x280] ss:$16 sps:$4 sm:$0xff]   ;;  %v7562_v31 = vld [vmem:[%s11356_s1 + $0x288] ss:$16 sps:$4 sm:$0xff]  }
  0x20   :  { %5053 = vmatprep.subr.bf16.mxu0 %v7487_v32  ;;  %5586 = vmatprep.subr.bf16.mxu1 %v7489_v33  ;;  %v7567_v32 = vld [vmem:[%s11356_s1 + $0x2a4] ss:$16 sps:$4 sm:$0xff]   ;;  %v7570_v33 = vld [vmem:[%s11356_s1 + $0x2ac] ss:$16 sps:$4 sm:$0xff]   ;;  %v7598_v58 = vld [vmem:[%s11356_s1 + $0x348] ss:$16 sps:$4 sm:$0xff]  }
  0x23   :  { %5054 = vmatpush1.bf16.msra.mxu0 %v7491_v34  ;;  %5587 = vmatpush1.bf16.msra.mxu1 %v7492_v35  ;;  %v7565_v34 = vld [vmem:[%s11356_s1 + $0x2a0] ss:$16 sps:$4 sm:$0xff]   ;;  %v7568_v35 = vld [vmem:[%s11356_s1 + $0x2a8] ss:$16 sps:$4 sm:$0xff]  }
  0x24   :  { %5055 = vmatprep.subr.bf16.mxu0 %v7493_v39  ;;  %5588 = vmatprep.subr.bf16.mxu1 %v7495_v40  ;;  %v7574_v39 = vld [vmem:[%s11356_s1 + $0x2c8] ss:$16 sps:$4 sm:$0xff]   ;;  %v7579_v40 = vld [vmem:[%s11356_s1 + $0x2e4] ss:$16 sps:$4 sm:$0xff]  }
  0x27   :  { %5056 = vmatpush1.bf16.msra.mxu0 %v7497_v41  ;;  %5589 = vmatpush1.bf16.msra.mxu1 %v7498_v44  ;;  %v7582_v41 = vld [vmem:[%s11356_s1 + $0x2ec] ss:$16 sps:$4 sm:$0xff]   ;;  %v7580_v44 = vld [vmem:[%s11356_s1 + $0x2e8] ss:$16 sps:$4 sm:$0xff]  }
  0x28   :  { %5057 = vmatprep.subr.bf16.mxu0 %v7499_v45  ;;  %5590 = vmatprep.subr.bf16.mxu1 %v7501_v46  ;;  %v7585_v45 = vld [vmem:[%s11356_s1 + $0x304] ss:$16 sps:$4 sm:$0xff]   ;;  %v7588_v46 = vld [vmem:[%s11356_s1 + $0x30c] ss:$16 sps:$4 sm:$0xff]  }
  0x2b   :  { %5058 = vmatpush1.bf16.msra.mxu0 %v7503_v47  ;;  %5591 = vmatpush1.bf16.msra.mxu1 %v7504_v48  ;;  %v7583_v47 = vld [vmem:[%s11356_s1 + $0x300] ss:$16 sps:$4 sm:$0xff]   ;;  %v7586_v48 = vld [vmem:[%s11356_s1 + $0x308] ss:$16 sps:$4 sm:$0xff]  }
  0x2c   :  { %5059 = vmatprep.subr.bf16.mxu0 %v7505_v50  ;;  %5592 = vmatprep.subr.bf16.mxu1 %v7507_v51  ;;  %v7591_v50 = vld [vmem:[%s11356_s1 + $0x324] ss:$16 sps:$4 sm:$0xff]   ;;  %v7594_v51 = vld [vmem:[%s11356_s1 + $0x32c] ss:$16 sps:$4 sm:$0xff]  }
  0x2f   :  { %5060 = vmatpush1.bf16.msra.mxu0 %v7509_v53  ;;  %5593 = vmatpush1.bf16.msra.mxu1 %v7510_v55  ;;  %v7589_v53 = vld [vmem:[%s11356_s1 + $0x320] ss:$16 sps:$4 sm:$0xff]   ;;  %v7597_v55 = vld [vmem:[%s11356_s1 + $0x344] ss:$16 sps:$4 sm:$0xff]  }
  0x30   :  { %5061 = vmatprep.subr.bf16.mxu0 %v7511_v56  ;;  %5594 = vmatprep.subr.bf16.mxu1 %v7513_v57  ;;  %v7600_v56 = vld [vmem:[%s11356_s1 + $0x34c] ss:$16 sps:$4 sm:$0xff]   ;;  %v7595_v57 = vld [vmem:[%s11356_s1 + $0x340] ss:$16 sps:$4 sm:$0xff]  }
  0x33   :  { %5062 = vmatpush1.bf16.msra.mxu0 %v7515_v59  ;;  %5595 = vmatpush1.bf16.msra.mxu1 %v7516_v61  ;;  %v7603_v59 = vld [vmem:[%s11356_s1 + $0x364] ss:$16 sps:$4 sm:$0xff]   ;;  %v7601_v61 = vld [vmem:[%s11356_s1 + $0x360] ss:$16 sps:$4 sm:$0xff]  }
  0x34   :  { %5063 = vmatprep.subr.bf16.mxu0 %v7517_v62  ;;  %5596 = vmatprep.subr.bf16.mxu1 %v7519_v63  ;;  %v7604_v62 = vld [vmem:[%s11356_s1 + $0x368] ss:$16 sps:$4 sm:$0xff]   ;;  %v7609_v63 = vld [vmem:[%s11356_s1 + $0x384] ss:$16 sps:$4 sm:$0xff]  }
  0x37   :  { %5064 = vmatpush1.bf16.msra.mxu0 %v7521_v0  ;;  %5597 = vmatpush1.bf16.msra.mxu1 %v7522_v1  ;;  %v7612_v0 = vld [vmem:[%s11356_s1 + $0x38c] ss:$16 sps:$4 sm:$0xff]   ;;  %v7607_v1 = vld [vmem:[%s11356_s1 + $0x380] ss:$16 sps:$4 sm:$0xff]  }
  0x38   :  { %5065 = vmatprep.subr.bf16.mxu0 %v7523_v2  ;;  %5598 = vmatprep.subr.bf16.mxu1 %v7525_v3  ;;  %v7610_v2 = vld [vmem:[%s11356_s1 + $0x388] ss:$16 sps:$4 sm:$0xff]   ;;  %v7615_v3 = vld [vmem:[%s11356_s1 + $0x3a4] ss:$16 sps:$4 sm:$0xff]  }
  0x3b   :  { %5066 = vmatpush1.bf16.msra.mxu0 %v7527_v4  ;;  %5599 = vmatpush1.bf16.msra.mxu1 %v7528_v5  ;;  %v7618_v4 = vld [vmem:[%s11356_s1 + $0x3ac] ss:$16 sps:$4 sm:$0xff]   ;;  %v7613_v5 = vld [vmem:[%s11356_s1 + $0x3a0] ss:$16 sps:$4 sm:$0xff]  }
  0x3c   :  { %5067 = vmatprep.subr.bf16.mxu0 %v7529_v6  ;;  %5600 = vmatprep.subr.bf16.mxu1 %v7531_v7  ;;  %v7616_v6 = vld [vmem:[%s11356_s1 + $0x3a8] ss:$16 sps:$4 sm:$0xff]   ;;  %v7621_v7 = vld [vmem:[%s11356_s1 + $0x3c4] ss:$16 sps:$4 sm:$0xff]  }
  0x3f   :  { %5068 = vmatpush1.bf16.msra.mxu0 %v7533_v8  ;;  %5601 = vmatpush1.bf16.msra.mxu1 %v7534_v9  ;;  %v7624_v8 = vld [vmem:[%s11356_s1 + $0x3cc] ss:$16 sps:$4 sm:$0xff]   ;;  %v851_v9 = vcombine.high %v8854_v52, %v8854_v52 }
  0x40   :  { %5078 = vmatprep.subr.bf16.mxu0 %v7537_v10  ;;  %5611 = vmatprep.subr.bf16.mxu1 %v7540_v11  ;;  %v7619_v10 = vld [vmem:[%s11356_s1 + $0x3c0] ss:$16 sps:$4 sm:$0xff]   ;;  %v7622_v11 = vld [vmem:[%s11356_s1 + $0x3c8] ss:$16 sps:$4 sm:$0xff]   ;;  %v7630_v52 = vld [vmem:[%s11356_s1 + $0x3ec] ss:$16 sps:$4 sm:$0xff]  }
  0x42   :  { %5070 = vmatmul.mubr.bf16.vlgmr.msra.gmra.mrb[0].mxu0 %v8923_v13  ;;  %5603 = vmatmul.mubr.bf16.vlgmr.msra.gmra.mrb[0].mxu1 %v8923_v13 }
  0x43   :  { %5079 = vmatpush1.bf16.msra.mxu0 %v7535_v12  ;;  %5612 = vmatpush1.bf16.msra.mxu1 %v7538_v14  ;;  %v7627_v12 = vld [vmem:[%s11356_s1 + $0x3e4] ss:$16 sps:$4 sm:$0xff]   ;;  %v9107_v14 = vrot.slane %v851_v9, %v8843_v49  ;;  %v7706_v9 = vld [vmem:[%s11356_s1 + $0x588] ss:$16 sps:$4 sm:$0xff]  }
  0x44   :  { %5080 = vmatprep.subr.bf16.mxu0 %v7543_v15  ;;  %5613 = vmatprep.subr.bf16.mxu1 %v7546_v16  ;;  %v7625_v15 = vld [vmem:[%s11356_s1 + $0x3e0] ss:$16 sps:$4 sm:$0xff]   ;;  %v7628_v16 = vld [vmem:[%s11356_s1 + $0x3e8] ss:$16 sps:$4 sm:$0xff]  }
  0x45   :  { %5110 = vmatprep.mubr.bf16.mxu0 %v898_v17  ;;  %5643 = vmatprep.mubr.bf16.mxu1 %v898_v17  ;;  %v7633_v17 = vld [vmem:[%s11356_s1 + $0x404] ss:$16 sps:$4 sm:$0xff]  }
  0x47   :  { %5081 = vmatpush1.bf16.msra.mxu0 %v7541_v18  ;;  %5614 = vmatpush1.bf16.msra.mxu1 %v7544_v19  ;;  %v7636_v18 = vld [vmem:[%s11356_s1 + $0x40c] ss:$16 sps:$4 sm:$0xff]   ;;  %v867_v19 = vcombine.high %v9107_v14, %v9107_v14 }
  0x48   :  { %5082 = vmatprep.subr.bf16.mxu0 %v7549_v20  ;;  %5615 = vmatprep.subr.bf16.mxu1 %v7552_v21  ;;  %v7631_v20 = vld [vmem:[%s11356_s1 + $0x400] ss:$16 sps:$4 sm:$0xff]   ;;  %v896_v21 = vcombine.high %v8923_v13, %v8923_v13 }
  0x49   :  { %v7637_v13 = vld [vmem:[%s11356_s1 + $0x420] ss:$16 sps:$4 sm:$0xff]  }
  0x4b   :  { %5083 = vmatpush1.bf16.msra.mxu0 %v7547_v22  ;;  %5616 = vmatpush1.bf16.msra.mxu1 %v7550_v23  ;;  %v7634_v22 = vld [vmem:[%s11356_s1 + $0x408] ss:$16 sps:$4 sm:$0xff]   ;;  %v7639_v23 = vld [vmem:[%s11356_s1 + $0x424] ss:$16 sps:$4 sm:$0xff]  }
  0x4c   :  { %5084 = vmatprep.subr.bf16.mxu0 %v7555_v24  ;;  %5617 = vmatprep.subr.bf16.mxu1 %v7558_v25  ;;  %v7642_v24 = vld [vmem:[%s11356_s1 + $0x42c] ss:$16 sps:$4 sm:$0xff]   ;;  %v9138_v25 = vrot.slane %v867_v19, %v8843_v49  ;;  %v7723_v19 = vld [vmem:[%s11356_s1 + $0x5e4] ss:$16 sps:$4 sm:$0xff]  }
  0x4f   :  { %5085 = vmatpush1.bf16.msra.mxu0 %v7553_v26  ;;  %5618 = vmatpush1.bf16.msra.mxu1 %v7556_v27  ;;  %v7640_v26 = vld [vmem:[%s11356_s1 + $0x428] ss:$16 sps:$4 sm:$0xff]   ;;  %v7645_v27 = vld [vmem:[%s11356_s1 + $0x444] ss:$16 sps:$4 sm:$0xff]  }
  0x50   :  { %5086 = vmatprep.subr.bf16.mxu0 %v7561_v28  ;;  %5619 = vmatprep.subr.bf16.mxu1 %v7564_v29  ;;  %v7648_v28 = vld [vmem:[%s11356_s1 + $0x44c] ss:$16 sps:$4 sm:$0xff]   ;;  %v7643_v29 = vld [vmem:[%s11356_s1 + $0x440] ss:$16 sps:$4 sm:$0xff]  }
  0x53   :  { %5087 = vmatpush1.bf16.msra.mxu0 %v7559_v30  ;;  %5620 = vmatpush1.bf16.msra.mxu1 %v7562_v31  ;;  %v7646_v30 = vld [vmem:[%s11356_s1 + $0x448] ss:$16 sps:$4 sm:$0xff]   ;;  %v7651_v31 = vld [vmem:[%s11356_s1 + $0x464] ss:$16 sps:$4 sm:$0xff]  }
  0x54   :  { %5088 = vmatprep.subr.bf16.mxu0 %v7567_v32  ;;  %5621 = vmatprep.subr.bf16.mxu1 %v7570_v33  ;;  %v7654_v32 = vld [vmem:[%s11356_s1 + $0x46c] ss:$16 sps:$4 sm:$0xff]   ;;  %v7649_v33 = vld [vmem:[%s11356_s1 + $0x460] ss:$16 sps:$4 sm:$0xff]  }
  0x57   :  { %5089 = vmatpush1.bf16.msra.mxu0 %v7565_v34  ;;  %5622 = vmatpush1.bf16.msra.mxu1 %v7568_v35  ;;  %v7652_v34 = vld [vmem:[%s11356_s1 + $0x468] ss:$16 sps:$4 sm:$0xff]   ;;  %v7657_v35 = vld [vmem:[%s11356_s1 + $0x484] ss:$16 sps:$4 sm:$0xff]  }
  0x58   :  { %5090 = vmatprep.subr.bf16.mxu0 %v7573_v36  ;;  %5623 = vmatprep.subr.bf16.mxu1 %v7576_v37  ;;  %v7660_v36 = vld [vmem:[%s11356_s1 + $0x48c] ss:$16 sps:$4 sm:$0xff]   ;;  %v7655_v37 = vld [vmem:[%s11356_s1 + $0x480] ss:$16 sps:$4 sm:$0xff]  }
  0x5b   :  { %5091 = vmatpush1.bf16.msra.mxu0 %v7571_v38  ;;  %5624 = vmatpush1.bf16.msra.mxu1 %v7574_v39  ;;  %v7658_v38 = vld [vmem:[%s11356_s1 + $0x488] ss:$16 sps:$4 sm:$0xff]   ;;  %v7663_v39 = vld [vmem:[%s11356_s1 + $0x4a4] ss:$16 sps:$4 sm:$0xff]  }
  0x5c   :  { %5092 = vmatprep.subr.bf16.mxu0 %v7579_v40  ;;  %5625 = vmatprep.subr.bf16.mxu1 %v7582_v41  ;;  %v7666_v40 = vld [vmem:[%s11356_s1 + $0x4ac] ss:$16 sps:$4 sm:$0xff]   ;;  %v7661_v41 = vld [vmem:[%s11356_s1 + $0x4a0] ss:$16 sps:$4 sm:$0xff]  }
  0x5f   :  { %5093 = vmatpush1.bf16.msra.mxu0 %v7577_v43  ;;  %5626 = vmatpush1.bf16.msra.mxu1 %v7580_v44  ;;  %v7664_v43 = vld [vmem:[%s11356_s1 + $0x4a8] ss:$16 sps:$4 sm:$0xff]   ;;  %v7669_v44 = vld [vmem:[%s11356_s1 + $0x4c4] ss:$16 sps:$4 sm:$0xff]  }
  0x60   :  { %5094 = vmatprep.subr.bf16.mxu0 %v7585_v45  ;;  %5627 = vmatprep.subr.bf16.mxu1 %v7588_v46  ;;  %v7672_v45 = vld [vmem:[%s11356_s1 + $0x4cc] ss:$16 sps:$4 sm:$0xff]   ;;  %v7667_v46 = vld [vmem:[%s11356_s1 + $0x4c0] ss:$16 sps:$4 sm:$0xff]  }
  0x63   :  { %5095 = vmatpush1.bf16.msra.mxu0 %v7583_v47  ;;  %5628 = vmatpush1.bf16.msra.mxu1 %v7586_v48  ;;  %v7670_v47 = vld [vmem:[%s11356_s1 + $0x4c8] ss:$16 sps:$4 sm:$0xff]   ;;  %v7675_v48 = vld [vmem:[%s11356_s1 + $0x4e4] ss:$16 sps:$4 sm:$0xff]  }
  0x64   :  { %5096 = vmatprep.subr.bf16.mxu0 %v7591_v50  ;;  %5629 = vmatprep.subr.bf16.mxu1 %v7594_v51  ;;  %v7678_v50 = vld [vmem:[%s11356_s1 + $0x4ec] ss:$16 sps:$4 sm:$0xff]   ;;  %v7673_v51 = vld [vmem:[%s11356_s1 + $0x4e0] ss:$16 sps:$4 sm:$0xff]  }
  0x67   :  { %5097 = vmatpush1.bf16.msra.mxu0 %v7589_v53  ;;  %5630 = vmatpush1.bf16.msra.mxu1 %v7592_v54  ;;  %v7676_v53 = vld [vmem:[%s11356_s1 + $0x4e8] ss:$16 sps:$4 sm:$0xff]   ;;  %v7681_v54 = vld [vmem:[%s11356_s1 + $0x504] ss:$16 sps:$4 sm:$0xff]  }
  0x68   :  { %5098 = vmatprep.subr.bf16.mxu0 %v7597_v55  ;;  %5631 = vmatprep.subr.bf16.mxu1 %v7600_v56  ;;  %v7684_v55 = vld [vmem:[%s11356_s1 + $0x50c] ss:$16 sps:$4 sm:$0xff]   ;;  %v7679_v56 = vld [vmem:[%s11356_s1 + $0x500] ss:$16 sps:$4 sm:$0xff]  }
  0x6b   :  { %5099 = vmatpush1.bf16.msra.mxu0 %v7595_v57  ;;  %5632 = vmatpush1.bf16.msra.mxu1 %v7598_v58  ;;  %v7682_v57 = vld [vmem:[%s11356_s1 + $0x508] ss:$16 sps:$4 sm:$0xff]   ;;  %v7687_v58 = vld [vmem:[%s11356_s1 + $0x524] ss:$16 sps:$4 sm:$0xff]  }
  0x6c   :  { %5100 = vmatprep.subr.bf16.mxu0 %v7603_v59  ;;  %5633 = vmatprep.subr.bf16.mxu1 %v7606_v60  ;;  %v7690_v59 = vld [vmem:[%s11356_s1 + $0x52c] ss:$16 sps:$4 sm:$0xff]   ;;  %v7685_v60 = vld [vmem:[%s11356_s1 + $0x520] ss:$16 sps:$4 sm:$0xff]  }
  0x6f   :  { %5101 = vmatpush1.bf16.msra.mxu0 %v7601_v61  ;;  %5634 = vmatpush1.bf16.msra.mxu1 %v7604_v62  ;;  %v7688_v61 = vld [vmem:[%s11356_s1 + $0x528] ss:$16 sps:$4 sm:$0xff]   ;;  %v7693_v62 = vld [vmem:[%s11356_s1 + $0x544] ss:$16 sps:$4 sm:$0xff]  }
  0x70   :  { %5102 = vmatprep.subr.bf16.mxu0 %v7609_v63  ;;  %5635 = vmatprep.subr.bf16.mxu1 %v7612_v0  ;;  %v7696_v63 = vld [vmem:[%s11356_s1 + $0x54c] ss:$16 sps:$4 sm:$0xff]   ;;  %v7691_v0 = vld [vmem:[%s11356_s1 + $0x540] ss:$16 sps:$4 sm:$0xff]  }
  0x73   :  { %5103 = vmatpush1.bf16.msra.mxu0 %v7607_v1  ;;  %5636 = vmatpush1.bf16.msra.mxu1 %v7610_v2  ;;  %v7694_v1 = vld [vmem:[%s11356_s1 + $0x548] ss:$16 sps:$4 sm:$0xff]   ;;  %v7699_v2 = vld [vmem:[%s11356_s1 + $0x564] ss:$16 sps:$4 sm:$0xff]  }
  0x74   :  { %5104 = vmatprep.subr.bf16.mxu0 %v7615_v3  ;;  %5637 = vmatprep.subr.bf16.mxu1 %v7618_v4  ;;  %v7702_v3 = vld [vmem:[%s11356_s1 + $0x56c] ss:$16 sps:$4 sm:$0xff]   ;;  %v7697_v4 = vld [vmem:[%s11356_s1 + $0x560] ss:$16 sps:$4 sm:$0xff]  }
  0x77   :  { %5105 = vmatpush1.bf16.msra.mxu0 %v7613_v5  ;;  %5638 = vmatpush1.bf16.msra.mxu1 %v7616_v6  ;;  %v7700_v5 = vld [vmem:[%s11356_s1 + $0x568] ss:$16 sps:$4 sm:$0xff]   ;;  %v7705_v6 = vld [vmem:[%s11356_s1 + $0x584] ss:$16 sps:$4 sm:$0xff]  }
  0x78   :  { %5106 = vmatprep.subr.bf16.mxu0 %v7621_v7  ;;  %5639 = vmatprep.subr.bf16.mxu1 %v7624_v8  ;;  %v7708_v7 = vld [vmem:[%s11356_s1 + $0x58c] ss:$16 sps:$4 sm:$0xff]   ;;  %v7703_v8 = vld [vmem:[%s11356_s1 + $0x580] ss:$16 sps:$4 sm:$0xff]  }
  0x7b   :  { %5107 = vmatpush1.bf16.msra.mxu0 %v7619_v10  ;;  %5640 = vmatpush1.bf16.msra.mxu1 %v7622_v11  ;;  %v7711_v10 = vld [vmem:[%s11356_s1 + $0x5a4] ss:$16 sps:$4 sm:$0xff]   ;;  %v7714_v11 = vld [vmem:[%s11356_s1 + $0x5ac] ss:$16 sps:$4 sm:$0xff]  }
  0x7c   :  { %5108 = vmatprep.subr.bf16.mxu0 %v7627_v12  ;;  %5641 = vmatprep.subr.bf16.mxu1 %v7630_v52  ;;  %v7709_v12 = vld [vmem:[%s11356_s1 + $0x5a0] ss:$16 sps:$4 sm:$0xff]   ;;  %v7712_v52 = vld [vmem:[%s11356_s1 + $0x5a8] ss:$16 sps:$4 sm:$0xff]  }
  0x7f   :  { %5109 = vmatpush1.bf16.msra.mxu0 %v7625_v15  ;;  %5642 = vmatpush1.bf16.msra.mxu1 %v7628_v16  ;;  %v7717_v15 = vld [vmem:[%s11356_s1 + $0x5c4] ss:$16 sps:$4 sm:$0xff]   ;;  %v7720_v16 = vld [vmem:[%s11356_s1 + $0x5cc] ss:$16 sps:$4 sm:$0xff]  }
  0x80   :  { %5119 = vmatprep.subr.bf16.mxu0 %v7633_v17  ;;  %5652 = vmatprep.subr.bf16.mxu1 %v7636_v18  ;;  %v7715_v17 = vld [vmem:[%s11356_s1 + $0x5c0] ss:$16 sps:$4 sm:$0xff]   ;;  %v7718_v18 = vld [vmem:[%s11356_s1 + $0x5c8] ss:$16 sps:$4 sm:$0xff]  }
  0x82   :  { %5111 = vmatmul.mubr.bf16.vlgmr.msra.gmra.mrb[0].mxu0 %v896_v21  ;;  %5644 = vmatmul.mubr.bf16.vlgmr.msra.gmra.mrb[0].mxu1 %v896_v21  ;;  %v7721_v21 = vld [vmem:[%s11356_s1 + $0x5e0] ss:$16 sps:$4 sm:$0xff]  }
  0x83   :  { %5120 = vmatpush1.bf16.msra.mxu0 %v7631_v20  ;;  %5653 = vmatpush1.bf16.msra.mxu1 %v7634_v22  ;;  %v7726_v20 = vld [vmem:[%s11356_s1 + $0x5ec] ss:$16 sps:$4 sm:$0xff]   ;;  %v7724_v22 = vld [vmem:[%s11356_s1 + $0x5e8] ss:$16 sps:$4 sm:$0xff]  }
  0x84   :  { %5121 = vmatprep.subr.bf16.mxu0 %v7639_v23  ;;  %5654 = vmatprep.subr.bf16.mxu1 %v7642_v24  ;;  %v7730_v23 = vld [vmem:[%s11356_s1 + $0x604] ss:$16 sps:$4 sm:$0xff]   ;;  %v7733_v24 = vld [vmem:[%s11356_s1 + $0x60c] ss:$16 sps:$4 sm:$0xff]  }
  0x85   :  { %5151 = vmatprep.mubr.bf16.mxu0 %v9138_v25  ;;  %5684 = vmatprep.mubr.bf16.mxu1 %v9138_v25 }
  0x87   :  { %5122 = vmatpush1.bf16.msra.mxu0 %v7637_v13  ;;  %5655 = vmatpush1.bf16.msra.mxu1 %v7640_v26  ;;  %v7728_v13 = vld [vmem:[%s11356_s1 + $0x600] ss:$16 sps:$4 sm:$0xff]   ;;  %v9327_v26 = vrot.slane %v9107_v14, %v8843_v49  ;;  %v899_v14 = vcombine.high %v9138_v25, %v9138_v25  ;;  %v7742_v25 = vld [vmem:[%s11356_s1 + $0x644] ss:$16 sps:$4 sm:$0xff]  }
  0x88   :  { %5123 = vmatprep.subr.bf16.mxu0 %v7645_v27  ;;  %5656 = vmatprep.subr.bf16.mxu1 %v7648_v28  ;;  %v7731_v27 = vld [vmem:[%s11356_s1 + $0x608] ss:$16 sps:$4 sm:$0xff]   ;;  %v7736_v28 = vld [vmem:[%s11356_s1 + $0x624] ss:$16 sps:$4 sm:$0xff]  }
  0x8b   :  { %5124 = vmatpush1.bf16.msra.mxu0 %v7643_v29  ;;  %5657 = vmatpush1.bf16.msra.mxu1 %v7646_v30  ;;  %v7739_v29 = vld [vmem:[%s11356_s1 + $0x62c] ss:$16 sps:$4 sm:$0xff]   ;;  %v7734_v30 = vld [vmem:[%s11356_s1 + $0x620] ss:$16 sps:$4 sm:$0xff]  }
  0x8c   :  { %5125 = vmatprep.subr.bf16.mxu0 %v7651_v31  ;;  %5658 = vmatprep.subr.bf16.mxu1 %v7654_v32  ;;  %v7737_v31 = vld [vmem:[%s11356_s1 + $0x628] ss:$16 sps:$4 sm:$0xff]   ;;  %v7745_v32 = vld [vmem:[%s11356_s1 + $0x64c] ss:$16 sps:$4 sm:$0xff]  }
  0x8f   :  { %5126 = vmatpush1.bf16.msra.mxu0 %v7649_v33  ;;  %5659 = vmatpush1.bf16.msra.mxu1 %v7652_v34  ;;  %v7740_v33 = vld [vmem:[%s11356_s1 + $0x640] ss:$16 sps:$4 sm:$0xff]   ;;  %v7743_v34 = vld [vmem:[%s11356_s1 + $0x648] ss:$16 sps:$4 sm:$0xff]  }
  0x90   :  { %5127 = vmatprep.subr.bf16.mxu0 %v7657_v35  ;;  %5660 = vmatprep.subr.bf16.mxu1 %v7660_v36  ;;  %v7748_v35 = vld [vmem:[%s11356_s1 + $0x664] ss:$16 sps:$4 sm:$0xff]   ;;  %v7751_v36 = vld [vmem:[%s11356_s1 + $0x66c] ss:$16 sps:$4 sm:$0xff]  }
  0x93   :  { %5128 = vmatpush1.bf16.msra.mxu0 %v7655_v37  ;;  %5661 = vmatpush1.bf16.msra.mxu1 %v7658_v38  ;;  %v7746_v37 = vld [vmem:[%s11356_s1 + $0x660] ss:$16 sps:$4 sm:$0xff]   ;;  %v7749_v38 = vld [vmem:[%s11356_s1 + $0x668] ss:$16 sps:$4 sm:$0xff]  }
  0x94   :  { %5129 = vmatprep.subr.bf16.mxu0 %v7663_v39  ;;  %5662 = vmatprep.subr.bf16.mxu1 %v7666_v40  ;;  %v7754_v39 = vld [vmem:[%s11356_s1 + $0x684] ss:$16 sps:$4 sm:$0xff]   ;;  %v7757_v40 = vld [vmem:[%s11356_s1 + $0x68c] ss:$16 sps:$4 sm:$0xff]  }
  0x97   :  { %5130 = vmatpush1.bf16.msra.mxu0 %v7661_v41  ;;  %5663 = vmatpush1.bf16.msra.mxu1 %v7664_v43  ;;  %v7752_v41 = vld [vmem:[%s11356_s1 + $0x680] ss:$16 sps:$4 sm:$0xff]   ;;  %v7755_v43 = vld [vmem:[%s11356_s1 + $0x688] ss:$16 sps:$4 sm:$0xff]  }
  0x98   :  { %5131 = vmatprep.subr.bf16.mxu0 %v7669_v44  ;;  %5664 = vmatprep.subr.bf16.mxu1 %v7672_v45  ;;  %v7760_v44 = vld [vmem:[%s11356_s1 + $0x6a4] ss:$16 sps:$4 sm:$0xff]   ;;  %v7763_v45 = vld [vmem:[%s11356_s1 + $0x6ac] ss:$16 sps:$4 sm:$0xff]  }
  0x9b   :  { %5132 = vmatpush1.bf16.msra.mxu0 %v7667_v46  ;;  %5665 = vmatpush1.bf16.msra.mxu1 %v7670_v47  ;;  %v7758_v46 = vld [vmem:[%s11356_s1 + $0x6a0] ss:$16 sps:$4 sm:$0xff]   ;;  %v7761_v47 = vld [vmem:[%s11356_s1 + $0x6a8] ss:$16 sps:$4 sm:$0xff]  }
  0x9c   :  { %5133 = vmatprep.subr.bf16.mxu0 %v7675_v48  ;;  %5666 = vmatprep.subr.bf16.mxu1 %v7678_v50  ;;  %v7766_v48 = vld [vmem:[%s11356_s1 + $0x6c4] ss:$16 sps:$4 sm:$0xff]   ;;  %v7769_v50 = vld [vmem:[%s11356_s1 + $0x6cc] ss:$16 sps:$4 sm:$0xff]  }
  0x9f   :  { %5134 = vmatpush1.bf16.msra.mxu0 %v7673_v51  ;;  %5667 = vmatpush1.bf16.msra.mxu1 %v7676_v53  ;;  %v7764_v51 = vld [vmem:[%s11356_s1 + $0x6c0] ss:$16 sps:$4 sm:$0xff]   ;;  %v7767_v53 = vld [vmem:[%s11356_s1 + $0x6c8] ss:$16 sps:$4 sm:$0xff]  }
  0xa0   :  { %5135 = vmatprep.subr.bf16.mxu0 %v7681_v54  ;;  %5668 = vmatprep.subr.bf16.mxu1 %v7684_v55  ;;  %v7772_v54 = vld [vmem:[%s11356_s1 + $0x6e4] ss:$16 sps:$4 sm:$0xff]   ;;  %v7775_v55 = vld [vmem:[%s11356_s1 + $0x6ec] ss:$16 sps:$4 sm:$0xff]  }
  0xa3   :  { %5136 = vmatpush1.bf16.msra.mxu0 %v7679_v56  ;;  %5669 = vmatpush1.bf16.msra.mxu1 %v7682_v57  ;;  %v7770_v56 = vld [vmem:[%s11356_s1 + $0x6e0] ss:$16 sps:$4 sm:$0xff]   ;;  %v7773_v57 = vld [vmem:[%s11356_s1 + $0x6e8] ss:$16 sps:$4 sm:$0xff]  }
  0xa4   :  { %5137 = vmatprep.subr.bf16.mxu0 %v7687_v58  ;;  %5670 = vmatprep.subr.bf16.mxu1 %v7690_v59  ;;  %v7778_v58 = vld [vmem:[%s11356_s1 + $0x704] ss:$16 sps:$4 sm:$0xff]   ;;  %v7781_v59 = vld [vmem:[%s11356_s1 + $0x70c] ss:$16 sps:$4 sm:$0xff]  }
  0xa7   :  { %5138 = vmatpush1.bf16.msra.mxu0 %v7685_v60  ;;  %5671 = vmatpush1.bf16.msra.mxu1 %v7688_v61  ;;  %v7776_v60 = vld [vmem:[%s11356_s1 + $0x700] ss:$16 sps:$4 sm:$0xff]   ;;  %v7779_v61 = vld [vmem:[%s11356_s1 + $0x708] ss:$16 sps:$4 sm:$0xff]  }
  0xa8   :  { %5139 = vmatprep.subr.bf16.mxu0 %v7693_v62  ;;  %5672 = vmatprep.subr.bf16.mxu1 %v7696_v63  ;;  %v7784_v62 = vld [vmem:[%s11356_s1 + $0x724] ss:$16 sps:$4 sm:$0xff]   ;;  %v7787_v63 = vld [vmem:[%s11356_s1 + $0x72c] ss:$16 sps:$4 sm:$0xff]  }
  0xab   :  { %5140 = vmatpush1.bf16.msra.mxu0 %v7691_v0  ;;  %5673 = vmatpush1.bf16.msra.mxu1 %v7694_v1  ;;  %v7782_v0 = vld [vmem:[%s11356_s1 + $0x720] ss:$16 sps:$4 sm:$0xff]   ;;  %v7785_v1 = vld [vmem:[%s11356_s1 + $0x728] ss:$16 sps:$4 sm:$0xff]  }
  0xac   :  { %5141 = vmatprep.subr.bf16.mxu0 %v7699_v2  ;;  %5674 = vmatprep.subr.bf16.mxu1 %v7702_v3  ;;  %v7790_v2 = vld [vmem:[%s11356_s1 + $0x744] ss:$16 sps:$4 sm:$0xff]   ;;  %v7793_v3 = vld [vmem:[%s11356_s1 + $0x74c] ss:$16 sps:$4 sm:$0xff]  }
  0xaf   :  { %5142 = vmatpush1.bf16.msra.mxu0 %v7697_v4  ;;  %5675 = vmatpush1.bf16.msra.mxu1 %v7700_v5  ;;  %v7788_v4 = vld [vmem:[%s11356_s1 + $0x740] ss:$16 sps:$4 sm:$0xff]   ;;  %v7791_v5 = vld [vmem:[%s11356_s1 + $0x748] ss:$16 sps:$4 sm:$0xff]  }
  0xb0   :  { %5143 = vmatprep.subr.bf16.mxu0 %v7705_v6  ;;  %5676 = vmatprep.subr.bf16.mxu1 %v7708_v7  ;;  %v7796_v6 = vld [vmem:[%s11356_s1 + $0x764] ss:$16 sps:$4 sm:$0xff]   ;;  %v7799_v7 = vld [vmem:[%s11356_s1 + $0x76c] ss:$16 sps:$4 sm:$0xff]  }
  0xb3   :  { %5144 = vmatpush1.bf16.msra.mxu0 %v7703_v8  ;;  %5677 = vmatpush1.bf16.msra.mxu1 %v7706_v9  ;;  %v7794_v8 = vld [vmem:[%s11356_s1 + $0x760] ss:$16 sps:$4 sm:$0xff]   ;;  %v7797_v9 = vld [vmem:[%s11356_s1 + $0x768] ss:$16 sps:$4 sm:$0xff]  }
  0xb4   :  { %5145 = vmatprep.subr.bf16.mxu0 %v7711_v10  ;;  %5678 = vmatprep.subr.bf16.mxu1 %v7714_v11  ;;  %v7802_v10 = vld [vmem:[%s11356_s1 + $0x784] ss:$16 sps:$4 sm:$0xff]   ;;  %v7805_v11 = vld [vmem:[%s11356_s1 + $0x78c] ss:$16 sps:$4 sm:$0xff]  }
  0xb7   :  { %5146 = vmatpush1.bf16.msra.mxu0 %v7709_v12  ;;  %5679 = vmatpush1.bf16.msra.mxu1 %v7712_v52  ;;  %v7800_v12 = vld [vmem:[%s11356_s1 + $0x780] ss:$16 sps:$4 sm:$0xff]   ;;  %v7803_v52 = vld [vmem:[%s11356_s1 + $0x788] ss:$16 sps:$4 sm:$0xff]  }
  0xb8   :  { %5147 = vmatprep.subr.bf16.mxu0 %v7717_v15  ;;  %5680 = vmatprep.subr.bf16.mxu1 %v7720_v16  ;;  %v7808_v15 = vld [vmem:[%s11356_s1 + $0x7a4] ss:$16 sps:$4 sm:$0xff]   ;;  %v7811_v16 = vld [vmem:[%s11356_s1 + $0x7ac] ss:$16 sps:$4 sm:$0xff]  }
  0xbb   :  { %5148 = vmatpush1.bf16.msra.mxu0 %v7715_v17  ;;  %5681 = vmatpush1.bf16.msra.mxu1 %v7718_v18  ;;  %v7806_v17 = vld [vmem:[%s11356_s1 + $0x7a0] ss:$16 sps:$4 sm:$0xff]   ;;  %v7809_v18 = vld [vmem:[%s11356_s1 + $0x7a8] ss:$16 sps:$4 sm:$0xff]  }
  0xbc   :  { %5149 = vmatprep.subr.bf16.mxu0 %v7723_v19  ;;  %5682 = vmatprep.subr.bf16.mxu1 %v7726_v20  ;;  %v7814_v19 = vld [vmem:[%s11356_s1 + $0x7c4] ss:$16 sps:$4 sm:$0xff]   ;;  %v7817_v20 = vld [vmem:[%s11356_s1 + $0x7cc] ss:$16 sps:$4 sm:$0xff]  }
  0xbf   :  { %5150 = vmatpush1.bf16.msra.mxu0 %v7721_v21  ;;  %5683 = vmatpush1.bf16.msra.mxu1 %v7724_v22  ;;  %v9501_v21 = vld.sshfl [vmem:[%s11357_s0 + $0x8] sm:$0xff pattern:$0x75316420]  ;;  %v7812_v22 = vld [vmem:[%s11356_s1 + $0x7c0] ss:$16 sps:$4 sm:$0xff]  }
  0xc0   :  { %5160 = vmatprep.subr.bf16.mxu0 %v7730_v23  ;;  %5693 = vmatprep.subr.bf16.mxu1 %v7733_v24  ;;  %v7815_v23 = vld [vmem:[%s11356_s1 + $0x7c8] ss:$16 sps:$4 sm:$0xff]   ;;  %v7820_v24 = vld [vmem:[%s11356_s1 + $0x7e4] ss:$16 sps:$4 sm:$0xff]  }
  0xc2   :  { %5152 = vmatmul.mubr.bf16.vlgmr.msra.gmra.mrb[0].mxu0 %v9327_v26  ;;  %5685 = vmatmul.mubr.bf16.vlgmr.msra.gmra.mrb[0].mxu1 %v9327_v26 }
  0xc3   :  { %5161 = vmatpush1.bf16.msra.mxu0 %v7728_v13  ;;  %5694 = vmatpush1.bf16.msra.mxu1 %v7731_v27  ;;  %v7823_v13 = vld [vmem:[%s11356_s1 + $0x7ec] ss:$16 sps:$4 sm:$0xff]   ;;  %v7818_v27 = vld [vmem:[%s11356_s1 + $0x7e0] ss:$16 sps:$4 sm:$0xff]  }
  0xc4   :  { %5162 = vmatprep.subr.bf16.mxu0 %v7736_v28  ;;  %5695 = vmatprep.subr.bf16.mxu1 %v7739_v29  ;;  %v7821_v28 = vld [vmem:[%s11356_s1 + $0x7e8] ss:$16 sps:$4 sm:$0xff]   ;;  %v7826_v29 = vld [vmem:[%s11356_s1 + $0x804] ss:$16 sps:$4 sm:$0xff]  }
  0xc5   :  { %5192 = vmatprep.mubr.bf16.mxu0 %v899_v14  ;;  %5725 = vmatprep.mubr.bf16.mxu1 %v899_v14  ;;  %v7829_v14 = vld [vmem:[%s11356_s1 + $0x80c] ss:$16 sps:$4 sm:$0xff]  }
  0xc7   :  { %5163 = vmatpush1.bf16.msra.mxu0 %v7734_v30  ;;  %5696 = vmatpush1.bf16.msra.mxu1 %v7737_v31  ;;  %v915_v30 = vcombine.high %v9501_v21, %v9501_v21  ;;  %v897_v31 = vcombine.high %v9327_v26, %v9327_v26  ;;  %v7835_v26 = vld [vmem:[%s11356_s1 + $0x82c] ss:$16 sps:$4 sm:$0xff]  }
  0xc8   :  { %5164 = vmatprep.subr.bf16.mxu0 %v7742_v25  ;;  %5697 = vmatprep.subr.bf16.mxu1 %v7745_v32  ;;  %v7824_v25 = vld [vmem:[%s11356_s1 + $0x800] ss:$16 sps:$4 sm:$0xff]   ;;  %v7827_v32 = vld [vmem:[%s11356_s1 + $0x808] ss:$16 sps:$4 sm:$0xff]  }
  0xcb   :  { %5165 = vmatpush1.bf16.msra.mxu0 %v7740_v33  ;;  %5698 = vmatpush1.bf16.msra.mxu1 %v7743_v34  ;;  %v7832_v33 = vld [vmem:[%s11356_s1 + $0x824] ss:$16 sps:$4 sm:$0xff]   ;;  %v9544_v34 = vrot.slane %v915_v30, %v8843_v49 }
  0xcc   :  { %5166 = vmatprep.subr.bf16.mxu0 %v7748_v35  ;;  %5699 = vmatprep.subr.bf16.mxu1 %v7751_v36  ;;  %v7830_v35 = vld [vmem:[%s11356_s1 + $0x820] ss:$16 sps:$4 sm:$0xff]   ;;  %v7833_v36 = vld [vmem:[%s11356_s1 + $0x828] ss:$16 sps:$4 sm:$0xff]   ;;  %v7916_v30 = vld [vmem:[%s11356_s1 + $0x9e4] ss:$16 sps:$4 sm:$0xff]  }
  0xcf   :  { %5167 = vmatpush1.bf16.msra.mxu0 %v7746_v37  ;;  %5700 = vmatpush1.bf16.msra.mxu1 %v7749_v38  ;;  %v7838_v37 = vld [vmem:[%s11356_s1 + $0x844] ss:$16 sps:$4 sm:$0xff]   ;;  %v7841_v38 = vld [vmem:[%s11356_s1 + $0x84c] ss:$16 sps:$4 sm:$0xff]  }
  0xd0   :  { %5168 = vmatprep.subr.bf16.mxu0 %v7754_v39  ;;  %5701 = vmatprep.subr.bf16.mxu1 %v7757_v40  ;;  %v7836_v39 = vld [vmem:[%s11356_s1 + $0x840] ss:$16 sps:$4 sm:$0xff]   ;;  %v7839_v40 = vld [vmem:[%s11356_s1 + $0x848] ss:$16 sps:$4 sm:$0xff]  }
  0xd3   :  { %5169 = vmatpush1.bf16.msra.mxu0 %v7752_v41  ;;  %5702 = vmatpush1.bf16.msra.mxu1 %v7755_v43  ;;  %v7844_v41 = vld [vmem:[%s11356_s1 + $0x864] ss:$16 sps:$4 sm:$0xff]   ;;  %v7847_v43 = vld [vmem:[%s11356_s1 + $0x86c] ss:$16 sps:$4 sm:$0xff]  }
  0xd4   :  { %5170 = vmatprep.subr.bf16.mxu0 %v7760_v44  ;;  %5703 = vmatprep.subr.bf16.mxu1 %v7763_v45  ;;  %v7842_v44 = vld [vmem:[%s11356_s1 + $0x860] ss:$16 sps:$4 sm:$0xff]   ;;  %v7845_v45 = vld [vmem:[%s11356_s1 + $0x868] ss:$16 sps:$4 sm:$0xff]  }
  0xd7   :  { %5171 = vmatpush1.bf16.msra.mxu0 %v7758_v46  ;;  %5704 = vmatpush1.bf16.msra.mxu1 %v7761_v47  ;;  %v7850_v46 = vld [vmem:[%s11356_s1 + $0x884] ss:$16 sps:$4 sm:$0xff]   ;;  %v7853_v47 = vld [vmem:[%s11356_s1 + $0x88c] ss:$16 sps:$4 sm:$0xff]  }
  0xd8   :  { %5172 = vmatprep.subr.bf16.mxu0 %v7766_v48  ;;  %5705 = vmatprep.subr.bf16.mxu1 %v7769_v50  ;;  %v7848_v48 = vld [vmem:[%s11356_s1 + $0x880] ss:$16 sps:$4 sm:$0xff]   ;;  %v7851_v50 = vld [vmem:[%s11356_s1 + $0x888] ss:$16 sps:$4 sm:$0xff]  }
  0xdb   :  { %5173 = vmatpush1.bf16.msra.mxu0 %v7764_v51  ;;  %5706 = vmatpush1.bf16.msra.mxu1 %v7767_v53  ;;  %v7856_v51 = vld [vmem:[%s11356_s1 + $0x8a4] ss:$16 sps:$4 sm:$0xff]   ;;  %v7859_v53 = vld [vmem:[%s11356_s1 + $0x8ac] ss:$16 sps:$4 sm:$0xff]  }
  0xdc   :  { %5174 = vmatprep.subr.bf16.mxu0 %v7772_v54  ;;  %5707 = vmatprep.subr.bf16.mxu1 %v7775_v55  ;;  %v7854_v54 = vld [vmem:[%s11356_s1 + $0x8a0] ss:$16 sps:$4 sm:$0xff]   ;;  %v7857_v55 = vld [vmem:[%s11356_s1 + $0x8a8] ss:$16 sps:$4 sm:$0xff]  }
  0xdf   :  { %5175 = vmatpush1.bf16.msra.mxu0 %v7770_v56  ;;  %5708 = vmatpush1.bf16.msra.mxu1 %v7773_v57  ;;  %v7862_v56 = vld [vmem:[%s11356_s1 + $0x8c4] ss:$16 sps:$4 sm:$0xff]   ;;  %v7865_v57 = vld [vmem:[%s11356_s1 + $0x8cc] ss:$16 sps:$4 sm:$0xff]  }
  0xe0   :  { %5176 = vmatprep.subr.bf16.mxu0 %v7778_v58  ;;  %5709 = vmatprep.subr.bf16.mxu1 %v7781_v59  ;;  %v7860_v58 = vld [vmem:[%s11356_s1 + $0x8c0] ss:$16 sps:$4 sm:$0xff]   ;;  %v7863_v59 = vld [vmem:[%s11356_s1 + $0x8c8] ss:$16 sps:$4 sm:$0xff]  }
  0xe3   :  { %5177 = vmatpush1.bf16.msra.mxu0 %v7776_v60  ;;  %5710 = vmatpush1.bf16.msra.mxu1 %v7779_v61  ;;  %v7868_v60 = vld [vmem:[%s11356_s1 + $0x8e4] ss:$16 sps:$4 sm:$0xff]   ;;  %v7871_v61 = vld [vmem:[%s11356_s1 + $0x8ec] ss:$16 sps:$4 sm:$0xff]  }
  0xe4   :  { %5178 = vmatprep.subr.bf16.mxu0 %v7784_v62  ;;  %5711 = vmatprep.subr.bf16.mxu1 %v7787_v63  ;;  %v7866_v62 = vld [vmem:[%s11356_s1 + $0x8e0] ss:$16 sps:$4 sm:$0xff]   ;;  %v7869_v63 = vld [vmem:[%s11356_s1 + $0x8e8] ss:$16 sps:$4 sm:$0xff]  }
  0xe7   :  { %5179 = vmatpush1.bf16.msra.mxu0 %v7782_v0  ;;  %5712 = vmatpush1.bf16.msra.mxu1 %v7785_v1  ;;  %v7874_v0 = vld [vmem:[%s11356_s1 + $0x904] ss:$16 sps:$4 sm:$0xff]   ;;  %v7877_v1 = vld [vmem:[%s11356_s1 + $0x90c] ss:$16 sps:$4 sm:$0xff]  }
  0xe8   :  { %5180 = vmatprep.subr.bf16.mxu0 %v7790_v2  ;;  %5713 = vmatprep.subr.bf16.mxu1 %v7793_v3  ;;  %v7872_v2 = vld [vmem:[%s11356_s1 + $0x900] ss:$16 sps:$4 sm:$0xff]   ;;  %v7875_v3 = vld [vmem:[%s11356_s1 + $0x908] ss:$16 sps:$4 sm:$0xff]  }
  0xeb   :  { %5181 = vmatpush1.bf16.msra.mxu0 %v7788_v4  ;;  %5714 = vmatpush1.bf16.msra.mxu1 %v7791_v5  ;;  %v7880_v4 = vld [vmem:[%s11356_s1 + $0x924] ss:$16 sps:$4 sm:$0xff]   ;;  %v7883_v5 = vld [vmem:[%s11356_s1 + $0x92c] ss:$16 sps:$4 sm:$0xff]  }
  0xec   :  { %5182 = vmatprep.subr.bf16.mxu0 %v7796_v6  ;;  %5715 = vmatprep.subr.bf16.mxu1 %v7799_v7  ;;  %v7878_v6 = vld [vmem:[%s11356_s1 + $0x920] ss:$16 sps:$4 sm:$0xff]   ;;  %v7881_v7 = vld [vmem:[%s11356_s1 + $0x928] ss:$16 sps:$4 sm:$0xff]  }
  0xef   :  { %5183 = vmatpush1.bf16.msra.mxu0 %v7794_v8  ;;  %5716 = vmatpush1.bf16.msra.mxu1 %v7797_v9  ;;  %v7886_v8 = vld [vmem:[%s11356_s1 + $0x944] ss:$16 sps:$4 sm:$0xff]   ;;  %v7889_v9 = vld [vmem:[%s11356_s1 + $0x94c] ss:$16 sps:$4 sm:$0xff]  }
  0xf0   :  { %5184 = vmatprep.subr.bf16.mxu0 %v7802_v10  ;;  %5717 = vmatprep.subr.bf16.mxu1 %v7805_v11  ;;  %v7884_v10 = vld [vmem:[%s11356_s1 + $0x940] ss:$16 sps:$4 sm:$0xff]   ;;  %v7887_v11 = vld [vmem:[%s11356_s1 + $0x948] ss:$16 sps:$4 sm:$0xff]  }
  0xf3   :  { %5185 = vmatpush1.bf16.msra.mxu0 %v7800_v12  ;;  %5718 = vmatpush1.bf16.msra.mxu1 %v7803_v52  ;;  %v7892_v12 = vld [vmem:[%s11356_s1 + $0x964] ss:$16 sps:$4 sm:$0xff]   ;;  %v7895_v52 = vld [vmem:[%s11356_s1 + $0x96c] ss:$16 sps:$4 sm:$0xff]  }
  0xf4   :  { %5186 = vmatprep.subr.bf16.mxu0 %v7808_v15  ;;  %5719 = vmatprep.subr.bf16.mxu1 %v7811_v16  ;;  %v7890_v15 = vld [vmem:[%s11356_s1 + $0x960] ss:$16 sps:$4 sm:$0xff]   ;;  %v7893_v16 = vld [vmem:[%s11356_s1 + $0x968] ss:$16 sps:$4 sm:$0xff]  }
  0xf7   :  { %5187 = vmatpush1.bf16.msra.mxu0 %v7806_v17  ;;  %5720 = vmatpush1.bf16.msra.mxu1 %v7809_v18  ;;  %v7898_v17 = vld [vmem:[%s11356_s1 + $0x984] ss:$16 sps:$4 sm:$0xff]   ;;  %v7901_v18 = vld [vmem:[%s11356_s1 + $0x98c] ss:$16 sps:$4 sm:$0xff]  }
  0xf8   :  { %5188 = vmatprep.subr.bf16.mxu0 %v7814_v19  ;;  %5721 = vmatprep.subr.bf16.mxu1 %v7817_v20  ;;  %v7896_v19 = vld [vmem:[%s11356_s1 + $0x980] ss:$16 sps:$4 sm:$0xff]   ;;  %v7899_v20 = vld [vmem:[%s11356_s1 + $0x988] ss:$16 sps:$4 sm:$0xff]  }
  0xfb   :  { %5189 = vmatpush1.bf16.msra.mxu0 %v7812_v22  ;;  %5722 = vmatpush1.bf16.msra.mxu1 %v7815_v23  ;;  %v7904_v22 = vld [vmem:[%s11356_s1 + $0x9a4] ss:$16 sps:$4 sm:$0xff]   ;;  %v7907_v23 = vld [vmem:[%s11356_s1 + $0x9ac] ss:$16 sps:$4 sm:$0xff]  }
  0xfc   :  { %5190 = vmatprep.subr.bf16.mxu0 %v7820_v24  ;;  %5723 = vmatprep.subr.bf16.mxu1 %v7823_v13  ;;  %v7902_v24 = vld [vmem:[%s11356_s1 + $0x9a0] ss:$16 sps:$4 sm:$0xff]   ;;  %v7905_v13 = vld [vmem:[%s11356_s1 + $0x9a8] ss:$16 sps:$4 sm:$0xff]  }
  0xff   :  { %5191 = vmatpush1.bf16.msra.mxu0 %v7818_v27  ;;  %5724 = vmatpush1.bf16.msra.mxu1 %v7821_v28  ;;  %v7910_v27 = vld [vmem:[%s11356_s1 + $0x9c4] ss:$16 sps:$4 sm:$0xff]   ;;  %v7913_v28 = vld [vmem:[%s11356_s1 + $0x9cc] ss:$16 sps:$4 sm:$0xff]  }
 0x100   :  { %5201 = vmatprep.subr.bf16.mxu0 %v7826_v29  ;;  %5734 = vmatprep.subr.bf16.mxu1 %v7829_v14  ;;  %v7908_v29 = vld [vmem:[%s11356_s1 + $0x9c0] ss:$16 sps:$4 sm:$0xff]   ;;  %v7911_v14 = vld [vmem:[%s11356_s1 + $0x9c8] ss:$16 sps:$4 sm:$0xff]  }
 0x102   :  { %5193 = vmatmul.mubr.bf16.vlgmr.msra.gmra.mrb[0].mxu0 %v897_v31  ;;  %5726 = vmatmul.mubr.bf16.vlgmr.msra.gmra.mrb[0].mxu1 %v897_v31  ;;  %v7919_v31 = vld [vmem:[%s11356_s1 + $0x9ec] ss:$16 sps:$4 sm:$0xff]  }
 0x103   :  { %5202 = vmatpush1.bf16.msra.mxu0 %v7824_v25  ;;  %5735 = vmatpush1.bf16.msra.mxu1 %v7827_v32  ;;  %v7914_v25 = vld [vmem:[%s11356_s1 + $0x9e0] ss:$16 sps:$4 sm:$0xff]   ;;  %v7917_v32 = vld [vmem:[%s11356_s1 + $0x9e8] ss:$16 sps:$4 sm:$0xff]  }
 0x104   :  { %5203 = vmatprep.subr.bf16.mxu0 %v7832_v33  ;;  %5736 = vmatprep.subr.bf16.mxu1 %v7835_v26  ;;  %v7922_v33 = vld [vmem:[%s11356_s1 + $0xa04] ss:$16 sps:$4 sm:$0xff]   ;;  %v7925_v26 = vld [vmem:[%s11356_s1 + $0xa0c] ss:$16 sps:$4 sm:$0xff]  }
 0x105   :  { %5233 = vmatprep.mubr.bf16.mxu0 %v9544_v34  ;;  %5766 = vmatprep.mubr.bf16.mxu1 %v9544_v34 }
 0x107   :  { %5204 = vmatpush1.bf16.msra.mxu0 %v7830_v35  ;;  %5737 = vmatpush1.bf16.msra.mxu1 %v7833_v36  ;;  %v9730_v35 = vrot.slane %v9501_v21, %v8843_v49  ;;  %v7920_v36 = vld [vmem:[%s11356_s1 + $0xa00] ss:$16 sps:$4 sm:$0xff]   ;;  %v7931_v21 = vld [vmem:[%s11356_s1 + $0xa2c] ss:$16 sps:$4 sm:$0xff]  }
 0x108   :  { %5205 = vmatprep.subr.bf16.mxu0 %v7838_v37  ;;  %5738 = vmatprep.subr.bf16.mxu1 %v7841_v38  ;;  %v7923_v37 = vld [vmem:[%s11356_s1 + $0xa08] ss:$16 sps:$4 sm:$0xff]   ;;  %v7928_v38 = vld [vmem:[%s11356_s1 + $0xa24] ss:$16 sps:$4 sm:$0xff]  }
 0x10b   :  { %5206 = vmatpush1.bf16.msra.mxu0 %v7836_v39  ;;  %5739 = vmatpush1.bf16.msra.mxu1 %v7839_v40  ;;  %v947_v39 = vcombine.high %v9544_v34, %v9544_v34  ;;  %v7926_v40 = vld [vmem:[%s11356_s1 + $0xa20] ss:$16 sps:$4 sm:$0xff]   ;;  %v7934_v34 = vld [vmem:[%s11356_s1 + $0xa44] ss:$16 sps:$4 sm:$0xff]  }
 0x10c   :  { %5207 = vmatprep.subr.bf16.mxu0 %v7844_v41  ;;  %5740 = vmatprep.subr.bf16.mxu1 %v7847_v43  ;;  %v7929_v41 = vld [vmem:[%s11356_s1 + $0xa28] ss:$16 sps:$4 sm:$0xff]   ;;  %v7937_v43 = vld [vmem:[%s11356_s1 + $0xa4c] ss:$16 sps:$4 sm:$0xff]  }
 0x10f   :  { %5208 = vmatpush1.bf16.msra.mxu0 %v7842_v44  ;;  %5741 = vmatpush1.bf16.msra.mxu1 %v7845_v45  ;;  %v7932_v44 = vld [vmem:[%s11356_s1 + $0xa40] ss:$16 sps:$4 sm:$0xff]   ;;  %v7935_v45 = vld [vmem:[%s11356_s1 + $0xa48] ss:$16 sps:$4 sm:$0xff]  }
 0x110   :  { %5209 = vmatprep.subr.bf16.mxu0 %v7850_v46  ;;  %5742 = vmatprep.subr.bf16.mxu1 %v7853_v47  ;;  %v7940_v46 = vld [vmem:[%s11356_s1 + $0xa64] ss:$16 sps:$4 sm:$0xff]   ;;  %v7943_v47 = vld [vmem:[%s11356_s1 + $0xa6c] ss:$16 sps:$4 sm:$0xff]  }
 0x113   :  { %5210 = vmatpush1.bf16.msra.mxu0 %v7848_v48  ;;  %5743 = vmatpush1.bf16.msra.mxu1 %v7851_v50  ;;  %v7938_v48 = vld [vmem:[%s11356_s1 + $0xa60] ss:$16 sps:$4 sm:$0xff]   ;;  %v7941_v50 = vld [vmem:[%s11356_s1 + $0xa68] ss:$16 sps:$4 sm:$0xff]  }
 0x114   :  { %5211 = vmatprep.subr.bf16.mxu0 %v7856_v51  ;;  %5744 = vmatprep.subr.bf16.mxu1 %v7859_v53  ;;  %v7946_v51 = vld [vmem:[%s11356_s1 + $0xa84] ss:$16 sps:$4 sm:$0xff]   ;;  %v7949_v53 = vld [vmem:[%s11356_s1 + $0xa8c] ss:$16 sps:$4 sm:$0xff]  }
 0x117   :  { %5212 = vmatpush1.bf16.msra.mxu0 %v7854_v54  ;;  %5745 = vmatpush1.bf16.msra.mxu1 %v7857_v55  ;;  %v7944_v54 = vld [vmem:[%s11356_s1 + $0xa80] ss:$16 sps:$4 sm:$0xff]   ;;  %v7947_v55 = vld [vmem:[%s11356_s1 + $0xa88] ss:$16 sps:$4 sm:$0xff]  }
 0x118   :  { %5213 = vmatprep.subr.bf16.mxu0 %v7862_v56  ;;  %5746 = vmatprep.subr.bf16.mxu1 %v7865_v57  ;;  %v7952_v56 = vld [vmem:[%s11356_s1 + $0xaa4] ss:$16 sps:$4 sm:$0xff]   ;;  %v7955_v57 = vld [vmem:[%s11356_s1 + $0xaac] ss:$16 sps:$4 sm:$0xff]  }
 0x11b   :  { %5214 = vmatpush1.bf16.msra.mxu0 %v7860_v58  ;;  %5747 = vmatpush1.bf16.msra.mxu1 %v7863_v59  ;;  %v7950_v58 = vld [vmem:[%s11356_s1 + $0xaa0] ss:$16 sps:$4 sm:$0xff]   ;;  %v7953_v59 = vld [vmem:[%s11356_s1 + $0xaa8] ss:$16 sps:$4 sm:$0xff]  }
 0x11c   :  { %5215 = vmatprep.subr.bf16.mxu0 %v7868_v60  ;;  %5748 = vmatprep.subr.bf16.mxu1 %v7871_v61  ;;  %v7958_v60 = vld [vmem:[%s11356_s1 + $0xac4] ss:$16 sps:$4 sm:$0xff]   ;;  %v7961_v61 = vld [vmem:[%s11356_s1 + $0xacc] ss:$16 sps:$4 sm:$0xff]  }
 0x11f   :  { %5216 = vmatpush1.bf16.msra.mxu0 %v7866_v62  ;;  %5749 = vmatpush1.bf16.msra.mxu1 %v7869_v63  ;;  %v7956_v62 = vld [vmem:[%s11356_s1 + $0xac0] ss:$16 sps:$4 sm:$0xff]   ;;  %v7959_v63 = vld [vmem:[%s11356_s1 + $0xac8] ss:$16 sps:$4 sm:$0xff]  }
 0x120   :  { %5217 = vmatprep.subr.bf16.mxu0 %v7874_v0  ;;  %5750 = vmatprep.subr.bf16.mxu1 %v7877_v1  ;;  %v7964_v0 = vld [vmem:[%s11356_s1 + $0xae4] ss:$16 sps:$4 sm:$0xff]   ;;  %v7967_v1 = vld [vmem:[%s11356_s1 + $0xaec] ss:$16 sps:$4 sm:$0xff]  }
 0x123   :  { %5218 = vmatpush1.bf16.msra.mxu0 %v7872_v2  ;;  %5751 = vmatpush1.bf16.msra.mxu1 %v7875_v3  ;;  %v7962_v2 = vld [vmem:[%s11356_s1 + $0xae0] ss:$16 sps:$4 sm:$0xff]   ;;  %v7965_v3 = vld [vmem:[%s11356_s1 + $0xae8] ss:$16 sps:$4 sm:$0xff]  }
 0x124   :  { %5219 = vmatprep.subr.bf16.mxu0 %v7880_v4  ;;  %5752 = vmatprep.subr.bf16.mxu1 %v7883_v5  ;;  %v7970_v4 = vld [vmem:[%s11356_s1 + $0xb04] ss:$16 sps:$4 sm:$0xff]   ;;  %v7973_v5 = vld [vmem:[%s11356_s1 + $0xb0c] ss:$16 sps:$4 sm:$0xff]  }
 0x127   :  { %5220 = vmatpush1.bf16.msra.mxu0 %v7878_v6  ;;  %5753 = vmatpush1.bf16.msra.mxu1 %v7881_v7  ;;  %v7968_v6 = vld [vmem:[%s11356_s1 + $0xb00] ss:$16 sps:$4 sm:$0xff]   ;;  %v7971_v7 = vld [vmem:[%s11356_s1 + $0xb08] ss:$16 sps:$4 sm:$0xff]  }
 0x128   :  { %5221 = vmatprep.subr.bf16.mxu0 %v7886_v8  ;;  %5754 = vmatprep.subr.bf16.mxu1 %v7889_v9  ;;  %v7976_v8 = vld [vmem:[%s11356_s1 + $0xb24] ss:$16 sps:$4 sm:$0xff]   ;;  %v7979_v9 = vld [vmem:[%s11356_s1 + $0xb2c] ss:$16 sps:$4 sm:$0xff]  }
 0x12b   :  { %5222 = vmatpush1.bf16.msra.mxu0 %v7884_v10  ;;  %5755 = vmatpush1.bf16.msra.mxu1 %v7887_v11  ;;  %v7974_v10 = vld [vmem:[%s11356_s1 + $0xb20] ss:$16 sps:$4 sm:$0xff]   ;;  %v7977_v11 = vld [vmem:[%s11356_s1 + $0xb28] ss:$16 sps:$4 sm:$0xff]  }
 0x12c   :  { %5223 = vmatprep.subr.bf16.mxu0 %v7892_v12  ;;  %5756 = vmatprep.subr.bf16.mxu1 %v7895_v52  ;;  %v7982_v12 = vld [vmem:[%s11356_s1 + $0xb44] ss:$16 sps:$4 sm:$0xff]   ;;  %v7985_v52 = vld [vmem:[%s11356_s1 + $0xb4c] ss:$16 sps:$4 sm:$0xff]  }
 0x12f   :  { %5224 = vmatpush1.bf16.msra.mxu0 %v7890_v15  ;;  %5757 = vmatpush1.bf16.msra.mxu1 %v7893_v16  ;;  %v7980_v15 = vld [vmem:[%s11356_s1 + $0xb40] ss:$16 sps:$4 sm:$0xff]   ;;  %v7983_v16 = vld [vmem:[%s11356_s1 + $0xb48] ss:$16 sps:$4 sm:$0xff]  }
 0x130   :  { %5225 = vmatprep.subr.bf16.mxu0 %v7898_v17  ;;  %5758 = vmatprep.subr.bf16.mxu1 %v7901_v18  ;;  %v7988_v17 = vld [vmem:[%s11356_s1 + $0xb64] ss:$16 sps:$4 sm:$0xff]   ;;  %v7991_v18 = vld [vmem:[%s11356_s1 + $0xb6c] ss:$16 sps:$4 sm:$0xff]  }
 0x133   :  { %5226 = vmatpush1.bf16.msra.mxu0 %v7896_v19  ;;  %5759 = vmatpush1.bf16.msra.mxu1 %v7899_v20  ;;  %v7986_v19 = vld [vmem:[%s11356_s1 + $0xb60] ss:$16 sps:$4 sm:$0xff]   ;;  %v7989_v20 = vld [vmem:[%s11356_s1 + $0xb68] ss:$16 sps:$4 sm:$0xff]  }
 0x134   :  { %5227 = vmatprep.subr.bf16.mxu0 %v7904_v22  ;;  %5760 = vmatprep.subr.bf16.mxu1 %v7907_v23  ;;  %v7994_v22 = vld [vmem:[%s11356_s1 + $0xb84] ss:$16 sps:$4 sm:$0xff]   ;;  %v7997_v23 = vld [vmem:[%s11356_s1 + $0xb8c] ss:$16 sps:$4 sm:$0xff]  }
 0x137   :  { %5228 = vmatpush1.bf16.msra.mxu0 %v7902_v24  ;;  %5761 = vmatpush1.bf16.msra.mxu1 %v7905_v13  ;;  %v7992_v24 = vld [vmem:[%s11356_s1 + $0xb80] ss:$16 sps:$4 sm:$0xff]   ;;  %v7995_v13 = vld [vmem:[%s11356_s1 + $0xb88] ss:$16 sps:$4 sm:$0xff]  }
 0x138   :  { %5229 = vmatprep.subr.bf16.mxu0 %v7910_v27  ;;  %5762 = vmatprep.subr.bf16.mxu1 %v7913_v28  ;;  %v8000_v27 = vld [vmem:[%s11356_s1 + $0xba4] ss:$16 sps:$4 sm:$0xff]   ;;  %v8003_v28 = vld [vmem:[%s11356_s1 + $0xbac] ss:$16 sps:$4 sm:$0xff]  }
 0x13b   :  { %5230 = vmatpush1.bf16.msra.mxu0 %v7908_v29  ;;  %5763 = vmatpush1.bf16.msra.mxu1 %v7911_v14  ;;  %v7998_v29 = vld [vmem:[%s11356_s1 + $0xba0] ss:$16 sps:$4 sm:$0xff]   ;;  %v8001_v14 = vld [vmem:[%s11356_s1 + $0xba8] ss:$16 sps:$4 sm:$0xff]  }
 0x13c   :  { %5231 = vmatprep.subr.bf16.mxu0 %v7916_v30  ;;  %5764 = vmatprep.subr.bf16.mxu1 %v7919_v31  ;;  %v8006_v30 = vld [vmem:[%s11356_s1 + $0xbc4] ss:$16 sps:$4 sm:$0xff]   ;;  %v8009_v31 = vld [vmem:[%s11356_s1 + $0xbcc] ss:$16 sps:$4 sm:$0xff]  }
 0x13f   :  { %5232 = vmatpush1.bf16.msra.mxu0 %v7914_v25  ;;  %5765 = vmatpush1.bf16.msra.mxu1 %v7917_v32  ;;  %v8674_v25 = vld [vmem:[%s11357_s0 + $0x8] sm:$0xff] }
 0x140   :  { %5242 = vmatprep.subr.bf16.mxu0 %v7922_v33  ;;  %5775 = vmatprep.subr.bf16.mxu1 %v7925_v26  ;;  %v900_v32 = vcombine.high %v8674_v25, %v8674_v25  ;;  %v8004_v33 = vld [vmem:[%s11356_s1 + $0xbc0] ss:$16 sps:$4 sm:$0xff]   ;;  %v8007_v26 = vld [vmem:[%s11356_s1 + $0xbc8] ss:$16 sps:$4 sm:$0xff]  }
 0x141   :  { %v8088_v25 = vld [vmem:[%s11356_s1 + $0xd80] ss:$16 sps:$4 sm:$0xff]  }
 0x142   :  { %5234 = vmatmul.mubr.bf16.vlgmr.msra.gmra.mrb[0].mxu0 %v9730_v35  ;;  %5767 = vmatmul.mubr.bf16.vlgmr.msra.gmra.mrb[0].mxu1 %v9730_v35 }
 0x143   :  { %5243 = vmatpush1.bf16.msra.mxu0 %v7920_v36  ;;  %5776 = vmatpush1.bf16.msra.mxu1 %v7923_v37  ;;  %v8012_v36 = vld [vmem:[%s11356_s1 + $0xbe4] ss:$16 sps:$4 sm:$0xff]   ;;  %v8015_v37 = vld [vmem:[%s11356_s1 + $0xbec] ss:$16 sps:$4 sm:$0xff]  }
 0x144   :  { %5244 = vmatprep.subr.bf16.mxu0 %v7928_v38  ;;  %5777 = vmatprep.subr.bf16.mxu1 %v7931_v21  ;;  %v9920_v38 = vrot.slane %v900_v32, %v8843_v49  ;;  %v8010_v21 = vld [vmem:[%s11356_s1 + $0xbe0] ss:$16 sps:$4 sm:$0xff]   ;;  %v8091_v32 = vld [vmem:[%s11356_s1 + $0xd88] ss:$16 sps:$4 sm:$0xff]  }
 0x145   :  { %5274 = vmatprep.mubr.bf16.mxu0 %v947_v39  ;;  %5807 = vmatprep.mubr.bf16.mxu1 %v947_v39  ;;  %v8013_v39 = vld [vmem:[%s11356_s1 + $0xbe8] ss:$16 sps:$4 sm:$0xff]  }
 0x147   :  { %5245 = vmatpush1.bf16.msra.mxu0 %v7926_v40  ;;  %5778 = vmatpush1.bf16.msra.mxu1 %v7929_v41  ;;  %v8018_v40 = vld [vmem:[%s11356_s1 + $0xc04] ss:$16 sps:$4 sm:$0xff]   ;;  %v8021_v41 = vld [vmem:[%s11356_s1 + $0xc0c] ss:$16 sps:$4 sm:$0xff]  }
 0x148   :  { %5246 = vmatprep.subr.bf16.mxu0 %v7934_v34  ;;  %5779 = vmatprep.subr.bf16.mxu1 %v7937_v43  ;;  %v916_v34 = vcombine.high %v9920_v38, %v9920_v38  ;;  %v945_v43 = vcombine.high %v9730_v35, %v9730_v35  ;;  %v8027_v35 = vld [vmem:[%s11356_s1 + $0xc2c] ss:$16 sps:$4 sm:$0xff]  }
 0x14b   :  { %5247 = vmatpush1.bf16.msra.mxu0 %v7932_v44  ;;  %5780 = vmatpush1.bf16.msra.mxu1 %v7935_v45  ;;  %v8016_v44 = vld [vmem:[%s11356_s1 + $0xc00] ss:$16 sps:$4 sm:$0xff]   ;;  %v8019_v45 = vld [vmem:[%s11356_s1 + $0xc08] ss:$16 sps:$4 sm:$0xff]  }
 0x14c   :  { %5248 = vmatprep.subr.bf16.mxu0 %v7940_v46  ;;  %5781 = vmatprep.subr.bf16.mxu1 %v7943_v47  ;;  %v8024_v46 = vld [vmem:[%s11356_s1 + $0xc24] ss:$16 sps:$4 sm:$0xff]   ;;  %v9951_v47 = vrot.slane %v916_v34, %v8843_v49 }
 0x14d   :  { %v8108_v34 = vld [vmem:[%s11356_s1 + $0xde4] ss:$16 sps:$4 sm:$0xff]  }
 0x14f   :  { %5249 = vmatpush1.bf16.msra.mxu0 %v7938_v48  ;;  %5782 = vmatpush1.bf16.msra.mxu1 %v7941_v50  ;;  %v8022_v48 = vld [vmem:[%s11356_s1 + $0xc20] ss:$16 sps:$4 sm:$0xff]   ;;  %v8025_v50 = vld [vmem:[%s11356_s1 + $0xc28] ss:$16 sps:$4 sm:$0xff]  }
 0x150   :  { %5250 = vmatprep.subr.bf16.mxu0 %v7946_v51  ;;  %5783 = vmatprep.subr.bf16.mxu1 %v7949_v53  ;;  %v8030_v51 = vld [vmem:[%s11356_s1 + $0xc44] ss:$16 sps:$4 sm:$0xff]   ;;  %v8033_v53 = vld [vmem:[%s11356_s1 + $0xc4c] ss:$16 sps:$4 sm:$0xff]  }
 0x153   :  { %5251 = vmatpush1.bf16.msra.mxu0 %v7944_v54  ;;  %5784 = vmatpush1.bf16.msra.mxu1 %v7947_v55  ;;  %v8028_v54 = vld [vmem:[%s11356_s1 + $0xc40] ss:$16 sps:$4 sm:$0xff]   ;;  %v8031_v55 = vld [vmem:[%s11356_s1 + $0xc48] ss:$16 sps:$4 sm:$0xff]  }
 0x154   :  { %5252 = vmatprep.subr.bf16.mxu0 %v7952_v56  ;;  %5785 = vmatprep.subr.bf16.mxu1 %v7955_v57  ;;  %v8036_v56 = vld [vmem:[%s11356_s1 + $0xc64] ss:$16 sps:$4 sm:$0xff]   ;;  %v8039_v57 = vld [vmem:[%s11356_s1 + $0xc6c] ss:$16 sps:$4 sm:$0xff]  }
 0x157   :  { %5253 = vmatpush1.bf16.msra.mxu0 %v7950_v58  ;;  %5786 = vmatpush1.bf16.msra.mxu1 %v7953_v59  ;;  %v8034_v58 = vld [vmem:[%s11356_s1 + $0xc60] ss:$16 sps:$4 sm:$0xff]   ;;  %v8037_v59 = vld [vmem:[%s11356_s1 + $0xc68] ss:$16 sps:$4 sm:$0xff]  }
 0x158   :  { %5254 = vmatprep.subr.bf16.mxu0 %v7958_v60  ;;  %5787 = vmatprep.subr.bf16.mxu1 %v7961_v61  ;;  %v8042_v60 = vld [vmem:[%s11356_s1 + $0xc84] ss:$16 sps:$4 sm:$0xff]   ;;  %v8045_v61 = vld [vmem:[%s11356_s1 + $0xc8c] ss:$16 sps:$4 sm:$0xff]  }
 0x15b   :  { %5255 = vmatpush1.bf16.msra.mxu0 %v7956_v62  ;;  %5788 = vmatpush1.bf16.msra.mxu1 %v7959_v63  ;;  %v8040_v62 = vld [vmem:[%s11356_s1 + $0xc80] ss:$16 sps:$4 sm:$0xff]   ;;  %v8043_v63 = vld [vmem:[%s11356_s1 + $0xc88] ss:$16 sps:$4 sm:$0xff]  }
 0x15c   :  { %5256 = vmatprep.subr.bf16.mxu0 %v7964_v0  ;;  %5789 = vmatprep.subr.bf16.mxu1 %v7967_v1  ;;  %v8048_v0 = vld [vmem:[%s11356_s1 + $0xca4] ss:$16 sps:$4 sm:$0xff]   ;;  %v8051_v1 = vld [vmem:[%s11356_s1 + $0xcac] ss:$16 sps:$4 sm:$0xff]  }
 0x15f   :  { %5257 = vmatpush1.bf16.msra.mxu0 %v7962_v2  ;;  %5790 = vmatpush1.bf16.msra.mxu1 %v7965_v3  ;;  %v8046_v2 = vld [vmem:[%s11356_s1 + $0xca0] ss:$16 sps:$4 sm:$0xff]   ;;  %v8049_v3 = vld [vmem:[%s11356_s1 + $0xca8] ss:$16 sps:$4 sm:$0xff]  }
 0x160   :  { %5258 = vmatprep.subr.bf16.mxu0 %v7970_v4  ;;  %5791 = vmatprep.subr.bf16.mxu1 %v7973_v5  ;;  %v8054_v4 = vld [vmem:[%s11356_s1 + $0xcc4] ss:$16 sps:$4 sm:$0xff]   ;;  %v8057_v5 = vld [vmem:[%s11356_s1 + $0xccc] ss:$16 sps:$4 sm:$0xff]  }
 0x163   :  { %5259 = vmatpush1.bf16.msra.mxu0 %v7968_v6  ;;  %5792 = vmatpush1.bf16.msra.mxu1 %v7971_v7  ;;  %v8052_v6 = vld [vmem:[%s11356_s1 + $0xcc0] ss:$16 sps:$4 sm:$0xff]   ;;  %v8055_v7 = vld [vmem:[%s11356_s1 + $0xcc8] ss:$16 sps:$4 sm:$0xff]  }
 0x164   :  { %5260 = vmatprep.subr.bf16.mxu0 %v7976_v8  ;;  %5793 = vmatprep.subr.bf16.mxu1 %v7979_v9  ;;  %v8060_v8 = vld [vmem:[%s11356_s1 + $0xce4] ss:$16 sps:$4 sm:$0xff]   ;;  %v8063_v9 = vld [vmem:[%s11356_s1 + $0xcec] ss:$16 sps:$4 sm:$0xff]  }
 0x167   :  { %5261 = vmatpush1.bf16.msra.mxu0 %v7974_v10  ;;  %5794 = vmatpush1.bf16.msra.mxu1 %v7977_v11  ;;  %v8058_v10 = vld [vmem:[%s11356_s1 + $0xce0] ss:$16 sps:$4 sm:$0xff]   ;;  %v8061_v11 = vld [vmem:[%s11356_s1 + $0xce8] ss:$16 sps:$4 sm:$0xff]  }
 0x168   :  { %5262 = vmatprep.subr.bf16.mxu0 %v7982_v12  ;;  %5795 = vmatprep.subr.bf16.mxu1 %v7985_v52  ;;  %v8066_v12 = vld [vmem:[%s11356_s1 + $0xd04] ss:$16 sps:$4 sm:$0xff]   ;;  %v8069_v52 = vld [vmem:[%s11356_s1 + $0xd0c] ss:$16 sps:$4 sm:$0xff]  }
 0x16b   :  { %5263 = vmatpush1.bf16.msra.mxu0 %v7980_v15  ;;  %5796 = vmatpush1.bf16.msra.mxu1 %v7983_v16  ;;  %v8064_v15 = vld [vmem:[%s11356_s1 + $0xd00] ss:$16 sps:$4 sm:$0xff]   ;;  %v8067_v16 = vld [vmem:[%s11356_s1 + $0xd08] ss:$16 sps:$4 sm:$0xff]  }
 0x16c   :  { %5264 = vmatprep.subr.bf16.mxu0 %v7988_v17  ;;  %5797 = vmatprep.subr.bf16.mxu1 %v7991_v18  ;;  %v8072_v17 = vld [vmem:[%s11356_s1 + $0xd24] ss:$16 sps:$4 sm:$0xff]   ;;  %v8075_v18 = vld [vmem:[%s11356_s1 + $0xd2c] ss:$16 sps:$4 sm:$0xff]  }
 0x16f   :  { %5265 = vmatpush1.bf16.msra.mxu0 %v7986_v19  ;;  %5798 = vmatpush1.bf16.msra.mxu1 %v7989_v20  ;;  %v8070_v19 = vld [vmem:[%s11356_s1 + $0xd20] ss:$16 sps:$4 sm:$0xff]   ;;  %v8073_v20 = vld [vmem:[%s11356_s1 + $0xd28] ss:$16 sps:$4 sm:$0xff]  }
 0x170   :  { %5266 = vmatprep.subr.bf16.mxu0 %v7994_v22  ;;  %5799 = vmatprep.subr.bf16.mxu1 %v7997_v23  ;;  %v8078_v22 = vld [vmem:[%s11356_s1 + $0xd44] ss:$16 sps:$4 sm:$0xff]   ;;  %v8081_v23 = vld [vmem:[%s11356_s1 + $0xd4c] ss:$16 sps:$4 sm:$0xff]  }
 0x173   :  { %5267 = vmatpush1.bf16.msra.mxu0 %v7992_v24  ;;  %5800 = vmatpush1.bf16.msra.mxu1 %v7995_v13  ;;  %v8076_v24 = vld [vmem:[%s11356_s1 + $0xd40] ss:$16 sps:$4 sm:$0xff]   ;;  %v8079_v13 = vld [vmem:[%s11356_s1 + $0xd48] ss:$16 sps:$4 sm:$0xff]  }
 0x174   :  { %5268 = vmatprep.subr.bf16.mxu0 %v8000_v27  ;;  %5801 = vmatprep.subr.bf16.mxu1 %v8003_v28  ;;  %v8084_v27 = vld [vmem:[%s11356_s1 + $0xd64] ss:$16 sps:$4 sm:$0xff]   ;;  %v8087_v28 = vld [vmem:[%s11356_s1 + $0xd6c] ss:$16 sps:$4 sm:$0xff]  }
 0x177   :  { %5269 = vmatpush1.bf16.msra.mxu0 %v7998_v29  ;;  %5802 = vmatpush1.bf16.msra.mxu1 %v8001_v14  ;;  %v8082_v29 = vld [vmem:[%s11356_s1 + $0xd60] ss:$16 sps:$4 sm:$0xff]   ;;  %v8085_v14 = vld [vmem:[%s11356_s1 + $0xd68] ss:$16 sps:$4 sm:$0xff]  }
 0x178   :  { %5270 = vmatprep.subr.bf16.mxu0 %v8006_v30  ;;  %5803 = vmatprep.subr.bf16.mxu1 %v8009_v31  ;;  %v8090_v30 = vld [vmem:[%s11356_s1 + $0xd84] ss:$16 sps:$4 sm:$0xff]   ;;  %v8093_v31 = vld [vmem:[%s11356_s1 + $0xd8c] ss:$16 sps:$4 sm:$0xff]  }
 0x17b   :  { %5271 = vmatpush1.bf16.msra.mxu0 %v8004_v33  ;;  %5804 = vmatpush1.bf16.msra.mxu1 %v8007_v26  ;;  %v8096_v33 = vld [vmem:[%s11356_s1 + $0xda4] ss:$16 sps:$4 sm:$0xff]   ;;  %v8099_v26 = vld [vmem:[%s11356_s1 + $0xdac] ss:$16 sps:$4 sm:$0xff]  }
 0x17c   :  { %5272 = vmatprep.subr.bf16.mxu0 %v8012_v36  ;;  %5805 = vmatprep.subr.bf16.mxu1 %v8015_v37  ;;  %v8094_v36 = vld [vmem:[%s11356_s1 + $0xda0] ss:$16 sps:$4 sm:$0xff]   ;;  %v8097_v37 = vld [vmem:[%s11356_s1 + $0xda8] ss:$16 sps:$4 sm:$0xff]  }
 0x17f   :  { %5273 = vmatpush1.bf16.msra.mxu0 %v8010_v21  ;;  %5806 = vmatpush1.bf16.msra.mxu1 %v8013_v39  ;;  %v8102_v21 = vld [vmem:[%s11356_s1 + $0xdc4] ss:$16 sps:$4 sm:$0xff]   ;;  %v8105_v39 = vld [vmem:[%s11356_s1 + $0xdcc] ss:$16 sps:$4 sm:$0xff]  }
 0x180   :  { %5283 = vmatprep.subr.bf16.mxu0 %v8018_v40  ;;  %5816 = vmatprep.subr.bf16.mxu1 %v8021_v41  ;;  %v8100_v40 = vld [vmem:[%s11356_s1 + $0xdc0] ss:$16 sps:$4 sm:$0xff]   ;;  %v8103_v41 = vld [vmem:[%s11356_s1 + $0xdc8] ss:$16 sps:$4 sm:$0xff]  }
 0x182   :  { %5275 = vmatmul.mubr.bf16.vlgmr.msra.gmra.mrb[0].mxu0 %v945_v43  ;;  %5808 = vmatmul.mubr.bf16.vlgmr.msra.gmra.mrb[0].mxu1 %v945_v43  ;;  %v8111_v43 = vld [vmem:[%s11356_s1 + $0xdec] ss:$16 sps:$4 sm:$0xff]  }
 0x183   :  { %5284 = vmatpush1.bf16.msra.mxu0 %v8016_v44  ;;  %5817 = vmatpush1.bf16.msra.mxu1 %v8019_v45  ;;  %v8106_v44 = vld [vmem:[%s11356_s1 + $0xde0] ss:$16 sps:$4 sm:$0xff]   ;;  %v8109_v45 = vld [vmem:[%s11356_s1 + $0xde8] ss:$16 sps:$4 sm:$0xff]  }
 0x184   :  { %5285 = vmatprep.subr.bf16.mxu0 %v8024_v46  ;;  %5818 = vmatprep.subr.bf16.mxu1 %v8027_v35  ;;  %v8115_v46 = vld [vmem:[%s11356_s1 + $0xe04] ss:$16 sps:$4 sm:$0xff]   ;;  %v8118_v35 = vld [vmem:[%s11356_s1 + $0xe0c] ss:$16 sps:$4 sm:$0xff]  }
 0x185   :  { %5315 = vmatprep.mubr.bf16.mxu0 %v9951_v47  ;;  %5848 = vmatprep.mubr.bf16.mxu1 %v9951_v47 }
 0x187   :  { %5286 = vmatpush1.bf16.msra.mxu0 %v8022_v48  ;;  %5819 = vmatpush1.bf16.msra.mxu1 %v8025_v50  ;;  %v10137_v48 = vrot.slane %v9920_v38, %v8843_v49  ;;  %v8113_v50 = vld [vmem:[%s11356_s1 + $0xe00] ss:$16 sps:$4 sm:$0xff]   ;;  %v8124_v38 = vld [vmem:[%s11356_s1 + $0xe2c] ss:$16 sps:$4 sm:$0xff]  }
 0x188   :  { %5287 = vmatprep.subr.bf16.mxu0 %v8030_v51  ;;  %5820 = vmatprep.subr.bf16.mxu1 %v8033_v53  ;;  %v8116_v51 = vld [vmem:[%s11356_s1 + $0xe08] ss:$16 sps:$4 sm:$0xff]   ;;  %v8121_v53 = vld [vmem:[%s11356_s1 + $0xe24] ss:$16 sps:$4 sm:$0xff]  }
 0x18b   :  { %5288 = vmatpush1.bf16.msra.mxu0 %v8028_v54  ;;  %5821 = vmatpush1.bf16.msra.mxu1 %v8031_v55  ;;  %v948_v54 = vcombine.high %v9951_v47, %v9951_v47  ;;  %v8119_v55 = vld [vmem:[%s11356_s1 + $0xe20] ss:$16 sps:$4 sm:$0xff]   ;;  %v8127_v47 = vld [vmem:[%s11356_s1 + $0xe44] ss:$16 sps:$4 sm:$0xff]  }
 0x18c   :  { %5289 = vmatprep.subr.bf16.mxu0 %v8036_v56  ;;  %5822 = vmatprep.subr.bf16.mxu1 %v8039_v57  ;;  %v8122_v56 = vld [vmem:[%s11356_s1 + $0xe28] ss:$16 sps:$4 sm:$0xff]   ;;  %v8130_v57 = vld [vmem:[%s11356_s1 + $0xe4c] ss:$16 sps:$4 sm:$0xff]  }
 0x18f   :  { %5290 = vmatpush1.bf16.msra.mxu0 %v8034_v58  ;;  %5823 = vmatpush1.bf16.msra.mxu1 %v8037_v59  ;;  %v8125_v58 = vld [vmem:[%s11356_s1 + $0xe40] ss:$16 sps:$4 sm:$0xff]   ;;  %v8128_v59 = vld [vmem:[%s11356_s1 + $0xe48] ss:$16 sps:$4 sm:$0xff]  }
 0x190   :  { %5291 = vmatprep.subr.bf16.mxu0 %v8042_v60  ;;  %5824 = vmatprep.subr.bf16.mxu1 %v8045_v61  ;;  %v8133_v60 = vld [vmem:[%s11356_s1 + $0xe64] ss:$16 sps:$4 sm:$0xff]   ;;  %v8136_v61 = vld [vmem:[%s11356_s1 + $0xe6c] ss:$16 sps:$4 sm:$0xff]  }
 0x193   :  { %5292 = vmatpush1.bf16.msra.mxu0 %v8040_v62  ;;  %5825 = vmatpush1.bf16.msra.mxu1 %v8043_v63  ;;  %v8131_v62 = vld [vmem:[%s11356_s1 + $0xe60] ss:$16 sps:$4 sm:$0xff]   ;;  %v8134_v63 = vld [vmem:[%s11356_s1 + $0xe68] ss:$16 sps:$4 sm:$0xff]  }
 0x194   :  { %5293 = vmatprep.subr.bf16.mxu0 %v8048_v0  ;;  %5826 = vmatprep.subr.bf16.mxu1 %v8051_v1  ;;  %v8139_v0 = vld [vmem:[%s11356_s1 + $0xe84] ss:$16 sps:$4 sm:$0xff]   ;;  %v8142_v1 = vld [vmem:[%s11356_s1 + $0xe8c] ss:$16 sps:$4 sm:$0xff]  }
 0x197   :  { %5294 = vmatpush1.bf16.msra.mxu0 %v8046_v2  ;;  %5827 = vmatpush1.bf16.msra.mxu1 %v8049_v3  ;;  %v8137_v2 = vld [vmem:[%s11356_s1 + $0xe80] ss:$16 sps:$4 sm:$0xff]   ;;  %v8140_v3 = vld [vmem:[%s11356_s1 + $0xe88] ss:$16 sps:$4 sm:$0xff]  }
 0x198   :  { %5295 = vmatprep.subr.bf16.mxu0 %v8054_v4  ;;  %5828 = vmatprep.subr.bf16.mxu1 %v8057_v5  ;;  %v8145_v4 = vld [vmem:[%s11356_s1 + $0xea4] ss:$16 sps:$4 sm:$0xff]   ;;  %v8148_v5 = vld [vmem:[%s11356_s1 + $0xeac] ss:$16 sps:$4 sm:$0xff]  }
 0x19b   :  { %5296 = vmatpush1.bf16.msra.mxu0 %v8052_v6  ;;  %5829 = vmatpush1.bf16.msra.mxu1 %v8055_v7  ;;  %v8143_v6 = vld [vmem:[%s11356_s1 + $0xea0] ss:$16 sps:$4 sm:$0xff]   ;;  %v8146_v7 = vld [vmem:[%s11356_s1 + $0xea8] ss:$16 sps:$4 sm:$0xff]  }
 0x19c   :  { %5297 = vmatprep.subr.bf16.mxu0 %v8060_v8  ;;  %5830 = vmatprep.subr.bf16.mxu1 %v8063_v9  ;;  %v8151_v8 = vld [vmem:[%s11356_s1 + $0xec4] ss:$16 sps:$4 sm:$0xff]   ;;  %v8154_v9 = vld [vmem:[%s11356_s1 + $0xecc] ss:$16 sps:$4 sm:$0xff]  }
 0x19f   :  { %5298 = vmatpush1.bf16.msra.mxu0 %v8058_v10  ;;  %5831 = vmatpush1.bf16.msra.mxu1 %v8061_v11  ;;  %v8149_v10 = vld [vmem:[%s11356_s1 + $0xec0] ss:$16 sps:$4 sm:$0xff]   ;;  %v8152_v11 = vld [vmem:[%s11356_s1 + $0xec8] ss:$16 sps:$4 sm:$0xff]  }
 0x1a0   :  { %5299 = vmatprep.subr.bf16.mxu0 %v8066_v12  ;;  %5832 = vmatprep.subr.bf16.mxu1 %v8069_v52  ;;  %v8157_v12 = vld [vmem:[%s11356_s1 + $0xee4] ss:$16 sps:$4 sm:$0xff]   ;;  %v8160_v52 = vld [vmem:[%s11356_s1 + $0xeec] ss:$16 sps:$4 sm:$0xff]  }
 0x1a3   :  { %5300 = vmatpush1.bf16.msra.mxu0 %v8064_v15  ;;  %5833 = vmatpush1.bf16.msra.mxu1 %v8067_v16  ;;  %v8155_v15 = vld [vmem:[%s11356_s1 + $0xee0] ss:$16 sps:$4 sm:$0xff]   ;;  %v8158_v16 = vld [vmem:[%s11356_s1 + $0xee8] ss:$16 sps:$4 sm:$0xff]  }
 0x1a4   :  { %5301 = vmatprep.subr.bf16.mxu0 %v8072_v17  ;;  %5834 = vmatprep.subr.bf16.mxu1 %v8075_v18  ;;  %v8163_v17 = vld [vmem:[%s11356_s1 + $0xf04] ss:$16 sps:$4 sm:$0xff]   ;;  %v8166_v18 = vld [vmem:[%s11356_s1 + $0xf0c] ss:$16 sps:$4 sm:$0xff]  }
 0x1a7   :  { %5302 = vmatpush1.bf16.msra.mxu0 %v8070_v19  ;;  %5835 = vmatpush1.bf16.msra.mxu1 %v8073_v20  ;;  %v8161_v19 = vld [vmem:[%s11356_s1 + $0xf00] ss:$16 sps:$4 sm:$0xff]   ;;  %v8164_v20 = vld [vmem:[%s11356_s1 + $0xf08] ss:$16 sps:$4 sm:$0xff]  }
 0x1a8   :  { %5303 = vmatprep.subr.bf16.mxu0 %v8078_v22  ;;  %5836 = vmatprep.subr.bf16.mxu1 %v8081_v23  ;;  %v8169_v22 = vld [vmem:[%s11356_s1 + $0xf24] ss:$16 sps:$4 sm:$0xff]   ;;  %v8172_v23 = vld [vmem:[%s11356_s1 + $0xf2c] ss:$16 sps:$4 sm:$0xff]  }
 0x1ab   :  { %5304 = vmatpush1.bf16.msra.mxu0 %v8076_v24  ;;  %5837 = vmatpush1.bf16.msra.mxu1 %v8079_v13  ;;  %v8167_v24 = vld [vmem:[%s11356_s1 + $0xf20] ss:$16 sps:$4 sm:$0xff]   ;;  %v8170_v13 = vld [vmem:[%s11356_s1 + $0xf28] ss:$16 sps:$4 sm:$0xff]  }
 0x1ac   :  { %5305 = vmatprep.subr.bf16.mxu0 %v8084_v27  ;;  %5838 = vmatprep.subr.bf16.mxu1 %v8087_v28  ;;  %v8175_v27 = vld [vmem:[%s11356_s1 + $0xf44] ss:$16 sps:$4 sm:$0xff]   ;;  %v8178_v28 = vld [vmem:[%s11356_s1 + $0xf4c] ss:$16 sps:$4 sm:$0xff]  }
 0x1af   :  { %5306 = vmatpush1.bf16.msra.mxu0 %v8082_v29  ;;  %5839 = vmatpush1.bf16.msra.mxu1 %v8085_v14  ;;  %v8173_v29 = vld [vmem:[%s11356_s1 + $0xf40] ss:$16 sps:$4 sm:$0xff]   ;;  %v8176_v14 = vld [vmem:[%s11356_s1 + $0xf48] ss:$16 sps:$4 sm:$0xff]  }
 0x1b0   :  { %5307 = vmatprep.subr.bf16.mxu0 %v8090_v30  ;;  %5840 = vmatprep.subr.bf16.mxu1 %v8093_v31  ;;  %v8181_v30 = vld [vmem:[%s11356_s1 + $0xf64] ss:$16 sps:$4 sm:$0xff]   ;;  %v8184_v31 = vld [vmem:[%s11356_s1 + $0xf6c] ss:$16 sps:$4 sm:$0xff]  }
 0x1b3   :  { %5308 = vmatpush1.bf16.msra.mxu0 %v8088_v25  ;;  %5841 = vmatpush1.bf16.msra.mxu1 %v8091_v32  ;;  %v8179_v25 = vld [vmem:[%s11356_s1 + $0xf60] ss:$16 sps:$4 sm:$0xff]   ;;  %v8182_v32 = vld [vmem:[%s11356_s1 + $0xf68] ss:$16 sps:$4 sm:$0xff]  }
 0x1b4   :  { %5309 = vmatprep.subr.bf16.mxu0 %v8096_v33  ;;  %5842 = vmatprep.subr.bf16.mxu1 %v8099_v26  ;;  %v8187_v33 = vld [vmem:[%s11356_s1 + $0xf84] ss:$16 sps:$4 sm:$0xff]   ;;  %v8190_v26 = vld [vmem:[%s11356_s1 + $0xf8c] ss:$16 sps:$4 sm:$0xff]  }
 0x1b7   :  { %5310 = vmatpush1.bf16.msra.mxu0 %v8094_v36  ;;  %5843 = vmatpush1.bf16.msra.mxu1 %v8097_v37  ;;  %v8185_v36 = vld [vmem:[%s11356_s1 + $0xf80] ss:$16 sps:$4 sm:$0xff]   ;;  %v8188_v37 = vld [vmem:[%s11356_s1 + $0xf88] ss:$16 sps:$4 sm:$0xff]  }
 0x1b8   :  { %5311 = vmatprep.subr.bf16.mxu0 %v8102_v21  ;;  %5844 = vmatprep.subr.bf16.mxu1 %v8105_v39  ;;  %v8193_v21 = vld [vmem:[%s11356_s1 + $0xfa4] ss:$16 sps:$4 sm:$0xff]   ;;  %v8196_v39 = vld [vmem:[%s11356_s1 + $0xfac] ss:$16 sps:$4 sm:$0xff]  }
 0x1bb   :  { %5312 = vmatpush1.bf16.msra.mxu0 %v8100_v40  ;;  %5845 = vmatpush1.bf16.msra.mxu1 %v8103_v41  ;;  %v8191_v40 = vld [vmem:[%s11356_s1 + $0xfa0] ss:$16 sps:$4 sm:$0xff]   ;;  %v8194_v41 = vld [vmem:[%s11356_s1 + $0xfa8] ss:$16 sps:$4 sm:$0xff]  }
 0x1bc   :  { %5313 = vmatprep.subr.bf16.mxu0 %v8108_v34  ;;  %5846 = vmatprep.subr.bf16.mxu1 %v8111_v43  ;;  %v8199_v34 = vld [vmem:[%s11356_s1 + $0xfc4] ss:$16 sps:$4 sm:$0xff]   ;;  %v8202_v43 = vld [vmem:[%s11356_s1 + $0xfcc] ss:$16 sps:$4 sm:$0xff]  }
 0x1bf   :  { %5314 = vmatpush1.bf16.msra.mxu0 %v8106_v44  ;;  %5847 = vmatpush1.bf16.msra.mxu1 %v8109_v45  ;;  %v10314_v44 = vld [vmem:[%s11357_s0 + $0x10] sm:$0xff] }
 0x1c0   :  { %5324 = vmatprep.subr.bf16.mxu0 %v8115_v46  ;;  %5857 = vmatprep.subr.bf16.mxu1 %v8118_v35  ;;  %v8197_v45 = vld [vmem:[%s11356_s1 + $0xfc0] ss:$16 sps:$4 sm:$0xff]   ;;  %v8200_v46 = vld [vmem:[%s11356_s1 + $0xfc8] ss:$16 sps:$4 sm:$0xff]   ;;  %v8205_v35 = vld [vmem:[%s11356_s1 + $0xfe4] ss:$16 sps:$4 sm:$0xff]  }
 0x1c2   :  { %5316 = vmatmul.mubr.bf16.vlgmr.msra.gmra.mrb[0].mxu0 %v10137_v48  ;;  %5849 = vmatmul.mubr.bf16.vlgmr.msra.gmra.mrb[0].mxu1 %v10137_v48 }
 0x1c3   :  { %5325 = vmatpush1.bf16.msra.mxu0 %v8113_v50  ;;  %5858 = vmatpush1.bf16.msra.mxu1 %v8116_v51  ;;  %v8208_v50 = vld [vmem:[%s11356_s1 + $0xfec] ss:$16 sps:$4 sm:$0xff]   ;;  %v10330_v51 = vrot.slane %v10314_v44, %v8843_v49 }
 0x1c4   :  { %5326 = vmatprep.subr.bf16.mxu0 %v8121_v53  ;;  %5859 = vmatprep.subr.bf16.mxu1 %v8124_v38  ;;  %v8203_v53 = vld [vmem:[%s11356_s1 + $0xfe0] ss:$16 sps:$4 sm:$0xff]   ;;  %v8206_v38 = vld [vmem:[%s11356_s1 + $0xfe8] ss:$16 sps:$4 sm:$0xff]  }
 0x1c5   :  { %5356 = vmatprep.mubr.bf16.mxu0 %v948_v54  ;;  %5889 = vmatprep.mubr.bf16.mxu1 %v948_v54  ;;  %v8211_v54 = vld [vmem:[%s11356_s1 + $0x1004] ss:$16 sps:$4 sm:$0xff]  }
 0x1c7   :  { %5327 = vmatpush1.bf16.msra.mxu0 %v8119_v55  ;;  %5860 = vmatpush1.bf16.msra.mxu1 %v8122_v56  ;;  %v8214_v55 = vld [vmem:[%s11356_s1 + $0x100c] ss:$16 sps:$4 sm:$0xff]   ;;  %v964_v56 = vcombine.high %v10330_v51, %v10330_v51 }
 0x1c8   :  { %5328 = vmatprep.subr.bf16.mxu0 %v8127_v47  ;;  %5861 = vmatprep.subr.bf16.mxu1 %v8130_v57  ;;  %v946_v47 = vcombine.high %v10137_v48, %v10137_v48  ;;  %v8209_v57 = vld [vmem:[%s11356_s1 + $0x1000] ss:$16 sps:$4 sm:$0xff]   ;;  %v8220_v48 = vld [vmem:[%s11356_s1 + $0x102c] ss:$16 sps:$4 sm:$0xff]  }
 0x1cb   :  { %5329 = vmatpush1.bf16.msra.mxu0 %v8125_v58  ;;  %5862 = vmatpush1.bf16.msra.mxu1 %v8128_v59  ;;  %v8212_v58 = vld [vmem:[%s11356_s1 + $0x1008] ss:$16 sps:$4 sm:$0xff]   ;;  %v8217_v59 = vld [vmem:[%s11356_s1 + $0x1024] ss:$16 sps:$4 sm:$0xff]  }
 0x1cc   :  { %5330 = vmatprep.subr.bf16.mxu0 %v8133_v60  ;;  %5863 = vmatprep.subr.bf16.mxu1 %v8136_v61  ;;  %v10361_v60 = vrot.slane %v964_v56, %v8843_v49  ;;  %v8215_v61 = vld [vmem:[%s11356_s1 + $0x1020] ss:$16 sps:$4 sm:$0xff]   ;;  %v8296_v56 = vld [vmem:[%s11356_s1 + $0x11c8] ss:$16 sps:$4 sm:$0xff]  }
 0x1cf   :  { %5331 = vmatpush1.bf16.msra.mxu0 %v8131_v62  ;;  %5864 = vmatpush1.bf16.msra.mxu1 %v8134_v63  ;;  %v8218_v62 = vld [vmem:[%s11356_s1 + $0x1028] ss:$16 sps:$4 sm:$0xff]   ;;  %v8223_v63 = vld [vmem:[%s11356_s1 + $0x1044] ss:$16 sps:$4 sm:$0xff]  }
 0x1d0   :  { %5332 = vmatprep.subr.bf16.mxu0 %v8139_v0  ;;  %5865 = vmatprep.subr.bf16.mxu1 %v8142_v1  ;;  %v8226_v0 = vld [vmem:[%s11356_s1 + $0x104c] ss:$16 sps:$4 sm:$0xff]   ;;  %v8221_v1 = vld [vmem:[%s11356_s1 + $0x1040] ss:$16 sps:$4 sm:$0xff]  }
 0x1d3   :  { %5333 = vmatpush1.bf16.msra.mxu0 %v8137_v2  ;;  %5866 = vmatpush1.bf16.msra.mxu1 %v8140_v3  ;;  %v8224_v2 = vld [vmem:[%s11356_s1 + $0x1048] ss:$16 sps:$4 sm:$0xff]   ;;  %v8229_v3 = vld [vmem:[%s11356_s1 + $0x1064] ss:$16 sps:$4 sm:$0xff]  }
 0x1d4   :  { %5334 = vmatprep.subr.bf16.mxu0 %v8145_v4  ;;  %5867 = vmatprep.subr.bf16.mxu1 %v8148_v5  ;;  %v8232_v4 = vld [vmem:[%s11356_s1 + $0x106c] ss:$16 sps:$4 sm:$0xff]   ;;  %v8227_v5 = vld [vmem:[%s11356_s1 + $0x1060] ss:$16 sps:$4 sm:$0xff]  }
 0x1d7   :  { %5335 = vmatpush1.bf16.msra.mxu0 %v8143_v6  ;;  %5868 = vmatpush1.bf16.msra.mxu1 %v8146_v7  ;;  %v8230_v6 = vld [vmem:[%s11356_s1 + $0x1068] ss:$16 sps:$4 sm:$0xff]   ;;  %v8235_v7 = vld [vmem:[%s11356_s1 + $0x1084] ss:$16 sps:$4 sm:$0xff]  }
 0x1d8   :  { %5336 = vmatprep.subr.bf16.mxu0 %v8151_v8  ;;  %5869 = vmatprep.subr.bf16.mxu1 %v8154_v9  ;;  %v8238_v8 = vld [vmem:[%s11356_s1 + $0x108c] ss:$16 sps:$4 sm:$0xff]   ;;  %v8233_v9 = vld [vmem:[%s11356_s1 + $0x1080] ss:$16 sps:$4 sm:$0xff]  }
 0x1db   :  { %5337 = vmatpush1.bf16.msra.mxu0 %v8149_v10  ;;  %5870 = vmatpush1.bf16.msra.mxu1 %v8152_v11  ;;  %v8236_v10 = vld [vmem:[%s11356_s1 + $0x1088] ss:$16 sps:$4 sm:$0xff]   ;;  %v8241_v11 = vld [vmem:[%s11356_s1 + $0x10a4] ss:$16 sps:$4 sm:$0xff]  }
 0x1dc   :  { %5338 = vmatprep.subr.bf16.mxu0 %v8157_v12  ;;  %5871 = vmatprep.subr.bf16.mxu1 %v8160_v52  ;;  %v8244_v12 = vld [vmem:[%s11356_s1 + $0x10ac] ss:$16 sps:$4 sm:$0xff]   ;;  %v8239_v52 = vld [vmem:[%s11356_s1 + $0x10a0] ss:$16 sps:$4 sm:$0xff]  }
 0x1df   :  { %5339 = vmatpush1.bf16.msra.mxu0 %v8155_v15  ;;  %5872 = vmatpush1.bf16.msra.mxu1 %v8158_v16  ;;  %v8242_v15 = vld [vmem:[%s11356_s1 + $0x10a8] ss:$16 sps:$4 sm:$0xff]   ;;  %v8247_v16 = vld [vmem:[%s11356_s1 + $0x10c4] ss:$16 sps:$4 sm:$0xff]  }
 0x1e0   :  { %5340 = vmatprep.subr.bf16.mxu0 %v8163_v17  ;;  %5873 = vmatprep.subr.bf16.mxu1 %v8166_v18  ;;  %v8250_v17 = vld [vmem:[%s11356_s1 + $0x10cc] ss:$16 sps:$4 sm:$0xff]   ;;  %v8245_v18 = vld [vmem:[%s11356_s1 + $0x10c0] ss:$16 sps:$4 sm:$0xff]  }
 0x1e3   :  { %5341 = vmatpush1.bf16.msra.mxu0 %v8161_v19  ;;  %5874 = vmatpush1.bf16.msra.mxu1 %v8164_v20  ;;  %v8248_v19 = vld [vmem:[%s11356_s1 + $0x10c8] ss:$16 sps:$4 sm:$0xff]   ;;  %v8253_v20 = vld [vmem:[%s11356_s1 + $0x10e4] ss:$16 sps:$4 sm:$0xff]  }
 0x1e4   :  { %5342 = vmatprep.subr.bf16.mxu0 %v8169_v22  ;;  %5875 = vmatprep.subr.bf16.mxu1 %v8172_v23  ;;  %v8256_v22 = vld [vmem:[%s11356_s1 + $0x10ec] ss:$16 sps:$4 sm:$0xff]   ;;  %v8251_v23 = vld [vmem:[%s11356_s1 + $0x10e0] ss:$16 sps:$4 sm:$0xff]  }
 0x1e7   :  { %5343 = vmatpush1.bf16.msra.mxu0 %v8167_v24  ;;  %5876 = vmatpush1.bf16.msra.mxu1 %v8170_v13  ;;  %v8254_v24 = vld [vmem:[%s11356_s1 + $0x10e8] ss:$16 sps:$4 sm:$0xff]   ;;  %v8259_v13 = vld [vmem:[%s11356_s1 + $0x1104] ss:$16 sps:$4 sm:$0xff]  }
 0x1e8   :  { %5344 = vmatprep.subr.bf16.mxu0 %v8175_v27  ;;  %5877 = vmatprep.subr.bf16.mxu1 %v8178_v28  ;;  %v8262_v27 = vld [vmem:[%s11356_s1 + $0x110c] ss:$16 sps:$4 sm:$0xff]   ;;  %v8257_v28 = vld [vmem:[%s11356_s1 + $0x1100] ss:$16 sps:$4 sm:$0xff]  }
 0x1eb   :  { %5345 = vmatpush1.bf16.msra.mxu0 %v8173_v29  ;;  %5878 = vmatpush1.bf16.msra.mxu1 %v8176_v14  ;;  %v8260_v29 = vld [vmem:[%s11356_s1 + $0x1108] ss:$16 sps:$4 sm:$0xff]   ;;  %v8265_v14 = vld [vmem:[%s11356_s1 + $0x1124] ss:$16 sps:$4 sm:$0xff]  }
 0x1ec   :  { %5346 = vmatprep.subr.bf16.mxu0 %v8181_v30  ;;  %5879 = vmatprep.subr.bf16.mxu1 %v8184_v31  ;;  %v8268_v30 = vld [vmem:[%s11356_s1 + $0x112c] ss:$16 sps:$4 sm:$0xff]   ;;  %v8263_v31 = vld [vmem:[%s11356_s1 + $0x1120] ss:$16 sps:$4 sm:$0xff]  }
 0x1ef   :  { %5347 = vmatpush1.bf16.msra.mxu0 %v8179_v25  ;;  %5880 = vmatpush1.bf16.msra.mxu1 %v8182_v32  ;;  %v8266_v25 = vld [vmem:[%s11356_s1 + $0x1128] ss:$16 sps:$4 sm:$0xff]   ;;  %v8271_v32 = vld [vmem:[%s11356_s1 + $0x1144] ss:$16 sps:$4 sm:$0xff]  }
 0x1f0   :  { %5348 = vmatprep.subr.bf16.mxu0 %v8187_v33  ;;  %5881 = vmatprep.subr.bf16.mxu1 %v8190_v26  ;;  %v8274_v33 = vld [vmem:[%s11356_s1 + $0x114c] ss:$16 sps:$4 sm:$0xff]   ;;  %v8269_v26 = vld [vmem:[%s11356_s1 + $0x1140] ss:$16 sps:$4 sm:$0xff]  }
 0x1f3   :  { %5349 = vmatpush1.bf16.msra.mxu0 %v8185_v36  ;;  %5882 = vmatpush1.bf16.msra.mxu1 %v8188_v37  ;;  %v8272_v36 = vld [vmem:[%s11356_s1 + $0x1148] ss:$16 sps:$4 sm:$0xff]   ;;  %v8277_v37 = vld [vmem:[%s11356_s1 + $0x1164] ss:$16 sps:$4 sm:$0xff]  }
 0x1f4   :  { %5350 = vmatprep.subr.bf16.mxu0 %v8193_v21  ;;  %5883 = vmatprep.subr.bf16.mxu1 %v8196_v39  ;;  %v8280_v21 = vld [vmem:[%s11356_s1 + $0x116c] ss:$16 sps:$4 sm:$0xff]   ;;  %v8275_v39 = vld [vmem:[%s11356_s1 + $0x1160] ss:$16 sps:$4 sm:$0xff]  }
 0x1f7   :  { %5351 = vmatpush1.bf16.msra.mxu0 %v8191_v40  ;;  %5884 = vmatpush1.bf16.msra.mxu1 %v8194_v41  ;;  %v8278_v40 = vld [vmem:[%s11356_s1 + $0x1168] ss:$16 sps:$4 sm:$0xff]   ;;  %v8283_v41 = vld [vmem:[%s11356_s1 + $0x1184] ss:$16 sps:$4 sm:$0xff]  }
 0x1f8   :  { %5352 = vmatprep.subr.bf16.mxu0 %v8199_v34  ;;  %5885 = vmatprep.subr.bf16.mxu1 %v8202_v43  ;;  %v8286_v34 = vld [vmem:[%s11356_s1 + $0x118c] ss:$16 sps:$4 sm:$0xff]   ;;  %v8281_v43 = vld [vmem:[%s11356_s1 + $0x1180] ss:$16 sps:$4 sm:$0xff]  }
 0x1fb   :  { %5353 = vmatpush1.bf16.msra.mxu0 %v8197_v45  ;;  %5886 = vmatpush1.bf16.msra.mxu1 %v8200_v46  ;;  %v8284_v45 = vld [vmem:[%s11356_s1 + $0x1188] ss:$16 sps:$4 sm:$0xff]   ;;  %v8289_v46 = vld [vmem:[%s11356_s1 + $0x11a4] ss:$16 sps:$4 sm:$0xff]  }
 0x1fc   :  { %5354 = vmatprep.subr.bf16.mxu0 %v8205_v35  ;;  %5887 = vmatprep.subr.bf16.mxu1 %v8208_v50  ;;  %v8292_v35 = vld [vmem:[%s11356_s1 + $0x11ac] ss:$16 sps:$4 sm:$0xff]   ;;  %v8287_v50 = vld [vmem:[%s11356_s1 + $0x11a0] ss:$16 sps:$4 sm:$0xff]  }
 0x1ff   :  { %5355 = vmatpush1.bf16.msra.mxu0 %v8203_v53  ;;  %5888 = vmatpush1.bf16.msra.mxu1 %v8206_v38  ;;  %v8290_v53 = vld [vmem:[%s11356_s1 + $0x11a8] ss:$16 sps:$4 sm:$0xff]   ;;  %v8295_v38 = vld [vmem:[%s11356_s1 + $0x11c4] ss:$16 sps:$4 sm:$0xff]  }
 0x200   :  { %5365 = vmatprep.subr.bf16.mxu0 %v8211_v54  ;;  %5898 = vmatprep.subr.bf16.mxu1 %v8214_v55  ;;  %v8298_v54 = vld [vmem:[%s11356_s1 + $0x11cc] ss:$16 sps:$4 sm:$0xff]   ;;  %v8293_v55 = vld [vmem:[%s11356_s1 + $0x11c0] ss:$16 sps:$4 sm:$0xff]  }
 0x202   :  { %5357 = vmatmul.mubr.bf16.vlgmr.msra.gmra.mrb[0].mxu0 %v946_v47  ;;  %5890 = vmatmul.mubr.bf16.vlgmr.msra.gmra.mrb[0].mxu1 %v946_v47  ;;  %v8301_v47 = vld [vmem:[%s11356_s1 + $0x11e4] ss:$16 sps:$4 sm:$0xff]  }
 0x203   :  { %5366 = vmatpush1.bf16.msra.mxu0 %v8209_v57  ;;  %5899 = vmatpush1.bf16.msra.mxu1 %v8212_v58  ;;  %v8304_v57 = vld [vmem:[%s11356_s1 + $0x11ec] ss:$16 sps:$4 sm:$0xff]   ;;  %v8299_v58 = vld [vmem:[%s11356_s1 + $0x11e0] ss:$16 sps:$4 sm:$0xff]  }
 0x204   :  { %5367 = vmatprep.subr.bf16.mxu0 %v8217_v59  ;;  %5900 = vmatprep.subr.bf16.mxu1 %v8220_v48  ;;  %v8302_v59 = vld [vmem:[%s11356_s1 + $0x11e8] ss:$16 sps:$4 sm:$0xff]   ;;  %v8307_v48 = vld [vmem:[%s11356_s1 + $0x1204] ss:$16 sps:$4 sm:$0xff]  }
 0x205   :  { %5397 = vmatprep.mubr.bf16.mxu0 %v10361_v60  ;;  %5930 = vmatprep.mubr.bf16.mxu1 %v10361_v60 }
 0x207   :  { %5368 = vmatpush1.bf16.msra.mxu0 %v8215_v61  ;;  %5901 = vmatpush1.bf16.msra.mxu1 %v8218_v62  ;;  %v8310_v61 = vld [vmem:[%s11356_s1 + $0x120c] ss:$16 sps:$4 sm:$0xff]   ;;  %v10547_v62 = vrot.slane %v10330_v51, %v8843_v49 }
 0x208   :  { %5369 = vmatprep.subr.bf16.mxu0 %v8223_v63  ;;  %5902 = vmatprep.subr.bf16.mxu1 %v8226_v0  ;;  %v8305_v63 = vld [vmem:[%s11356_s1 + $0x1200] ss:$16 sps:$4 sm:$0xff]   ;;  %v8308_v0 = vld [vmem:[%s11356_s1 + $0x1208] ss:$16 sps:$4 sm:$0xff]   ;;  %v8316_v51 = vld [vmem:[%s11356_s1 + $0x122c] ss:$16 sps:$4 sm:$0xff]  }
 0x20b   :  { %5370 = vmatpush1.bf16.msra.mxu0 %v8221_v1  ;;  %5903 = vmatpush1.bf16.msra.mxu1 %v8224_v2  ;;  %v8313_v1 = vld [vmem:[%s11356_s1 + $0x1224] ss:$16 sps:$4 sm:$0xff]   ;;  %v996_v2 = vcombine.high %v10361_v60, %v10361_v60 }
 0x20c   :  { %5371 = vmatprep.subr.bf16.mxu0 %v8229_v3  ;;  %5904 = vmatprep.subr.bf16.mxu1 %v8232_v4  ;;  %v8311_v3 = vld [vmem:[%s11356_s1 + $0x1220] ss:$16 sps:$4 sm:$0xff]   ;;  %v8314_v4 = vld [vmem:[%s11356_s1 + $0x1228] ss:$16 sps:$4 sm:$0xff]   ;;  %v8319_v60 = vld [vmem:[%s11356_s1 + $0x1244] ss:$16 sps:$4 sm:$0xff]  }
 0x20f   :  { %5372 = vmatpush1.bf16.msra.mxu0 %v8227_v5  ;;  %5905 = vmatpush1.bf16.msra.mxu1 %v8230_v6  ;;  %v8322_v5 = vld [vmem:[%s11356_s1 + $0x124c] ss:$16 sps:$4 sm:$0xff]   ;;  %v8317_v6 = vld [vmem:[%s11356_s1 + $0x1240] ss:$16 sps:$4 sm:$0xff]  }
 0x210   :  { %5373 = vmatprep.subr.bf16.mxu0 %v8235_v7  ;;  %5906 = vmatprep.subr.bf16.mxu1 %v8238_v8  ;;  %v8320_v7 = vld [vmem:[%s11356_s1 + $0x1248] ss:$16 sps:$4 sm:$0xff]   ;;  %v8325_v8 = vld [vmem:[%s11356_s1 + $0x1264] ss:$16 sps:$4 sm:$0xff]  }
 0x213   :  { %5374 = vmatpush1.bf16.msra.mxu0 %v8233_v9  ;;  %5907 = vmatpush1.bf16.msra.mxu1 %v8236_v10  ;;  %v8328_v9 = vld [vmem:[%s11356_s1 + $0x126c] ss:$16 sps:$4 sm:$0xff]   ;;  %v8323_v10 = vld [vmem:[%s11356_s1 + $0x1260] ss:$16 sps:$4 sm:$0xff]  }
 0x214   :  { %5375 = vmatprep.subr.bf16.mxu0 %v8241_v11  ;;  %5908 = vmatprep.subr.bf16.mxu1 %v8244_v12  ;;  %v8326_v11 = vld [vmem:[%s11356_s1 + $0x1268] ss:$16 sps:$4 sm:$0xff]   ;;  %v8331_v12 = vld [vmem:[%s11356_s1 + $0x1284] ss:$16 sps:$4 sm:$0xff]  }
 0x217   :  { %5376 = vmatpush1.bf16.msra.mxu0 %v8239_v52  ;;  %5909 = vmatpush1.bf16.msra.mxu1 %v8242_v15  ;;  %v8334_v52 = vld [vmem:[%s11356_s1 + $0x128c] ss:$16 sps:$4 sm:$0xff]   ;;  %v8329_v15 = vld [vmem:[%s11356_s1 + $0x1280] ss:$16 sps:$4 sm:$0xff]  }
 0x218   :  { %5377 = vmatprep.subr.bf16.mxu0 %v8247_v16  ;;  %5910 = vmatprep.subr.bf16.mxu1 %v8250_v17  ;;  %v8332_v16 = vld [vmem:[%s11356_s1 + $0x1288] ss:$16 sps:$4 sm:$0xff]   ;;  %v8337_v17 = vld [vmem:[%s11356_s1 + $0x12a4] ss:$16 sps:$4 sm:$0xff]  }
 0x21b   :  { %5378 = vmatpush1.bf16.msra.mxu0 %v8245_v18  ;;  %5911 = vmatpush1.bf16.msra.mxu1 %v8248_v19  ;;  %v8340_v18 = vld [vmem:[%s11356_s1 + $0x12ac] ss:$16 sps:$4 sm:$0xff]   ;;  %v8335_v19 = vld [vmem:[%s11356_s1 + $0x12a0] ss:$16 sps:$4 sm:$0xff]  }
 0x21c   :  { %5379 = vmatprep.subr.bf16.mxu0 %v8253_v20  ;;  %5912 = vmatprep.subr.bf16.mxu1 %v8256_v22  ;;  %v8338_v20 = vld [vmem:[%s11356_s1 + $0x12a8] ss:$16 sps:$4 sm:$0xff]   ;;  %v8343_v22 = vld [vmem:[%s11356_s1 + $0x12c4] ss:$16 sps:$4 sm:$0xff]  }
 0x21f   :  { %5380 = vmatpush1.bf16.msra.mxu0 %v8251_v23  ;;  %5913 = vmatpush1.bf16.msra.mxu1 %v8254_v24  ;;  %v8346_v23 = vld [vmem:[%s11356_s1 + $0x12cc] ss:$16 sps:$4 sm:$0xff]   ;;  %v8341_v24 = vld [vmem:[%s11356_s1 + $0x12c0] ss:$16 sps:$4 sm:$0xff]  }
 0x220   :  { %5381 = vmatprep.subr.bf16.mxu0 %v8259_v13  ;;  %5914 = vmatprep.subr.bf16.mxu1 %v8262_v27  ;;  %v8344_v13 = vld [vmem:[%s11356_s1 + $0x12c8] ss:$16 sps:$4 sm:$0xff]   ;;  %v8349_v27 = vld [vmem:[%s11356_s1 + $0x12e4] ss:$16 sps:$4 sm:$0xff]  }
 0x223   :  { %5382 = vmatpush1.bf16.msra.mxu0 %v8257_v28  ;;  %5915 = vmatpush1.bf16.msra.mxu1 %v8260_v29  ;;  %v8352_v28 = vld [vmem:[%s11356_s1 + $0x12ec] ss:$16 sps:$4 sm:$0xff]   ;;  %v8347_v29 = vld [vmem:[%s11356_s1 + $0x12e0] ss:$16 sps:$4 sm:$0xff]  }
 0x224   :  { %5383 = vmatprep.subr.bf16.mxu0 %v8265_v14  ;;  %5916 = vmatprep.subr.bf16.mxu1 %v8268_v30  ;;  %v8350_v14 = vld [vmem:[%s11356_s1 + $0x12e8] ss:$16 sps:$4 sm:$0xff]   ;;  %v8355_v30 = vld [vmem:[%s11356_s1 + $0x1304] ss:$16 sps:$4 sm:$0xff]  }
 0x227   :  { %5384 = vmatpush1.bf16.msra.mxu0 %v8263_v31  ;;  %5917 = vmatpush1.bf16.msra.mxu1 %v8266_v25  ;;  %v8358_v31 = vld [vmem:[%s11356_s1 + $0x130c] ss:$16 sps:$4 sm:$0xff]   ;;  %v8353_v25 = vld [vmem:[%s11356_s1 + $0x1300] ss:$16 sps:$4 sm:$0xff]  }
 0x228   :  { %5385 = vmatprep.subr.bf16.mxu0 %v8271_v32  ;;  %5918 = vmatprep.subr.bf16.mxu1 %v8274_v33  ;;  %v8356_v32 = vld [vmem:[%s11356_s1 + $0x1308] ss:$16 sps:$4 sm:$0xff]   ;;  %v8361_v33 = vld [vmem:[%s11356_s1 + $0x1324] ss:$16 sps:$4 sm:$0xff]  }
 0x22b   :  { %5386 = vmatpush1.bf16.msra.mxu0 %v8269_v26  ;;  %5919 = vmatpush1.bf16.msra.mxu1 %v8272_v36  ;;  %v8364_v26 = vld [vmem:[%s11356_s1 + $0x132c] ss:$16 sps:$4 sm:$0xff]   ;;  %v8359_v36 = vld [vmem:[%s11356_s1 + $0x1320] ss:$16 sps:$4 sm:$0xff]  }
 0x22c   :  { %5387 = vmatprep.subr.bf16.mxu0 %v8277_v37  ;;  %5920 = vmatprep.subr.bf16.mxu1 %v8280_v21  ;;  %v8362_v37 = vld [vmem:[%s11356_s1 + $0x1328] ss:$16 sps:$4 sm:$0xff]   ;;  %v8367_v21 = vld [vmem:[%s11356_s1 + $0x1344] ss:$16 sps:$4 sm:$0xff]  }
 0x22f   :  { %5388 = vmatpush1.bf16.msra.mxu0 %v8275_v39  ;;  %5921 = vmatpush1.bf16.msra.mxu1 %v8278_v40  ;;  %v8370_v39 = vld [vmem:[%s11356_s1 + $0x134c] ss:$16 sps:$4 sm:$0xff]   ;;  %v8365_v40 = vld [vmem:[%s11356_s1 + $0x1340] ss:$16 sps:$4 sm:$0xff]  }
 0x230   :  { %5389 = vmatprep.subr.bf16.mxu0 %v8283_v41  ;;  %5922 = vmatprep.subr.bf16.mxu1 %v8286_v34  ;;  %v8368_v41 = vld [vmem:[%s11356_s1 + $0x1348] ss:$16 sps:$4 sm:$0xff]   ;;  %v8373_v34 = vld [vmem:[%s11356_s1 + $0x1364] ss:$16 sps:$4 sm:$0xff]  }
 0x233   :  { %5390 = vmatpush1.bf16.msra.mxu0 %v8281_v43  ;;  %5923 = vmatpush1.bf16.msra.mxu1 %v8284_v45  ;;  %v8376_v43 = vld [vmem:[%s11356_s1 + $0x136c] ss:$16 sps:$4 sm:$0xff]   ;;  %v8371_v45 = vld [vmem:[%s11356_s1 + $0x1360] ss:$16 sps:$4 sm:$0xff]  }
 0x234   :  { %5391 = vmatprep.subr.bf16.mxu0 %v8289_v46  ;;  %5924 = vmatprep.subr.bf16.mxu1 %v8292_v35  ;;  %v8374_v46 = vld [vmem:[%s11356_s1 + $0x1368] ss:$16 sps:$4 sm:$0xff]   ;;  %v8379_v35 = vld [vmem:[%s11356_s1 + $0x1384] ss:$16 sps:$4 sm:$0xff]  }
 0x237   :  { %5392 = vmatpush1.bf16.msra.mxu0 %v8287_v50  ;;  %5925 = vmatpush1.bf16.msra.mxu1 %v8290_v53  ;;  %v8382_v50 = vld [vmem:[%s11356_s1 + $0x138c] ss:$16 sps:$4 sm:$0xff]   ;;  %v8377_v53 = vld [vmem:[%s11356_s1 + $0x1380] ss:$16 sps:$4 sm:$0xff]  }
 0x238   :  { %5393 = vmatprep.subr.bf16.mxu0 %v8295_v38  ;;  %5926 = vmatprep.subr.bf16.mxu1 %v8298_v54  ;;  %v8380_v38 = vld [vmem:[%s11356_s1 + $0x1388] ss:$16 sps:$4 sm:$0xff]   ;;  %v8385_v54 = vld [vmem:[%s11356_s1 + $0x13a4] ss:$16 sps:$4 sm:$0xff]  }
 0x23b   :  { %5394 = vmatpush1.bf16.msra.mxu0 %v8293_v55  ;;  %5927 = vmatpush1.bf16.msra.mxu1 %v8296_v56  ;;  %v8388_v55 = vld [vmem:[%s11356_s1 + $0x13ac] ss:$16 sps:$4 sm:$0xff]   ;;  %v8383_v56 = vld [vmem:[%s11356_s1 + $0x13a0] ss:$16 sps:$4 sm:$0xff]  }
 0x23c   :  { %5395 = vmatprep.subr.bf16.mxu0 %v8301_v47  ;;  %5928 = vmatprep.subr.bf16.mxu1 %v8304_v57  ;;  %v8386_v47 = vld [vmem:[%s11356_s1 + $0x13a8] ss:$16 sps:$4 sm:$0xff]   ;;  %v8391_v57 = vld [vmem:[%s11356_s1 + $0x13c4] ss:$16 sps:$4 sm:$0xff]  }
 0x23f   :  { %5396 = vmatpush1.bf16.msra.mxu0 %v8299_v58  ;;  %5929 = vmatpush1.bf16.msra.mxu1 %v8302_v59  ;;  %v8394_v58 = vld [vmem:[%s11356_s1 + $0x13cc] ss:$16 sps:$4 sm:$0xff]   ;;  %v949_v59 = vcombine.high %v10314_v44, %v10314_v44 }
 0x240   :  { %5406 = vmatprep.subr.bf16.mxu0 %v8307_v48  ;;  %5939 = vmatprep.subr.bf16.mxu1 %v8310_v61  ;;  %v8389_v48 = vld [vmem:[%s11356_s1 + $0x13c0] ss:$16 sps:$4 sm:$0xff]   ;;  %v8392_v61 = vld [vmem:[%s11356_s1 + $0x13c8] ss:$16 sps:$4 sm:$0xff]   ;;  %v8400_v44 = vld [vmem:[%s11356_s1 + $0x13ec] ss:$16 sps:$4 sm:$0xff]  }
 0x242   :  { %5398 = vmatmul.mubr.bf16.vlgmr.msra.gmra.mrb[0].mxu0 %v10547_v62  ;;  %5931 = vmatmul.mubr.bf16.vlgmr.msra.gmra.mrb[0].mxu1 %v10547_v62 }
 0x243   :  { %5407 = vmatpush1.bf16.msra.mxu0 %v8305_v63  ;;  %5940 = vmatpush1.bf16.msra.mxu1 %v8308_v0  ;;  %v8397_v63 = vld [vmem:[%s11356_s1 + $0x13e4] ss:$16 sps:$4 sm:$0xff]   ;;  %v10736_v0 = vrot.slane %v949_v59, %v8843_v49  ;;  %v8476_v59 = vld [vmem:[%s11356_s1 + $0x1588] ss:$16 sps:$4 sm:$0xff]  }
 0x244   :  { %5408 = vmatprep.subr.bf16.mxu0 %v8313_v1  ;;  %5941 = vmatprep.subr.bf16.mxu1 %v8316_v51  ;;  %v8395_v1 = vld [vmem:[%s11356_s1 + $0x13e0] ss:$16 sps:$4 sm:$0xff]   ;;  %v8398_v51 = vld [vmem:[%s11356_s1 + $0x13e8] ss:$16 sps:$4 sm:$0xff]  }
 0x245   :  { %5438 = vmatprep.mubr.bf16.mxu0 %v996_v2  ;;  %5971 = vmatprep.mubr.bf16.mxu1 %v996_v2  ;;  %v8403_v2 = vld [vmem:[%s11356_s1 + $0x1404] ss:$16 sps:$4 sm:$0xff]  }
 0x247   :  { %5409 = vmatpush1.bf16.msra.mxu0 %v8311_v3  ;;  %5942 = vmatpush1.bf16.msra.mxu1 %v8314_v4  ;;  %v8406_v3 = vld [vmem:[%s11356_s1 + $0x140c] ss:$16 sps:$4 sm:$0xff]   ;;  %v965_v4 = vcombine.high %v10736_v0, %v10736_v0 }
 0x248   :  { %5410 = vmatprep.subr.bf16.mxu0 %v8319_v60  ;;  %5943 = vmatprep.subr.bf16.mxu1 %v8322_v5  ;;  %v994_v60 = vcombine.high %v10547_v62, %v10547_v62  ;;  %v8401_v5 = vld [vmem:[%s11356_s1 + $0x1400] ss:$16 sps:$4 sm:$0xff]   ;;  %v8412_v62 = vld [vmem:[%s11356_s1 + $0x142c] ss:$16 sps:$4 sm:$0xff]  }
 0x24b   :  { %5411 = vmatpush1.bf16.msra.mxu0 %v8317_v6  ;;  %5944 = vmatpush1.bf16.msra.mxu1 %v8320_v7  ;;  %v8404_v6 = vld [vmem:[%s11356_s1 + $0x1408] ss:$16 sps:$4 sm:$0xff]   ;;  %v8409_v7 = vld [vmem:[%s11356_s1 + $0x1424] ss:$16 sps:$4 sm:$0xff]  }
 0x24c   :  { %5412 = vmatprep.subr.bf16.mxu0 %v8325_v8  ;;  %5945 = vmatprep.subr.bf16.mxu1 %v8328_v9  ;;  %v10767_v8 = vrot.slane %v965_v4, %v8843_v49  ;;  %v8407_v9 = vld [vmem:[%s11356_s1 + $0x1420] ss:$16 sps:$4 sm:$0xff]   ;;  %v8493_v4 = vld [vmem:[%s11356_s1 + $0x15e4] ss:$16 sps:$4 sm:$0xff]  }
 0x24f   :  { %5413 = vmatpush1.bf16.msra.mxu0 %v8323_v10  ;;  %5946 = vmatpush1.bf16.msra.mxu1 %v8326_v11  ;;  %v8410_v10 = vld [vmem:[%s11356_s1 + $0x1428] ss:$16 sps:$4 sm:$0xff]   ;;  %v8415_v11 = vld [vmem:[%s11356_s1 + $0x1444] ss:$16 sps:$4 sm:$0xff]  }
 0x250   :  { %5414 = vmatprep.subr.bf16.mxu0 %v8331_v12  ;;  %5947 = vmatprep.subr.bf16.mxu1 %v8334_v52  ;;  %v8418_v12 = vld [vmem:[%s11356_s1 + $0x144c] ss:$16 sps:$4 sm:$0xff]   ;;  %v8413_v52 = vld [vmem:[%s11356_s1 + $0x1440] ss:$16 sps:$4 sm:$0xff]  }
 0x253   :  { %5415 = vmatpush1.bf16.msra.mxu0 %v8329_v15  ;;  %5948 = vmatpush1.bf16.msra.mxu1 %v8332_v16  ;;  %v8416_v15 = vld [vmem:[%s11356_s1 + $0x1448] ss:$16 sps:$4 sm:$0xff]   ;;  %v8421_v16 = vld [vmem:[%s11356_s1 + $0x1464] ss:$16 sps:$4 sm:$0xff]  }
 0x254   :  { %5416 = vmatprep.subr.bf16.mxu0 %v8337_v17  ;;  %5949 = vmatprep.subr.bf16.mxu1 %v8340_v18  ;;  %v8424_v17 = vld [vmem:[%s11356_s1 + $0x146c] ss:$16 sps:$4 sm:$0xff]   ;;  %v8419_v18 = vld [vmem:[%s11356_s1 + $0x1460] ss:$16 sps:$4 sm:$0xff]  }
 0x257   :  { %5417 = vmatpush1.bf16.msra.mxu0 %v8335_v19  ;;  %5950 = vmatpush1.bf16.msra.mxu1 %v8338_v20  ;;  %v8422_v19 = vld [vmem:[%s11356_s1 + $0x1468] ss:$16 sps:$4 sm:$0xff]   ;;  %v8427_v20 = vld [vmem:[%s11356_s1 + $0x1484] ss:$16 sps:$4 sm:$0xff]  }
 0x258   :  { %5418 = vmatprep.subr.bf16.mxu0 %v8343_v22  ;;  %5951 = vmatprep.subr.bf16.mxu1 %v8346_v23  ;;  %v8430_v22 = vld [vmem:[%s11356_s1 + $0x148c] ss:$16 sps:$4 sm:$0xff]   ;;  %v8425_v23 = vld [vmem:[%s11356_s1 + $0x1480] ss:$16 sps:$4 sm:$0xff]  }
 0x25b   :  { %5419 = vmatpush1.bf16.msra.mxu0 %v8341_v24  ;;  %5952 = vmatpush1.bf16.msra.mxu1 %v8344_v13  ;;  %v8428_v24 = vld [vmem:[%s11356_s1 + $0x1488] ss:$16 sps:$4 sm:$0xff]   ;;  %v8433_v13 = vld [vmem:[%s11356_s1 + $0x14a4] ss:$16 sps:$4 sm:$0xff]  }
 0x25c   :  { %5420 = vmatprep.subr.bf16.mxu0 %v8349_v27  ;;  %5953 = vmatprep.subr.bf16.mxu1 %v8352_v28  ;;  %v8436_v27 = vld [vmem:[%s11356_s1 + $0x14ac] ss:$16 sps:$4 sm:$0xff]   ;;  %v8431_v28 = vld [vmem:[%s11356_s1 + $0x14a0] ss:$16 sps:$4 sm:$0xff]  }
 0x25f   :  { %5421 = vmatpush1.bf16.msra.mxu0 %v8347_v29  ;;  %5954 = vmatpush1.bf16.msra.mxu1 %v8350_v14  ;;  %v8434_v29 = vld [vmem:[%s11356_s1 + $0x14a8] ss:$16 sps:$4 sm:$0xff]   ;;  %v8439_v14 = vld [vmem:[%s11356_s1 + $0x14c4] ss:$16 sps:$4 sm:$0xff]  }
 0x260   :  { %5422 = vmatprep.subr.bf16.mxu0 %v8355_v30  ;;  %5955 = vmatprep.subr.bf16.mxu1 %v8358_v31  ;;  %v8442_v30 = vld [vmem:[%s11356_s1 + $0x14cc] ss:$16 sps:$4 sm:$0xff]   ;;  %v8437_v31 = vld [vmem:[%s11356_s1 + $0x14c0] ss:$16 sps:$4 sm:$0xff]  }
 0x263   :  { %5423 = vmatpush1.bf16.msra.mxu0 %v8353_v25  ;;  %5956 = vmatpush1.bf16.msra.mxu1 %v8356_v32  ;;  %v8440_v25 = vld [vmem:[%s11356_s1 + $0x14c8] ss:$16 sps:$4 sm:$0xff]   ;;  %v8445_v32 = vld [vmem:[%s11356_s1 + $0x14e4] ss:$16 sps:$4 sm:$0xff]  }
 0x264   :  { %5424 = vmatprep.subr.bf16.mxu0 %v8361_v33  ;;  %5957 = vmatprep.subr.bf16.mxu1 %v8364_v26  ;;  %v8448_v33 = vld [vmem:[%s11356_s1 + $0x14ec] ss:$16 sps:$4 sm:$0xff]   ;;  %v8443_v26 = vld [vmem:[%s11356_s1 + $0x14e0] ss:$16 sps:$4 sm:$0xff]  }
 0x267   :  { %5425 = vmatpush1.bf16.msra.mxu0 %v8359_v36  ;;  %5958 = vmatpush1.bf16.msra.mxu1 %v8362_v37  ;;  %v8446_v36 = vld [vmem:[%s11356_s1 + $0x14e8] ss:$16 sps:$4 sm:$0xff]   ;;  %v8451_v37 = vld [vmem:[%s11356_s1 + $0x1504] ss:$16 sps:$4 sm:$0xff]  }
 0x268   :  { %5426 = vmatprep.subr.bf16.mxu0 %v8367_v21  ;;  %5959 = vmatprep.subr.bf16.mxu1 %v8370_v39  ;;  %v8454_v21 = vld [vmem:[%s11356_s1 + $0x150c] ss:$16 sps:$4 sm:$0xff]   ;;  %v8449_v39 = vld [vmem:[%s11356_s1 + $0x1500] ss:$16 sps:$4 sm:$0xff]  }
 0x26b   :  { %5427 = vmatpush1.bf16.msra.mxu0 %v8365_v40  ;;  %5960 = vmatpush1.bf16.msra.mxu1 %v8368_v41  ;;  %v8452_v40 = vld [vmem:[%s11356_s1 + $0x1508] ss:$16 sps:$4 sm:$0xff]   ;;  %v8457_v41 = vld [vmem:[%s11356_s1 + $0x1524] ss:$16 sps:$4 sm:$0xff]  }
 0x26c   :  { %5428 = vmatprep.subr.bf16.mxu0 %v8373_v34  ;;  %5961 = vmatprep.subr.bf16.mxu1 %v8376_v43  ;;  %v8460_v34 = vld [vmem:[%s11356_s1 + $0x152c] ss:$16 sps:$4 sm:$0xff]   ;;  %v8455_v43 = vld [vmem:[%s11356_s1 + $0x1520] ss:$16 sps:$4 sm:$0xff]  }
 0x26f   :  { %5429 = vmatpush1.bf16.msra.mxu0 %v8371_v45  ;;  %5962 = vmatpush1.bf16.msra.mxu1 %v8374_v46  ;;  %v8458_v45 = vld [vmem:[%s11356_s1 + $0x1528] ss:$16 sps:$4 sm:$0xff]   ;;  %v8463_v46 = vld [vmem:[%s11356_s1 + $0x1544] ss:$16 sps:$4 sm:$0xff]  }
 0x270   :  { %5430 = vmatprep.subr.bf16.mxu0 %v8379_v35  ;;  %5963 = vmatprep.subr.bf16.mxu1 %v8382_v50  ;;  %v8466_v35 = vld [vmem:[%s11356_s1 + $0x154c] ss:$16 sps:$4 sm:$0xff]   ;;  %v8461_v50 = vld [vmem:[%s11356_s1 + $0x1540] ss:$16 sps:$4 sm:$0xff]  }
 0x273   :  { %5431 = vmatpush1.bf16.msra.mxu0 %v8377_v53  ;;  %5964 = vmatpush1.bf16.msra.mxu1 %v8380_v38  ;;  %v8464_v53 = vld [vmem:[%s11356_s1 + $0x1548] ss:$16 sps:$4 sm:$0xff]   ;;  %v8469_v38 = vld [vmem:[%s11356_s1 + $0x1564] ss:$16 sps:$4 sm:$0xff]  }
 0x274   :  { %5432 = vmatprep.subr.bf16.mxu0 %v8385_v54  ;;  %5965 = vmatprep.subr.bf16.mxu1 %v8388_v55  ;;  %v8472_v54 = vld [vmem:[%s11356_s1 + $0x156c] ss:$16 sps:$4 sm:$0xff]   ;;  %v8467_v55 = vld [vmem:[%s11356_s1 + $0x1560] ss:$16 sps:$4 sm:$0xff]  }
 0x277   :  { %5433 = vmatpush1.bf16.msra.mxu0 %v8383_v56  ;;  %5966 = vmatpush1.bf16.msra.mxu1 %v8386_v47  ;;  %v8470_v56 = vld [vmem:[%s11356_s1 + $0x1568] ss:$16 sps:$4 sm:$0xff]   ;;  %v8475_v47 = vld [vmem:[%s11356_s1 + $0x1584] ss:$16 sps:$4 sm:$0xff]  }
 0x278   :  { %5434 = vmatprep.subr.bf16.mxu0 %v8391_v57  ;;  %5967 = vmatprep.subr.bf16.mxu1 %v8394_v58  ;;  %v8478_v57 = vld [vmem:[%s11356_s1 + $0x158c] ss:$16 sps:$4 sm:$0xff]   ;;  %v8473_v58 = vld [vmem:[%s11356_s1 + $0x1580] ss:$16 sps:$4 sm:$0xff]  }
 0x27b   :  { %5435 = vmatpush1.bf16.msra.mxu0 %v8389_v48  ;;  %5968 = vmatpush1.bf16.msra.mxu1 %v8392_v61  ;;  %v8481_v48 = vld [vmem:[%s11356_s1 + $0x15a4] ss:$16 sps:$4 sm:$0xff]   ;;  %v8484_v61 = vld [vmem:[%s11356_s1 + $0x15ac] ss:$16 sps:$4 sm:$0xff]  }
 0x27c   :  { %5436 = vmatprep.subr.bf16.mxu0 %v8397_v63  ;;  %5969 = vmatprep.subr.bf16.mxu1 %v8400_v44  ;;  %v8479_v63 = vld [vmem:[%s11356_s1 + $0x15a0] ss:$16 sps:$4 sm:$0xff]   ;;  %v8482_v44 = vld [vmem:[%s11356_s1 + $0x15a8] ss:$16 sps:$4 sm:$0xff]  }
 0x27f   :  { %5437 = vmatpush1.bf16.msra.mxu0 %v8395_v1  ;;  %5970 = vmatpush1.bf16.msra.mxu1 %v8398_v51  ;;  %v8487_v1 = vld [vmem:[%s11356_s1 + $0x15c4] ss:$16 sps:$4 sm:$0xff]   ;;  %v8490_v51 = vld [vmem:[%s11356_s1 + $0x15cc] ss:$16 sps:$4 sm:$0xff]  }
 0x280   :  { %5447 = vmatprep.subr.bf16.mxu0 %v8403_v2  ;;  %5980 = vmatprep.subr.bf16.mxu1 %v8406_v3  ;;  %v8485_v2 = vld [vmem:[%s11356_s1 + $0x15c0] ss:$16 sps:$4 sm:$0xff]   ;;  %v8488_v3 = vld [vmem:[%s11356_s1 + $0x15c8] ss:$16 sps:$4 sm:$0xff]  }
 0x282   :  { %5439 = vmatmul.mubr.bf16.vlgmr.msra.gmra.mrb[0].mxu0 %v994_v60  ;;  %5972 = vmatmul.mubr.bf16.vlgmr.msra.gmra.mrb[0].mxu1 %v994_v60  ;;  %v8496_v60 = vld [vmem:[%s11356_s1 + $0x15ec] ss:$16 sps:$4 sm:$0xff]  }
 0x283   :  { %5448 = vmatpush1.bf16.msra.mxu0 %v8401_v5  ;;  %5981 = vmatpush1.bf16.msra.mxu1 %v8404_v6  ;;  %v8491_v5 = vld [vmem:[%s11356_s1 + $0x15e0] ss:$16 sps:$4 sm:$0xff]   ;;  %v8494_v6 = vld [vmem:[%s11356_s1 + $0x15e8] ss:$16 sps:$4 sm:$0xff]  }
 0x284   :  { %5449 = vmatprep.subr.bf16.mxu0 %v8409_v7  ;;  %5982 = vmatprep.subr.bf16.mxu1 %v8412_v62  ;;  %v8500_v7 = vld [vmem:[%s11356_s1 + $0x1604] ss:$16 sps:$4 sm:$0xff]   ;;  %v8503_v62 = vld [vmem:[%s11356_s1 + $0x160c] ss:$16 sps:$4 sm:$0xff]  }
 0x285   :  { %5479 = vmatprep.mubr.bf16.mxu0 %v10767_v8  ;;  %6012 = vmatprep.mubr.bf16.mxu1 %v10767_v8 }
 0x287   :  { %5450 = vmatpush1.bf16.msra.mxu0 %v8407_v9  ;;  %5983 = vmatpush1.bf16.msra.mxu1 %v8410_v10  ;;  %v8498_v9 = vld [vmem:[%s11356_s1 + $0x1600] ss:$16 sps:$4 sm:$0xff]   ;;  %v8501_v10 = vld [vmem:[%s11356_s1 + $0x1608] ss:$16 sps:$4 sm:$0xff]  }
 0x288   :  { %5451 = vmatprep.subr.bf16.mxu0 %v8415_v11  ;;  %5984 = vmatprep.subr.bf16.mxu1 %v8418_v12  ;;  %v10959_v11 = vrot.slane %v10736_v0, %v8843_v49  ;;  %v8506_v12 = vld [vmem:[%s11356_s1 + $0x1624] ss:$16 sps:$4 sm:$0xff]   ;;  %v8504_v0 = vld [vmem:[%s11356_s1 + $0x1620] ss:$16 sps:$4 sm:$0xff]  }
 0x28b   :  { %5452 = vmatpush1.bf16.msra.mxu0 %v8413_v52  ;;  %5985 = vmatpush1.bf16.msra.mxu1 %v8416_v15  ;;  %v8509_v52 = vld [vmem:[%s11356_s1 + $0x162c] ss:$16 sps:$4 sm:$0xff]   ;;  %v997_v15 = vcombine.high %v10767_v8, %v10767_v8  ;;  %v8512_v8 = vld [vmem:[%s11356_s1 + $0x1644] ss:$16 sps:$4 sm:$0xff]  }
 0x28c   :  { %5453 = vmatprep.subr.bf16.mxu0 %v8421_v16  ;;  %5986 = vmatprep.subr.bf16.mxu1 %v8424_v17  ;;  %v8507_v16 = vld [vmem:[%s11356_s1 + $0x1628] ss:$16 sps:$4 sm:$0xff]   ;;  %v8515_v17 = vld [vmem:[%s11356_s1 + $0x164c] ss:$16 sps:$4 sm:$0xff]  }
 0x28f   :  { %5454 = vmatpush1.bf16.msra.mxu0 %v8419_v18  ;;  %5987 = vmatpush1.bf16.msra.mxu1 %v8422_v19  ;;  %v8510_v18 = vld [vmem:[%s11356_s1 + $0x1640] ss:$16 sps:$4 sm:$0xff]   ;;  %v8513_v19 = vld [vmem:[%s11356_s1 + $0x1648] ss:$16 sps:$4 sm:$0xff]  }
 0x290   :  { %5455 = vmatprep.subr.bf16.mxu0 %v8427_v20  ;;  %5988 = vmatprep.subr.bf16.mxu1 %v8430_v22  ;;  %v8518_v20 = vld [vmem:[%s11356_s1 + $0x1664] ss:$16 sps:$4 sm:$0xff]   ;;  %v8521_v22 = vld [vmem:[%s11356_s1 + $0x166c] ss:$16 sps:$4 sm:$0xff]  }
 0x293   :  { %5456 = vmatpush1.bf16.msra.mxu0 %v8425_v23  ;;  %5989 = vmatpush1.bf16.msra.mxu1 %v8428_v24  ;;  %v8516_v23 = vld [vmem:[%s11356_s1 + $0x1660] ss:$16 sps:$4 sm:$0xff]   ;;  %v8519_v24 = vld [vmem:[%s11356_s1 + $0x1668] ss:$16 sps:$4 sm:$0xff]  }
 0x294   :  { %5457 = vmatprep.subr.bf16.mxu0 %v8433_v13  ;;  %5990 = vmatprep.subr.bf16.mxu1 %v8436_v27  ;;  %v8524_v13 = vld [vmem:[%s11356_s1 + $0x1684] ss:$16 sps:$4 sm:$0xff]   ;;  %v8527_v27 = vld [vmem:[%s11356_s1 + $0x168c] ss:$16 sps:$4 sm:$0xff]  }
 0x297   :  { %5458 = vmatpush1.bf16.msra.mxu0 %v8431_v28  ;;  %5991 = vmatpush1.bf16.msra.mxu1 %v8434_v29  ;;  %v8522_v28 = vld [vmem:[%s11356_s1 + $0x1680] ss:$16 sps:$4 sm:$0xff]   ;;  %v8525_v29 = vld [vmem:[%s11356_s1 + $0x1688] ss:$16 sps:$4 sm:$0xff]  }
 0x298   :  { %5459 = vmatprep.subr.bf16.mxu0 %v8439_v14  ;;  %5992 = vmatprep.subr.bf16.mxu1 %v8442_v30  ;;  %v8530_v14 = vld [vmem:[%s11356_s1 + $0x16a4] ss:$16 sps:$4 sm:$0xff]   ;;  %v8533_v30 = vld [vmem:[%s11356_s1 + $0x16ac] ss:$16 sps:$4 sm:$0xff]  }
 0x29b   :  { %5460 = vmatpush1.bf16.msra.mxu0 %v8437_v31  ;;  %5993 = vmatpush1.bf16.msra.mxu1 %v8440_v25  ;;  %v8528_v31 = vld [vmem:[%s11356_s1 + $0x16a0] ss:$16 sps:$4 sm:$0xff]   ;;  %v8531_v25 = vld [vmem:[%s11356_s1 + $0x16a8] ss:$16 sps:$4 sm:$0xff]  }
 0x29c   :  { %5461 = vmatprep.subr.bf16.mxu0 %v8445_v32  ;;  %5994 = vmatprep.subr.bf16.mxu1 %v8448_v33  ;;  %v8536_v32 = vld [vmem:[%s11356_s1 + $0x16c4] ss:$16 sps:$4 sm:$0xff]   ;;  %v8539_v33 = vld [vmem:[%s11356_s1 + $0x16cc] ss:$16 sps:$4 sm:$0xff]  }
 0x29f   :  { %5462 = vmatpush1.bf16.msra.mxu0 %v8443_v26  ;;  %5995 = vmatpush1.bf16.msra.mxu1 %v8446_v36  ;;  %v8534_v26 = vld [vmem:[%s11356_s1 + $0x16c0] ss:$16 sps:$4 sm:$0xff]   ;;  %v8537_v36 = vld [vmem:[%s11356_s1 + $0x16c8] ss:$16 sps:$4 sm:$0xff]  }
 0x2a0   :  { %5463 = vmatprep.subr.bf16.mxu0 %v8451_v37  ;;  %5996 = vmatprep.subr.bf16.mxu1 %v8454_v21  ;;  %v8542_v37 = vld [vmem:[%s11356_s1 + $0x16e4] ss:$16 sps:$4 sm:$0xff]   ;;  %v8545_v21 = vld [vmem:[%s11356_s1 + $0x16ec] ss:$16 sps:$4 sm:$0xff]  }
 0x2a3   :  { %5464 = vmatpush1.bf16.msra.mxu0 %v8449_v39  ;;  %5997 = vmatpush1.bf16.msra.mxu1 %v8452_v40  ;;  %v8540_v39 = vld [vmem:[%s11356_s1 + $0x16e0] ss:$16 sps:$4 sm:$0xff]   ;;  %v8543_v40 = vld [vmem:[%s11356_s1 + $0x16e8] ss:$16 sps:$4 sm:$0xff]  }
 0x2a4   :  { %5465 = vmatprep.subr.bf16.mxu0 %v8457_v41  ;;  %5998 = vmatprep.subr.bf16.mxu1 %v8460_v34  ;;  %v8548_v41 = vld [vmem:[%s11356_s1 + $0x1704] ss:$16 sps:$4 sm:$0xff]   ;;  %v8551_v34 = vld [vmem:[%s11356_s1 + $0x170c] ss:$16 sps:$4 sm:$0xff]  }
 0x2a7   :  { %5466 = vmatpush1.bf16.msra.mxu0 %v8455_v43  ;;  %5999 = vmatpush1.bf16.msra.mxu1 %v8458_v45  ;;  %v8546_v43 = vld [vmem:[%s11356_s1 + $0x1700] ss:$16 sps:$4 sm:$0xff]   ;;  %v8549_v45 = vld [vmem:[%s11356_s1 + $0x1708] ss:$16 sps:$4 sm:$0xff]  }
 0x2a8   :  { %5467 = vmatprep.subr.bf16.mxu0 %v8463_v46  ;;  %6000 = vmatprep.subr.bf16.mxu1 %v8466_v35  ;;  %v8554_v46 = vld [vmem:[%s11356_s1 + $0x1724] ss:$16 sps:$4 sm:$0xff]   ;;  %v8557_v35 = vld [vmem:[%s11356_s1 + $0x172c] ss:$16 sps:$4 sm:$0xff]  }
 0x2ab   :  { %5468 = vmatpush1.bf16.msra.mxu0 %v8461_v50  ;;  %6001 = vmatpush1.bf16.msra.mxu1 %v8464_v53  ;;  %v8552_v50 = vld [vmem:[%s11356_s1 + $0x1720] ss:$16 sps:$4 sm:$0xff]   ;;  %v8555_v53 = vld [vmem:[%s11356_s1 + $0x1728] ss:$16 sps:$4 sm:$0xff]  }
 0x2ac   :  { %5469 = vmatprep.subr.bf16.mxu0 %v8469_v38  ;;  %6002 = vmatprep.subr.bf16.mxu1 %v8472_v54  ;;  %v8560_v38 = vld [vmem:[%s11356_s1 + $0x1744] ss:$16 sps:$4 sm:$0xff]   ;;  %v8563_v54 = vld [vmem:[%s11356_s1 + $0x174c] ss:$16 sps:$4 sm:$0xff]  }
 0x2af   :  { %5470 = vmatpush1.bf16.msra.mxu0 %v8467_v55  ;;  %6003 = vmatpush1.bf16.msra.mxu1 %v8470_v56  ;;  %v8558_v55 = vld [vmem:[%s11356_s1 + $0x1740] ss:$16 sps:$4 sm:$0xff]   ;;  %v8561_v56 = vld [vmem:[%s11356_s1 + $0x1748] ss:$16 sps:$4 sm:$0xff]  }
 0x2b0   :  { %5471 = vmatprep.subr.bf16.mxu0 %v8475_v47  ;;  %6004 = vmatprep.subr.bf16.mxu1 %v8478_v57  ;;  %v8566_v47 = vld [vmem:[%s11356_s1 + $0x1764] ss:$16 sps:$4 sm:$0xff]   ;;  %v8569_v57 = vld [vmem:[%s11356_s1 + $0x176c] ss:$16 sps:$4 sm:$0xff]  }
 0x2b3   :  { %5472 = vmatpush1.bf16.msra.mxu0 %v8473_v58  ;;  %6005 = vmatpush1.bf16.msra.mxu1 %v8476_v59  ;;  %v8564_v58 = vld [vmem:[%s11356_s1 + $0x1760] ss:$16 sps:$4 sm:$0xff]   ;;  %v8567_v59 = vld [vmem:[%s11356_s1 + $0x1768] ss:$16 sps:$4 sm:$0xff]  }
 0x2b4   :  { %5473 = vmatprep.subr.bf16.mxu0 %v8481_v48  ;;  %6006 = vmatprep.subr.bf16.mxu1 %v8484_v61  ;;  %v8572_v48 = vld [vmem:[%s11356_s1 + $0x1784] ss:$16 sps:$4 sm:$0xff]   ;;  %v8575_v61 = vld [vmem:[%s11356_s1 + $0x178c] ss:$16 sps:$4 sm:$0xff]  }
 0x2b7   :  { %5474 = vmatpush1.bf16.msra.mxu0 %v8479_v63  ;;  %6007 = vmatpush1.bf16.msra.mxu1 %v8482_v44  ;;  %v8570_v63 = vld [vmem:[%s11356_s1 + $0x1780] ss:$16 sps:$4 sm:$0xff]   ;;  %v8573_v44 = vld [vmem:[%s11356_s1 + $0x1788] ss:$16 sps:$4 sm:$0xff]  }
 0x2b8   :  { %5475 = vmatprep.subr.bf16.mxu0 %v8487_v1  ;;  %6008 = vmatprep.subr.bf16.mxu1 %v8490_v51  ;;  %v8578_v1 = vld [vmem:[%s11356_s1 + $0x17a4] ss:$16 sps:$4 sm:$0xff]   ;;  %v8581_v51 = vld [vmem:[%s11356_s1 + $0x17ac] ss:$16 sps:$4 sm:$0xff]  }
 0x2bb   :  { %5476 = vmatpush1.bf16.msra.mxu0 %v8485_v2  ;;  %6009 = vmatpush1.bf16.msra.mxu1 %v8488_v3  ;;  %v8576_v2 = vld [vmem:[%s11356_s1 + $0x17a0] ss:$16 sps:$4 sm:$0xff]   ;;  %v8579_v3 = vld [vmem:[%s11356_s1 + $0x17a8] ss:$16 sps:$4 sm:$0xff]  }
 0x2bc   :  { %5477 = vmatprep.subr.bf16.mxu0 %v8493_v4  ;;  %6010 = vmatprep.subr.bf16.mxu1 %v8496_v60  ;;  %v8584_v4 = vld [vmem:[%s11356_s1 + $0x17c4] ss:$16 sps:$4 sm:$0xff]   ;;  %v8587_v60 = vld [vmem:[%s11356_s1 + $0x17cc] ss:$16 sps:$4 sm:$0xff]  }
 0x2bf   :  { %5478 = vmatpush1.bf16.msra.mxu0 %v8491_v5  ;;  %6011 = vmatpush1.bf16.msra.mxu1 %v8494_v6  ;;  %v8582_v5 = vld [vmem:[%s11356_s1 + $0x17c0] ss:$16 sps:$4 sm:$0xff]   ;;  %v8585_v6 = vld [vmem:[%s11356_s1 + $0x17c8] ss:$16 sps:$4 sm:$0xff]  }
 0x2c0   :  { %5488 = vmatprep.subr.bf16.mxu0 %v8500_v7  ;;  %6021 = vmatprep.subr.bf16.mxu1 %v8503_v62  ;;  %v8590_v7 = vld [vmem:[%s11356_s1 + $0x17e4] ss:$16 sps:$4 sm:$0xff]   ;;  %v8593_v62 = vld [vmem:[%s11356_s1 + $0x17ec] ss:$16 sps:$4 sm:$0xff]  }
 0x2c2   :  { %5480 = vmatmul.mubr.bf16.vlgmr.msra.gmra.mrb[0].mxu0 %v10959_v11  ;;  %6013 = vmatmul.mubr.bf16.vlgmr.msra.gmra.mrb[0].mxu1 %v10959_v11 }
 0x2c3   :  { %5489 = vmatpush1.bf16.msra.mxu0 %v8498_v9  ;;  %6022 = vmatpush1.bf16.msra.mxu1 %v8501_v10  ;;  %v8588_v9 = vld [vmem:[%s11356_s1 + $0x17e0] ss:$16 sps:$4 sm:$0xff]   ;;  %v8591_v10 = vld [vmem:[%s11356_s1 + $0x17e8] ss:$16 sps:$4 sm:$0xff]  }
 0x2c4   :  { %5490 = vmatprep.subr.bf16.mxu0 %v8506_v12  ;;  %6023 = vmatprep.subr.bf16.mxu1 %v8509_v52  ;;  %v8596_v12 = vld [vmem:[%s11356_s1 + $0x1804] ss:$16 sps:$4 sm:$0xff]   ;;  %v8599_v52 = vld [vmem:[%s11356_s1 + $0x180c] ss:$16 sps:$4 sm:$0xff]  }
 0x2c5   :  { %5520 = vmatprep.mubr.bf16.mxu0 %v997_v15  ;;  %6053 = vmatprep.mubr.bf16.mxu1 %v997_v15  ;;  %v995_v15 = vcombine.high %v10959_v11, %v10959_v11  ;;  %v8605_v11 = vld [vmem:[%s11356_s1 + $0x182c] ss:$16 sps:$4 sm:$0xff]  }
 0x2c7   :  { %5491 = vmatpush1.bf16.msra.mxu0 %v8504_v0  ;;  %6024 = vmatpush1.bf16.msra.mxu1 %v8507_v16  ;;  %v8594_v0 = vld [vmem:[%s11356_s1 + $0x1800] ss:$16 sps:$4 sm:$0xff]   ;;  %v8597_v16 = vld [vmem:[%s11356_s1 + $0x1808] ss:$16 sps:$4 sm:$0xff]  }
 0x2c8   :  { %5492 = vmatprep.subr.bf16.mxu0 %v8512_v8  ;;  %6025 = vmatprep.subr.bf16.mxu1 %v8515_v17  ;;  %v8602_v8 = vld [vmem:[%s11356_s1 + $0x1824] ss:$16 sps:$4 sm:$0xff]   ;;  %v8600_v17 = vld [vmem:[%s11356_s1 + $0x1820] ss:$16 sps:$4 sm:$0xff]  }
 0x2cb   :  { %5493 = vmatpush1.bf16.msra.mxu0 %v8510_v18  ;;  %6026 = vmatpush1.bf16.msra.mxu1 %v8513_v19  ;;  %v8603_v18 = vld [vmem:[%s11356_s1 + $0x1828] ss:$16 sps:$4 sm:$0xff]   ;;  %v8608_v19 = vld [vmem:[%s11356_s1 + $0x1844] ss:$16 sps:$4 sm:$0xff]  }
 0x2cc   :  { %5494 = vmatprep.subr.bf16.mxu0 %v8518_v20  ;;  %6027 = vmatprep.subr.bf16.mxu1 %v8521_v22  ;;  %v8611_v20 = vld [vmem:[%s11356_s1 + $0x184c] ss:$16 sps:$4 sm:$0xff]   ;;  %v8677_v22 = vmov 0  }
 0x2cf   :  { %5495 = vmatpush1.bf16.msra.mxu0 %v8516_v23  ;;  %6028 = vmatpush1.bf16.msra.mxu1 %v8519_v24  ;;  %v8606_v23 = vld [vmem:[%s11356_s1 + $0x1840] ss:$16 sps:$4 sm:$0xff]   ;;  %v8609_v24 = vld [vmem:[%s11356_s1 + $0x1848] ss:$16 sps:$4 sm:$0xff]  }
 0x2d0   :  { %5496 = vmatprep.subr.bf16.mxu0 %v8524_v13  ;;  %6029 = vmatprep.subr.bf16.mxu1 %v8527_v27  ;;  %v8614_v13 = vld [vmem:[%s11356_s1 + $0x1864] ss:$16 sps:$4 sm:$0xff]   ;;  %v8617_v27 = vld [vmem:[%s11356_s1 + $0x186c] ss:$16 sps:$4 sm:$0xff]  }
 0x2d3   :  { %5497 = vmatpush1.bf16.msra.mxu0 %v8522_v28  ;;  %6030 = vmatpush1.bf16.msra.mxu1 %v8525_v29  ;;  %v8612_v28 = vld [vmem:[%s11356_s1 + $0x1860] ss:$16 sps:$4 sm:$0xff]   ;;  %v8615_v29 = vld [vmem:[%s11356_s1 + $0x1868] ss:$16 sps:$4 sm:$0xff]  }
 0x2d4   :  { %5498 = vmatprep.subr.bf16.mxu0 %v8530_v14  ;;  %6031 = vmatprep.subr.bf16.mxu1 %v8533_v30  ;;  %v8620_v14 = vld [vmem:[%s11356_s1 + $0x1884] ss:$16 sps:$4 sm:$0xff]   ;;  %v8623_v30 = vld [vmem:[%s11356_s1 + $0x188c] ss:$16 sps:$4 sm:$0xff]  }
 0x2d7   :  { %5499 = vmatpush1.bf16.msra.mxu0 %v8528_v31  ;;  %6032 = vmatpush1.bf16.msra.mxu1 %v8531_v25  ;;  %v8618_v31 = vld [vmem:[%s11356_s1 + $0x1880] ss:$16 sps:$4 sm:$0xff]   ;;  %v8621_v25 = vld [vmem:[%s11356_s1 + $0x1888] ss:$16 sps:$4 sm:$0xff]  }
 0x2d8   :  { %5500 = vmatprep.subr.bf16.mxu0 %v8536_v32  ;;  %6033 = vmatprep.subr.bf16.mxu1 %v8539_v33  ;;  %v8626_v32 = vld [vmem:[%s11356_s1 + $0x18a4] ss:$16 sps:$4 sm:$0xff]   ;;  %v8629_v33 = vld [vmem:[%s11356_s1 + $0x18ac] ss:$16 sps:$4 sm:$0xff]  }
 0x2db   :  { %5501 = vmatpush1.bf16.msra.mxu0 %v8534_v26  ;;  %6034 = vmatpush1.bf16.msra.mxu1 %v8537_v36  ;;  %v8624_v26 = vld [vmem:[%s11356_s1 + $0x18a0] ss:$16 sps:$4 sm:$0xff]   ;;  %v8627_v36 = vld [vmem:[%s11356_s1 + $0x18a8] ss:$16 sps:$4 sm:$0xff]  }
 0x2dc   :  { %5502 = vmatprep.subr.bf16.mxu0 %v8542_v37  ;;  %6035 = vmatprep.subr.bf16.mxu1 %v8545_v21  ;;  %v8632_v37 = vld [vmem:[%s11356_s1 + $0x18c4] ss:$16 sps:$4 sm:$0xff]   ;;  %v8635_v21 = vld [vmem:[%s11356_s1 + $0x18cc] ss:$16 sps:$4 sm:$0xff]  }
 0x2df   :  { %5503 = vmatpush1.bf16.msra.mxu0 %v8540_v39  ;;  %6036 = vmatpush1.bf16.msra.mxu1 %v8543_v40  ;;  %v8630_v39 = vld [vmem:[%s11356_s1 + $0x18c0] ss:$16 sps:$4 sm:$0xff]   ;;  %v8633_v40 = vld [vmem:[%s11356_s1 + $0x18c8] ss:$16 sps:$4 sm:$0xff]  }
 0x2e0   :  { %5504 = vmatprep.subr.bf16.mxu0 %v8548_v41  ;;  %6037 = vmatprep.subr.bf16.mxu1 %v8551_v34  ;;  %v8638_v41 = vld [vmem:[%s11356_s1 + $0x18e4] ss:$16 sps:$4 sm:$0xff]   ;;  %v8641_v34 = vld [vmem:[%s11356_s1 + $0x18ec] ss:$16 sps:$4 sm:$0xff]  }
 0x2e3   :  { %5505 = vmatpush1.bf16.msra.mxu0 %v8546_v43  ;;  %6038 = vmatpush1.bf16.msra.mxu1 %v8549_v45  ;;  %v8636_v43 = vld [vmem:[%s11356_s1 + $0x18e0] ss:$16 sps:$4 sm:$0xff]   ;;  %v8639_v45 = vld [vmem:[%s11356_s1 + $0x18e8] ss:$16 sps:$4 sm:$0xff]  }
 0x2e4   :  { %5506 = vmatprep.subr.bf16.mxu0 %v8554_v46  ;;  %6039 = vmatprep.subr.bf16.mxu1 %v8557_v35  ;;  %v6459_v46 = vld.sshfl [vmem:[%s11357_s0 + $0x18] sm:$0x1 pattern:$0x75316420]  ;;  %v8642_v35 = vld [vmem:[%s11358_s3 + $0x40] sm:$0xff]  }
 0x2e7   :  { %5507 = vmatpush1.bf16.msra.mxu0 %v8552_v50  ;;  %6040 = vmatpush1.bf16.msra.mxu1 %v8555_v53  ;;  %v8643_v50 = vld [vmem:[%s11358_s3 + $0xc0] sm:$0xff]   ;;  %v1011_v53 = vrot.slane %v6459_v46, %v8843_v49  ;;  %v8647_v49 = vld [vmem:[%s11358_s3 + $0xc8] sm:$0xff]  }
 0x2e8   :  { %5508 = vmatprep.subr.bf16.mxu0 %v8560_v38  ;;  %6041 = vmatprep.subr.bf16.mxu1 %v8563_v54  ;;  %v8644_v38 = vld [vmem:[%s11358_s3] sm:$0xff]  }
 0x2e9   :  { %v8645_v54 = vld [vmem:[%s11358_s3 + $0x80] sm:$0xff]  }
 0x2eb   :  { %5509 = vmatpush1.bf16.msra.mxu0 %v8558_v55  ;;  %6042 = vmatpush1.bf16.msra.mxu1 %v8561_v56  ;;  %v8646_v55 = vld [vmem:[%s11358_s3 + $0x48] sm:$0xff]  }
 0x2ec   :  { %5510 = vmatprep.subr.bf16.mxu0 %v8566_v47  ;;  %6043 = vmatprep.subr.bf16.mxu1 %v8569_v57  ;;  %v8648_v56 = vld [vmem:[%s11358_s3 + $0x8] sm:$0xff]   ;;  %v8650_v57 = vld [vmem:[%s11358_s3 + $0x50] sm:$0xff]  }
 0x2ed   :  { %v8649_v47 = vld [vmem:[%s11358_s3 + $0x88] sm:$0xff]  }
 0x2ef   :  { %5511 = vmatpush1.bf16.msra.mxu0 %v8564_v58  ;;  %6044 = vmatpush1.bf16.msra.mxu1 %v8567_v59  ;;  %v8651_v58 = vld [vmem:[%s11358_s3 + $0xd0] sm:$0xff]  }
 0x2f0   :  { %5512 = vmatprep.subr.bf16.mxu0 %v8572_v48  ;;  %6045 = vmatprep.subr.bf16.mxu1 %v8575_v61  ;;  %v8652_v59 = vld [vmem:[%s11358_s3 + $0x10] sm:$0xff]   ;;  %v8654_v61 = vld [vmem:[%s11358_s3 + $0x58] sm:$0xff]  }
 0x2f1   :  { %v8653_v48 = vld [vmem:[%s11358_s3 + $0x90] sm:$0xff]  }
 0x2f3   :  { %5513 = vmatpush1.bf16.msra.mxu0 %v8570_v63  ;;  %6046 = vmatpush1.bf16.msra.mxu1 %v8573_v44  ;;  %v8655_v63 = vld [vmem:[%s11358_s3 + $0xd8] sm:$0xff]  }
 0x2f4   :  { %5514 = vmatprep.subr.bf16.mxu0 %v8578_v1  ;;  %6047 = vmatprep.subr.bf16.mxu1 %v8581_v51  ;;  %v8656_v44 = vld [vmem:[%s11358_s3 + $0x18] sm:$0xff]   ;;  %v8658_v51 = vld [vmem:[%s11358_s3 + $0x60] sm:$0xff]  }
 0x2f5   :  { %v8657_v1 = vld [vmem:[%s11358_s3 + $0x98] sm:$0xff]  }
 0x2f7   :  { %5515 = vmatpush1.bf16.msra.mxu0 %v8576_v2  ;;  %6048 = vmatpush1.bf16.msra.mxu1 %v8579_v3  ;;  %v8659_v2 = vld [vmem:[%s11358_s3 + $0xe0] sm:$0xff]  }
 0x2f8   :  { %5516 = vmatprep.subr.bf16.mxu0 %v8584_v4  ;;  %6049 = vmatprep.subr.bf16.mxu1 %v8587_v60  ;;  %v8660_v3 = vld [vmem:[%s11358_s3 + $0x20] sm:$0xff]   ;;  %v8662_v60 = vld [vmem:[%s11358_s3 + $0x68] sm:$0xff]  }
 0x2f9   :  { %v8661_v4 = vld [vmem:[%s11358_s3 + $0xa0] sm:$0xff]  }
 0x2fb   :  { %5517 = vmatpush1.bf16.msra.mxu0 %v8582_v5  ;;  %6050 = vmatpush1.bf16.msra.mxu1 %v8585_v6  ;;  %v8663_v5 = vld [vmem:[%s11358_s3 + $0xe8] sm:$0xff]  }
 0x2fc   :  { %5518 = vmatprep.subr.bf16.mxu0 %v8590_v7  ;;  %6051 = vmatprep.subr.bf16.mxu1 %v8593_v62  ;;  %v8664_v6 = vld [vmem:[%s11358_s3 + $0x28] sm:$0xff]   ;;  %v8666_v62 = vld [vmem:[%s11358_s3 + $0x70] sm:$0xff]  }
 0x2fd   :  { %v8665_v7 = vld [vmem:[%s11358_s3 + $0xa8] sm:$0xff]  }
 0x2ff   :  { %5519 = vmatpush1.bf16.msra.mxu0 %v8588_v9  ;;  %6052 = vmatpush1.bf16.msra.mxu1 %v8591_v10  ;;  %v8667_v9 = vld [vmem:[%s11358_s3 + $0xf0] sm:$0xff]  }
 0x300   :  { %5529 = vmatprep.subr.bf16.mxu0 %v8596_v12  ;;  %6062 = vmatprep.subr.bf16.mxu1 %v8599_v52  ;;  %v8668_v10 = vld [vmem:[%s11358_s3 + $0x30] sm:$0xff]   ;;  %v8670_v52 = vld [vmem:[%s11358_s3 + $0x78] sm:$0xff]  }
 0x301   :  { %v8669_v12 = vld [vmem:[%s11358_s3 + $0xb0] sm:$0xff]  }
 0x302   :  { %5521 = vmatmul.mubr.bf16.vlgmr.msra.gmra.mrb[0].mxu0 %v995_v15  ;;  %6054 = vmatmul.mubr.bf16.vlgmr.msra.gmra.mrb[0].mxu1 %v995_v15  ;;  %v8671_v15 = vld [vmem:[%s11358_s3 + $0xf8] sm:$0xff]  }
 0x303   :  { %5530 = vmatpush1.bf16.msra.mxu0 %v8594_v0  ;;  %6063 = vmatpush1.bf16.msra.mxu1 %v8597_v16  ;;  %v8672_v0 = vld [vmem:[%s11358_s3 + $0x38] sm:$0xff]  }
 0x304   :  { %5531 = vmatprep.subr.bf16.mxu0 %v8602_v8  ;;  %6064 = vmatprep.subr.bf16.mxu1 %v8605_v11  ;;  %v8673_v16 = vld [vmem:[%s11358_s3 + $0xb8] sm:$0xff]   ;;  %v829_v8 = vsub.s32 0, %v8825_v42  ;;  %v837_v11 = vsub.s32 2, %v8825_v42 }
 0x305   :  { %5561 = vmatprep.mubr.bf16.mxu0 %v8677_v22  ;;  %6094 = vmatprep.mubr.bf16.mxu1 %v8677_v22 }
 0x307   :  { %5532 = vmatpush1.bf16.msra.mxu0 %v8600_v17  ;;  %6065 = vmatpush1.bf16.msra.mxu1 %v8603_v18  ;;  %v825_v17 = vld [vmem:[%s11359_s2] sm:$0xf]  ;;  %v833_v18 = vsub.s32 1, %v8825_v42 }
 0x308   :  { %5533 = vmatprep.subr.bf16.mxu0 %v8608_v19  ;;  %6066 = vmatprep.subr.bf16.mxu1 %v8611_v20  ;;  %v841_v19 = vsub.s32 3, %v8825_v42  ;;  %v830_v20 = vrot.slane %v825_v17, %v829_v8  ;;  %v838_v22 = vrot.slane %v825_v17, %v837_v11 }
 0x30b   :  { %5534 = vmatpush1.bf16.msra.mxu0 %v8606_v23  ;;  %6067 = vmatpush1.bf16.msra.mxu1 %v8609_v24  ;;  %v834_v23 = vrot.slane %v825_v17, %v833_v18  ;;  %v842_v24 = vrot.slane %v825_v17, %v841_v19 }
 0x30c   :  { %5535 = vmatprep.subr.bf16.mxu0 %v8614_v13  ;;  %6068 = vmatprep.subr.bf16.mxu1 %v8617_v27 }
 0x30f   :  { %5536 = vmatpush1.bf16.msra.mxu0 %v8612_v28  ;;  %6069 = vmatpush1.bf16.msra.mxu1 %v8615_v29 }
 0x310   :  { %5537 = vmatprep.subr.bf16.mxu0 %v8620_v14  ;;  %6070 = vmatprep.subr.bf16.mxu1 %v8623_v30 }
 0x313   :  { %5538 = vmatpush1.bf16.msra.mxu0 %v8618_v31  ;;  %6071 = vmatpush1.bf16.msra.mxu1 %v8621_v25 }
 0x314   :  { %5539 = vmatprep.subr.bf16.mxu0 %v8626_v32  ;;  %6072 = vmatprep.subr.bf16.mxu1 %v8629_v33 }
 0x317   :  { %5540 = vmatpush1.bf16.msra.mxu0 %v8624_v26  ;;  %6073 = vmatpush1.bf16.msra.mxu1 %v8627_v36 }
 0x318   :  { %5541 = vmatprep.subr.bf16.mxu0 %v8632_v37  ;;  %6074 = vmatprep.subr.bf16.mxu1 %v8635_v21 }
 0x31b   :  { %5542 = vmatpush1.bf16.msra.mxu0 %v8630_v39  ;;  %6075 = vmatpush1.bf16.msra.mxu1 %v8633_v40 }
 0x31c   :  { %5543 = vmatprep.subr.bf16.mxu0 %v8638_v41  ;;  %6076 = vmatprep.subr.bf16.mxu1 %v8641_v34 }
 0x31f   :  { %5544 = vmatpush1.bf16.msra.mxu0 %v8636_v43  ;;  %6077 = vmatpush1.bf16.msra.mxu1 %v8639_v45 }
 0x320   :  { %7293 = vmatprep.subr.bf16.mxu0 %v8642_v35  ;;  %7315 = vmatprep.subr.bf16.mxu1 %v8643_v50  ;;  %v7260_v35 = vld [vmem:[%s11360_s4] ss:$0 sm:$0xff] }
 0x322   :  { %5562 = vmatmul.mubr.bf16.vlgmr.msra.gmra.mrb[0].mxu0 %v1011_v53  ;;  %6095 = vmatmul.mubr.bf16.vlgmr.msra.gmra.mrb[0].mxu1 %v1011_v53 }
 0x323   :  { %7294 = vmatpush3.bf16.msra.mxu0 %v8644_v38  ;;  %7316 = vmatpush3.bf16.msra.mxu1 %v8645_v54 }
 0x324   :  { %7295 = vmatprep.subr.bf16.mxu0 %v8646_v55  ;;  %7317 = vmatprep.subr.bf16.mxu1 %v8647_v49 }
 0x327   :  { %7296 = vmatpush3.bf16.msra.mxu0 %v8648_v56  ;;  %7318 = vmatpush3.bf16.msra.mxu1 %v8649_v47 }
 0x328   :  { %7297 = vmatprep.subr.bf16.mxu0 %v8650_v57  ;;  %7319 = vmatprep.subr.bf16.mxu1 %v8651_v58 }
 0x32b   :  { %7298 = vmatpush3.bf16.msra.mxu0 %v8652_v59  ;;  %7320 = vmatpush3.bf16.msra.mxu1 %v8653_v48 }
 0x32c   :  { %7299 = vmatprep.subr.bf16.mxu0 %v8654_v61  ;;  %7321 = vmatprep.subr.bf16.mxu1 %v8655_v63 }
 0x32f   :  { %7300 = vmatpush3.bf16.msra.mxu0 %v8656_v44  ;;  %7322 = vmatpush3.bf16.msra.mxu1 %v8657_v1 }
 0x330   :  { %7301 = vmatprep.subr.bf16.mxu0 %v8658_v51  ;;  %7323 = vmatprep.subr.bf16.mxu1 %v8659_v2 }
 0x333   :  { %7302 = vmatpush3.bf16.msra.mxu0 %v8660_v3  ;;  %7324 = vmatpush3.bf16.msra.mxu1 %v8661_v4 }
 0x334   :  { %7303 = vmatprep.subr.bf16.mxu0 %v8662_v60  ;;  %7325 = vmatprep.subr.bf16.mxu1 %v8663_v5 }
 0x337   :  { %7304 = vmatpush3.bf16.msra.mxu0 %v8664_v6  ;;  %7326 = vmatpush3.bf16.msra.mxu1 %v8665_v7 }
 0x338   :  { %7305 = vmatprep.subr.bf16.mxu0 %v8666_v62  ;;  %7327 = vmatprep.subr.bf16.mxu1 %v8667_v9 }
 0x33b   :  { %7306 = vmatpush3.bf16.msra.mxu0 %v8668_v10  ;;  %7328 = vmatpush3.bf16.msra.mxu1 %v8669_v12 }
 0x33c   :  { %7307 = vmatprep.subr.bf16.mxu0 %v8670_v52  ;;  %7329 = vmatprep.subr.bf16.mxu1 %v8671_v15 }
 0x33f   :  { %7308 = vmatpush3.bf16.msra.mxu0 %v8672_v0  ;;  %7330 = vmatpush3.bf16.msra.mxu1 %v8673_v16 }
 0x3f5   :  { %v5563_v13 = vpop.f32.mrb[0].mxu0  ;;  %v6096_v27 = vpop.f32.mrb[0].mxu1 }
 0x3f6   :  { %v7337_v28 = vadd.f32 %v5563_v13, %v830_v20  ;;  %v7339_v29 = vadd.f32 %v6096_v27, %v838_v22  ;;  %v5565_v14 = vpop.f32.mrb[1].mxu0  ;;  %v6098_v30 = vpop.f32.mrb[1].mxu1 }
 0x3f7   :  { %v7338_v31 = vadd.f32 %v5565_v14, %v834_v23  ;;  %v7340_v25 = vadd.f32 %v6098_v30, %v842_v24  ;;  %v5567_v32 = vpop.f32.mrb[2].mxu0  ;;  %v6100_v33 = vpop.f32.mrb[2].mxu1 }
 0x3f8   :  { %v6103_v26 = vmax.f32 %v7337_v28, 0.0  ;;  %v6105_v36 = vmax.f32 %v7339_v29, 0.0  ;;  %v5568_v37 = vpop.f32.mrb[3].mxu0  ;;  %v6101_v21 = vpop.f32.mrb[3].mxu1 }
 0x3f9   :  { %v6104_v39 = vmax.f32 %v7338_v31, 0.0  ;;  %v6106_v42 = vmax.f32 %v7340_v25, 0.0 }
 0x3fa   :  { %v6107_v34 = vpack.c.bf16 %v6103_v26, %v6103_v26  ;;  %v6109_v43 = vpack.c.bf16 %v6105_v36, %v6105_v36 }
 0x3fb   :  { %v6108_v40 = vpack.c.bf16 %v6104_v39, %v6104_v39  ;;  %v6110_v41 = vpack.c.bf16 %v6106_v42, %v6106_v42 }
 0x3fd   :  { %6406 = vmatprep.mubr.bf16.mxu0 %v6108_v40  ;;  %6446 = vmatprep.mubr.bf16.mxu1 %v6110_v41 }
 0x3fe   :  { %6407 = vmatmul.mubr.bf16.vlgmr.msra.gmra.mrb[4].mxu0 %v6107_v34  ;;  %6447 = vmatmul.mubr.bf16.vlgmr.msra.gmra.mrb[4].mxu1 %v6109_v43 }
 0x4d1   :  { %v7309_v45 = vpop.f32.mrb[4].mxu0  ;;  %v7331_v46 = vpop.f32.mrb[4].mxu1 }
 0x4d2   :  { %v7310_v50 = vpop.f32.mrb[5].mxu0  ;;  %v7332_v53 = vpop.f32.mrb[5].mxu1 }
 0x4d3   :  { %v7311_v38 = vadd.f32 %v7310_v50, %v7309_v45  ;;  %v7333_v54 = vadd.f32 %v7332_v53, %v7331_v46  ;;  %v7312_v55 = vpop.f32.mrb[6].mxu0  ;;  %v7334_v49 = vpop.f32.mrb[6].mxu1 }
 0x4d4   :  { %v7313_v56 = vpop.f32.mrb[7].mxu0  ;;  %v7335_v47 = vpop.f32.mrb[7].mxu1 }
 0x4d5   :  { %v6409_v57 = vadd.f32 %v7311_v38, %v7260_v35 }
 0x4d7   :  { %v6449_v58 = vadd.f32 %v7333_v54, %v6409_v57 }
 0x4d9   :  { %6454 = vst [vmem:[%s11361_s5] sm:$0x3] %v6449_v58 }

</bundles_post_ra>
